<compile_context>
chip_gen: v7x
topology: tpu7x:2x2x1
jax: 0.10.0
libtpu: 0.0.40
codegen_flags: <defaults>
</compile_context>

<pallas_src>
import numpy as np
import jax
import jax.numpy as jnp
from jax.experimental import pallas as pl
from jax.experimental.pallas import tpu as pltpu


# ----------------------------------------------------------------------------
# conv_output_shape (ported verbatim, no torch)
# ----------------------------------------------------------------------------
def conv_output_shape(input_w, stride, first_kernel_size, second_kernel_size,
                      padding_size, scale):
    w_res = int((input_w + 2 * padding_size - (first_kernel_size - 1) - 1) / stride + 1)
    w_list = [w_res]
    w = w_res
    for _ in range(scale):
        w_temp = int((w + 2 * padding_size - (second_kernel_size - 1) - 1) / stride + 1)
        w_list.append(w_temp)
        w = w_temp
    out_paddings = []
    for i in range(len(w_list)):
        if i > 0 and w_list[i - 1] % 2 == 1:
            out_paddings.append((0, 0))
        elif i == 0:
            out_paddings.append((0, 0))
        else:
            out_paddings.append((0, 1))
    return out_paddings


# ----------------------------------------------------------------------------
# Host-side constant 0/1 resampling matrices.  Only the df=0 tap is needed
# (one matrix per f_in); other taps are produced in-kernel by lane shifts.
# Activations are flattened per batch element as (C, P) with P = T*F, F fastest.
# ----------------------------------------------------------------------------
def _conv_sel_np(T, f_in, kw):
    # (x @ S0)[c, t*f_out + j] == x[c, t*f_in + 2*j]   (stride-2 freq gather)
    f_out = (f_in - kw) // 2 + 1
    S = np.zeros((T * f_in, T * f_out), np.float32)
    for t in range(T):
        for j in range(f_out):
            S[t * f_in + 2 * j, t * f_out + j] = 1.0
    return S


def _deconv_sel_np(T, f_in, kw, opad):
    # (x @ R0)[c, t*f_out + 2*j] == x[c, t*f_in + j]   (stride-2 freq scatter)
    f_out = (f_in - 1) * 2 + kw + opad
    R = np.zeros((T * f_in, T * f_out), np.float32)
    for t in range(T):
        for j in range(f_in):
            R[t * f_in + j, t * f_out + 2 * j] = 1.0
    return R


def _round_up(n, m):
    return ((n + m - 1) // m) * m


# ----------------------------------------------------------------------------
# Fused whole-encoder Pallas kernel (one grid step == one batch element)
# ----------------------------------------------------------------------------
def _make_kernel(plan, n_sel, intra_connect):
    def _dot(a, b):
        return jnp.dot(a.astype(jnp.bfloat16), b.astype(jnp.bfloat16),
                       preferred_element_type=jnp.float32)

    def _shift_lanes(x, k):
        # out[:, q] = x[:, q + k]; vacated lanes are zero.  Static slice + concat
        # only (lane relayout, no MXU, no O(P^2) constants).
        if k == 0:
            return x
        pad = jnp.zeros((x.shape[0], abs(k)), x.dtype)
        if k > 0:
            return jnp.concatenate([x[:, k:], pad], axis=1)
        return jnp.concatenate([pad, x[:, :k]], axis=1)

    def kernel(*refs):
        o_ref = refs[-1]
        x_ref = refs[0]
        sel_refs = refs[1:1 + n_sel]
        w_ref = refs[1 + n_sel]
        v_ref = refs[2 + n_sel]

        def run_layer(x, d):
            # x: (Cin, P_in) f32. One fused conv/gate-conv/deconv + IN + PReLU.
            kw, kh, ct, cout = d['kw'], d['kh'], d['ct'], d['cout']
            xb = x.astype(jnp.bfloat16)          # one bf16 rounding per layer
            S = sel_refs[d['sel']][...]
            if d['kind'] == 'conv':
                # 1a) freq taps as lane-shifted copies stacked on sublanes,
                #     then ONE stride-2 gather matmul against the shared matrix.
                stk = jnp.concatenate(
                    [_shift_lanes(xb, df) for df in range(kw)], axis=0)
                z0 = _dot(stk, S)                # (kw*Cin, P_out), exact copies
            else:
                # 1b) deconv: ONE stride-2 scatter matmul, then per-tap lane shift.
                g = _dot(xb, S).astype(jnp.bfloat16)       # exact (0/1 matrix)
                z0 = jnp.concatenate(
                    [_shift_lanes(g, -df) for df in range(kw)], axis=0)
            # 2) conv as a single lane-dense matmul over all time taps/gate rows.
            W = w_ref[pl.ds(d['w_off'], kh * ct), pl.ds(0, d['K'])]
            y_all = _dot(W, z0)                  # (kh*ct, P_out) f32
            y = y_all[(kh - 1) * ct:]
            if kh == 2:
                # causal time tap: shift the f32 dt=0 partial one frame, zeros
                # for t == 0 (replaces the old (P x P) tshift matmul).
                y = y + _shift_lanes(y_all[:ct], -d['f_out'])
            # 3) bias (+ sigmoid gating for GateConv2d), all in f32
            vb = v_ref[pl.ds(d['v_off'], cout), :]   # [gamma, beta, alpha, b, b_g]
            if d['gate']:
                y = (y[:cout] + vb[:, 3:4]) * jax.nn.sigmoid(y[cout:] + vb[:, 4:5])
            else:
                y = y + vb[:, 3:4]
            # 4) InstanceNorm2d(affine, eps=1e-5, biased var) over lanes with
            #    single-pass stats, + PReLU.
            s1 = jnp.mean(y, axis=1, keepdims=True)
            s2 = jnp.mean(y * y, axis=1, keepdims=True)
            var = jnp.maximum(s2 - s1 * s1, 0.0)
            yn = (y - s1) * jax.lax.rsqrt(var + 1e-5)
            yn = yn * vb[:, 0:1] + vb[:, 1:2]
            return jnp.where(yn >= 0.0, yn, vb[:, 2:3] * yn)

        x = x_ref[0]
        for unet in plan['unets']:
            x_resi = run_layer(x, unet['gate'])
            x = x_resi
            skips = []
            for d in unet['enco']:
                x = run_layer(x, d)
                skips.append(x)
            for i, d in enumerate(unet['deco']):
                if i == 0:
                    xin = x
                elif intra_connect == 'cat':
                    xin = jnp.concatenate([x, skips[-(i + 1)]], axis=0)
                else:  # 'add'
                    xin = x + skips[-(i + 1)]
                x = run_layer(xin, d)
            x = x_resi + x
        # TODO(synk): final (64, T) store is lane-sparse (masked vst); ~2 KB per
        # batch element, intentionally left as-is (low-priority review item).
        o_ref[0] = run_layer(x, plan['last'])

    return kernel


# ----------------------------------------------------------------------------
# Build: plan + packed weights + constant matrices + pallas_call wrapper
# ----------------------------------------------------------------------------
def build_u2net_encoder(params, *, cin, k1, k2, c, n_fft, T, intra_connect):
    F0 = n_fft // 2 + 1
    k_beg = (2, 5)
    c_end = 64
    out_pads = conv_output_shape(F0, 2, k_beg[1], k2[1], 0, 4)
    cins = [cin, c, c, c]
    k1s = [k_beg, k1, k1, k1]
    cin0_eff = _round_up(cin, 8)

    sel_mats, sel_index = [], {}

    def sel_id(key, build):
        if key not in sel_index:
            sel_index[key] = len(sel_mats)
            sel_mats.append(jnp.asarray(build(), dtype=jnp.bfloat16))
        return sel_index[key]

    # All conv/deconv weights -> ONE bf16 buffer (static row offsets), all
    # per-channel vectors -> ONE f32 buffer.
    w_blocks, v_blocks = [], []
    w_off_cur, v_off_cur = [0], [0]

    def add_w(blk):
        off = w_off_cur[0]
        w_blocks.append(blk)
        w_off_cur[0] += blk.shape[0]
        return off

    def add_v(gamma, beta, alpha, b_main, b_gate):
        off = v_off_cur[0]
        v_blocks.append(jnp.stack([gamma, beta, alpha, b_main, b_gate],
                                  axis=1).astype(jnp.float32))
        v_off_cur[0] += v_blocks[-1].shape[0]
        return off

    def make_conv(w, b, gamma, beta, alpha, kh, kw, cin_l, cin_eff, cout, f_in, gate):
        f_out = (f_in - kw) // 2 + 1
        ct = 2 * cout if gate else cout
        wj = jnp.asarray(w, jnp.float32)
        if cin_eff > cin_l:                                  # pad Cin to sublane tile
            wj = jnp.pad(wj, ((0, 0), (0, cin_eff - cin_l), (0, 0), (0, 0)))
        # (ct, Cin, kh, kw) -> (kh*ct, kw*Cin); row = dt*ct + co, col = df*Cin + ci
        wpk = jnp.transpose(wj, (2, 0, 3, 1)).reshape(kh * ct, kw * cin_eff)
        b = jnp.asarray(b, jnp.float32)
        zero = jnp.zeros((cout,), jnp.float32)
        d = {
            'kind': 'conv', 'kh': kh, 'kw': kw, 'cout': cout, 'ct': ct, 'gate': gate,
            'K': kw * cin_eff, 'f_out': f_out,
            'sel': sel_id(('c', f_in, kw), lambda: _conv_sel_np(T, f_in, kw)),
            'w_off': add_w(wpk),
            'v_off': add_v(gamma, beta, alpha,
                           b[:cout] if gate else b,
                           b[cout:] if gate else zero),
        }
        return d, f_out

    def make_deconv(wt, b, gamma, beta, alpha, kw, cin_l, cout, f_in, opad):
        f_out = (f_in - 1) * 2 + kw + opad
        # (Cin, Cout, 1, kw) -> (Cout, kw*Cin); col = df*Cin + ci
        wpk = jnp.transpose(jnp.asarray(wt, jnp.float32),
                            (2, 1, 3, 0)).reshape(cout, kw * cin_l)
        zero = jnp.zeros((cout,), jnp.float32)
        d = {
            'kind': 'deconv', 'kh': 1, 'kw': kw, 'cout': cout, 'ct': cout,
            'gate': False, 'K': kw * cin_l, 'f_out': f_out,
            'sel': sel_id(('d', f_in, kw, opad),
                          lambda: _deconv_sel_np(T, f_in, kw, opad)),
            'w_off': add_w(wpk),
            'v_off': add_v(gamma, beta, alpha, jnp.asarray(b, jnp.float32), zero),
        }
        return d, f_out

    plan = {'unets': [], 'last': None}
    F = F0
    for u in range(4):
        up = params['unets'][u]
        kh1, kw1 = k1s[u]
        cin_l = cins[u]
        cin_eff = cin0_eff if u == 0 else cin_l
        gate_desc, F_gate = make_conv(up['in_w'], up['in_b'], up['in_gamma'],
                                      up['in_beta'], up['in_alpha'],
                                      kh1, kw1, cin_l, cin_eff, c, F, gate=True)
        F = F_gate
        enco_descs = []
        for e in up['enco']:
            d, F = make_conv(e['w'], e['b'], e['gamma'], e['beta'], e['alpha'],
                             k2[0], k2[1], c, c, c, F, gate=False)
            enco_descs.append(d)
        deco_descs = []
        for i, dc in enumerate(up['deco']):
            cin_d = c if i == 0 else (2 * c if intra_connect == 'cat' else c)
            opad_t, opad_f = out_pads[-(i + 1)]
            assert opad_t == 0
            d, F = make_deconv(dc['w'], dc['b'], dc['gamma'], dc['beta'], dc['alpha'],
                               k2[1], cin_d, c, F, opad_f)
            deco_descs.append(d)
        assert F == F_gate, (F, F_gate)
        plan['unets'].append({'gate': gate_desc, 'enco': enco_descs,
                              'deco': deco_descs})
    lp = params['last']
    plan['last'], F_last = make_conv(lp['w'], lp['b'], lp['gamma'], lp['beta'],
                                     lp['alpha'], k1[0], k1[1], c, c, c_end, F,
                                     gate=True)

    k_max = max(blk.shape[1] for blk in w_blocks)
    w_packed = jnp.concatenate(
        [jnp.pad(blk, ((0, 0), (0, k_max - blk.shape[1]))) for blk in w_blocks],
        axis=0).astype(jnp.bfloat16)
    v_packed = jnp.concatenate(v_blocks, axis=0)

    kernel = _make_kernel(plan, len(sel_mats), intra_connect)
    P0, P_last = T * F0, T * F_last
    consts = sel_mats + [w_packed, v_packed]

    def forward(x):
        B = x.shape[0]
        x_flat = x.reshape(B, cin, P0).astype(jnp.float32)
        if cin0_eff > cin:
            x_flat = jnp.pad(x_flat, ((0, 0), (0, cin0_eff - cin), (0, 0)))
        in_specs = [pl.BlockSpec((1, cin0_eff, P0), lambda b: (b, 0, 0))]
        for a in consts:
            # Constants: same block every grid step (~1.3 MiB total after packing).
            # TODO(synk): pipeline_mode=pl.Buffered(1) would single-buffer them.
            in_specs.append(pl.BlockSpec(a.shape, lambda b: (0, 0)))
        out = pl.pallas_call(
            kernel,
            out_shape=jax.ShapeDtypeStruct((B, c_end, P_last), jnp.float32),
            grid=(B,),
            in_specs=in_specs,
            out_specs=pl.BlockSpec((1, c_end, P_last), lambda b: (b, 0, 0)),
            compiler_params=pltpu.CompilerParams(
                dimension_semantics=("parallel",),
                vmem_limit_bytes=32 * 1024 * 1024),
        )(x_flat, *consts)
        return out.reshape(B, c_end, T, F_last)

    return forward


# ----------------------------------------------------------------------------
# Deterministic parameter construction (shapes follow the PyTorch __init__)
# ----------------------------------------------------------------------------
def _winit(key, shape, scale=0.1):
    return scale * jax.random.normal(key, shape, dtype=jnp.float32)


def init_u2net_encoder_params(key, cin, k1, k2, c, intra_connect):
    k_beg = (2, 5)
    c_end = 64
    scales = [4, 3, 2, 1]
    cins = [cin, c, c, c]
    k1s = [k_beg, k1, k1, k1]

    keys = jax.random.split(key, 64)
    kit = iter(range(64))
    nk = lambda: keys[next(kit)]
    ones = lambda n: jnp.ones((n,), jnp.float32)
    zeros = lambda n: jnp.zeros((n,), jnp.float32)
    prelu = lambda n: jnp.full((n,), 0.25, jnp.float32)

    unets = []
    for u in range(4):
        sc = scales[u]
        kh1, kw1 = k1s[u]
        unet = {
            'in_w': _winit(nk(), (2 * c, cins[u], kh1, kw1)),
            'in_b': _winit(nk(), (2 * c,)),
            'in_gamma': ones(c), 'in_beta': zeros(c), 'in_alpha': prelu(c),
            'enco': [], 'deco': [],
        }
        for _ in range(sc):
            unet['enco'].append(dict(w=_winit(nk(), (c, c, k2[0], k2[1])),
                                     b=_winit(nk(), (c,)),
                                     gamma=ones(c), beta=zeros(c), alpha=prelu(c)))
        for i in range(sc):
            cin_d = c if i == 0 else (2 * c if intra_connect == 'cat' else c)
            unet['deco'].append(dict(w=_winit(nk(), (cin_d, c, k2[0], k2[1])),
                                     b=_winit(nk(), (c,)),
                                     gamma=ones(c), beta=zeros(c), alpha=prelu(c)))
        unets.append(unet)
    last = dict(w=_winit(nk(), (2 * c_end, c, k1[0], k1[1])),
                b=_winit(nk(), (2 * c_end,)),
                gamma=ones(c_end), beta=zeros(c_end), alpha=prelu(c_end))
    return dict(unets=unets, last=last)


# ----------------------------------------------------------------------------
if __name__ == "__main__":
    cin, c, n_fft = 2, 16, 160
    k1, k2 = (2, 3), (1, 3)
    intra_connect = 'cat'      # norm_type = 'IN'
    B, T = 2, 8
    F = n_fft // 2 + 1         # 81 frequency bins

    key = jax.random.PRNGKey(0)
    kx, kp = jax.random.split(key)
    x = jax.random.normal(kx, (B, cin, T, F), dtype=jnp.float32)
    params = init_u2net_encoder_params(kp, cin, k1, k2, c, intra_connect)

    forward = build_u2net_encoder(params, cin=cin, k1=k1, k2=k2, c=c,
                                  n_fft=n_fft, T=T, intra_connect=intra_connect)
    y = jax.block_until_ready(forward(x))

    assert y.shape == (B, 64, T, 1), y.shape
    assert bool(jnp.all(jnp.isfinite(y)))
    print("KERNEL_OK")
</pallas_src>

<mosaic_0001>
module attributes {stable_mosaic.version = 11 : i64} {
  func.func @kernel(%arg0: i32, %arg1: memref<1x8x648xf32, #tpu.memory_space<vmem>>, %arg2: memref<648x312xbf16, #tpu.memory_space<vmem>>, %arg3: memref<312x152xbf16, #tpu.memory_space<vmem>>, %arg4: memref<152x72xbf16, #tpu.memory_space<vmem>>, %arg5: memref<72x32xbf16, #tpu.memory_space<vmem>>, %arg6: memref<32x8xbf16, #tpu.memory_space<vmem>>, %arg7: memref<8x32xbf16, #tpu.memory_space<vmem>>, %arg8: memref<32x72xbf16, #tpu.memory_space<vmem>>, %arg9: memref<72x152xbf16, #tpu.memory_space<vmem>>, %arg10: memref<152x312xbf16, #tpu.memory_space<vmem>>, %arg11: memref<832x96xbf16, #tpu.memory_space<vmem>>, %arg12: memref<448x5xf32, #tpu.memory_space<vmem>>, %arg13: memref<1x64x8xf32, #tpu.memory_space<vmem>>) attributes {dimension_semantics = [#tpu.dimension_semantics<parallel>], iteration_bounds = array<i64: 2>, scalar_prefetch = 0 : i64, scratch_operands = 0 : i64, tpu.core_type = #tpu.core_type<tc>, window_params = [{transform_indices = @transform_0, window_bounds = array<i64: 1, 8, 648>}, {pipeline_mode = #tpu.pipeline_mode<synchronous>, transform_indices = @transform_1, window_bounds = array<i64: 648, 312>}, {pipeline_mode = #tpu.pipeline_mode<synchronous>, transform_indices = @transform_2, window_bounds = array<i64: 312, 152>}, {pipeline_mode = #tpu.pipeline_mode<synchronous>, transform_indices = @transform_3, window_bounds = array<i64: 152, 72>}, {pipeline_mode = #tpu.pipeline_mode<synchronous>, transform_indices = @transform_4, window_bounds = array<i64: 72, 32>}, {pipeline_mode = #tpu.pipeline_mode<synchronous>, transform_indices = @transform_5, window_bounds = array<i64: 32, 8>}, {pipeline_mode = #tpu.pipeline_mode<synchronous>, transform_indices = @transform_6, window_bounds = array<i64: 8, 32>}, {pipeline_mode = #tpu.pipeline_mode<synchronous>, transform_indices = @transform_7, window_bounds = array<i64: 32, 72>}, {pipeline_mode = #tpu.pipeline_mode<synchronous>, transform_indices = @transform_8, window_bounds = array<i64: 72, 152>}, {pipeline_mode = #tpu.pipeline_mode<synchronous>, transform_indices = @transform_9, window_bounds = array<i64: 152, 312>}, {pipeline_mode = #tpu.pipeline_mode<synchronous>, transform_indices = @transform_10, window_bounds = array<i64: 832, 96>}, {pipeline_mode = #tpu.pipeline_mode<synchronous>, transform_indices = @transform_11, window_bounds = array<i64: 448, 5>}, {transform_indices = @transform_12, window_bounds = array<i64: 1, 64, 8>}]} {
    %c0 = arith.constant 0 : index
    %c0_0 = arith.constant 0 : index
    %c0_1 = arith.constant 0 : index
    %0 = vector.load %arg1[%c0, %c0_0, %c0_1] : memref<1x8x648xf32, #tpu.memory_space<vmem>>, vector<1x8x648xf32>
    %1 = vector.shape_cast %0 : vector<1x8x648xf32> to vector<8x648xf32>
    %2 = arith.truncf %1 : vector<8x648xf32> to vector<8x648xbf16>
    %c0_2 = arith.constant 0 : index
    %c0_3 = arith.constant 0 : index
    %3 = vector.load %arg2[%c0_2, %c0_3] : memref<648x312xbf16, #tpu.memory_space<vmem>>, vector<648x312xbf16>
    %cst = arith.constant 0.000000e+00 : bf16
    %4 = vector.broadcast %cst : bf16 to vector<8x1xbf16>
    %5 = vector.extract_strided_slice %2 {offsets = [0, 1], sizes = [8, 647], strides = [1, 1]} : vector<8x648xbf16> to vector<8x647xbf16>
    %6 = tpu.concatenate %5, %4 in 1 : vector<8x647xbf16>, vector<8x1xbf16> -> vector<8x648xbf16>
    %cst_4 = arith.constant 0.000000e+00 : bf16
    %7 = vector.broadcast %cst_4 : bf16 to vector<8x2xbf16>
    %8 = vector.extract_strided_slice %2 {offsets = [0, 2], sizes = [8, 646], strides = [1, 1]} : vector<8x648xbf16> to vector<8x646xbf16>
    %9 = tpu.concatenate %8, %7 in 1 : vector<8x646xbf16>, vector<8x2xbf16> -> vector<8x648xbf16>
    %cst_5 = arith.constant 0.000000e+00 : bf16
    %10 = vector.broadcast %cst_5 : bf16 to vector<8x3xbf16>
    %11 = vector.extract_strided_slice %2 {offsets = [0, 3], sizes = [8, 645], strides = [1, 1]} : vector<8x648xbf16> to vector<8x645xbf16>
    %12 = tpu.concatenate %11, %10 in 1 : vector<8x645xbf16>, vector<8x3xbf16> -> vector<8x648xbf16>
    %cst_6 = arith.constant 0.000000e+00 : bf16
    %13 = vector.broadcast %cst_6 : bf16 to vector<8x4xbf16>
    %14 = vector.extract_strided_slice %2 {offsets = [0, 4], sizes = [8, 644], strides = [1, 1]} : vector<8x648xbf16> to vector<8x644xbf16>
    %15 = tpu.concatenate %14, %13 in 1 : vector<8x644xbf16>, vector<8x4xbf16> -> vector<8x648xbf16>
    %16 = tpu.concatenate %2, %6, %9, %12, %15 in 0 : vector<8x648xbf16>, vector<8x648xbf16>, vector<8x648xbf16>, vector<8x648xbf16>, vector<8x648xbf16> -> vector<40x648xbf16>
    %cst_7 = arith.constant dense<0.000000e+00> : vector<40x312xf32>
    %17 = tpu.matmul %16, %3, %cst_7 {dimension_numbers = #tpu.dot_dimension_numbers<[1], [0], [0], [1], [0, 0, 1, 1], [], []>} : vector<40x648xbf16>, vector<648x312xbf16>, vector<40x312xf32> -> vector<40x312xf32>
    %c0_8 = arith.constant 0 : index
    %c0_9 = arith.constant 0 : index
    %18 = vector.load %arg11[%c0_8, %c0_9] : memref<832x96xbf16, #tpu.memory_space<vmem>>, vector<64x40xbf16>
    %19 = arith.truncf %17 : vector<40x312xf32> to vector<40x312xbf16>
    %cst_10 = arith.constant dense<0.000000e+00> : vector<64x312xf32>
    %20 = tpu.matmul %18, %19, %cst_10 {dimension_numbers = #tpu.dot_dimension_numbers<[1], [0], [0], [1], [0, 0, 1, 1], [], []>} : vector<64x40xbf16>, vector<40x312xbf16>, vector<64x312xf32> -> vector<64x312xf32>
    %21 = vector.extract_strided_slice %20 {offsets = [32, 0], sizes = [32, 312], strides = [1, 1]} : vector<64x312xf32> to vector<32x312xf32>
    %22 = vector.extract_strided_slice %20 {offsets = [0, 0], sizes = [32, 312], strides = [1, 1]} : vector<64x312xf32> to vector<32x312xf32>
    %cst_11 = arith.constant 0.000000e+00 : f32
    %23 = vector.broadcast %cst_11 : f32 to vector<32x39xf32>
    %24 = vector.extract_strided_slice %22 {offsets = [0, 0], sizes = [32, 273], strides = [1, 1]} : vector<32x312xf32> to vector<32x273xf32>
    %25 = tpu.concatenate %23, %24 in 1 : vector<32x39xf32>, vector<32x273xf32> -> vector<32x312xf32>
    %26 = arith.addf %21, %25 : vector<32x312xf32>
    %c0_12 = arith.constant 0 : index
    %c0_13 = arith.constant 0 : index
    %27 = vector.load %arg12[%c0_12, %c0_13] : memref<448x5xf32, #tpu.memory_space<vmem>>, vector<16x5xf32>
    %28 = vector.extract_strided_slice %26 {offsets = [0, 0], sizes = [16, 312], strides = [1, 1]} : vector<32x312xf32> to vector<16x312xf32>
    %29 = vector.extract_strided_slice %27 {offsets = [0, 3], sizes = [16, 1], strides = [1, 1]} : vector<16x5xf32> to vector<16x1xf32>
    %30 = vector.broadcast %29 : vector<16x1xf32> to vector<16x312xf32>
    %31 = arith.addf %28, %30 : vector<16x312xf32>
    %32 = vector.extract_strided_slice %26 {offsets = [16, 0], sizes = [16, 312], strides = [1, 1]} : vector<32x312xf32> to vector<16x312xf32>
    %33 = vector.extract_strided_slice %27 {offsets = [0, 4], sizes = [16, 1], strides = [1, 1]} : vector<16x5xf32> to vector<16x1xf32>
    %34 = vector.broadcast %33 : vector<16x1xf32> to vector<16x312xf32>
    %35 = arith.addf %32, %34 : vector<16x312xf32>
    %36 = arith.negf %35 : vector<16x312xf32>
    %37 = math.exp %36 : vector<16x312xf32>
    %cst_14 = arith.constant 1.000000e+00 : f32
    %38 = vector.broadcast %cst_14 : f32 to vector<16x312xf32>
    %39 = arith.addf %38, %37 : vector<16x312xf32>
    %40 = arith.divf %38, %39 : vector<16x312xf32>
    %41 = arith.mulf %31, %40 : vector<16x312xf32>
    %cst_15 = arith.constant dense<0.000000e+00> : vector<16xf32>
    %42 = vector.multi_reduction <add>, %41, %cst_15 [1] : vector<16x312xf32> to vector<16xf32>
    %43 = vector.shape_cast %42 : vector<16xf32> to vector<16x1xf32>
    %cst_16 = arith.constant 3.120000e+02 : f32
    %44 = vector.broadcast %cst_16 : f32 to vector<16x1xf32>
    %45 = arith.divf %43, %44 : vector<16x1xf32>
    %46 = arith.mulf %41, %41 : vector<16x312xf32>
    %cst_17 = arith.constant dense<0.000000e+00> : vector<16xf32>
    %47 = vector.multi_reduction <add>, %46, %cst_17 [1] : vector<16x312xf32> to vector<16xf32>
    %48 = vector.shape_cast %47 : vector<16xf32> to vector<16x1xf32>
    %cst_18 = arith.constant 3.120000e+02 : f32
    %49 = vector.broadcast %cst_18 : f32 to vector<16x1xf32>
    %50 = arith.divf %48, %49 : vector<16x1xf32>
    %51 = arith.mulf %45, %45 : vector<16x1xf32>
    %52 = arith.subf %50, %51 : vector<16x1xf32>
    %cst_19 = arith.constant 0.000000e+00 : f32
    %53 = vector.broadcast %cst_19 : f32 to vector<16x1xf32>
    %54 = arith.maximumf %52, %53 : vector<16x1xf32>
    %55 = vector.broadcast %45 : vector<16x1xf32> to vector<16x312xf32>
    %56 = arith.subf %41, %55 : vector<16x312xf32>
    %cst_20 = arith.constant 9.99999974E-6 : f32
    %57 = vector.broadcast %cst_20 : f32 to vector<16x1xf32>
    %58 = arith.addf %54, %57 : vector<16x1xf32>
    %59 = math.rsqrt %58 : vector<16x1xf32>
    %60 = vector.broadcast %59 : vector<16x1xf32> to vector<16x312xf32>
    %61 = arith.mulf %56, %60 : vector<16x312xf32>
    %62 = vector.extract_strided_slice %27 {offsets = [0, 0], sizes = [16, 1], strides = [1, 1]} : vector<16x5xf32> to vector<16x1xf32>
    %63 = vector.broadcast %62 : vector<16x1xf32> to vector<16x312xf32>
    %64 = arith.mulf %61, %63 : vector<16x312xf32>
    %65 = vector.extract_strided_slice %27 {offsets = [0, 1], sizes = [16, 1], strides = [1, 1]} : vector<16x5xf32> to vector<16x1xf32>
    %66 = vector.broadcast %65 : vector<16x1xf32> to vector<16x312xf32>
    %67 = arith.addf %64, %66 : vector<16x312xf32>
    %cst_21 = arith.constant 0.000000e+00 : f32
    %68 = vector.broadcast %cst_21 : f32 to vector<16x312xf32>
    %69 = arith.cmpf oge, %67, %68 : vector<16x312xf32>
    %70 = vector.extract_strided_slice %27 {offsets = [0, 2], sizes = [16, 1], strides = [1, 1]} : vector<16x5xf32> to vector<16x1xf32>
    %71 = vector.broadcast %70 : vector<16x1xf32> to vector<16x312xf32>
    %72 = arith.mulf %71, %67 : vector<16x312xf32>
    %73 = arith.select %69, %67, %72 : vector<16x312xi1>, vector<16x312xf32>
    %74 = arith.truncf %73 : vector<16x312xf32> to vector<16x312xbf16>
    %c0_22 = arith.constant 0 : index
    %c0_23 = arith.constant 0 : index
    %75 = vector.load %arg3[%c0_22, %c0_23] : memref<312x152xbf16, #tpu.memory_space<vmem>>, vector<312x152xbf16>
    %cst_24 = arith.constant 0.000000e+00 : bf16
    %76 = vector.broadcast %cst_24 : bf16 to vector<16x1xbf16>
    %77 = vector.extract_strided_slice %74 {offsets = [0, 1], sizes = [16, 311], strides = [1, 1]} : vector<16x312xbf16> to vector<16x311xbf16>
    %78 = tpu.concatenate %77, %76 in 1 : vector<16x311xbf16>, vector<16x1xbf16> -> vector<16x312xbf16>
    %cst_25 = arith.constant 0.000000e+00 : bf16
    %79 = vector.broadcast %cst_25 : bf16 to vector<16x2xbf16>
    %80 = vector.extract_strided_slice %74 {offsets = [0, 2], sizes = [16, 310], strides = [1, 1]} : vector<16x312xbf16> to vector<16x310xbf16>
    %81 = tpu.concatenate %80, %79 in 1 : vector<16x310xbf16>, vector<16x2xbf16> -> vector<16x312xbf16>
    %82 = tpu.concatenate %74, %78, %81 in 0 : vector<16x312xbf16>, vector<16x312xbf16>, vector<16x312xbf16> -> vector<48x312xbf16>
    %cst_26 = arith.constant dense<0.000000e+00> : vector<48x152xf32>
    %83 = tpu.matmul %82, %75, %cst_26 {dimension_numbers = #tpu.dot_dimension_numbers<[1], [0], [0], [1], [0, 0, 1, 1], [], []>} : vector<48x312xbf16>, vector<312x152xbf16>, vector<48x152xf32> -> vector<48x152xf32>
    %c64 = arith.constant 64 : index
    %c0_27 = arith.constant 0 : index
    %84 = vector.load %arg11[%c64, %c0_27] : memref<832x96xbf16, #tpu.memory_space<vmem>>, vector<16x48xbf16>
    %85 = arith.truncf %83 : vector<48x152xf32> to vector<48x152xbf16>
    %cst_28 = arith.constant dense<0.000000e+00> : vector<16x152xf32>
    %86 = tpu.matmul %84, %85, %cst_28 {dimension_numbers = #tpu.dot_dimension_numbers<[1], [0], [0], [1], [0, 0, 1, 1], [], []>} : vector<16x48xbf16>, vector<48x152xbf16>, vector<16x152xf32> -> vector<16x152xf32>
    %c16 = arith.constant 16 : index
    %c0_29 = arith.constant 0 : index
    %87 = vector.load %arg12[%c16, %c0_29] : memref<448x5xf32, #tpu.memory_space<vmem>>, vector<16x5xf32>
    %88 = vector.extract_strided_slice %87 {offsets = [0, 3], sizes = [16, 1], strides = [1, 1]} : vector<16x5xf32> to vector<16x1xf32>
    %89 = vector.broadcast %88 : vector<16x1xf32> to vector<16x152xf32>
    %90 = arith.addf %86, %89 : vector<16x152xf32>
    %cst_30 = arith.constant dense<0.000000e+00> : vector<16xf32>
    %91 = vector.multi_reduction <add>, %90, %cst_30 [1] : vector<16x152xf32> to vector<16xf32>
    %92 = vector.shape_cast %91 : vector<16xf32> to vector<16x1xf32>
    %cst_31 = arith.constant 1.520000e+02 : f32
    %93 = vector.broadcast %cst_31 : f32 to vector<16x1xf32>
    %94 = arith.divf %92, %93 : vector<16x1xf32>
    %95 = arith.mulf %90, %90 : vector<16x152xf32>
    %cst_32 = arith.constant dense<0.000000e+00> : vector<16xf32>
    %96 = vector.multi_reduction <add>, %95, %cst_32 [1] : vector<16x152xf32> to vector<16xf32>
    %97 = vector.shape_cast %96 : vector<16xf32> to vector<16x1xf32>
    %cst_33 = arith.constant 1.520000e+02 : f32
    %98 = vector.broadcast %cst_33 : f32 to vector<16x1xf32>
    %99 = arith.divf %97, %98 : vector<16x1xf32>
    %100 = arith.mulf %94, %94 : vector<16x1xf32>
    %101 = arith.subf %99, %100 : vector<16x1xf32>
    %cst_34 = arith.constant 0.000000e+00 : f32
    %102 = vector.broadcast %cst_34 : f32 to vector<16x1xf32>
    %103 = arith.maximumf %101, %102 : vector<16x1xf32>
    %104 = vector.broadcast %94 : vector<16x1xf32> to vector<16x152xf32>
    %105 = arith.subf %90, %104 : vector<16x152xf32>
    %cst_35 = arith.constant 9.99999974E-6 : f32
    %106 = vector.broadcast %cst_35 : f32 to vector<16x1xf32>
    %107 = arith.addf %103, %106 : vector<16x1xf32>
    %108 = math.rsqrt %107 : vector<16x1xf32>
    %109 = vector.broadcast %108 : vector<16x1xf32> to vector<16x152xf32>
    %110 = arith.mulf %105, %109 : vector<16x152xf32>
    %111 = vector.extract_strided_slice %87 {offsets = [0, 0], sizes = [16, 1], strides = [1, 1]} : vector<16x5xf32> to vector<16x1xf32>
    %112 = vector.broadcast %111 : vector<16x1xf32> to vector<16x152xf32>
    %113 = arith.mulf %110, %112 : vector<16x152xf32>
    %114 = vector.extract_strided_slice %87 {offsets = [0, 1], sizes = [16, 1], strides = [1, 1]} : vector<16x5xf32> to vector<16x1xf32>
    %115 = vector.broadcast %114 : vector<16x1xf32> to vector<16x152xf32>
    %116 = arith.addf %113, %115 : vector<16x152xf32>
    %cst_36 = arith.constant 0.000000e+00 : f32
    %117 = vector.broadcast %cst_36 : f32 to vector<16x152xf32>
    %118 = arith.cmpf oge, %116, %117 : vector<16x152xf32>
    %119 = vector.extract_strided_slice %87 {offsets = [0, 2], sizes = [16, 1], strides = [1, 1]} : vector<16x5xf32> to vector<16x1xf32>
    %120 = vector.broadcast %119 : vector<16x1xf32> to vector<16x152xf32>
    %121 = arith.mulf %120, %116 : vector<16x152xf32>
    %122 = arith.select %118, %116, %121 : vector<16x152xi1>, vector<16x152xf32>
    %123 = arith.truncf %122 : vector<16x152xf32> to vector<16x152xbf16>
    %c0_37 = arith.constant 0 : index
    %c0_38 = arith.constant 0 : index
    %124 = vector.load %arg4[%c0_37, %c0_38] : memref<152x72xbf16, #tpu.memory_space<vmem>>, vector<152x72xbf16>
    %cst_39 = arith.constant 0.000000e+00 : bf16
    %125 = vector.broadcast %cst_39 : bf16 to vector<16x1xbf16>
    %126 = vector.extract_strided_slice %123 {offsets = [0, 1], sizes = [16, 151], strides = [1, 1]} : vector<16x152xbf16> to vector<16x151xbf16>
    %127 = tpu.concatenate %126, %125 in 1 : vector<16x151xbf16>, vector<16x1xbf16> -> vector<16x152xbf16>
    %cst_40 = arith.constant 0.000000e+00 : bf16
    %128 = vector.broadcast %cst_40 : bf16 to vector<16x2xbf16>
    %129 = vector.extract_strided_slice %123 {offsets = [0, 2], sizes = [16, 150], strides = [1, 1]} : vector<16x152xbf16> to vector<16x150xbf16>
    %130 = tpu.concatenate %129, %128 in 1 : vector<16x150xbf16>, vector<16x2xbf16> -> vector<16x152xbf16>
    %131 = tpu.concatenate %123, %127, %130 in 0 : vector<16x152xbf16>, vector<16x152xbf16>, vector<16x152xbf16> -> vector<48x152xbf16>
    %cst_41 = arith.constant dense<0.000000e+00> : vector<48x72xf32>
    %132 = tpu.matmul %131, %124, %cst_41 {dimension_numbers = #tpu.dot_dimension_numbers<[1], [0], [0], [1], [0, 0, 1, 1], [], []>} : vector<48x152xbf16>, vector<152x72xbf16>, vector<48x72xf32> -> vector<48x72xf32>
    %c80 = arith.constant 80 : index
    %c0_42 = arith.constant 0 : index
    %133 = vector.load %arg11[%c80, %c0_42] : memref<832x96xbf16, #tpu.memory_space<vmem>>, vector<16x48xbf16>
    %134 = arith.truncf %132 : vector<48x72xf32> to vector<48x72xbf16>
    %cst_43 = arith.constant dense<0.000000e+00> : vector<16x72xf32>
    %135 = tpu.matmul %133, %134, %cst_43 {dimension_numbers = #tpu.dot_dimension_numbers<[1], [0], [0], [1], [0, 0, 1, 1], [], []>} : vector<16x48xbf16>, vector<48x72xbf16>, vector<16x72xf32> -> vector<16x72xf32>
    %c32 = arith.constant 32 : index
    %c0_44 = arith.constant 0 : index
    %136 = vector.load %arg12[%c32, %c0_44] : memref<448x5xf32, #tpu.memory_space<vmem>>, vector<16x5xf32>
    %137 = vector.extract_strided_slice %136 {offsets = [0, 3], sizes = [16, 1], strides = [1, 1]} : vector<16x5xf32> to vector<16x1xf32>
    %138 = vector.broadcast %137 : vector<16x1xf32> to vector<16x72xf32>
    %139 = arith.addf %135, %138 : vector<16x72xf32>
    %cst_45 = arith.constant dense<0.000000e+00> : vector<16xf32>
    %140 = vector.multi_reduction <add>, %139, %cst_45 [1] : vector<16x72xf32> to vector<16xf32>
    %141 = vector.shape_cast %140 : vector<16xf32> to vector<16x1xf32>
    %cst_46 = arith.constant 7.200000e+01 : f32
    %142 = vector.broadcast %cst_46 : f32 to vector<16x1xf32>
    %143 = arith.divf %141, %142 : vector<16x1xf32>
    %144 = arith.mulf %139, %139 : vector<16x72xf32>
    %cst_47 = arith.constant dense<0.000000e+00> : vector<16xf32>
    %145 = vector.multi_reduction <add>, %144, %cst_47 [1] : vector<16x72xf32> to vector<16xf32>
    %146 = vector.shape_cast %145 : vector<16xf32> to vector<16x1xf32>
    %cst_48 = arith.constant 7.200000e+01 : f32
    %147 = vector.broadcast %cst_48 : f32 to vector<16x1xf32>
    %148 = arith.divf %146, %147 : vector<16x1xf32>
    %149 = arith.mulf %143, %143 : vector<16x1xf32>
    %150 = arith.subf %148, %149 : vector<16x1xf32>
    %cst_49 = arith.constant 0.000000e+00 : f32
    %151 = vector.broadcast %cst_49 : f32 to vector<16x1xf32>
    %152 = arith.maximumf %150, %151 : vector<16x1xf32>
    %153 = vector.broadcast %143 : vector<16x1xf32> to vector<16x72xf32>
    %154 = arith.subf %139, %153 : vector<16x72xf32>
    %cst_50 = arith.constant 9.99999974E-6 : f32
    %155 = vector.broadcast %cst_50 : f32 to vector<16x1xf32>
    %156 = arith.addf %152, %155 : vector<16x1xf32>
    %157 = math.rsqrt %156 : vector<16x1xf32>
    %158 = vector.broadcast %157 : vector<16x1xf32> to vector<16x72xf32>
    %159 = arith.mulf %154, %158 : vector<16x72xf32>
    %160 = vector.extract_strided_slice %136 {offsets = [0, 0], sizes = [16, 1], strides = [1, 1]} : vector<16x5xf32> to vector<16x1xf32>
    %161 = vector.broadcast %160 : vector<16x1xf32> to vector<16x72xf32>
    %162 = arith.mulf %159, %161 : vector<16x72xf32>
    %163 = vector.extract_strided_slice %136 {offsets = [0, 1], sizes = [16, 1], strides = [1, 1]} : vector<16x5xf32> to vector<16x1xf32>
    %164 = vector.broadcast %163 : vector<16x1xf32> to vector<16x72xf32>
    %165 = arith.addf %162, %164 : vector<16x72xf32>
    %cst_51 = arith.constant 0.000000e+00 : f32
    %166 = vector.broadcast %cst_51 : f32 to vector<16x72xf32>
    %167 = arith.cmpf oge, %165, %166 : vector<16x72xf32>
    %168 = vector.extract_strided_slice %136 {offsets = [0, 2], sizes = [16, 1], strides = [1, 1]} : vector<16x5xf32> to vector<16x1xf32>
    %169 = vector.broadcast %168 : vector<16x1xf32> to vector<16x72xf32>
    %170 = arith.mulf %169, %165 : vector<16x72xf32>
    %171 = arith.select %167, %165, %170 : vector<16x72xi1>, vector<16x72xf32>
    %172 = arith.truncf %171 : vector<16x72xf32> to vector<16x72xbf16>
    %c0_52 = arith.constant 0 : index
    %c0_53 = arith.constant 0 : index
    %173 = vector.load %arg5[%c0_52, %c0_53] : memref<72x32xbf16, #tpu.memory_space<vmem>>, vector<72x32xbf16>
    %cst_54 = arith.constant 0.000000e+00 : bf16
    %174 = vector.broadcast %cst_54 : bf16 to vector<16x1xbf16>
    %175 = vector.extract_strided_slice %172 {offsets = [0, 1], sizes = [16, 71], strides = [1, 1]} : vector<16x72xbf16> to vector<16x71xbf16>
    %176 = tpu.concatenate %175, %174 in 1 : vector<16x71xbf16>, vector<16x1xbf16> -> vector<16x72xbf16>
    %cst_55 = arith.constant 0.000000e+00 : bf16
    %177 = vector.broadcast %cst_55 : bf16 to vector<16x2xbf16>
    %178 = vector.extract_strided_slice %172 {offsets = [0, 2], sizes = [16, 70], strides = [1, 1]} : vector<16x72xbf16> to vector<16x70xbf16>
    %179 = tpu.concatenate %178, %177 in 1 : vector<16x70xbf16>, vector<16x2xbf16> -> vector<16x72xbf16>
    %180 = tpu.concatenate %172, %176, %179 in 0 : vector<16x72xbf16>, vector<16x72xbf16>, vector<16x72xbf16> -> vector<48x72xbf16>
    %cst_56 = arith.constant dense<0.000000e+00> : vector<48x32xf32>
    %181 = tpu.matmul %180, %173, %cst_56 {dimension_numbers = #tpu.dot_dimension_numbers<[1], [0], [0], [1], [0, 0, 1, 1], [], []>} : vector<48x72xbf16>, vector<72x32xbf16>, vector<48x32xf32> -> vector<48x32xf32>
    %c96 = arith.constant 96 : index
    %c0_57 = arith.constant 0 : index
    %182 = vector.load %arg11[%c96, %c0_57] : memref<832x96xbf16, #tpu.memory_space<vmem>>, vector<16x48xbf16>
    %183 = arith.truncf %181 : vector<48x32xf32> to vector<48x32xbf16>
    %cst_58 = arith.constant dense<0.000000e+00> : vector<16x32xf32>
    %184 = tpu.matmul %182, %183, %cst_58 {dimension_numbers = #tpu.dot_dimension_numbers<[1], [0], [0], [1], [0, 0, 1, 1], [], []>} : vector<16x48xbf16>, vector<48x32xbf16>, vector<16x32xf32> -> vector<16x32xf32>
    %c48 = arith.constant 48 : index
    %c0_59 = arith.constant 0 : index
    %185 = vector.load %arg12[%c48, %c0_59] : memref<448x5xf32, #tpu.memory_space<vmem>>, vector<16x5xf32>
    %186 = vector.extract_strided_slice %185 {offsets = [0, 3], sizes = [16, 1], strides = [1, 1]} : vector<16x5xf32> to vector<16x1xf32>
    %187 = vector.broadcast %186 : vector<16x1xf32> to vector<16x32xf32>
    %188 = arith.addf %184, %187 : vector<16x32xf32>
    %cst_60 = arith.constant dense<0.000000e+00> : vector<16xf32>
    %189 = vector.multi_reduction <add>, %188, %cst_60 [1] : vector<16x32xf32> to vector<16xf32>
    %190 = vector.shape_cast %189 : vector<16xf32> to vector<16x1xf32>
    %cst_61 = arith.constant 3.200000e+01 : f32
    %191 = vector.broadcast %cst_61 : f32 to vector<16x1xf32>
    %192 = arith.divf %190, %191 : vector<16x1xf32>
    %193 = arith.mulf %188, %188 : vector<16x32xf32>
    %cst_62 = arith.constant dense<0.000000e+00> : vector<16xf32>
    %194 = vector.multi_reduction <add>, %193, %cst_62 [1] : vector<16x32xf32> to vector<16xf32>
    %195 = vector.shape_cast %194 : vector<16xf32> to vector<16x1xf32>
    %cst_63 = arith.constant 3.200000e+01 : f32
    %196 = vector.broadcast %cst_63 : f32 to vector<16x1xf32>
    %197 = arith.divf %195, %196 : vector<16x1xf32>
    %198 = arith.mulf %192, %192 : vector<16x1xf32>
    %199 = arith.subf %197, %198 : vector<16x1xf32>
    %cst_64 = arith.constant 0.000000e+00 : f32
    %200 = vector.broadcast %cst_64 : f32 to vector<16x1xf32>
    %201 = arith.maximumf %199, %200 : vector<16x1xf32>
    %202 = vector.broadcast %192 : vector<16x1xf32> to vector<16x32xf32>
    %203 = arith.subf %188, %202 : vector<16x32xf32>
    %cst_65 = arith.constant 9.99999974E-6 : f32
    %204 = vector.broadcast %cst_65 : f32 to vector<16x1xf32>
    %205 = arith.addf %201, %204 : vector<16x1xf32>
    %206 = math.rsqrt %205 : vector<16x1xf32>
    %207 = vector.broadcast %206 : vector<16x1xf32> to vector<16x32xf32>
    %208 = arith.mulf %203, %207 : vector<16x32xf32>
    %209 = vector.extract_strided_slice %185 {offsets = [0, 0], sizes = [16, 1], strides = [1, 1]} : vector<16x5xf32> to vector<16x1xf32>
    %210 = vector.broadcast %209 : vector<16x1xf32> to vector<16x32xf32>
    %211 = arith.mulf %208, %210 : vector<16x32xf32>
    %212 = vector.extract_strided_slice %185 {offsets = [0, 1], sizes = [16, 1], strides = [1, 1]} : vector<16x5xf32> to vector<16x1xf32>
    %213 = vector.broadcast %212 : vector<16x1xf32> to vector<16x32xf32>
    %214 = arith.addf %211, %213 : vector<16x32xf32>
    %cst_66 = arith.constant 0.000000e+00 : f32
    %215 = vector.broadcast %cst_66 : f32 to vector<16x32xf32>
    %216 = arith.cmpf oge, %214, %215 : vector<16x32xf32>
    %217 = vector.extract_strided_slice %185 {offsets = [0, 2], sizes = [16, 1], strides = [1, 1]} : vector<16x5xf32> to vector<16x1xf32>
    %218 = vector.broadcast %217 : vector<16x1xf32> to vector<16x32xf32>
    %219 = arith.mulf %218, %214 : vector<16x32xf32>
    %220 = arith.select %216, %214, %219 : vector<16x32xi1>, vector<16x32xf32>
    %221 = arith.truncf %220 : vector<16x32xf32> to vector<16x32xbf16>
    %c0_67 = arith.constant 0 : index
    %c0_68 = arith.constant 0 : index
    %222 = vector.load %arg6[%c0_67, %c0_68] : memref<32x8xbf16, #tpu.memory_space<vmem>>, vector<32x8xbf16>
    %cst_69 = arith.constant 0.000000e+00 : bf16
    %223 = vector.broadcast %cst_69 : bf16 to vector<16x1xbf16>
    %224 = vector.extract_strided_slice %221 {offsets = [0, 1], sizes = [16, 31], strides = [1, 1]} : vector<16x32xbf16> to vector<16x31xbf16>
    %225 = tpu.concatenate %224, %223 in 1 : vector<16x31xbf16>, vector<16x1xbf16> -> vector<16x32xbf16>
    %cst_70 = arith.constant 0.000000e+00 : bf16
    %226 = vector.broadcast %cst_70 : bf16 to vector<16x2xbf16>
    %227 = vector.extract_strided_slice %221 {offsets = [0, 2], sizes = [16, 30], strides = [1, 1]} : vector<16x32xbf16> to vector<16x30xbf16>
    %228 = tpu.concatenate %227, %226 in 1 : vector<16x30xbf16>, vector<16x2xbf16> -> vector<16x32xbf16>
    %229 = tpu.concatenate %221, %225, %228 in 0 : vector<16x32xbf16>, vector<16x32xbf16>, vector<16x32xbf16> -> vector<48x32xbf16>
    %cst_71 = arith.constant dense<0.000000e+00> : vector<48x8xf32>
    %230 = tpu.matmul %229, %222, %cst_71 {dimension_numbers = #tpu.dot_dimension_numbers<[1], [0], [0], [1], [0, 0, 1, 1], [], []>} : vector<48x32xbf16>, vector<32x8xbf16>, vector<48x8xf32> -> vector<48x8xf32>
    %c112 = arith.constant 112 : index
    %c0_72 = arith.constant 0 : index
    %231 = vector.load %arg11[%c112, %c0_72] : memref<832x96xbf16, #tpu.memory_space<vmem>>, vector<16x48xbf16>
    %232 = arith.truncf %230 : vector<48x8xf32> to vector<48x8xbf16>
    %cst_73 = arith.constant dense<0.000000e+00> : vector<16x8xf32>
    %233 = tpu.matmul %231, %232, %cst_73 {dimension_numbers = #tpu.dot_dimension_numbers<[1], [0], [0], [1], [0, 0, 1, 1], [], []>} : vector<16x48xbf16>, vector<48x8xbf16>, vector<16x8xf32> -> vector<16x8xf32>
    %c64_74 = arith.constant 64 : index
    %c0_75 = arith.constant 0 : index
    %234 = vector.load %arg12[%c64_74, %c0_75] : memref<448x5xf32, #tpu.memory_space<vmem>>, vector<16x5xf32>
    %235 = vector.extract_strided_slice %234 {offsets = [0, 3], sizes = [16, 1], strides = [1, 1]} : vector<16x5xf32> to vector<16x1xf32>
    %236 = vector.broadcast %235 : vector<16x1xf32> to vector<16x8xf32>
    %237 = arith.addf %233, %236 : vector<16x8xf32>
    %cst_76 = arith.constant dense<0.000000e+00> : vector<16xf32>
    %238 = vector.multi_reduction <add>, %237, %cst_76 [1] : vector<16x8xf32> to vector<16xf32>
    %239 = vector.shape_cast %238 : vector<16xf32> to vector<16x1xf32>
    %cst_77 = arith.constant 8.000000e+00 : f32
    %240 = vector.broadcast %cst_77 : f32 to vector<16x1xf32>
    %241 = arith.divf %239, %240 : vector<16x1xf32>
    %242 = arith.mulf %237, %237 : vector<16x8xf32>
    %cst_78 = arith.constant dense<0.000000e+00> : vector<16xf32>
    %243 = vector.multi_reduction <add>, %242, %cst_78 [1] : vector<16x8xf32> to vector<16xf32>
    %244 = vector.shape_cast %243 : vector<16xf32> to vector<16x1xf32>
    %cst_79 = arith.constant 8.000000e+00 : f32
    %245 = vector.broadcast %cst_79 : f32 to vector<16x1xf32>
    %246 = arith.divf %244, %245 : vector<16x1xf32>
    %247 = arith.mulf %241, %241 : vector<16x1xf32>
    %248 = arith.subf %246, %247 : vector<16x1xf32>
    %cst_80 = arith.constant 0.000000e+00 : f32
    %249 = vector.broadcast %cst_80 : f32 to vector<16x1xf32>
    %250 = arith.maximumf %248, %249 : vector<16x1xf32>
    %251 = vector.broadcast %241 : vector<16x1xf32> to vector<16x8xf32>
    %252 = arith.subf %237, %251 : vector<16x8xf32>
    %cst_81 = arith.constant 9.99999974E-6 : f32
    %253 = vector.broadcast %cst_81 : f32 to vector<16x1xf32>
    %254 = arith.addf %250, %253 : vector<16x1xf32>
    %255 = math.rsqrt %254 : vector<16x1xf32>
    %256 = vector.broadcast %255 : vector<16x1xf32> to vector<16x8xf32>
    %257 = arith.mulf %252, %256 : vector<16x8xf32>
    %258 = vector.extract_strided_slice %234 {offsets = [0, 0], sizes = [16, 1], strides = [1, 1]} : vector<16x5xf32> to vector<16x1xf32>
    %259 = vector.broadcast %258 : vector<16x1xf32> to vector<16x8xf32>
    %260 = arith.mulf %257, %259 : vector<16x8xf32>
    %261 = vector.extract_strided_slice %234 {offsets = [0, 1], sizes = [16, 1], strides = [1, 1]} : vector<16x5xf32> to vector<16x1xf32>
    %262 = vector.broadcast %261 : vector<16x1xf32> to vector<16x8xf32>
    %263 = arith.addf %260, %262 : vector<16x8xf32>
    %cst_82 = arith.constant 0.000000e+00 : f32
    %264 = vector.broadcast %cst_82 : f32 to vector<16x8xf32>
    %265 = arith.cmpf oge, %263, %264 : vector<16x8xf32>
    %266 = vector.extract_strided_slice %234 {offsets = [0, 2], sizes = [16, 1], strides = [1, 1]} : vector<16x5xf32> to vector<16x1xf32>
    %267 = vector.broadcast %266 : vector<16x1xf32> to vector<16x8xf32>
    %268 = arith.mulf %267, %263 : vector<16x8xf32>
    %269 = arith.select %265, %263, %268 : vector<16x8xi1>, vector<16x8xf32>
    %270 = arith.truncf %269 : vector<16x8xf32> to vector<16x8xbf16>
    %c0_83 = arith.constant 0 : index
    %c0_84 = arith.constant 0 : index
    %271 = vector.load %arg7[%c0_83, %c0_84] : memref<8x32xbf16, #tpu.memory_space<vmem>>, vector<8x32xbf16>
    %cst_85 = arith.constant dense<0.000000e+00> : vector<16x32xf32>
    %272 = tpu.matmul %270, %271, %cst_85 {dimension_numbers = #tpu.dot_dimension_numbers<[1], [0], [0], [1], [0, 0, 1, 1], [], []>} : vector<16x8xbf16>, vector<8x32xbf16>, vector<16x32xf32> -> vector<16x32xf32>
    %273 = arith.truncf %272 : vector<16x32xf32> to vector<16x32xbf16>
    %cst_86 = arith.constant 0.000000e+00 : bf16
    %274 = vector.broadcast %cst_86 : bf16 to vector<16x1xbf16>
    %275 = vector.extract_strided_slice %273 {offsets = [0, 0], sizes = [16, 31], strides = [1, 1]} : vector<16x32xbf16> to vector<16x31xbf16>
    %276 = tpu.concatenate %274, %275 in 1 : vector<16x1xbf16>, vector<16x31xbf16> -> vector<16x32xbf16>
    %cst_87 = arith.constant 0.000000e+00 : bf16
    %277 = vector.broadcast %cst_87 : bf16 to vector<16x2xbf16>
    %278 = vector.extract_strided_slice %273 {offsets = [0, 0], sizes = [16, 30], strides = [1, 1]} : vector<16x32xbf16> to vector<16x30xbf16>
    %279 = tpu.concatenate %277, %278 in 1 : vector<16x2xbf16>, vector<16x30xbf16> -> vector<16x32xbf16>
    %280 = tpu.concatenate %273, %276, %279 in 0 : vector<16x32xbf16>, vector<16x32xbf16>, vector<16x32xbf16> -> vector<48x32xbf16>
    %c128 = arith.constant 128 : index
    %c0_88 = arith.constant 0 : index
    %281 = vector.load %arg11[%c128, %c0_88] : memref<832x96xbf16, #tpu.memory_space<vmem>>, vector<16x48xbf16>
    %cst_89 = arith.constant dense<0.000000e+00> : vector<16x32xf32>
    %282 = tpu.matmul %281, %280, %cst_89 {dimension_numbers = #tpu.dot_dimension_numbers<[1], [0], [0], [1], [0, 0, 1, 1], [], []>} : vector<16x48xbf16>, vector<48x32xbf16>, vector<16x32xf32> -> vector<16x32xf32>
    %c80_90 = arith.constant 80 : index
    %c0_91 = arith.constant 0 : index
    %283 = vector.load %arg12[%c80_90, %c0_91] : memref<448x5xf32, #tpu.memory_space<vmem>>, vector<16x5xf32>
    %284 = vector.extract_strided_slice %283 {offsets = [0, 3], sizes = [16, 1], strides = [1, 1]} : vector<16x5xf32> to vector<16x1xf32>
    %285 = vector.broadcast %284 : vector<16x1xf32> to vector<16x32xf32>
    %286 = arith.addf %282, %285 : vector<16x32xf32>
    %cst_92 = arith.constant dense<0.000000e+00> : vector<16xf32>
    %287 = vector.multi_reduction <add>, %286, %cst_92 [1] : vector<16x32xf32> to vector<16xf32>
    %288 = vector.shape_cast %287 : vector<16xf32> to vector<16x1xf32>
    %cst_93 = arith.constant 3.200000e+01 : f32
    %289 = vector.broadcast %cst_93 : f32 to vector<16x1xf32>
    %290 = arith.divf %288, %289 : vector<16x1xf32>
    %291 = arith.mulf %286, %286 : vector<16x32xf32>
    %cst_94 = arith.constant dense<0.000000e+00> : vector<16xf32>
    %292 = vector.multi_reduction <add>, %291, %cst_94 [1] : vector<16x32xf32> to vector<16xf32>
    %293 = vector.shape_cast %292 : vector<16xf32> to vector<16x1xf32>
    %cst_95 = arith.constant 3.200000e+01 : f32
    %294 = vector.broadcast %cst_95 : f32 to vector<16x1xf32>
    %295 = arith.divf %293, %294 : vector<16x1xf32>
    %296 = arith.mulf %290, %290 : vector<16x1xf32>
    %297 = arith.subf %295, %296 : vector<16x1xf32>
    %cst_96 = arith.constant 0.000000e+00 : f32
    %298 = vector.broadcast %cst_96 : f32 to vector<16x1xf32>
    %299 = arith.maximumf %297, %298 : vector<16x1xf32>
    %300 = vector.broadcast %290 : vector<16x1xf32> to vector<16x32xf32>
    %301 = arith.subf %286, %300 : vector<16x32xf32>
    %cst_97 = arith.constant 9.99999974E-6 : f32
    %302 = vector.broadcast %cst_97 : f32 to vector<16x1xf32>
    %303 = arith.addf %299, %302 : vector<16x1xf32>
    %304 = math.rsqrt %303 : vector<16x1xf32>
    %305 = vector.broadcast %304 : vector<16x1xf32> to vector<16x32xf32>
    %306 = arith.mulf %301, %305 : vector<16x32xf32>
    %307 = vector.extract_strided_slice %283 {offsets = [0, 0], sizes = [16, 1], strides = [1, 1]} : vector<16x5xf32> to vector<16x1xf32>
    %308 = vector.broadcast %307 : vector<16x1xf32> to vector<16x32xf32>
    %309 = arith.mulf %306, %308 : vector<16x32xf32>
    %310 = vector.extract_strided_slice %283 {offsets = [0, 1], sizes = [16, 1], strides = [1, 1]} : vector<16x5xf32> to vector<16x1xf32>
    %311 = vector.broadcast %310 : vector<16x1xf32> to vector<16x32xf32>
    %312 = arith.addf %309, %311 : vector<16x32xf32>
    %cst_98 = arith.constant 0.000000e+00 : f32
    %313 = vector.broadcast %cst_98 : f32 to vector<16x32xf32>
    %314 = arith.cmpf oge, %312, %313 : vector<16x32xf32>
    %315 = vector.extract_strided_slice %283 {offsets = [0, 2], sizes = [16, 1], strides = [1, 1]} : vector<16x5xf32> to vector<16x1xf32>
    %316 = vector.broadcast %315 : vector<16x1xf32> to vector<16x32xf32>
    %317 = arith.mulf %316, %312 : vector<16x32xf32>
    %318 = arith.select %314, %312, %317 : vector<16x32xi1>, vector<16x32xf32>
    %319 = tpu.concatenate %318, %220 in 0 : vector<16x32xf32>, vector<16x32xf32> -> vector<32x32xf32>
    %320 = arith.truncf %319 : vector<32x32xf32> to vector<32x32xbf16>
    %c0_99 = arith.constant 0 : index
    %c0_100 = arith.constant 0 : index
    %321 = vector.load %arg8[%c0_99, %c0_100] : memref<32x72xbf16, #tpu.memory_space<vmem>>, vector<32x72xbf16>
    %cst_101 = arith.constant dense<0.000000e+00> : vector<32x72xf32>
    %322 = tpu.matmul %320, %321, %cst_101 {dimension_numbers = #tpu.dot_dimension_numbers<[1], [0], [0], [1], [0, 0, 1, 1], [], []>} : vector<32x32xbf16>, vector<32x72xbf16>, vector<32x72xf32> -> vector<32x72xf32>
    %323 = arith.truncf %322 : vector<32x72xf32> to vector<32x72xbf16>
    %cst_102 = arith.constant 0.000000e+00 : bf16
    %324 = vector.broadcast %cst_102 : bf16 to vector<32x1xbf16>
    %325 = vector.extract_strided_slice %323 {offsets = [0, 0], sizes = [32, 71], strides = [1, 1]} : vector<32x72xbf16> to vector<32x71xbf16>
    %326 = tpu.concatenate %324, %325 in 1 : vector<32x1xbf16>, vector<32x71xbf16> -> vector<32x72xbf16>
    %cst_103 = arith.constant 0.000000e+00 : bf16
    %327 = vector.broadcast %cst_103 : bf16 to vector<32x2xbf16>
    %328 = vector.extract_strided_slice %323 {offsets = [0, 0], sizes = [32, 70], strides = [1, 1]} : vector<32x72xbf16> to vector<32x70xbf16>
    %329 = tpu.concatenate %327, %328 in 1 : vector<32x2xbf16>, vector<32x70xbf16> -> vector<32x72xbf16>
    %330 = tpu.concatenate %323, %326, %329 in 0 : vector<32x72xbf16>, vector<32x72xbf16>, vector<32x72xbf16> -> vector<96x72xbf16>
    %c144 = arith.constant 144 : index
    %c0_104 = arith.constant 0 : index
    %331 = vector.load %arg11[%c144, %c0_104] : memref<832x96xbf16, #tpu.memory_space<vmem>>, vector<16x96xbf16>
    %cst_105 = arith.constant dense<0.000000e+00> : vector<16x72xf32>
    %332 = tpu.matmul %331, %330, %cst_105 {dimension_numbers = #tpu.dot_dimension_numbers<[1], [0], [0], [1], [0, 0, 1, 1], [], []>} : vector<16x96xbf16>, vector<96x72xbf16>, vector<16x72xf32> -> vector<16x72xf32>
    %c96_106 = arith.constant 96 : index
    %c0_107 = arith.constant 0 : index
    %333 = vector.load %arg12[%c96_106, %c0_107] : memref<448x5xf32, #tpu.memory_space<vmem>>, vector<16x5xf32>
    %334 = vector.extract_strided_slice %333 {offsets = [0, 3], sizes = [16, 1], strides = [1, 1]} : vector<16x5xf32> to vector<16x1xf32>
    %335 = vector.broadcast %334 : vector<16x1xf32> to vector<16x72xf32>
    %336 = arith.addf %332, %335 : vector<16x72xf32>
    %cst_108 = arith.constant dense<0.000000e+00> : vector<16xf32>
    %337 = vector.multi_reduction <add>, %336, %cst_108 [1] : vector<16x72xf32> to vector<16xf32>
    %338 = vector.shape_cast %337 : vector<16xf32> to vector<16x1xf32>
    %cst_109 = arith.constant 7.200000e+01 : f32
    %339 = vector.broadcast %cst_109 : f32 to vector<16x1xf32>
    %340 = arith.divf %338, %339 : vector<16x1xf32>
    %341 = arith.mulf %336, %336 : vector<16x72xf32>
    %cst_110 = arith.constant dense<0.000000e+00> : vector<16xf32>
    %342 = vector.multi_reduction <add>, %341, %cst_110 [1] : vector<16x72xf32> to vector<16xf32>
    %343 = vector.shape_cast %342 : vector<16xf32> to vector<16x1xf32>
    %cst_111 = arith.constant 7.200000e+01 : f32
    %344 = vector.broadcast %cst_111 : f32 to vector<16x1xf32>
    %345 = arith.divf %343, %344 : vector<16x1xf32>
    %346 = arith.mulf %340, %340 : vector<16x1xf32>
    %347 = arith.subf %345, %346 : vector<16x1xf32>
    %cst_112 = arith.constant 0.000000e+00 : f32
    %348 = vector.broadcast %cst_112 : f32 to vector<16x1xf32>
    %349 = arith.maximumf %347, %348 : vector<16x1xf32>
    %350 = vector.broadcast %340 : vector<16x1xf32> to vector<16x72xf32>
    %351 = arith.subf %336, %350 : vector<16x72xf32>
    %cst_113 = arith.constant 9.99999974E-6 : f32
    %352 = vector.broadcast %cst_113 : f32 to vector<16x1xf32>
    %353 = arith.addf %349, %352 : vector<16x1xf32>
    %354 = math.rsqrt %353 : vector<16x1xf32>
    %355 = vector.broadcast %354 : vector<16x1xf32> to vector<16x72xf32>
    %356 = arith.mulf %351, %355 : vector<16x72xf32>
    %357 = vector.extract_strided_slice %333 {offsets = [0, 0], sizes = [16, 1], strides = [1, 1]} : vector<16x5xf32> to vector<16x1xf32>
    %358 = vector.broadcast %357 : vector<16x1xf32> to vector<16x72xf32>
    %359 = arith.mulf %356, %358 : vector<16x72xf32>
    %360 = vector.extract_strided_slice %333 {offsets = [0, 1], sizes = [16, 1], strides = [1, 1]} : vector<16x5xf32> to vector<16x1xf32>
    %361 = vector.broadcast %360 : vector<16x1xf32> to vector<16x72xf32>
    %362 = arith.addf %359, %361 : vector<16x72xf32>
    %cst_114 = arith.constant 0.000000e+00 : f32
    %363 = vector.broadcast %cst_114 : f32 to vector<16x72xf32>
    %364 = arith.cmpf oge, %362, %363 : vector<16x72xf32>
    %365 = vector.extract_strided_slice %333 {offsets = [0, 2], sizes = [16, 1], strides = [1, 1]} : vector<16x5xf32> to vector<16x1xf32>
    %366 = vector.broadcast %365 : vector<16x1xf32> to vector<16x72xf32>
    %367 = arith.mulf %366, %362 : vector<16x72xf32>
    %368 = arith.select %364, %362, %367 : vector<16x72xi1>, vector<16x72xf32>
    %369 = tpu.concatenate %368, %171 in 0 : vector<16x72xf32>, vector<16x72xf32> -> vector<32x72xf32>
    %370 = arith.truncf %369 : vector<32x72xf32> to vector<32x72xbf16>
    %c0_115 = arith.constant 0 : index
    %c0_116 = arith.constant 0 : index
    %371 = vector.load %arg9[%c0_115, %c0_116] : memref<72x152xbf16, #tpu.memory_space<vmem>>, vector<72x152xbf16>
    %cst_117 = arith.constant dense<0.000000e+00> : vector<32x152xf32>
    %372 = tpu.matmul %370, %371, %cst_117 {dimension_numbers = #tpu.dot_dimension_numbers<[1], [0], [0], [1], [0, 0, 1, 1], [], []>} : vector<32x72xbf16>, vector<72x152xbf16>, vector<32x152xf32> -> vector<32x152xf32>
    %373 = arith.truncf %372 : vector<32x152xf32> to vector<32x152xbf16>
    %cst_118 = arith.constant 0.000000e+00 : bf16
    %374 = vector.broadcast %cst_118 : bf16 to vector<32x1xbf16>
    %375 = vector.extract_strided_slice %373 {offsets = [0, 0], sizes = [32, 151], strides = [1, 1]} : vector<32x152xbf16> to vector<32x151xbf16>
    %376 = tpu.concatenate %374, %375 in 1 : vector<32x1xbf16>, vector<32x151xbf16> -> vector<32x152xbf16>
    %cst_119 = arith.constant 0.000000e+00 : bf16
    %377 = vector.broadcast %cst_119 : bf16 to vector<32x2xbf16>
    %378 = vector.extract_strided_slice %373 {offsets = [0, 0], sizes = [32, 150], strides = [1, 1]} : vector<32x152xbf16> to vector<32x150xbf16>
    %379 = tpu.concatenate %377, %378 in 1 : vector<32x2xbf16>, vector<32x150xbf16> -> vector<32x152xbf16>
    %380 = tpu.concatenate %373, %376, %379 in 0 : vector<32x152xbf16>, vector<32x152xbf16>, vector<32x152xbf16> -> vector<96x152xbf16>
    %c160 = arith.constant 160 : index
    %c0_120 = arith.constant 0 : index
    %381 = vector.load %arg11[%c160, %c0_120] : memref<832x96xbf16, #tpu.memory_space<vmem>>, vector<16x96xbf16>
    %cst_121 = arith.constant dense<0.000000e+00> : vector<16x152xf32>
    %382 = tpu.matmul %381, %380, %cst_121 {dimension_numbers = #tpu.dot_dimension_numbers<[1], [0], [0], [1], [0, 0, 1, 1], [], []>} : vector<16x96xbf16>, vector<96x152xbf16>, vector<16x152xf32> -> vector<16x152xf32>
    %c112_122 = arith.constant 112 : index
    %c0_123 = arith.constant 0 : index
    %383 = vector.load %arg12[%c112_122, %c0_123] : memref<448x5xf32, #tpu.memory_space<vmem>>, vector<16x5xf32>
    %384 = vector.extract_strided_slice %383 {offsets = [0, 3], sizes = [16, 1], strides = [1, 1]} : vector<16x5xf32> to vector<16x1xf32>
    %385 = vector.broadcast %384 : vector<16x1xf32> to vector<16x152xf32>
    %386 = arith.addf %382, %385 : vector<16x152xf32>
    %cst_124 = arith.constant dense<0.000000e+00> : vector<16xf32>
    %387 = vector.multi_reduction <add>, %386, %cst_124 [1] : vector<16x152xf32> to vector<16xf32>
    %388 = vector.shape_cast %387 : vector<16xf32> to vector<16x1xf32>
    %cst_125 = arith.constant 1.520000e+02 : f32
    %389 = vector.broadcast %cst_125 : f32 to vector<16x1xf32>
    %390 = arith.divf %388, %389 : vector<16x1xf32>
    %391 = arith.mulf %386, %386 : vector<16x152xf32>
    %cst_126 = arith.constant dense<0.000000e+00> : vector<16xf32>
    %392 = vector.multi_reduction <add>, %391, %cst_126 [1] : vector<16x152xf32> to vector<16xf32>
    %393 = vector.shape_cast %392 : vector<16xf32> to vector<16x1xf32>
    %cst_127 = arith.constant 1.520000e+02 : f32
    %394 = vector.broadcast %cst_127 : f32 to vector<16x1xf32>
    %395 = arith.divf %393, %394 : vector<16x1xf32>
    %396 = arith.mulf %390, %390 : vector<16x1xf32>
    %397 = arith.subf %395, %396 : vector<16x1xf32>
    %cst_128 = arith.constant 0.000000e+00 : f32
    %398 = vector.broadcast %cst_128 : f32 to vector<16x1xf32>
    %399 = arith.maximumf %397, %398 : vector<16x1xf32>
    %400 = vector.broadcast %390 : vector<16x1xf32> to vector<16x152xf32>
    %401 = arith.subf %386, %400 : vector<16x152xf32>
    %cst_129 = arith.constant 9.99999974E-6 : f32
    %402 = vector.broadcast %cst_129 : f32 to vector<16x1xf32>
    %403 = arith.addf %399, %402 : vector<16x1xf32>
    %404 = math.rsqrt %403 : vector<16x1xf32>
    %405 = vector.broadcast %404 : vector<16x1xf32> to vector<16x152xf32>
    %406 = arith.mulf %401, %405 : vector<16x152xf32>
    %407 = vector.extract_strided_slice %383 {offsets = [0, 0], sizes = [16, 1], strides = [1, 1]} : vector<16x5xf32> to vector<16x1xf32>
    %408 = vector.broadcast %407 : vector<16x1xf32> to vector<16x152xf32>
    %409 = arith.mulf %406, %408 : vector<16x152xf32>
    %410 = vector.extract_strided_slice %383 {offsets = [0, 1], sizes = [16, 1], strides = [1, 1]} : vector<16x5xf32> to vector<16x1xf32>
    %411 = vector.broadcast %410 : vector<16x1xf32> to vector<16x152xf32>
    %412 = arith.addf %409, %411 : vector<16x152xf32>
    %cst_130 = arith.constant 0.000000e+00 : f32
    %413 = vector.broadcast %cst_130 : f32 to vector<16x152xf32>
    %414 = arith.cmpf oge, %412, %413 : vector<16x152xf32>
    %415 = vector.extract_strided_slice %383 {offsets = [0, 2], sizes = [16, 1], strides = [1, 1]} : vector<16x5xf32> to vector<16x1xf32>
    %416 = vector.broadcast %415 : vector<16x1xf32> to vector<16x152xf32>
    %417 = arith.mulf %416, %412 : vector<16x152xf32>
    %418 = arith.select %414, %412, %417 : vector<16x152xi1>, vector<16x152xf32>
    %419 = tpu.concatenate %418, %122 in 0 : vector<16x152xf32>, vector<16x152xf32> -> vector<32x152xf32>
    %420 = arith.truncf %419 : vector<32x152xf32> to vector<32x152xbf16>
    %c0_131 = arith.constant 0 : index
    %c0_132 = arith.constant 0 : index
    %421 = vector.load %arg10[%c0_131, %c0_132] : memref<152x312xbf16, #tpu.memory_space<vmem>>, vector<152x312xbf16>
    %cst_133 = arith.constant dense<0.000000e+00> : vector<32x312xf32>
    %422 = tpu.matmul %420, %421, %cst_133 {dimension_numbers = #tpu.dot_dimension_numbers<[1], [0], [0], [1], [0, 0, 1, 1], [], []>} : vector<32x152xbf16>, vector<152x312xbf16>, vector<32x312xf32> -> vector<32x312xf32>
    %423 = arith.truncf %422 : vector<32x312xf32> to vector<32x312xbf16>
    %cst_134 = arith.constant 0.000000e+00 : bf16
    %424 = vector.broadcast %cst_134 : bf16 to vector<32x1xbf16>
    %425 = vector.extract_strided_slice %423 {offsets = [0, 0], sizes = [32, 311], strides = [1, 1]} : vector<32x312xbf16> to vector<32x311xbf16>
    %426 = tpu.concatenate %424, %425 in 1 : vector<32x1xbf16>, vector<32x311xbf16> -> vector<32x312xbf16>
    %cst_135 = arith.constant 0.000000e+00 : bf16
    %427 = vector.broadcast %cst_135 : bf16 to vector<32x2xbf16>
    %428 = vector.extract_strided_slice %423 {offsets = [0, 0], sizes = [32, 310], strides = [1, 1]} : vector<32x312xbf16> to vector<32x310xbf16>
    %429 = tpu.concatenate %427, %428 in 1 : vector<32x2xbf16>, vector<32x310xbf16> -> vector<32x312xbf16>
    %430 = tpu.concatenate %423, %426, %429 in 0 : vector<32x312xbf16>, vector<32x312xbf16>, vector<32x312xbf16> -> vector<96x312xbf16>
    %c176 = arith.constant 176 : index
    %c0_136 = arith.constant 0 : index
    %431 = vector.load %arg11[%c176, %c0_136] : memref<832x96xbf16, #tpu.memory_space<vmem>>, vector<16x96xbf16>
    %cst_137 = arith.constant dense<0.000000e+00> : vector<16x312xf32>
    %432 = tpu.matmul %431, %430, %cst_137 {dimension_numbers = #tpu.dot_dimension_numbers<[1], [0], [0], [1], [0, 0, 1, 1], [], []>} : vector<16x96xbf16>, vector<96x312xbf16>, vector<16x312xf32> -> vector<16x312xf32>
    %c128_138 = arith.constant 128 : index
    %c0_139 = arith.constant 0 : index
    %433 = vector.load %arg12[%c128_138, %c0_139] : memref<448x5xf32, #tpu.memory_space<vmem>>, vector<16x5xf32>
    %434 = vector.extract_strided_slice %433 {offsets = [0, 3], sizes = [16, 1], strides = [1, 1]} : vector<16x5xf32> to vector<16x1xf32>
    %435 = vector.broadcast %434 : vector<16x1xf32> to vector<16x312xf32>
    %436 = arith.addf %432, %435 : vector<16x312xf32>
    %cst_140 = arith.constant dense<0.000000e+00> : vector<16xf32>
    %437 = vector.multi_reduction <add>, %436, %cst_140 [1] : vector<16x312xf32> to vector<16xf32>
    %438 = vector.shape_cast %437 : vector<16xf32> to vector<16x1xf32>
    %cst_141 = arith.constant 3.120000e+02 : f32
    %439 = vector.broadcast %cst_141 : f32 to vector<16x1xf32>
    %440 = arith.divf %438, %439 : vector<16x1xf32>
    %441 = arith.mulf %436, %436 : vector<16x312xf32>
    %cst_142 = arith.constant dense<0.000000e+00> : vector<16xf32>
    %442 = vector.multi_reduction <add>, %441, %cst_142 [1] : vector<16x312xf32> to vector<16xf32>
    %443 = vector.shape_cast %442 : vector<16xf32> to vector<16x1xf32>
    %cst_143 = arith.constant 3.120000e+02 : f32
    %444 = vector.broadcast %cst_143 : f32 to vector<16x1xf32>
    %445 = arith.divf %443, %444 : vector<16x1xf32>
    %446 = arith.mulf %440, %440 : vector<16x1xf32>
    %447 = arith.subf %445, %446 : vector<16x1xf32>
    %cst_144 = arith.constant 0.000000e+00 : f32
    %448 = vector.broadcast %cst_144 : f32 to vector<16x1xf32>
    %449 = arith.maximumf %447, %448 : vector<16x1xf32>
    %450 = vector.broadcast %440 : vector<16x1xf32> to vector<16x312xf32>
    %451 = arith.subf %436, %450 : vector<16x312xf32>
    %cst_145 = arith.constant 9.99999974E-6 : f32
    %452 = vector.broadcast %cst_145 : f32 to vector<16x1xf32>
    %453 = arith.addf %449, %452 : vector<16x1xf32>
    %454 = math.rsqrt %453 : vector<16x1xf32>
    %455 = vector.broadcast %454 : vector<16x1xf32> to vector<16x312xf32>
    %456 = arith.mulf %451, %455 : vector<16x312xf32>
    %457 = vector.extract_strided_slice %433 {offsets = [0, 0], sizes = [16, 1], strides = [1, 1]} : vector<16x5xf32> to vector<16x1xf32>
    %458 = vector.broadcast %457 : vector<16x1xf32> to vector<16x312xf32>
    %459 = arith.mulf %456, %458 : vector<16x312xf32>
    %460 = vector.extract_strided_slice %433 {offsets = [0, 1], sizes = [16, 1], strides = [1, 1]} : vector<16x5xf32> to vector<16x1xf32>
    %461 = vector.broadcast %460 : vector<16x1xf32> to vector<16x312xf32>
    %462 = arith.addf %459, %461 : vector<16x312xf32>
    %cst_146 = arith.constant 0.000000e+00 : f32
    %463 = vector.broadcast %cst_146 : f32 to vector<16x312xf32>
    %464 = arith.cmpf oge, %462, %463 : vector<16x312xf32>
    %465 = vector.extract_strided_slice %433 {offsets = [0, 2], sizes = [16, 1], strides = [1, 1]} : vector<16x5xf32> to vector<16x1xf32>
    %466 = vector.broadcast %465 : vector<16x1xf32> to vector<16x312xf32>
    %467 = arith.mulf %466, %462 : vector<16x312xf32>
    %468 = arith.select %464, %462, %467 : vector<16x312xi1>, vector<16x312xf32>
    %469 = arith.addf %73, %468 : vector<16x312xf32>
    %470 = arith.truncf %469 : vector<16x312xf32> to vector<16x312xbf16>
    %c0_147 = arith.constant 0 : index
    %c0_148 = arith.constant 0 : index
    %471 = vector.load %arg3[%c0_147, %c0_148] : memref<312x152xbf16, #tpu.memory_space<vmem>>, vector<312x152xbf16>
    %cst_149 = arith.constant 0.000000e+00 : bf16
    %472 = vector.broadcast %cst_149 : bf16 to vector<16x1xbf16>
    %473 = vector.extract_strided_slice %470 {offsets = [0, 1], sizes = [16, 311], strides = [1, 1]} : vector<16x312xbf16> to vector<16x311xbf16>
    %474 = tpu.concatenate %473, %472 in 1 : vector<16x311xbf16>, vector<16x1xbf16> -> vector<16x312xbf16>
    %cst_150 = arith.constant 0.000000e+00 : bf16
    %475 = vector.broadcast %cst_150 : bf16 to vector<16x2xbf16>
    %476 = vector.extract_strided_slice %470 {offsets = [0, 2], sizes = [16, 310], strides = [1, 1]} : vector<16x312xbf16> to vector<16x310xbf16>
    %477 = tpu.concatenate %476, %475 in 1 : vector<16x310xbf16>, vector<16x2xbf16> -> vector<16x312xbf16>
    %478 = tpu.concatenate %470, %474, %477 in 0 : vector<16x312xbf16>, vector<16x312xbf16>, vector<16x312xbf16> -> vector<48x312xbf16>
    %cst_151 = arith.constant dense<0.000000e+00> : vector<48x152xf32>
    %479 = tpu.matmul %478, %471, %cst_151 {dimension_numbers = #tpu.dot_dimension_numbers<[1], [0], [0], [1], [0, 0, 1, 1], [], []>} : vector<48x312xbf16>, vector<312x152xbf16>, vector<48x152xf32> -> vector<48x152xf32>
    %c192 = arith.constant 192 : index
    %c0_152 = arith.constant 0 : index
    %480 = vector.load %arg11[%c192, %c0_152] : memref<832x96xbf16, #tpu.memory_space<vmem>>, vector<64x48xbf16>
    %481 = arith.truncf %479 : vector<48x152xf32> to vector<48x152xbf16>
    %cst_153 = arith.constant dense<0.000000e+00> : vector<64x152xf32>
    %482 = tpu.matmul %480, %481, %cst_153 {dimension_numbers = #tpu.dot_dimension_numbers<[1], [0], [0], [1], [0, 0, 1, 1], [], []>} : vector<64x48xbf16>, vector<48x152xbf16>, vector<64x152xf32> -> vector<64x152xf32>
    %483 = vector.extract_strided_slice %482 {offsets = [32, 0], sizes = [32, 152], strides = [1, 1]} : vector<64x152xf32> to vector<32x152xf32>
    %484 = vector.extract_strided_slice %482 {offsets = [0, 0], sizes = [32, 152], strides = [1, 1]} : vector<64x152xf32> to vector<32x152xf32>
    %cst_154 = arith.constant 0.000000e+00 : f32
    %485 = vector.broadcast %cst_154 : f32 to vector<32x19xf32>
    %486 = vector.extract_strided_slice %484 {offsets = [0, 0], sizes = [32, 133], strides = [1, 1]} : vector<32x152xf32> to vector<32x133xf32>
    %487 = tpu.concatenate %485, %486 in 1 : vector<32x19xf32>, vector<32x133xf32> -> vector<32x152xf32>
    %488 = arith.addf %483, %487 : vector<32x152xf32>
    %c144_155 = arith.constant 144 : index
    %c0_156 = arith.constant 0 : index
    %489 = vector.load %arg12[%c144_155, %c0_156] : memref<448x5xf32, #tpu.memory_space<vmem>>, vector<16x5xf32>
    %490 = vector.extract_strided_slice %488 {offsets = [0, 0], sizes = [16, 152], strides = [1, 1]} : vector<32x152xf32> to vector<16x152xf32>
    %491 = vector.extract_strided_slice %489 {offsets = [0, 3], sizes = [16, 1], strides = [1, 1]} : vector<16x5xf32> to vector<16x1xf32>
    %492 = vector.broadcast %491 : vector<16x1xf32> to vector<16x152xf32>
    %493 = arith.addf %490, %492 : vector<16x152xf32>
    %494 = vector.extract_strided_slice %488 {offsets = [16, 0], sizes = [16, 152], strides = [1, 1]} : vector<32x152xf32> to vector<16x152xf32>
    %495 = vector.extract_strided_slice %489 {offsets = [0, 4], sizes = [16, 1], strides = [1, 1]} : vector<16x5xf32> to vector<16x1xf32>
    %496 = vector.broadcast %495 : vector<16x1xf32> to vector<16x152xf32>
    %497 = arith.addf %494, %496 : vector<16x152xf32>
    %498 = arith.negf %497 : vector<16x152xf32>
    %499 = math.exp %498 : vector<16x152xf32>
    %cst_157 = arith.constant 1.000000e+00 : f32
    %500 = vector.broadcast %cst_157 : f32 to vector<16x152xf32>
    %501 = arith.addf %500, %499 : vector<16x152xf32>
    %502 = arith.divf %500, %501 : vector<16x152xf32>
    %503 = arith.mulf %493, %502 : vector<16x152xf32>
    %cst_158 = arith.constant dense<0.000000e+00> : vector<16xf32>
    %504 = vector.multi_reduction <add>, %503, %cst_158 [1] : vector<16x152xf32> to vector<16xf32>
    %505 = vector.shape_cast %504 : vector<16xf32> to vector<16x1xf32>
    %cst_159 = arith.constant 1.520000e+02 : f32
    %506 = vector.broadcast %cst_159 : f32 to vector<16x1xf32>
    %507 = arith.divf %505, %506 : vector<16x1xf32>
    %508 = arith.mulf %503, %503 : vector<16x152xf32>
    %cst_160 = arith.constant dense<0.000000e+00> : vector<16xf32>
    %509 = vector.multi_reduction <add>, %508, %cst_160 [1] : vector<16x152xf32> to vector<16xf32>
    %510 = vector.shape_cast %509 : vector<16xf32> to vector<16x1xf32>
    %cst_161 = arith.constant 1.520000e+02 : f32
    %511 = vector.broadcast %cst_161 : f32 to vector<16x1xf32>
    %512 = arith.divf %510, %511 : vector<16x1xf32>
    %513 = arith.mulf %507, %507 : vector<16x1xf32>
    %514 = arith.subf %512, %513 : vector<16x1xf32>
    %cst_162 = arith.constant 0.000000e+00 : f32
    %515 = vector.broadcast %cst_162 : f32 to vector<16x1xf32>
    %516 = arith.maximumf %514, %515 : vector<16x1xf32>
    %517 = vector.broadcast %507 : vector<16x1xf32> to vector<16x152xf32>
    %518 = arith.subf %503, %517 : vector<16x152xf32>
    %cst_163 = arith.constant 9.99999974E-6 : f32
    %519 = vector.broadcast %cst_163 : f32 to vector<16x1xf32>
    %520 = arith.addf %516, %519 : vector<16x1xf32>
    %521 = math.rsqrt %520 : vector<16x1xf32>
    %522 = vector.broadcast %521 : vector<16x1xf32> to vector<16x152xf32>
    %523 = arith.mulf %518, %522 : vector<16x152xf32>
    %524 = vector.extract_strided_slice %489 {offsets = [0, 0], sizes = [16, 1], strides = [1, 1]} : vector<16x5xf32> to vector<16x1xf32>
    %525 = vector.broadcast %524 : vector<16x1xf32> to vector<16x152xf32>
    %526 = arith.mulf %523, %525 : vector<16x152xf32>
    %527 = vector.extract_strided_slice %489 {offsets = [0, 1], sizes = [16, 1], strides = [1, 1]} : vector<16x5xf32> to vector<16x1xf32>
    %528 = vector.broadcast %527 : vector<16x1xf32> to vector<16x152xf32>
    %529 = arith.addf %526, %528 : vector<16x152xf32>
    %cst_164 = arith.constant 0.000000e+00 : f32
    %530 = vector.broadcast %cst_164 : f32 to vector<16x152xf32>
    %531 = arith.cmpf oge, %529, %530 : vector<16x152xf32>
    %532 = vector.extract_strided_slice %489 {offsets = [0, 2], sizes = [16, 1], strides = [1, 1]} : vector<16x5xf32> to vector<16x1xf32>
    %533 = vector.broadcast %532 : vector<16x1xf32> to vector<16x152xf32>
    %534 = arith.mulf %533, %529 : vector<16x152xf32>
    %535 = arith.select %531, %529, %534 : vector<16x152xi1>, vector<16x152xf32>
    %536 = arith.truncf %535 : vector<16x152xf32> to vector<16x152xbf16>
    %c0_165 = arith.constant 0 : index
    %c0_166 = arith.constant 0 : index
    %537 = vector.load %arg4[%c0_165, %c0_166] : memref<152x72xbf16, #tpu.memory_space<vmem>>, vector<152x72xbf16>
    %cst_167 = arith.constant 0.000000e+00 : bf16
    %538 = vector.broadcast %cst_167 : bf16 to vector<16x1xbf16>
    %539 = vector.extract_strided_slice %536 {offsets = [0, 1], sizes = [16, 151], strides = [1, 1]} : vector<16x152xbf16> to vector<16x151xbf16>
    %540 = tpu.concatenate %539, %538 in 1 : vector<16x151xbf16>, vector<16x1xbf16> -> vector<16x152xbf16>
    %cst_168 = arith.constant 0.000000e+00 : bf16
    %541 = vector.broadcast %cst_168 : bf16 to vector<16x2xbf16>
    %542 = vector.extract_strided_slice %536 {offsets = [0, 2], sizes = [16, 150], strides = [1, 1]} : vector<16x152xbf16> to vector<16x150xbf16>
    %543 = tpu.concatenate %542, %541 in 1 : vector<16x150xbf16>, vector<16x2xbf16> -> vector<16x152xbf16>
    %544 = tpu.concatenate %536, %540, %543 in 0 : vector<16x152xbf16>, vector<16x152xbf16>, vector<16x152xbf16> -> vector<48x152xbf16>
    %cst_169 = arith.constant dense<0.000000e+00> : vector<48x72xf32>
    %545 = tpu.matmul %544, %537, %cst_169 {dimension_numbers = #tpu.dot_dimension_numbers<[1], [0], [0], [1], [0, 0, 1, 1], [], []>} : vector<48x152xbf16>, vector<152x72xbf16>, vector<48x72xf32> -> vector<48x72xf32>
    %c256 = arith.constant 256 : index
    %c0_170 = arith.constant 0 : index
    %546 = vector.load %arg11[%c256, %c0_170] : memref<832x96xbf16, #tpu.memory_space<vmem>>, vector<16x48xbf16>
    %547 = arith.truncf %545 : vector<48x72xf32> to vector<48x72xbf16>
    %cst_171 = arith.constant dense<0.000000e+00> : vector<16x72xf32>
    %548 = tpu.matmul %546, %547, %cst_171 {dimension_numbers = #tpu.dot_dimension_numbers<[1], [0], [0], [1], [0, 0, 1, 1], [], []>} : vector<16x48xbf16>, vector<48x72xbf16>, vector<16x72xf32> -> vector<16x72xf32>
    %c160_172 = arith.constant 160 : index
    %c0_173 = arith.constant 0 : index
    %549 = vector.load %arg12[%c160_172, %c0_173] : memref<448x5xf32, #tpu.memory_space<vmem>>, vector<16x5xf32>
    %550 = vector.extract_strided_slice %549 {offsets = [0, 3], sizes = [16, 1], strides = [1, 1]} : vector<16x5xf32> to vector<16x1xf32>
    %551 = vector.broadcast %550 : vector<16x1xf32> to vector<16x72xf32>
    %552 = arith.addf %548, %551 : vector<16x72xf32>
    %cst_174 = arith.constant dense<0.000000e+00> : vector<16xf32>
    %553 = vector.multi_reduction <add>, %552, %cst_174 [1] : vector<16x72xf32> to vector<16xf32>
    %554 = vector.shape_cast %553 : vector<16xf32> to vector<16x1xf32>
    %cst_175 = arith.constant 7.200000e+01 : f32
    %555 = vector.broadcast %cst_175 : f32 to vector<16x1xf32>
    %556 = arith.divf %554, %555 : vector<16x1xf32>
    %557 = arith.mulf %552, %552 : vector<16x72xf32>
    %cst_176 = arith.constant dense<0.000000e+00> : vector<16xf32>
    %558 = vector.multi_reduction <add>, %557, %cst_176 [1] : vector<16x72xf32> to vector<16xf32>
    %559 = vector.shape_cast %558 : vector<16xf32> to vector<16x1xf32>
    %cst_177 = arith.constant 7.200000e+01 : f32
    %560 = vector.broadcast %cst_177 : f32 to vector<16x1xf32>
    %561 = arith.divf %559, %560 : vector<16x1xf32>
    %562 = arith.mulf %556, %556 : vector<16x1xf32>
    %563 = arith.subf %561, %562 : vector<16x1xf32>
    %cst_178 = arith.constant 0.000000e+00 : f32
    %564 = vector.broadcast %cst_178 : f32 to vector<16x1xf32>
    %565 = arith.maximumf %563, %564 : vector<16x1xf32>
    %566 = vector.broadcast %556 : vector<16x1xf32> to vector<16x72xf32>
    %567 = arith.subf %552, %566 : vector<16x72xf32>
    %cst_179 = arith.constant 9.99999974E-6 : f32
    %568 = vector.broadcast %cst_179 : f32 to vector<16x1xf32>
    %569 = arith.addf %565, %568 : vector<16x1xf32>
    %570 = math.rsqrt %569 : vector<16x1xf32>
    %571 = vector.broadcast %570 : vector<16x1xf32> to vector<16x72xf32>
    %572 = arith.mulf %567, %571 : vector<16x72xf32>
    %573 = vector.extract_strided_slice %549 {offsets = [0, 0], sizes = [16, 1], strides = [1, 1]} : vector<16x5xf32> to vector<16x1xf32>
    %574 = vector.broadcast %573 : vector<16x1xf32> to vector<16x72xf32>
    %575 = arith.mulf %572, %574 : vector<16x72xf32>
    %576 = vector.extract_strided_slice %549 {offsets = [0, 1], sizes = [16, 1], strides = [1, 1]} : vector<16x5xf32> to vector<16x1xf32>
    %577 = vector.broadcast %576 : vector<16x1xf32> to vector<16x72xf32>
    %578 = arith.addf %575, %577 : vector<16x72xf32>
    %cst_180 = arith.constant 0.000000e+00 : f32
    %579 = vector.broadcast %cst_180 : f32 to vector<16x72xf32>
    %580 = arith.cmpf oge, %578, %579 : vector<16x72xf32>
    %581 = vector.extract_strided_slice %549 {offsets = [0, 2], sizes = [16, 1], strides = [1, 1]} : vector<16x5xf32> to vector<16x1xf32>
    %582 = vector.broadcast %581 : vector<16x1xf32> to vector<16x72xf32>
    %583 = arith.mulf %582, %578 : vector<16x72xf32>
    %584 = arith.select %580, %578, %583 : vector<16x72xi1>, vector<16x72xf32>
    %585 = arith.truncf %584 : vector<16x72xf32> to vector<16x72xbf16>
    %c0_181 = arith.constant 0 : index
    %c0_182 = arith.constant 0 : index
    %586 = vector.load %arg5[%c0_181, %c0_182] : memref<72x32xbf16, #tpu.memory_space<vmem>>, vector<72x32xbf16>
    %cst_183 = arith.constant 0.000000e+00 : bf16
    %587 = vector.broadcast %cst_183 : bf16 to vector<16x1xbf16>
    %588 = vector.extract_strided_slice %585 {offsets = [0, 1], sizes = [16, 71], strides = [1, 1]} : vector<16x72xbf16> to vector<16x71xbf16>
    %589 = tpu.concatenate %588, %587 in 1 : vector<16x71xbf16>, vector<16x1xbf16> -> vector<16x72xbf16>
    %cst_184 = arith.constant 0.000000e+00 : bf16
    %590 = vector.broadcast %cst_184 : bf16 to vector<16x2xbf16>
    %591 = vector.extract_strided_slice %585 {offsets = [0, 2], sizes = [16, 70], strides = [1, 1]} : vector<16x72xbf16> to vector<16x70xbf16>
    %592 = tpu.concatenate %591, %590 in 1 : vector<16x70xbf16>, vector<16x2xbf16> -> vector<16x72xbf16>
    %593 = tpu.concatenate %585, %589, %592 in 0 : vector<16x72xbf16>, vector<16x72xbf16>, vector<16x72xbf16> -> vector<48x72xbf16>
    %cst_185 = arith.constant dense<0.000000e+00> : vector<48x32xf32>
    %594 = tpu.matmul %593, %586, %cst_185 {dimension_numbers = #tpu.dot_dimension_numbers<[1], [0], [0], [1], [0, 0, 1, 1], [], []>} : vector<48x72xbf16>, vector<72x32xbf16>, vector<48x32xf32> -> vector<48x32xf32>
    %c272 = arith.constant 272 : index
    %c0_186 = arith.constant 0 : index
    %595 = vector.load %arg11[%c272, %c0_186] : memref<832x96xbf16, #tpu.memory_space<vmem>>, vector<16x48xbf16>
    %596 = arith.truncf %594 : vector<48x32xf32> to vector<48x32xbf16>
    %cst_187 = arith.constant dense<0.000000e+00> : vector<16x32xf32>
    %597 = tpu.matmul %595, %596, %cst_187 {dimension_numbers = #tpu.dot_dimension_numbers<[1], [0], [0], [1], [0, 0, 1, 1], [], []>} : vector<16x48xbf16>, vector<48x32xbf16>, vector<16x32xf32> -> vector<16x32xf32>
    %c176_188 = arith.constant 176 : index
    %c0_189 = arith.constant 0 : index
    %598 = vector.load %arg12[%c176_188, %c0_189] : memref<448x5xf32, #tpu.memory_space<vmem>>, vector<16x5xf32>
    %599 = vector.extract_strided_slice %598 {offsets = [0, 3], sizes = [16, 1], strides = [1, 1]} : vector<16x5xf32> to vector<16x1xf32>
    %600 = vector.broadcast %599 : vector<16x1xf32> to vector<16x32xf32>
    %601 = arith.addf %597, %600 : vector<16x32xf32>
    %cst_190 = arith.constant dense<0.000000e+00> : vector<16xf32>
    %602 = vector.multi_reduction <add>, %601, %cst_190 [1] : vector<16x32xf32> to vector<16xf32>
    %603 = vector.shape_cast %602 : vector<16xf32> to vector<16x1xf32>
    %cst_191 = arith.constant 3.200000e+01 : f32
    %604 = vector.broadcast %cst_191 : f32 to vector<16x1xf32>
    %605 = arith.divf %603, %604 : vector<16x1xf32>
    %606 = arith.mulf %601, %601 : vector<16x32xf32>
    %cst_192 = arith.constant dense<0.000000e+00> : vector<16xf32>
    %607 = vector.multi_reduction <add>, %606, %cst_192 [1] : vector<16x32xf32> to vector<16xf32>
    %608 = vector.shape_cast %607 : vector<16xf32> to vector<16x1xf32>
    %cst_193 = arith.constant 3.200000e+01 : f32
    %609 = vector.broadcast %cst_193 : f32 to vector<16x1xf32>
    %610 = arith.divf %608, %609 : vector<16x1xf32>
    %611 = arith.mulf %605, %605 : vector<16x1xf32>
    %612 = arith.subf %610, %611 : vector<16x1xf32>
    %cst_194 = arith.constant 0.000000e+00 : f32
    %613 = vector.broadcast %cst_194 : f32 to vector<16x1xf32>
    %614 = arith.maximumf %612, %613 : vector<16x1xf32>
    %615 = vector.broadcast %605 : vector<16x1xf32> to vector<16x32xf32>
    %616 = arith.subf %601, %615 : vector<16x32xf32>
    %cst_195 = arith.constant 9.99999974E-6 : f32
    %617 = vector.broadcast %cst_195 : f32 to vector<16x1xf32>
    %618 = arith.addf %614, %617 : vector<16x1xf32>
    %619 = math.rsqrt %618 : vector<16x1xf32>
    %620 = vector.broadcast %619 : vector<16x1xf32> to vector<16x32xf32>
    %621 = arith.mulf %616, %620 : vector<16x32xf32>
    %622 = vector.extract_strided_slice %598 {offsets = [0, 0], sizes = [16, 1], strides = [1, 1]} : vector<16x5xf32> to vector<16x1xf32>
    %623 = vector.broadcast %622 : vector<16x1xf32> to vector<16x32xf32>
    %624 = arith.mulf %621, %623 : vector<16x32xf32>
    %625 = vector.extract_strided_slice %598 {offsets = [0, 1], sizes = [16, 1], strides = [1, 1]} : vector<16x5xf32> to vector<16x1xf32>
    %626 = vector.broadcast %625 : vector<16x1xf32> to vector<16x32xf32>
    %627 = arith.addf %624, %626 : vector<16x32xf32>
    %cst_196 = arith.constant 0.000000e+00 : f32
    %628 = vector.broadcast %cst_196 : f32 to vector<16x32xf32>
    %629 = arith.cmpf oge, %627, %628 : vector<16x32xf32>
    %630 = vector.extract_strided_slice %598 {offsets = [0, 2], sizes = [16, 1], strides = [1, 1]} : vector<16x5xf32> to vector<16x1xf32>
    %631 = vector.broadcast %630 : vector<16x1xf32> to vector<16x32xf32>
    %632 = arith.mulf %631, %627 : vector<16x32xf32>
    %633 = arith.select %629, %627, %632 : vector<16x32xi1>, vector<16x32xf32>
    %634 = arith.truncf %633 : vector<16x32xf32> to vector<16x32xbf16>
    %c0_197 = arith.constant 0 : index
    %c0_198 = arith.constant 0 : index
    %635 = vector.load %arg6[%c0_197, %c0_198] : memref<32x8xbf16, #tpu.memory_space<vmem>>, vector<32x8xbf16>
    %cst_199 = arith.constant 0.000000e+00 : bf16
    %636 = vector.broadcast %cst_199 : bf16 to vector<16x1xbf16>
    %637 = vector.extract_strided_slice %634 {offsets = [0, 1], sizes = [16, 31], strides = [1, 1]} : vector<16x32xbf16> to vector<16x31xbf16>
    %638 = tpu.concatenate %637, %636 in 1 : vector<16x31xbf16>, vector<16x1xbf16> -> vector<16x32xbf16>
    %cst_200 = arith.constant 0.000000e+00 : bf16
    %639 = vector.broadcast %cst_200 : bf16 to vector<16x2xbf16>
    %640 = vector.extract_strided_slice %634 {offsets = [0, 2], sizes = [16, 30], strides = [1, 1]} : vector<16x32xbf16> to vector<16x30xbf16>
    %641 = tpu.concatenate %640, %639 in 1 : vector<16x30xbf16>, vector<16x2xbf16> -> vector<16x32xbf16>
    %642 = tpu.concatenate %634, %638, %641 in 0 : vector<16x32xbf16>, vector<16x32xbf16>, vector<16x32xbf16> -> vector<48x32xbf16>
    %cst_201 = arith.constant dense<0.000000e+00> : vector<48x8xf32>
    %643 = tpu.matmul %642, %635, %cst_201 {dimension_numbers = #tpu.dot_dimension_numbers<[1], [0], [0], [1], [0, 0, 1, 1], [], []>} : vector<48x32xbf16>, vector<32x8xbf16>, vector<48x8xf32> -> vector<48x8xf32>
    %c288 = arith.constant 288 : index
    %c0_202 = arith.constant 0 : index
    %644 = vector.load %arg11[%c288, %c0_202] : memref<832x96xbf16, #tpu.memory_space<vmem>>, vector<16x48xbf16>
    %645 = arith.truncf %643 : vector<48x8xf32> to vector<48x8xbf16>
    %cst_203 = arith.constant dense<0.000000e+00> : vector<16x8xf32>
    %646 = tpu.matmul %644, %645, %cst_203 {dimension_numbers = #tpu.dot_dimension_numbers<[1], [0], [0], [1], [0, 0, 1, 1], [], []>} : vector<16x48xbf16>, vector<48x8xbf16>, vector<16x8xf32> -> vector<16x8xf32>
    %c192_204 = arith.constant 192 : index
    %c0_205 = arith.constant 0 : index
    %647 = vector.load %arg12[%c192_204, %c0_205] : memref<448x5xf32, #tpu.memory_space<vmem>>, vector<16x5xf32>
    %648 = vector.extract_strided_slice %647 {offsets = [0, 3], sizes = [16, 1], strides = [1, 1]} : vector<16x5xf32> to vector<16x1xf32>
    %649 = vector.broadcast %648 : vector<16x1xf32> to vector<16x8xf32>
    %650 = arith.addf %646, %649 : vector<16x8xf32>
    %cst_206 = arith.constant dense<0.000000e+00> : vector<16xf32>
    %651 = vector.multi_reduction <add>, %650, %cst_206 [1] : vector<16x8xf32> to vector<16xf32>
    %652 = vector.shape_cast %651 : vector<16xf32> to vector<16x1xf32>
    %cst_207 = arith.constant 8.000000e+00 : f32
    %653 = vector.broadcast %cst_207 : f32 to vector<16x1xf32>
    %654 = arith.divf %652, %653 : vector<16x1xf32>
    %655 = arith.mulf %650, %650 : vector<16x8xf32>
    %cst_208 = arith.constant dense<0.000000e+00> : vector<16xf32>
    %656 = vector.multi_reduction <add>, %655, %cst_208 [1] : vector<16x8xf32> to vector<16xf32>
    %657 = vector.shape_cast %656 : vector<16xf32> to vector<16x1xf32>
    %cst_209 = arith.constant 8.000000e+00 : f32
    %658 = vector.broadcast %cst_209 : f32 to vector<16x1xf32>
    %659 = arith.divf %657, %658 : vector<16x1xf32>
    %660 = arith.mulf %654, %654 : vector<16x1xf32>
    %661 = arith.subf %659, %660 : vector<16x1xf32>
    %cst_210 = arith.constant 0.000000e+00 : f32
    %662 = vector.broadcast %cst_210 : f32 to vector<16x1xf32>
    %663 = arith.maximumf %661, %662 : vector<16x1xf32>
    %664 = vector.broadcast %654 : vector<16x1xf32> to vector<16x8xf32>
    %665 = arith.subf %650, %664 : vector<16x8xf32>
    %cst_211 = arith.constant 9.99999974E-6 : f32
    %666 = vector.broadcast %cst_211 : f32 to vector<16x1xf32>
    %667 = arith.addf %663, %666 : vector<16x1xf32>
    %668 = math.rsqrt %667 : vector<16x1xf32>
    %669 = vector.broadcast %668 : vector<16x1xf32> to vector<16x8xf32>
    %670 = arith.mulf %665, %669 : vector<16x8xf32>
    %671 = vector.extract_strided_slice %647 {offsets = [0, 0], sizes = [16, 1], strides = [1, 1]} : vector<16x5xf32> to vector<16x1xf32>
    %672 = vector.broadcast %671 : vector<16x1xf32> to vector<16x8xf32>
    %673 = arith.mulf %670, %672 : vector<16x8xf32>
    %674 = vector.extract_strided_slice %647 {offsets = [0, 1], sizes = [16, 1], strides = [1, 1]} : vector<16x5xf32> to vector<16x1xf32>
    %675 = vector.broadcast %674 : vector<16x1xf32> to vector<16x8xf32>
    %676 = arith.addf %673, %675 : vector<16x8xf32>
    %cst_212 = arith.constant 0.000000e+00 : f32
    %677 = vector.broadcast %cst_212 : f32 to vector<16x8xf32>
    %678 = arith.cmpf oge, %676, %677 : vector<16x8xf32>
    %679 = vector.extract_strided_slice %647 {offsets = [0, 2], sizes = [16, 1], strides = [1, 1]} : vector<16x5xf32> to vector<16x1xf32>
    %680 = vector.broadcast %679 : vector<16x1xf32> to vector<16x8xf32>
    %681 = arith.mulf %680, %676 : vector<16x8xf32>
    %682 = arith.select %678, %676, %681 : vector<16x8xi1>, vector<16x8xf32>
    %683 = arith.truncf %682 : vector<16x8xf32> to vector<16x8xbf16>
    %c0_213 = arith.constant 0 : index
    %c0_214 = arith.constant 0 : index
    %684 = vector.load %arg7[%c0_213, %c0_214] : memref<8x32xbf16, #tpu.memory_space<vmem>>, vector<8x32xbf16>
    %cst_215 = arith.constant dense<0.000000e+00> : vector<16x32xf32>
    %685 = tpu.matmul %683, %684, %cst_215 {dimension_numbers = #tpu.dot_dimension_numbers<[1], [0], [0], [1], [0, 0, 1, 1], [], []>} : vector<16x8xbf16>, vector<8x32xbf16>, vector<16x32xf32> -> vector<16x32xf32>
    %686 = arith.truncf %685 : vector<16x32xf32> to vector<16x32xbf16>
    %cst_216 = arith.constant 0.000000e+00 : bf16
    %687 = vector.broadcast %cst_216 : bf16 to vector<16x1xbf16>
    %688 = vector.extract_strided_slice %686 {offsets = [0, 0], sizes = [16, 31], strides = [1, 1]} : vector<16x32xbf16> to vector<16x31xbf16>
    %689 = tpu.concatenate %687, %688 in 1 : vector<16x1xbf16>, vector<16x31xbf16> -> vector<16x32xbf16>
    %cst_217 = arith.constant 0.000000e+00 : bf16
    %690 = vector.broadcast %cst_217 : bf16 to vector<16x2xbf16>
    %691 = vector.extract_strided_slice %686 {offsets = [0, 0], sizes = [16, 30], strides = [1, 1]} : vector<16x32xbf16> to vector<16x30xbf16>
    %692 = tpu.concatenate %690, %691 in 1 : vector<16x2xbf16>, vector<16x30xbf16> -> vector<16x32xbf16>
    %693 = tpu.concatenate %686, %689, %692 in 0 : vector<16x32xbf16>, vector<16x32xbf16>, vector<16x32xbf16> -> vector<48x32xbf16>
    %c304 = arith.constant 304 : index
    %c0_218 = arith.constant 0 : index
    %694 = vector.load %arg11[%c304, %c0_218] : memref<832x96xbf16, #tpu.memory_space<vmem>>, vector<16x48xbf16>
    %cst_219 = arith.constant dense<0.000000e+00> : vector<16x32xf32>
    %695 = tpu.matmul %694, %693, %cst_219 {dimension_numbers = #tpu.dot_dimension_numbers<[1], [0], [0], [1], [0, 0, 1, 1], [], []>} : vector<16x48xbf16>, vector<48x32xbf16>, vector<16x32xf32> -> vector<16x32xf32>
    %c208 = arith.constant 208 : index
    %c0_220 = arith.constant 0 : index
    %696 = vector.load %arg12[%c208, %c0_220] : memref<448x5xf32, #tpu.memory_space<vmem>>, vector<16x5xf32>
    %697 = vector.extract_strided_slice %696 {offsets = [0, 3], sizes = [16, 1], strides = [1, 1]} : vector<16x5xf32> to vector<16x1xf32>
    %698 = vector.broadcast %697 : vector<16x1xf32> to vector<16x32xf32>
    %699 = arith.addf %695, %698 : vector<16x32xf32>
    %cst_221 = arith.constant dense<0.000000e+00> : vector<16xf32>
    %700 = vector.multi_reduction <add>, %699, %cst_221 [1] : vector<16x32xf32> to vector<16xf32>
    %701 = vector.shape_cast %700 : vector<16xf32> to vector<16x1xf32>
    %cst_222 = arith.constant 3.200000e+01 : f32
    %702 = vector.broadcast %cst_222 : f32 to vector<16x1xf32>
    %703 = arith.divf %701, %702 : vector<16x1xf32>
    %704 = arith.mulf %699, %699 : vector<16x32xf32>
    %cst_223 = arith.constant dense<0.000000e+00> : vector<16xf32>
    %705 = vector.multi_reduction <add>, %704, %cst_223 [1] : vector<16x32xf32> to vector<16xf32>
    %706 = vector.shape_cast %705 : vector<16xf32> to vector<16x1xf32>
    %cst_224 = arith.constant 3.200000e+01 : f32
    %707 = vector.broadcast %cst_224 : f32 to vector<16x1xf32>
    %708 = arith.divf %706, %707 : vector<16x1xf32>
    %709 = arith.mulf %703, %703 : vector<16x1xf32>
    %710 = arith.subf %708, %709 : vector<16x1xf32>
    %cst_225 = arith.constant 0.000000e+00 : f32
    %711 = vector.broadcast %cst_225 : f32 to vector<16x1xf32>
    %712 = arith.maximumf %710, %711 : vector<16x1xf32>
    %713 = vector.broadcast %703 : vector<16x1xf32> to vector<16x32xf32>
    %714 = arith.subf %699, %713 : vector<16x32xf32>
    %cst_226 = arith.constant 9.99999974E-6 : f32
    %715 = vector.broadcast %cst_226 : f32 to vector<16x1xf32>
    %716 = arith.addf %712, %715 : vector<16x1xf32>
    %717 = math.rsqrt %716 : vector<16x1xf32>
    %718 = vector.broadcast %717 : vector<16x1xf32> to vector<16x32xf32>
    %719 = arith.mulf %714, %718 : vector<16x32xf32>
    %720 = vector.extract_strided_slice %696 {offsets = [0, 0], sizes = [16, 1], strides = [1, 1]} : vector<16x5xf32> to vector<16x1xf32>
    %721 = vector.broadcast %720 : vector<16x1xf32> to vector<16x32xf32>
    %722 = arith.mulf %719, %721 : vector<16x32xf32>
    %723 = vector.extract_strided_slice %696 {offsets = [0, 1], sizes = [16, 1], strides = [1, 1]} : vector<16x5xf32> to vector<16x1xf32>
    %724 = vector.broadcast %723 : vector<16x1xf32> to vector<16x32xf32>
    %725 = arith.addf %722, %724 : vector<16x32xf32>
    %cst_227 = arith.constant 0.000000e+00 : f32
    %726 = vector.broadcast %cst_227 : f32 to vector<16x32xf32>
    %727 = arith.cmpf oge, %725, %726 : vector<16x32xf32>
    %728 = vector.extract_strided_slice %696 {offsets = [0, 2], sizes = [16, 1], strides = [1, 1]} : vector<16x5xf32> to vector<16x1xf32>
    %729 = vector.broadcast %728 : vector<16x1xf32> to vector<16x32xf32>
    %730 = arith.mulf %729, %725 : vector<16x32xf32>
    %731 = arith.select %727, %725, %730 : vector<16x32xi1>, vector<16x32xf32>
    %732 = tpu.concatenate %731, %633 in 0 : vector<16x32xf32>, vector<16x32xf32> -> vector<32x32xf32>
    %733 = arith.truncf %732 : vector<32x32xf32> to vector<32x32xbf16>
    %c0_228 = arith.constant 0 : index
    %c0_229 = arith.constant 0 : index
    %734 = vector.load %arg8[%c0_228, %c0_229] : memref<32x72xbf16, #tpu.memory_space<vmem>>, vector<32x72xbf16>
    %cst_230 = arith.constant dense<0.000000e+00> : vector<32x72xf32>
    %735 = tpu.matmul %733, %734, %cst_230 {dimension_numbers = #tpu.dot_dimension_numbers<[1], [0], [0], [1], [0, 0, 1, 1], [], []>} : vector<32x32xbf16>, vector<32x72xbf16>, vector<32x72xf32> -> vector<32x72xf32>
    %736 = arith.truncf %735 : vector<32x72xf32> to vector<32x72xbf16>
    %cst_231 = arith.constant 0.000000e+00 : bf16
    %737 = vector.broadcast %cst_231 : bf16 to vector<32x1xbf16>
    %738 = vector.extract_strided_slice %736 {offsets = [0, 0], sizes = [32, 71], strides = [1, 1]} : vector<32x72xbf16> to vector<32x71xbf16>
    %739 = tpu.concatenate %737, %738 in 1 : vector<32x1xbf16>, vector<32x71xbf16> -> vector<32x72xbf16>
    %cst_232 = arith.constant 0.000000e+00 : bf16
    %740 = vector.broadcast %cst_232 : bf16 to vector<32x2xbf16>
    %741 = vector.extract_strided_slice %736 {offsets = [0, 0], sizes = [32, 70], strides = [1, 1]} : vector<32x72xbf16> to vector<32x70xbf16>
    %742 = tpu.concatenate %740, %741 in 1 : vector<32x2xbf16>, vector<32x70xbf16> -> vector<32x72xbf16>
    %743 = tpu.concatenate %736, %739, %742 in 0 : vector<32x72xbf16>, vector<32x72xbf16>, vector<32x72xbf16> -> vector<96x72xbf16>
    %c320 = arith.constant 320 : index
    %c0_233 = arith.constant 0 : index
    %744 = vector.load %arg11[%c320, %c0_233] : memref<832x96xbf16, #tpu.memory_space<vmem>>, vector<16x96xbf16>
    %cst_234 = arith.constant dense<0.000000e+00> : vector<16x72xf32>
    %745 = tpu.matmul %744, %743, %cst_234 {dimension_numbers = #tpu.dot_dimension_numbers<[1], [0], [0], [1], [0, 0, 1, 1], [], []>} : vector<16x96xbf16>, vector<96x72xbf16>, vector<16x72xf32> -> vector<16x72xf32>
    %c224 = arith.constant 224 : index
    %c0_235 = arith.constant 0 : index
    %746 = vector.load %arg12[%c224, %c0_235] : memref<448x5xf32, #tpu.memory_space<vmem>>, vector<16x5xf32>
    %747 = vector.extract_strided_slice %746 {offsets = [0, 3], sizes = [16, 1], strides = [1, 1]} : vector<16x5xf32> to vector<16x1xf32>
    %748 = vector.broadcast %747 : vector<16x1xf32> to vector<16x72xf32>
    %749 = arith.addf %745, %748 : vector<16x72xf32>
    %cst_236 = arith.constant dense<0.000000e+00> : vector<16xf32>
    %750 = vector.multi_reduction <add>, %749, %cst_236 [1] : vector<16x72xf32> to vector<16xf32>
    %751 = vector.shape_cast %750 : vector<16xf32> to vector<16x1xf32>
    %cst_237 = arith.constant 7.200000e+01 : f32
    %752 = vector.broadcast %cst_237 : f32 to vector<16x1xf32>
    %753 = arith.divf %751, %752 : vector<16x1xf32>
    %754 = arith.mulf %749, %749 : vector<16x72xf32>
    %cst_238 = arith.constant dense<0.000000e+00> : vector<16xf32>
    %755 = vector.multi_reduction <add>, %754, %cst_238 [1] : vector<16x72xf32> to vector<16xf32>
    %756 = vector.shape_cast %755 : vector<16xf32> to vector<16x1xf32>
    %cst_239 = arith.constant 7.200000e+01 : f32
    %757 = vector.broadcast %cst_239 : f32 to vector<16x1xf32>
    %758 = arith.divf %756, %757 : vector<16x1xf32>
    %759 = arith.mulf %753, %753 : vector<16x1xf32>
    %760 = arith.subf %758, %759 : vector<16x1xf32>
    %cst_240 = arith.constant 0.000000e+00 : f32
    %761 = vector.broadcast %cst_240 : f32 to vector<16x1xf32>
    %762 = arith.maximumf %760, %761 : vector<16x1xf32>
    %763 = vector.broadcast %753 : vector<16x1xf32> to vector<16x72xf32>
    %764 = arith.subf %749, %763 : vector<16x72xf32>
    %cst_241 = arith.constant 9.99999974E-6 : f32
    %765 = vector.broadcast %cst_241 : f32 to vector<16x1xf32>
    %766 = arith.addf %762, %765 : vector<16x1xf32>
    %767 = math.rsqrt %766 : vector<16x1xf32>
    %768 = vector.broadcast %767 : vector<16x1xf32> to vector<16x72xf32>
    %769 = arith.mulf %764, %768 : vector<16x72xf32>
    %770 = vector.extract_strided_slice %746 {offsets = [0, 0], sizes = [16, 1], strides = [1, 1]} : vector<16x5xf32> to vector<16x1xf32>
    %771 = vector.broadcast %770 : vector<16x1xf32> to vector<16x72xf32>
    %772 = arith.mulf %769, %771 : vector<16x72xf32>
    %773 = vector.extract_strided_slice %746 {offsets = [0, 1], sizes = [16, 1], strides = [1, 1]} : vector<16x5xf32> to vector<16x1xf32>
    %774 = vector.broadcast %773 : vector<16x1xf32> to vector<16x72xf32>
    %775 = arith.addf %772, %774 : vector<16x72xf32>
    %cst_242 = arith.constant 0.000000e+00 : f32
    %776 = vector.broadcast %cst_242 : f32 to vector<16x72xf32>
    %777 = arith.cmpf oge, %775, %776 : vector<16x72xf32>
    %778 = vector.extract_strided_slice %746 {offsets = [0, 2], sizes = [16, 1], strides = [1, 1]} : vector<16x5xf32> to vector<16x1xf32>
    %779 = vector.broadcast %778 : vector<16x1xf32> to vector<16x72xf32>
    %780 = arith.mulf %779, %775 : vector<16x72xf32>
    %781 = arith.select %777, %775, %780 : vector<16x72xi1>, vector<16x72xf32>
    %782 = tpu.concatenate %781, %584 in 0 : vector<16x72xf32>, vector<16x72xf32> -> vector<32x72xf32>
    %783 = arith.truncf %782 : vector<32x72xf32> to vector<32x72xbf16>
    %c0_243 = arith.constant 0 : index
    %c0_244 = arith.constant 0 : index
    %784 = vector.load %arg9[%c0_243, %c0_244] : memref<72x152xbf16, #tpu.memory_space<vmem>>, vector<72x152xbf16>
    %cst_245 = arith.constant dense<0.000000e+00> : vector<32x152xf32>
    %785 = tpu.matmul %783, %784, %cst_245 {dimension_numbers = #tpu.dot_dimension_numbers<[1], [0], [0], [1], [0, 0, 1, 1], [], []>} : vector<32x72xbf16>, vector<72x152xbf16>, vector<32x152xf32> -> vector<32x152xf32>
    %786 = arith.truncf %785 : vector<32x152xf32> to vector<32x152xbf16>
    %cst_246 = arith.constant 0.000000e+00 : bf16
    %787 = vector.broadcast %cst_246 : bf16 to vector<32x1xbf16>
    %788 = vector.extract_strided_slice %786 {offsets = [0, 0], sizes = [32, 151], strides = [1, 1]} : vector<32x152xbf16> to vector<32x151xbf16>
    %789 = tpu.concatenate %787, %788 in 1 : vector<32x1xbf16>, vector<32x151xbf16> -> vector<32x152xbf16>
    %cst_247 = arith.constant 0.000000e+00 : bf16
    %790 = vector.broadcast %cst_247 : bf16 to vector<32x2xbf16>
    %791 = vector.extract_strided_slice %786 {offsets = [0, 0], sizes = [32, 150], strides = [1, 1]} : vector<32x152xbf16> to vector<32x150xbf16>
    %792 = tpu.concatenate %790, %791 in 1 : vector<32x2xbf16>, vector<32x150xbf16> -> vector<32x152xbf16>
    %793 = tpu.concatenate %786, %789, %792 in 0 : vector<32x152xbf16>, vector<32x152xbf16>, vector<32x152xbf16> -> vector<96x152xbf16>
    %c336 = arith.constant 336 : index
    %c0_248 = arith.constant 0 : index
    %794 = vector.load %arg11[%c336, %c0_248] : memref<832x96xbf16, #tpu.memory_space<vmem>>, vector<16x96xbf16>
    %cst_249 = arith.constant dense<0.000000e+00> : vector<16x152xf32>
    %795 = tpu.matmul %794, %793, %cst_249 {dimension_numbers = #tpu.dot_dimension_numbers<[1], [0], [0], [1], [0, 0, 1, 1], [], []>} : vector<16x96xbf16>, vector<96x152xbf16>, vector<16x152xf32> -> vector<16x152xf32>
    %c240 = arith.constant 240 : index
    %c0_250 = arith.constant 0 : index
    %796 = vector.load %arg12[%c240, %c0_250] : memref<448x5xf32, #tpu.memory_space<vmem>>, vector<16x5xf32>
    %797 = vector.extract_strided_slice %796 {offsets = [0, 3], sizes = [16, 1], strides = [1, 1]} : vector<16x5xf32> to vector<16x1xf32>
    %798 = vector.broadcast %797 : vector<16x1xf32> to vector<16x152xf32>
    %799 = arith.addf %795, %798 : vector<16x152xf32>
    %cst_251 = arith.constant dense<0.000000e+00> : vector<16xf32>
    %800 = vector.multi_reduction <add>, %799, %cst_251 [1] : vector<16x152xf32> to vector<16xf32>
    %801 = vector.shape_cast %800 : vector<16xf32> to vector<16x1xf32>
    %cst_252 = arith.constant 1.520000e+02 : f32
    %802 = vector.broadcast %cst_252 : f32 to vector<16x1xf32>
    %803 = arith.divf %801, %802 : vector<16x1xf32>
    %804 = arith.mulf %799, %799 : vector<16x152xf32>
    %cst_253 = arith.constant dense<0.000000e+00> : vector<16xf32>
    %805 = vector.multi_reduction <add>, %804, %cst_253 [1] : vector<16x152xf32> to vector<16xf32>
    %806 = vector.shape_cast %805 : vector<16xf32> to vector<16x1xf32>
    %cst_254 = arith.constant 1.520000e+02 : f32
    %807 = vector.broadcast %cst_254 : f32 to vector<16x1xf32>
    %808 = arith.divf %806, %807 : vector<16x1xf32>
    %809 = arith.mulf %803, %803 : vector<16x1xf32>
    %810 = arith.subf %808, %809 : vector<16x1xf32>
    %cst_255 = arith.constant 0.000000e+00 : f32
    %811 = vector.broadcast %cst_255 : f32 to vector<16x1xf32>
    %812 = arith.maximumf %810, %811 : vector<16x1xf32>
    %813 = vector.broadcast %803 : vector<16x1xf32> to vector<16x152xf32>
    %814 = arith.subf %799, %813 : vector<16x152xf32>
    %cst_256 = arith.constant 9.99999974E-6 : f32
    %815 = vector.broadcast %cst_256 : f32 to vector<16x1xf32>
    %816 = arith.addf %812, %815 : vector<16x1xf32>
    %817 = math.rsqrt %816 : vector<16x1xf32>
    %818 = vector.broadcast %817 : vector<16x1xf32> to vector<16x152xf32>
    %819 = arith.mulf %814, %818 : vector<16x152xf32>
    %820 = vector.extract_strided_slice %796 {offsets = [0, 0], sizes = [16, 1], strides = [1, 1]} : vector<16x5xf32> to vector<16x1xf32>
    %821 = vector.broadcast %820 : vector<16x1xf32> to vector<16x152xf32>
    %822 = arith.mulf %819, %821 : vector<16x152xf32>
    %823 = vector.extract_strided_slice %796 {offsets = [0, 1], sizes = [16, 1], strides = [1, 1]} : vector<16x5xf32> to vector<16x1xf32>
    %824 = vector.broadcast %823 : vector<16x1xf32> to vector<16x152xf32>
    %825 = arith.addf %822, %824 : vector<16x152xf32>
    %cst_257 = arith.constant 0.000000e+00 : f32
    %826 = vector.broadcast %cst_257 : f32 to vector<16x152xf32>
    %827 = arith.cmpf oge, %825, %826 : vector<16x152xf32>
    %828 = vector.extract_strided_slice %796 {offsets = [0, 2], sizes = [16, 1], strides = [1, 1]} : vector<16x5xf32> to vector<16x1xf32>
    %829 = vector.broadcast %828 : vector<16x1xf32> to vector<16x152xf32>
    %830 = arith.mulf %829, %825 : vector<16x152xf32>
    %831 = arith.select %827, %825, %830 : vector<16x152xi1>, vector<16x152xf32>
    %832 = arith.addf %535, %831 : vector<16x152xf32>
    %833 = arith.truncf %832 : vector<16x152xf32> to vector<16x152xbf16>
    %c0_258 = arith.constant 0 : index
    %c0_259 = arith.constant 0 : index
    %834 = vector.load %arg4[%c0_258, %c0_259] : memref<152x72xbf16, #tpu.memory_space<vmem>>, vector<152x72xbf16>
    %cst_260 = arith.constant 0.000000e+00 : bf16
    %835 = vector.broadcast %cst_260 : bf16 to vector<16x1xbf16>
    %836 = vector.extract_strided_slice %833 {offsets = [0, 1], sizes = [16, 151], strides = [1, 1]} : vector<16x152xbf16> to vector<16x151xbf16>
    %837 = tpu.concatenate %836, %835 in 1 : vector<16x151xbf16>, vector<16x1xbf16> -> vector<16x152xbf16>
    %cst_261 = arith.constant 0.000000e+00 : bf16
    %838 = vector.broadcast %cst_261 : bf16 to vector<16x2xbf16>
    %839 = vector.extract_strided_slice %833 {offsets = [0, 2], sizes = [16, 150], strides = [1, 1]} : vector<16x152xbf16> to vector<16x150xbf16>
    %840 = tpu.concatenate %839, %838 in 1 : vector<16x150xbf16>, vector<16x2xbf16> -> vector<16x152xbf16>
    %841 = tpu.concatenate %833, %837, %840 in 0 : vector<16x152xbf16>, vector<16x152xbf16>, vector<16x152xbf16> -> vector<48x152xbf16>
    %cst_262 = arith.constant dense<0.000000e+00> : vector<48x72xf32>
    %842 = tpu.matmul %841, %834, %cst_262 {dimension_numbers = #tpu.dot_dimension_numbers<[1], [0], [0], [1], [0, 0, 1, 1], [], []>} : vector<48x152xbf16>, vector<152x72xbf16>, vector<48x72xf32> -> vector<48x72xf32>
    %c352 = arith.constant 352 : index
    %c0_263 = arith.constant 0 : index
    %843 = vector.load %arg11[%c352, %c0_263] : memref<832x96xbf16, #tpu.memory_space<vmem>>, vector<64x48xbf16>
    %844 = arith.truncf %842 : vector<48x72xf32> to vector<48x72xbf16>
    %cst_264 = arith.constant dense<0.000000e+00> : vector<64x72xf32>
    %845 = tpu.matmul %843, %844, %cst_264 {dimension_numbers = #tpu.dot_dimension_numbers<[1], [0], [0], [1], [0, 0, 1, 1], [], []>} : vector<64x48xbf16>, vector<48x72xbf16>, vector<64x72xf32> -> vector<64x72xf32>
    %846 = vector.extract_strided_slice %845 {offsets = [32, 0], sizes = [32, 72], strides = [1, 1]} : vector<64x72xf32> to vector<32x72xf32>
    %847 = vector.extract_strided_slice %845 {offsets = [0, 0], sizes = [32, 72], strides = [1, 1]} : vector<64x72xf32> to vector<32x72xf32>
    %cst_265 = arith.constant 0.000000e+00 : f32
    %848 = vector.broadcast %cst_265 : f32 to vector<32x9xf32>
    %849 = vector.extract_strided_slice %847 {offsets = [0, 0], sizes = [32, 63], strides = [1, 1]} : vector<32x72xf32> to vector<32x63xf32>
    %850 = tpu.concatenate %848, %849 in 1 : vector<32x9xf32>, vector<32x63xf32> -> vector<32x72xf32>
    %851 = arith.addf %846, %850 : vector<32x72xf32>
    %c256_266 = arith.constant 256 : index
    %c0_267 = arith.constant 0 : index
    %852 = vector.load %arg12[%c256_266, %c0_267] : memref<448x5xf32, #tpu.memory_space<vmem>>, vector<16x5xf32>
    %853 = vector.extract_strided_slice %851 {offsets = [0, 0], sizes = [16, 72], strides = [1, 1]} : vector<32x72xf32> to vector<16x72xf32>
    %854 = vector.extract_strided_slice %852 {offsets = [0, 3], sizes = [16, 1], strides = [1, 1]} : vector<16x5xf32> to vector<16x1xf32>
    %855 = vector.broadcast %854 : vector<16x1xf32> to vector<16x72xf32>
    %856 = arith.addf %853, %855 : vector<16x72xf32>
    %857 = vector.extract_strided_slice %851 {offsets = [16, 0], sizes = [16, 72], strides = [1, 1]} : vector<32x72xf32> to vector<16x72xf32>
    %858 = vector.extract_strided_slice %852 {offsets = [0, 4], sizes = [16, 1], strides = [1, 1]} : vector<16x5xf32> to vector<16x1xf32>
    %859 = vector.broadcast %858 : vector<16x1xf32> to vector<16x72xf32>
    %860 = arith.addf %857, %859 : vector<16x72xf32>
    %861 = arith.negf %860 : vector<16x72xf32>
    %862 = math.exp %861 : vector<16x72xf32>
    %cst_268 = arith.constant 1.000000e+00 : f32
    %863 = vector.broadcast %cst_268 : f32 to vector<16x72xf32>
    %864 = arith.addf %863, %862 : vector<16x72xf32>
    %865 = arith.divf %863, %864 : vector<16x72xf32>
    %866 = arith.mulf %856, %865 : vector<16x72xf32>
    %cst_269 = arith.constant dense<0.000000e+00> : vector<16xf32>
    %867 = vector.multi_reduction <add>, %866, %cst_269 [1] : vector<16x72xf32> to vector<16xf32>
    %868 = vector.shape_cast %867 : vector<16xf32> to vector<16x1xf32>
    %cst_270 = arith.constant 7.200000e+01 : f32
    %869 = vector.broadcast %cst_270 : f32 to vector<16x1xf32>
    %870 = arith.divf %868, %869 : vector<16x1xf32>
    %871 = arith.mulf %866, %866 : vector<16x72xf32>
    %cst_271 = arith.constant dense<0.000000e+00> : vector<16xf32>
    %872 = vector.multi_reduction <add>, %871, %cst_271 [1] : vector<16x72xf32> to vector<16xf32>
    %873 = vector.shape_cast %872 : vector<16xf32> to vector<16x1xf32>
    %cst_272 = arith.constant 7.200000e+01 : f32
    %874 = vector.broadcast %cst_272 : f32 to vector<16x1xf32>
    %875 = arith.divf %873, %874 : vector<16x1xf32>
    %876 = arith.mulf %870, %870 : vector<16x1xf32>
    %877 = arith.subf %875, %876 : vector<16x1xf32>
    %cst_273 = arith.constant 0.000000e+00 : f32
    %878 = vector.broadcast %cst_273 : f32 to vector<16x1xf32>
    %879 = arith.maximumf %877, %878 : vector<16x1xf32>
    %880 = vector.broadcast %870 : vector<16x1xf32> to vector<16x72xf32>
    %881 = arith.subf %866, %880 : vector<16x72xf32>
    %cst_274 = arith.constant 9.99999974E-6 : f32
    %882 = vector.broadcast %cst_274 : f32 to vector<16x1xf32>
    %883 = arith.addf %879, %882 : vector<16x1xf32>
    %884 = math.rsqrt %883 : vector<16x1xf32>
    %885 = vector.broadcast %884 : vector<16x1xf32> to vector<16x72xf32>
    %886 = arith.mulf %881, %885 : vector<16x72xf32>
    %887 = vector.extract_strided_slice %852 {offsets = [0, 0], sizes = [16, 1], strides = [1, 1]} : vector<16x5xf32> to vector<16x1xf32>
    %888 = vector.broadcast %887 : vector<16x1xf32> to vector<16x72xf32>
    %889 = arith.mulf %886, %888 : vector<16x72xf32>
    %890 = vector.extract_strided_slice %852 {offsets = [0, 1], sizes = [16, 1], strides = [1, 1]} : vector<16x5xf32> to vector<16x1xf32>
    %891 = vector.broadcast %890 : vector<16x1xf32> to vector<16x72xf32>
    %892 = arith.addf %889, %891 : vector<16x72xf32>
    %cst_275 = arith.constant 0.000000e+00 : f32
    %893 = vector.broadcast %cst_275 : f32 to vector<16x72xf32>
    %894 = arith.cmpf oge, %892, %893 : vector<16x72xf32>
    %895 = vector.extract_strided_slice %852 {offsets = [0, 2], sizes = [16, 1], strides = [1, 1]} : vector<16x5xf32> to vector<16x1xf32>
    %896 = vector.broadcast %895 : vector<16x1xf32> to vector<16x72xf32>
    %897 = arith.mulf %896, %892 : vector<16x72xf32>
    %898 = arith.select %894, %892, %897 : vector<16x72xi1>, vector<16x72xf32>
    %899 = arith.truncf %898 : vector<16x72xf32> to vector<16x72xbf16>
    %c0_276 = arith.constant 0 : index
    %c0_277 = arith.constant 0 : index
    %900 = vector.load %arg5[%c0_276, %c0_277] : memref<72x32xbf16, #tpu.memory_space<vmem>>, vector<72x32xbf16>
    %cst_278 = arith.constant 0.000000e+00 : bf16
    %901 = vector.broadcast %cst_278 : bf16 to vector<16x1xbf16>
    %902 = vector.extract_strided_slice %899 {offsets = [0, 1], sizes = [16, 71], strides = [1, 1]} : vector<16x72xbf16> to vector<16x71xbf16>
    %903 = tpu.concatenate %902, %901 in 1 : vector<16x71xbf16>, vector<16x1xbf16> -> vector<16x72xbf16>
    %cst_279 = arith.constant 0.000000e+00 : bf16
    %904 = vector.broadcast %cst_279 : bf16 to vector<16x2xbf16>
    %905 = vector.extract_strided_slice %899 {offsets = [0, 2], sizes = [16, 70], strides = [1, 1]} : vector<16x72xbf16> to vector<16x70xbf16>
    %906 = tpu.concatenate %905, %904 in 1 : vector<16x70xbf16>, vector<16x2xbf16> -> vector<16x72xbf16>
    %907 = tpu.concatenate %899, %903, %906 in 0 : vector<16x72xbf16>, vector<16x72xbf16>, vector<16x72xbf16> -> vector<48x72xbf16>
    %cst_280 = arith.constant dense<0.000000e+00> : vector<48x32xf32>
    %908 = tpu.matmul %907, %900, %cst_280 {dimension_numbers = #tpu.dot_dimension_numbers<[1], [0], [0], [1], [0, 0, 1, 1], [], []>} : vector<48x72xbf16>, vector<72x32xbf16>, vector<48x32xf32> -> vector<48x32xf32>
    %c416 = arith.constant 416 : index
    %c0_281 = arith.constant 0 : index
    %909 = vector.load %arg11[%c416, %c0_281] : memref<832x96xbf16, #tpu.memory_space<vmem>>, vector<16x48xbf16>
    %910 = arith.truncf %908 : vector<48x32xf32> to vector<48x32xbf16>
    %cst_282 = arith.constant dense<0.000000e+00> : vector<16x32xf32>
    %911 = tpu.matmul %909, %910, %cst_282 {dimension_numbers = #tpu.dot_dimension_numbers<[1], [0], [0], [1], [0, 0, 1, 1], [], []>} : vector<16x48xbf16>, vector<48x32xbf16>, vector<16x32xf32> -> vector<16x32xf32>
    %c272_283 = arith.constant 272 : index
    %c0_284 = arith.constant 0 : index
    %912 = vector.load %arg12[%c272_283, %c0_284] : memref<448x5xf32, #tpu.memory_space<vmem>>, vector<16x5xf32>
    %913 = vector.extract_strided_slice %912 {offsets = [0, 3], sizes = [16, 1], strides = [1, 1]} : vector<16x5xf32> to vector<16x1xf32>
    %914 = vector.broadcast %913 : vector<16x1xf32> to vector<16x32xf32>
    %915 = arith.addf %911, %914 : vector<16x32xf32>
    %cst_285 = arith.constant dense<0.000000e+00> : vector<16xf32>
    %916 = vector.multi_reduction <add>, %915, %cst_285 [1] : vector<16x32xf32> to vector<16xf32>
    %917 = vector.shape_cast %916 : vector<16xf32> to vector<16x1xf32>
    %cst_286 = arith.constant 3.200000e+01 : f32
    %918 = vector.broadcast %cst_286 : f32 to vector<16x1xf32>
    %919 = arith.divf %917, %918 : vector<16x1xf32>
    %920 = arith.mulf %915, %915 : vector<16x32xf32>
    %cst_287 = arith.constant dense<0.000000e+00> : vector<16xf32>
    %921 = vector.multi_reduction <add>, %920, %cst_287 [1] : vector<16x32xf32> to vector<16xf32>
    %922 = vector.shape_cast %921 : vector<16xf32> to vector<16x1xf32>
    %cst_288 = arith.constant 3.200000e+01 : f32
    %923 = vector.broadcast %cst_288 : f32 to vector<16x1xf32>
    %924 = arith.divf %922, %923 : vector<16x1xf32>
    %925 = arith.mulf %919, %919 : vector<16x1xf32>
    %926 = arith.subf %924, %925 : vector<16x1xf32>
    %cst_289 = arith.constant 0.000000e+00 : f32
    %927 = vector.broadcast %cst_289 : f32 to vector<16x1xf32>
    %928 = arith.maximumf %926, %927 : vector<16x1xf32>
    %929 = vector.broadcast %919 : vector<16x1xf32> to vector<16x32xf32>
    %930 = arith.subf %915, %929 : vector<16x32xf32>
    %cst_290 = arith.constant 9.99999974E-6 : f32
    %931 = vector.broadcast %cst_290 : f32 to vector<16x1xf32>
    %932 = arith.addf %928, %931 : vector<16x1xf32>
    %933 = math.rsqrt %932 : vector<16x1xf32>
    %934 = vector.broadcast %933 : vector<16x1xf32> to vector<16x32xf32>
    %935 = arith.mulf %930, %934 : vector<16x32xf32>
    %936 = vector.extract_strided_slice %912 {offsets = [0, 0], sizes = [16, 1], strides = [1, 1]} : vector<16x5xf32> to vector<16x1xf32>
    %937 = vector.broadcast %936 : vector<16x1xf32> to vector<16x32xf32>
    %938 = arith.mulf %935, %937 : vector<16x32xf32>
    %939 = vector.extract_strided_slice %912 {offsets = [0, 1], sizes = [16, 1], strides = [1, 1]} : vector<16x5xf32> to vector<16x1xf32>
    %940 = vector.broadcast %939 : vector<16x1xf32> to vector<16x32xf32>
    %941 = arith.addf %938, %940 : vector<16x32xf32>
    %cst_291 = arith.constant 0.000000e+00 : f32
    %942 = vector.broadcast %cst_291 : f32 to vector<16x32xf32>
    %943 = arith.cmpf oge, %941, %942 : vector<16x32xf32>
    %944 = vector.extract_strided_slice %912 {offsets = [0, 2], sizes = [16, 1], strides = [1, 1]} : vector<16x5xf32> to vector<16x1xf32>
    %945 = vector.broadcast %944 : vector<16x1xf32> to vector<16x32xf32>
    %946 = arith.mulf %945, %941 : vector<16x32xf32>
    %947 = arith.select %943, %941, %946 : vector<16x32xi1>, vector<16x32xf32>
    %948 = arith.truncf %947 : vector<16x32xf32> to vector<16x32xbf16>
    %c0_292 = arith.constant 0 : index
    %c0_293 = arith.constant 0 : index
    %949 = vector.load %arg6[%c0_292, %c0_293] : memref<32x8xbf16, #tpu.memory_space<vmem>>, vector<32x8xbf16>
    %cst_294 = arith.constant 0.000000e+00 : bf16
    %950 = vector.broadcast %cst_294 : bf16 to vector<16x1xbf16>
    %951 = vector.extract_strided_slice %948 {offsets = [0, 1], sizes = [16, 31], strides = [1, 1]} : vector<16x32xbf16> to vector<16x31xbf16>
    %952 = tpu.concatenate %951, %950 in 1 : vector<16x31xbf16>, vector<16x1xbf16> -> vector<16x32xbf16>
    %cst_295 = arith.constant 0.000000e+00 : bf16
    %953 = vector.broadcast %cst_295 : bf16 to vector<16x2xbf16>
    %954 = vector.extract_strided_slice %948 {offsets = [0, 2], sizes = [16, 30], strides = [1, 1]} : vector<16x32xbf16> to vector<16x30xbf16>
    %955 = tpu.concatenate %954, %953 in 1 : vector<16x30xbf16>, vector<16x2xbf16> -> vector<16x32xbf16>
    %956 = tpu.concatenate %948, %952, %955 in 0 : vector<16x32xbf16>, vector<16x32xbf16>, vector<16x32xbf16> -> vector<48x32xbf16>
    %cst_296 = arith.constant dense<0.000000e+00> : vector<48x8xf32>
    %957 = tpu.matmul %956, %949, %cst_296 {dimension_numbers = #tpu.dot_dimension_numbers<[1], [0], [0], [1], [0, 0, 1, 1], [], []>} : vector<48x32xbf16>, vector<32x8xbf16>, vector<48x8xf32> -> vector<48x8xf32>
    %c432 = arith.constant 432 : index
    %c0_297 = arith.constant 0 : index
    %958 = vector.load %arg11[%c432, %c0_297] : memref<832x96xbf16, #tpu.memory_space<vmem>>, vector<16x48xbf16>
    %959 = arith.truncf %957 : vector<48x8xf32> to vector<48x8xbf16>
    %cst_298 = arith.constant dense<0.000000e+00> : vector<16x8xf32>
    %960 = tpu.matmul %958, %959, %cst_298 {dimension_numbers = #tpu.dot_dimension_numbers<[1], [0], [0], [1], [0, 0, 1, 1], [], []>} : vector<16x48xbf16>, vector<48x8xbf16>, vector<16x8xf32> -> vector<16x8xf32>
    %c288_299 = arith.constant 288 : index
    %c0_300 = arith.constant 0 : index
    %961 = vector.load %arg12[%c288_299, %c0_300] : memref<448x5xf32, #tpu.memory_space<vmem>>, vector<16x5xf32>
    %962 = vector.extract_strided_slice %961 {offsets = [0, 3], sizes = [16, 1], strides = [1, 1]} : vector<16x5xf32> to vector<16x1xf32>
    %963 = vector.broadcast %962 : vector<16x1xf32> to vector<16x8xf32>
    %964 = arith.addf %960, %963 : vector<16x8xf32>
    %cst_301 = arith.constant dense<0.000000e+00> : vector<16xf32>
    %965 = vector.multi_reduction <add>, %964, %cst_301 [1] : vector<16x8xf32> to vector<16xf32>
    %966 = vector.shape_cast %965 : vector<16xf32> to vector<16x1xf32>
    %cst_302 = arith.constant 8.000000e+00 : f32
    %967 = vector.broadcast %cst_302 : f32 to vector<16x1xf32>
    %968 = arith.divf %966, %967 : vector<16x1xf32>
    %969 = arith.mulf %964, %964 : vector<16x8xf32>
    %cst_303 = arith.constant dense<0.000000e+00> : vector<16xf32>
    %970 = vector.multi_reduction <add>, %969, %cst_303 [1] : vector<16x8xf32> to vector<16xf32>
    %971 = vector.shape_cast %970 : vector<16xf32> to vector<16x1xf32>
    %cst_304 = arith.constant 8.000000e+00 : f32
    %972 = vector.broadcast %cst_304 : f32 to vector<16x1xf32>
    %973 = arith.divf %971, %972 : vector<16x1xf32>
    %974 = arith.mulf %968, %968 : vector<16x1xf32>
    %975 = arith.subf %973, %974 : vector<16x1xf32>
    %cst_305 = arith.constant 0.000000e+00 : f32
    %976 = vector.broadcast %cst_305 : f32 to vector<16x1xf32>
    %977 = arith.maximumf %975, %976 : vector<16x1xf32>
    %978 = vector.broadcast %968 : vector<16x1xf32> to vector<16x8xf32>
    %979 = arith.subf %964, %978 : vector<16x8xf32>
    %cst_306 = arith.constant 9.99999974E-6 : f32
    %980 = vector.broadcast %cst_306 : f32 to vector<16x1xf32>
    %981 = arith.addf %977, %980 : vector<16x1xf32>
    %982 = math.rsqrt %981 : vector<16x1xf32>
    %983 = vector.broadcast %982 : vector<16x1xf32> to vector<16x8xf32>
    %984 = arith.mulf %979, %983 : vector<16x8xf32>
    %985 = vector.extract_strided_slice %961 {offsets = [0, 0], sizes = [16, 1], strides = [1, 1]} : vector<16x5xf32> to vector<16x1xf32>
    %986 = vector.broadcast %985 : vector<16x1xf32> to vector<16x8xf32>
    %987 = arith.mulf %984, %986 : vector<16x8xf32>
    %988 = vector.extract_strided_slice %961 {offsets = [0, 1], sizes = [16, 1], strides = [1, 1]} : vector<16x5xf32> to vector<16x1xf32>
    %989 = vector.broadcast %988 : vector<16x1xf32> to vector<16x8xf32>
    %990 = arith.addf %987, %989 : vector<16x8xf32>
    %cst_307 = arith.constant 0.000000e+00 : f32
    %991 = vector.broadcast %cst_307 : f32 to vector<16x8xf32>
    %992 = arith.cmpf oge, %990, %991 : vector<16x8xf32>
    %993 = vector.extract_strided_slice %961 {offsets = [0, 2], sizes = [16, 1], strides = [1, 1]} : vector<16x5xf32> to vector<16x1xf32>
    %994 = vector.broadcast %993 : vector<16x1xf32> to vector<16x8xf32>
    %995 = arith.mulf %994, %990 : vector<16x8xf32>
    %996 = arith.select %992, %990, %995 : vector<16x8xi1>, vector<16x8xf32>
    %997 = arith.truncf %996 : vector<16x8xf32> to vector<16x8xbf16>
    %c0_308 = arith.constant 0 : index
    %c0_309 = arith.constant 0 : index
    %998 = vector.load %arg7[%c0_308, %c0_309] : memref<8x32xbf16, #tpu.memory_space<vmem>>, vector<8x32xbf16>
    %cst_310 = arith.constant dense<0.000000e+00> : vector<16x32xf32>
    %999 = tpu.matmul %997, %998, %cst_310 {dimension_numbers = #tpu.dot_dimension_numbers<[1], [0], [0], [1], [0, 0, 1, 1], [], []>} : vector<16x8xbf16>, vector<8x32xbf16>, vector<16x32xf32> -> vector<16x32xf32>
    %1000 = arith.truncf %999 : vector<16x32xf32> to vector<16x32xbf16>
    %cst_311 = arith.constant 0.000000e+00 : bf16
    %1001 = vector.broadcast %cst_311 : bf16 to vector<16x1xbf16>
    %1002 = vector.extract_strided_slice %1000 {offsets = [0, 0], sizes = [16, 31], strides = [1, 1]} : vector<16x32xbf16> to vector<16x31xbf16>
    %1003 = tpu.concatenate %1001, %1002 in 1 : vector<16x1xbf16>, vector<16x31xbf16> -> vector<16x32xbf16>
    %cst_312 = arith.constant 0.000000e+00 : bf16
    %1004 = vector.broadcast %cst_312 : bf16 to vector<16x2xbf16>
    %1005 = vector.extract_strided_slice %1000 {offsets = [0, 0], sizes = [16, 30], strides = [1, 1]} : vector<16x32xbf16> to vector<16x30xbf16>
    %1006 = tpu.concatenate %1004, %1005 in 1 : vector<16x2xbf16>, vector<16x30xbf16> -> vector<16x32xbf16>
    %1007 = tpu.concatenate %1000, %1003, %1006 in 0 : vector<16x32xbf16>, vector<16x32xbf16>, vector<16x32xbf16> -> vector<48x32xbf16>
    %c448 = arith.constant 448 : index
    %c0_313 = arith.constant 0 : index
    %1008 = vector.load %arg11[%c448, %c0_313] : memref<832x96xbf16, #tpu.memory_space<vmem>>, vector<16x48xbf16>
    %cst_314 = arith.constant dense<0.000000e+00> : vector<16x32xf32>
    %1009 = tpu.matmul %1008, %1007, %cst_314 {dimension_numbers = #tpu.dot_dimension_numbers<[1], [0], [0], [1], [0, 0, 1, 1], [], []>} : vector<16x48xbf16>, vector<48x32xbf16>, vector<16x32xf32> -> vector<16x32xf32>
    %c304_315 = arith.constant 304 : index
    %c0_316 = arith.constant 0 : index
    %1010 = vector.load %arg12[%c304_315, %c0_316] : memref<448x5xf32, #tpu.memory_space<vmem>>, vector<16x5xf32>
    %1011 = vector.extract_strided_slice %1010 {offsets = [0, 3], sizes = [16, 1], strides = [1, 1]} : vector<16x5xf32> to vector<16x1xf32>
    %1012 = vector.broadcast %1011 : vector<16x1xf32> to vector<16x32xf32>
    %1013 = arith.addf %1009, %1012 : vector<16x32xf32>
    %cst_317 = arith.constant dense<0.000000e+00> : vector<16xf32>
    %1014 = vector.multi_reduction <add>, %1013, %cst_317 [1] : vector<16x32xf32> to vector<16xf32>
    %1015 = vector.shape_cast %1014 : vector<16xf32> to vector<16x1xf32>
    %cst_318 = arith.constant 3.200000e+01 : f32
    %1016 = vector.broadcast %cst_318 : f32 to vector<16x1xf32>
    %1017 = arith.divf %1015, %1016 : vector<16x1xf32>
    %1018 = arith.mulf %1013, %1013 : vector<16x32xf32>
    %cst_319 = arith.constant dense<0.000000e+00> : vector<16xf32>
    %1019 = vector.multi_reduction <add>, %1018, %cst_319 [1] : vector<16x32xf32> to vector<16xf32>
    %1020 = vector.shape_cast %1019 : vector<16xf32> to vector<16x1xf32>
    %cst_320 = arith.constant 3.200000e+01 : f32
    %1021 = vector.broadcast %cst_320 : f32 to vector<16x1xf32>
    %1022 = arith.divf %1020, %1021 : vector<16x1xf32>
    %1023 = arith.mulf %1017, %1017 : vector<16x1xf32>
    %1024 = arith.subf %1022, %1023 : vector<16x1xf32>
    %cst_321 = arith.constant 0.000000e+00 : f32
    %1025 = vector.broadcast %cst_321 : f32 to vector<16x1xf32>
    %1026 = arith.maximumf %1024, %1025 : vector<16x1xf32>
    %1027 = vector.broadcast %1017 : vector<16x1xf32> to vector<16x32xf32>
    %1028 = arith.subf %1013, %1027 : vector<16x32xf32>
    %cst_322 = arith.constant 9.99999974E-6 : f32
    %1029 = vector.broadcast %cst_322 : f32 to vector<16x1xf32>
    %1030 = arith.addf %1026, %1029 : vector<16x1xf32>
    %1031 = math.rsqrt %1030 : vector<16x1xf32>
    %1032 = vector.broadcast %1031 : vector<16x1xf32> to vector<16x32xf32>
    %1033 = arith.mulf %1028, %1032 : vector<16x32xf32>
    %1034 = vector.extract_strided_slice %1010 {offsets = [0, 0], sizes = [16, 1], strides = [1, 1]} : vector<16x5xf32> to vector<16x1xf32>
    %1035 = vector.broadcast %1034 : vector<16x1xf32> to vector<16x32xf32>
    %1036 = arith.mulf %1033, %1035 : vector<16x32xf32>
    %1037 = vector.extract_strided_slice %1010 {offsets = [0, 1], sizes = [16, 1], strides = [1, 1]} : vector<16x5xf32> to vector<16x1xf32>
    %1038 = vector.broadcast %1037 : vector<16x1xf32> to vector<16x32xf32>
    %1039 = arith.addf %1036, %1038 : vector<16x32xf32>
    %cst_323 = arith.constant 0.000000e+00 : f32
    %1040 = vector.broadcast %cst_323 : f32 to vector<16x32xf32>
    %1041 = arith.cmpf oge, %1039, %1040 : vector<16x32xf32>
    %1042 = vector.extract_strided_slice %1010 {offsets = [0, 2], sizes = [16, 1], strides = [1, 1]} : vector<16x5xf32> to vector<16x1xf32>
    %1043 = vector.broadcast %1042 : vector<16x1xf32> to vector<16x32xf32>
    %1044 = arith.mulf %1043, %1039 : vector<16x32xf32>
    %1045 = arith.select %1041, %1039, %1044 : vector<16x32xi1>, vector<16x32xf32>
    %1046 = tpu.concatenate %1045, %947 in 0 : vector<16x32xf32>, vector<16x32xf32> -> vector<32x32xf32>
    %1047 = arith.truncf %1046 : vector<32x32xf32> to vector<32x32xbf16>
    %c0_324 = arith.constant 0 : index
    %c0_325 = arith.constant 0 : index
    %1048 = vector.load %arg8[%c0_324, %c0_325] : memref<32x72xbf16, #tpu.memory_space<vmem>>, vector<32x72xbf16>
    %cst_326 = arith.constant dense<0.000000e+00> : vector<32x72xf32>
    %1049 = tpu.matmul %1047, %1048, %cst_326 {dimension_numbers = #tpu.dot_dimension_numbers<[1], [0], [0], [1], [0, 0, 1, 1], [], []>} : vector<32x32xbf16>, vector<32x72xbf16>, vector<32x72xf32> -> vector<32x72xf32>
    %1050 = arith.truncf %1049 : vector<32x72xf32> to vector<32x72xbf16>
    %cst_327 = arith.constant 0.000000e+00 : bf16
    %1051 = vector.broadcast %cst_327 : bf16 to vector<32x1xbf16>
    %1052 = vector.extract_strided_slice %1050 {offsets = [0, 0], sizes = [32, 71], strides = [1, 1]} : vector<32x72xbf16> to vector<32x71xbf16>
    %1053 = tpu.concatenate %1051, %1052 in 1 : vector<32x1xbf16>, vector<32x71xbf16> -> vector<32x72xbf16>
    %cst_328 = arith.constant 0.000000e+00 : bf16
    %1054 = vector.broadcast %cst_328 : bf16 to vector<32x2xbf16>
    %1055 = vector.extract_strided_slice %1050 {offsets = [0, 0], sizes = [32, 70], strides = [1, 1]} : vector<32x72xbf16> to vector<32x70xbf16>
    %1056 = tpu.concatenate %1054, %1055 in 1 : vector<32x2xbf16>, vector<32x70xbf16> -> vector<32x72xbf16>
    %1057 = tpu.concatenate %1050, %1053, %1056 in 0 : vector<32x72xbf16>, vector<32x72xbf16>, vector<32x72xbf16> -> vector<96x72xbf16>
    %c464 = arith.constant 464 : index
    %c0_329 = arith.constant 0 : index
    %1058 = vector.load %arg11[%c464, %c0_329] : memref<832x96xbf16, #tpu.memory_space<vmem>>, vector<16x96xbf16>
    %cst_330 = arith.constant dense<0.000000e+00> : vector<16x72xf32>
    %1059 = tpu.matmul %1058, %1057, %cst_330 {dimension_numbers = #tpu.dot_dimension_numbers<[1], [0], [0], [1], [0, 0, 1, 1], [], []>} : vector<16x96xbf16>, vector<96x72xbf16>, vector<16x72xf32> -> vector<16x72xf32>
    %c320_331 = arith.constant 320 : index
    %c0_332 = arith.constant 0 : index
    %1060 = vector.load %arg12[%c320_331, %c0_332] : memref<448x5xf32, #tpu.memory_space<vmem>>, vector<16x5xf32>
    %1061 = vector.extract_strided_slice %1060 {offsets = [0, 3], sizes = [16, 1], strides = [1, 1]} : vector<16x5xf32> to vector<16x1xf32>
    %1062 = vector.broadcast %1061 : vector<16x1xf32> to vector<16x72xf32>
    %1063 = arith.addf %1059, %1062 : vector<16x72xf32>
    %cst_333 = arith.constant dense<0.000000e+00> : vector<16xf32>
    %1064 = vector.multi_reduction <add>, %1063, %cst_333 [1] : vector<16x72xf32> to vector<16xf32>
    %1065 = vector.shape_cast %1064 : vector<16xf32> to vector<16x1xf32>
    %cst_334 = arith.constant 7.200000e+01 : f32
    %1066 = vector.broadcast %cst_334 : f32 to vector<16x1xf32>
    %1067 = arith.divf %1065, %1066 : vector<16x1xf32>
    %1068 = arith.mulf %1063, %1063 : vector<16x72xf32>
    %cst_335 = arith.constant dense<0.000000e+00> : vector<16xf32>
    %1069 = vector.multi_reduction <add>, %1068, %cst_335 [1] : vector<16x72xf32> to vector<16xf32>
    %1070 = vector.shape_cast %1069 : vector<16xf32> to vector<16x1xf32>
    %cst_336 = arith.constant 7.200000e+01 : f32
    %1071 = vector.broadcast %cst_336 : f32 to vector<16x1xf32>
    %1072 = arith.divf %1070, %1071 : vector<16x1xf32>
    %1073 = arith.mulf %1067, %1067 : vector<16x1xf32>
    %1074 = arith.subf %1072, %1073 : vector<16x1xf32>
    %cst_337 = arith.constant 0.000000e+00 : f32
    %1075 = vector.broadcast %cst_337 : f32 to vector<16x1xf32>
    %1076 = arith.maximumf %1074, %1075 : vector<16x1xf32>
    %1077 = vector.broadcast %1067 : vector<16x1xf32> to vector<16x72xf32>
    %1078 = arith.subf %1063, %1077 : vector<16x72xf32>
    %cst_338 = arith.constant 9.99999974E-6 : f32
    %1079 = vector.broadcast %cst_338 : f32 to vector<16x1xf32>
    %1080 = arith.addf %1076, %1079 : vector<16x1xf32>
    %1081 = math.rsqrt %1080 : vector<16x1xf32>
    %1082 = vector.broadcast %1081 : vector<16x1xf32> to vector<16x72xf32>
    %1083 = arith.mulf %1078, %1082 : vector<16x72xf32>
    %1084 = vector.extract_strided_slice %1060 {offsets = [0, 0], sizes = [16, 1], strides = [1, 1]} : vector<16x5xf32> to vector<16x1xf32>
    %1085 = vector.broadcast %1084 : vector<16x1xf32> to vector<16x72xf32>
    %1086 = arith.mulf %1083, %1085 : vector<16x72xf32>
    %1087 = vector.extract_strided_slice %1060 {offsets = [0, 1], sizes = [16, 1], strides = [1, 1]} : vector<16x5xf32> to vector<16x1xf32>
    %1088 = vector.broadcast %1087 : vector<16x1xf32> to vector<16x72xf32>
    %1089 = arith.addf %1086, %1088 : vector<16x72xf32>
    %cst_339 = arith.constant 0.000000e+00 : f32
    %1090 = vector.broadcast %cst_339 : f32 to vector<16x72xf32>
    %1091 = arith.cmpf oge, %1089, %1090 : vector<16x72xf32>
    %1092 = vector.extract_strided_slice %1060 {offsets = [0, 2], sizes = [16, 1], strides = [1, 1]} : vector<16x5xf32> to vector<16x1xf32>
    %1093 = vector.broadcast %1092 : vector<16x1xf32> to vector<16x72xf32>
    %1094 = arith.mulf %1093, %1089 : vector<16x72xf32>
    %1095 = arith.select %1091, %1089, %1094 : vector<16x72xi1>, vector<16x72xf32>
    %1096 = arith.addf %898, %1095 : vector<16x72xf32>
    %1097 = arith.truncf %1096 : vector<16x72xf32> to vector<16x72xbf16>
    %c0_340 = arith.constant 0 : index
    %c0_341 = arith.constant 0 : index
    %1098 = vector.load %arg5[%c0_340, %c0_341] : memref<72x32xbf16, #tpu.memory_space<vmem>>, vector<72x32xbf16>
    %cst_342 = arith.constant 0.000000e+00 : bf16
    %1099 = vector.broadcast %cst_342 : bf16 to vector<16x1xbf16>
    %1100 = vector.extract_strided_slice %1097 {offsets = [0, 1], sizes = [16, 71], strides = [1, 1]} : vector<16x72xbf16> to vector<16x71xbf16>
    %1101 = tpu.concatenate %1100, %1099 in 1 : vector<16x71xbf16>, vector<16x1xbf16> -> vector<16x72xbf16>
    %cst_343 = arith.constant 0.000000e+00 : bf16
    %1102 = vector.broadcast %cst_343 : bf16 to vector<16x2xbf16>
    %1103 = vector.extract_strided_slice %1097 {offsets = [0, 2], sizes = [16, 70], strides = [1, 1]} : vector<16x72xbf16> to vector<16x70xbf16>
    %1104 = tpu.concatenate %1103, %1102 in 1 : vector<16x70xbf16>, vector<16x2xbf16> -> vector<16x72xbf16>
    %1105 = tpu.concatenate %1097, %1101, %1104 in 0 : vector<16x72xbf16>, vector<16x72xbf16>, vector<16x72xbf16> -> vector<48x72xbf16>
    %cst_344 = arith.constant dense<0.000000e+00> : vector<48x32xf32>
    %1106 = tpu.matmul %1105, %1098, %cst_344 {dimension_numbers = #tpu.dot_dimension_numbers<[1], [0], [0], [1], [0, 0, 1, 1], [], []>} : vector<48x72xbf16>, vector<72x32xbf16>, vector<48x32xf32> -> vector<48x32xf32>
    %c480 = arith.constant 480 : index
    %c0_345 = arith.constant 0 : index
    %1107 = vector.load %arg11[%c480, %c0_345] : memref<832x96xbf16, #tpu.memory_space<vmem>>, vector<64x48xbf16>
    %1108 = arith.truncf %1106 : vector<48x32xf32> to vector<48x32xbf16>
    %cst_346 = arith.constant dense<0.000000e+00> : vector<64x32xf32>
    %1109 = tpu.matmul %1107, %1108, %cst_346 {dimension_numbers = #tpu.dot_dimension_numbers<[1], [0], [0], [1], [0, 0, 1, 1], [], []>} : vector<64x48xbf16>, vector<48x32xbf16>, vector<64x32xf32> -> vector<64x32xf32>
    %1110 = vector.extract_strided_slice %1109 {offsets = [32, 0], sizes = [32, 32], strides = [1, 1]} : vector<64x32xf32> to vector<32x32xf32>
    %1111 = vector.extract_strided_slice %1109 {offsets = [0, 0], sizes = [32, 32], strides = [1, 1]} : vector<64x32xf32> to vector<32x32xf32>
    %cst_347 = arith.constant 0.000000e+00 : f32
    %1112 = vector.broadcast %cst_347 : f32 to vector<32x4xf32>
    %1113 = vector.extract_strided_slice %1111 {offsets = [0, 0], sizes = [32, 28], strides = [1, 1]} : vector<32x32xf32> to vector<32x28xf32>
    %1114 = tpu.concatenate %1112, %1113 in 1 : vector<32x4xf32>, vector<32x28xf32> -> vector<32x32xf32>
    %1115 = arith.addf %1110, %1114 : vector<32x32xf32>
    %c336_348 = arith.constant 336 : index
    %c0_349 = arith.constant 0 : index
    %1116 = vector.load %arg12[%c336_348, %c0_349] : memref<448x5xf32, #tpu.memory_space<vmem>>, vector<16x5xf32>
    %1117 = vector.extract_strided_slice %1115 {offsets = [0, 0], sizes = [16, 32], strides = [1, 1]} : vector<32x32xf32> to vector<16x32xf32>
    %1118 = vector.extract_strided_slice %1116 {offsets = [0, 3], sizes = [16, 1], strides = [1, 1]} : vector<16x5xf32> to vector<16x1xf32>
    %1119 = vector.broadcast %1118 : vector<16x1xf32> to vector<16x32xf32>
    %1120 = arith.addf %1117, %1119 : vector<16x32xf32>
    %1121 = vector.extract_strided_slice %1115 {offsets = [16, 0], sizes = [16, 32], strides = [1, 1]} : vector<32x32xf32> to vector<16x32xf32>
    %1122 = vector.extract_strided_slice %1116 {offsets = [0, 4], sizes = [16, 1], strides = [1, 1]} : vector<16x5xf32> to vector<16x1xf32>
    %1123 = vector.broadcast %1122 : vector<16x1xf32> to vector<16x32xf32>
    %1124 = arith.addf %1121, %1123 : vector<16x32xf32>
    %1125 = arith.negf %1124 : vector<16x32xf32>
    %1126 = math.exp %1125 : vector<16x32xf32>
    %cst_350 = arith.constant 1.000000e+00 : f32
    %1127 = vector.broadcast %cst_350 : f32 to vector<16x32xf32>
    %1128 = arith.addf %1127, %1126 : vector<16x32xf32>
    %1129 = arith.divf %1127, %1128 : vector<16x32xf32>
    %1130 = arith.mulf %1120, %1129 : vector<16x32xf32>
    %cst_351 = arith.constant dense<0.000000e+00> : vector<16xf32>
    %1131 = vector.multi_reduction <add>, %1130, %cst_351 [1] : vector<16x32xf32> to vector<16xf32>
    %1132 = vector.shape_cast %1131 : vector<16xf32> to vector<16x1xf32>
    %cst_352 = arith.constant 3.200000e+01 : f32
    %1133 = vector.broadcast %cst_352 : f32 to vector<16x1xf32>
    %1134 = arith.divf %1132, %1133 : vector<16x1xf32>
    %1135 = arith.mulf %1130, %1130 : vector<16x32xf32>
    %cst_353 = arith.constant dense<0.000000e+00> : vector<16xf32>
    %1136 = vector.multi_reduction <add>, %1135, %cst_353 [1] : vector<16x32xf32> to vector<16xf32>
    %1137 = vector.shape_cast %1136 : vector<16xf32> to vector<16x1xf32>
    %cst_354 = arith.constant 3.200000e+01 : f32
    %1138 = vector.broadcast %cst_354 : f32 to vector<16x1xf32>
    %1139 = arith.divf %1137, %1138 : vector<16x1xf32>
    %1140 = arith.mulf %1134, %1134 : vector<16x1xf32>
    %1141 = arith.subf %1139, %1140 : vector<16x1xf32>
    %cst_355 = arith.constant 0.000000e+00 : f32
    %1142 = vector.broadcast %cst_355 : f32 to vector<16x1xf32>
    %1143 = arith.maximumf %1141, %1142 : vector<16x1xf32>
    %1144 = vector.broadcast %1134 : vector<16x1xf32> to vector<16x32xf32>
    %1145 = arith.subf %1130, %1144 : vector<16x32xf32>
    %cst_356 = arith.constant 9.99999974E-6 : f32
    %1146 = vector.broadcast %cst_356 : f32 to vector<16x1xf32>
    %1147 = arith.addf %1143, %1146 : vector<16x1xf32>
    %1148 = math.rsqrt %1147 : vector<16x1xf32>
    %1149 = vector.broadcast %1148 : vector<16x1xf32> to vector<16x32xf32>
    %1150 = arith.mulf %1145, %1149 : vector<16x32xf32>
    %1151 = vector.extract_strided_slice %1116 {offsets = [0, 0], sizes = [16, 1], strides = [1, 1]} : vector<16x5xf32> to vector<16x1xf32>
    %1152 = vector.broadcast %1151 : vector<16x1xf32> to vector<16x32xf32>
    %1153 = arith.mulf %1150, %1152 : vector<16x32xf32>
    %1154 = vector.extract_strided_slice %1116 {offsets = [0, 1], sizes = [16, 1], strides = [1, 1]} : vector<16x5xf32> to vector<16x1xf32>
    %1155 = vector.broadcast %1154 : vector<16x1xf32> to vector<16x32xf32>
    %1156 = arith.addf %1153, %1155 : vector<16x32xf32>
    %cst_357 = arith.constant 0.000000e+00 : f32
    %1157 = vector.broadcast %cst_357 : f32 to vector<16x32xf32>
    %1158 = arith.cmpf oge, %1156, %1157 : vector<16x32xf32>
    %1159 = vector.extract_strided_slice %1116 {offsets = [0, 2], sizes = [16, 1], strides = [1, 1]} : vector<16x5xf32> to vector<16x1xf32>
    %1160 = vector.broadcast %1159 : vector<16x1xf32> to vector<16x32xf32>
    %1161 = arith.mulf %1160, %1156 : vector<16x32xf32>
    %1162 = arith.select %1158, %1156, %1161 : vector<16x32xi1>, vector<16x32xf32>
    %1163 = arith.truncf %1162 : vector<16x32xf32> to vector<16x32xbf16>
    %c0_358 = arith.constant 0 : index
    %c0_359 = arith.constant 0 : index
    %1164 = vector.load %arg6[%c0_358, %c0_359] : memref<32x8xbf16, #tpu.memory_space<vmem>>, vector<32x8xbf16>
    %cst_360 = arith.constant 0.000000e+00 : bf16
    %1165 = vector.broadcast %cst_360 : bf16 to vector<16x1xbf16>
    %1166 = vector.extract_strided_slice %1163 {offsets = [0, 1], sizes = [16, 31], strides = [1, 1]} : vector<16x32xbf16> to vector<16x31xbf16>
    %1167 = tpu.concatenate %1166, %1165 in 1 : vector<16x31xbf16>, vector<16x1xbf16> -> vector<16x32xbf16>
    %cst_361 = arith.constant 0.000000e+00 : bf16
    %1168 = vector.broadcast %cst_361 : bf16 to vector<16x2xbf16>
    %1169 = vector.extract_strided_slice %1163 {offsets = [0, 2], sizes = [16, 30], strides = [1, 1]} : vector<16x32xbf16> to vector<16x30xbf16>
    %1170 = tpu.concatenate %1169, %1168 in 1 : vector<16x30xbf16>, vector<16x2xbf16> -> vector<16x32xbf16>
    %1171 = tpu.concatenate %1163, %1167, %1170 in 0 : vector<16x32xbf16>, vector<16x32xbf16>, vector<16x32xbf16> -> vector<48x32xbf16>
    %cst_362 = arith.constant dense<0.000000e+00> : vector<48x8xf32>
    %1172 = tpu.matmul %1171, %1164, %cst_362 {dimension_numbers = #tpu.dot_dimension_numbers<[1], [0], [0], [1], [0, 0, 1, 1], [], []>} : vector<48x32xbf16>, vector<32x8xbf16>, vector<48x8xf32> -> vector<48x8xf32>
    %c544 = arith.constant 544 : index
    %c0_363 = arith.constant 0 : index
    %1173 = vector.load %arg11[%c544, %c0_363] : memref<832x96xbf16, #tpu.memory_space<vmem>>, vector<16x48xbf16>
    %1174 = arith.truncf %1172 : vector<48x8xf32> to vector<48x8xbf16>
    %cst_364 = arith.constant dense<0.000000e+00> : vector<16x8xf32>
    %1175 = tpu.matmul %1173, %1174, %cst_364 {dimension_numbers = #tpu.dot_dimension_numbers<[1], [0], [0], [1], [0, 0, 1, 1], [], []>} : vector<16x48xbf16>, vector<48x8xbf16>, vector<16x8xf32> -> vector<16x8xf32>
    %c352_365 = arith.constant 352 : index
    %c0_366 = arith.constant 0 : index
    %1176 = vector.load %arg12[%c352_365, %c0_366] : memref<448x5xf32, #tpu.memory_space<vmem>>, vector<16x5xf32>
    %1177 = vector.extract_strided_slice %1176 {offsets = [0, 3], sizes = [16, 1], strides = [1, 1]} : vector<16x5xf32> to vector<16x1xf32>
    %1178 = vector.broadcast %1177 : vector<16x1xf32> to vector<16x8xf32>
    %1179 = arith.addf %1175, %1178 : vector<16x8xf32>
    %cst_367 = arith.constant dense<0.000000e+00> : vector<16xf32>
    %1180 = vector.multi_reduction <add>, %1179, %cst_367 [1] : vector<16x8xf32> to vector<16xf32>
    %1181 = vector.shape_cast %1180 : vector<16xf32> to vector<16x1xf32>
    %cst_368 = arith.constant 8.000000e+00 : f32
    %1182 = vector.broadcast %cst_368 : f32 to vector<16x1xf32>
    %1183 = arith.divf %1181, %1182 : vector<16x1xf32>
    %1184 = arith.mulf %1179, %1179 : vector<16x8xf32>
    %cst_369 = arith.constant dense<0.000000e+00> : vector<16xf32>
    %1185 = vector.multi_reduction <add>, %1184, %cst_369 [1] : vector<16x8xf32> to vector<16xf32>
    %1186 = vector.shape_cast %1185 : vector<16xf32> to vector<16x1xf32>
    %cst_370 = arith.constant 8.000000e+00 : f32
    %1187 = vector.broadcast %cst_370 : f32 to vector<16x1xf32>
    %1188 = arith.divf %1186, %1187 : vector<16x1xf32>
    %1189 = arith.mulf %1183, %1183 : vector<16x1xf32>
    %1190 = arith.subf %1188, %1189 : vector<16x1xf32>
    %cst_371 = arith.constant 0.000000e+00 : f32
    %1191 = vector.broadcast %cst_371 : f32 to vector<16x1xf32>
    %1192 = arith.maximumf %1190, %1191 : vector<16x1xf32>
    %1193 = vector.broadcast %1183 : vector<16x1xf32> to vector<16x8xf32>
    %1194 = arith.subf %1179, %1193 : vector<16x8xf32>
    %cst_372 = arith.constant 9.99999974E-6 : f32
    %1195 = vector.broadcast %cst_372 : f32 to vector<16x1xf32>
    %1196 = arith.addf %1192, %1195 : vector<16x1xf32>
    %1197 = math.rsqrt %1196 : vector<16x1xf32>
    %1198 = vector.broadcast %1197 : vector<16x1xf32> to vector<16x8xf32>
    %1199 = arith.mulf %1194, %1198 : vector<16x8xf32>
    %1200 = vector.extract_strided_slice %1176 {offsets = [0, 0], sizes = [16, 1], strides = [1, 1]} : vector<16x5xf32> to vector<16x1xf32>
    %1201 = vector.broadcast %1200 : vector<16x1xf32> to vector<16x8xf32>
    %1202 = arith.mulf %1199, %1201 : vector<16x8xf32>
    %1203 = vector.extract_strided_slice %1176 {offsets = [0, 1], sizes = [16, 1], strides = [1, 1]} : vector<16x5xf32> to vector<16x1xf32>
    %1204 = vector.broadcast %1203 : vector<16x1xf32> to vector<16x8xf32>
    %1205 = arith.addf %1202, %1204 : vector<16x8xf32>
    %cst_373 = arith.constant 0.000000e+00 : f32
    %1206 = vector.broadcast %cst_373 : f32 to vector<16x8xf32>
    %1207 = arith.cmpf oge, %1205, %1206 : vector<16x8xf32>
    %1208 = vector.extract_strided_slice %1176 {offsets = [0, 2], sizes = [16, 1], strides = [1, 1]} : vector<16x5xf32> to vector<16x1xf32>
    %1209 = vector.broadcast %1208 : vector<16x1xf32> to vector<16x8xf32>
    %1210 = arith.mulf %1209, %1205 : vector<16x8xf32>
    %1211 = arith.select %1207, %1205, %1210 : vector<16x8xi1>, vector<16x8xf32>
    %1212 = arith.truncf %1211 : vector<16x8xf32> to vector<16x8xbf16>
    %c0_374 = arith.constant 0 : index
    %c0_375 = arith.constant 0 : index
    %1213 = vector.load %arg7[%c0_374, %c0_375] : memref<8x32xbf16, #tpu.memory_space<vmem>>, vector<8x32xbf16>
    %cst_376 = arith.constant dense<0.000000e+00> : vector<16x32xf32>
    %1214 = tpu.matmul %1212, %1213, %cst_376 {dimension_numbers = #tpu.dot_dimension_numbers<[1], [0], [0], [1], [0, 0, 1, 1], [], []>} : vector<16x8xbf16>, vector<8x32xbf16>, vector<16x32xf32> -> vector<16x32xf32>
    %1215 = arith.truncf %1214 : vector<16x32xf32> to vector<16x32xbf16>
    %cst_377 = arith.constant 0.000000e+00 : bf16
    %1216 = vector.broadcast %cst_377 : bf16 to vector<16x1xbf16>
    %1217 = vector.extract_strided_slice %1215 {offsets = [0, 0], sizes = [16, 31], strides = [1, 1]} : vector<16x32xbf16> to vector<16x31xbf16>
    %1218 = tpu.concatenate %1216, %1217 in 1 : vector<16x1xbf16>, vector<16x31xbf16> -> vector<16x32xbf16>
    %cst_378 = arith.constant 0.000000e+00 : bf16
    %1219 = vector.broadcast %cst_378 : bf16 to vector<16x2xbf16>
    %1220 = vector.extract_strided_slice %1215 {offsets = [0, 0], sizes = [16, 30], strides = [1, 1]} : vector<16x32xbf16> to vector<16x30xbf16>
    %1221 = tpu.concatenate %1219, %1220 in 1 : vector<16x2xbf16>, vector<16x30xbf16> -> vector<16x32xbf16>
    %1222 = tpu.concatenate %1215, %1218, %1221 in 0 : vector<16x32xbf16>, vector<16x32xbf16>, vector<16x32xbf16> -> vector<48x32xbf16>
    %c560 = arith.constant 560 : index
    %c0_379 = arith.constant 0 : index
    %1223 = vector.load %arg11[%c560, %c0_379] : memref<832x96xbf16, #tpu.memory_space<vmem>>, vector<16x48xbf16>
    %cst_380 = arith.constant dense<0.000000e+00> : vector<16x32xf32>
    %1224 = tpu.matmul %1223, %1222, %cst_380 {dimension_numbers = #tpu.dot_dimension_numbers<[1], [0], [0], [1], [0, 0, 1, 1], [], []>} : vector<16x48xbf16>, vector<48x32xbf16>, vector<16x32xf32> -> vector<16x32xf32>
    %c368 = arith.constant 368 : index
    %c0_381 = arith.constant 0 : index
    %1225 = vector.load %arg12[%c368, %c0_381] : memref<448x5xf32, #tpu.memory_space<vmem>>, vector<16x5xf32>
    %1226 = vector.extract_strided_slice %1225 {offsets = [0, 3], sizes = [16, 1], strides = [1, 1]} : vector<16x5xf32> to vector<16x1xf32>
    %1227 = vector.broadcast %1226 : vector<16x1xf32> to vector<16x32xf32>
    %1228 = arith.addf %1224, %1227 : vector<16x32xf32>
    %cst_382 = arith.constant dense<0.000000e+00> : vector<16xf32>
    %1229 = vector.multi_reduction <add>, %1228, %cst_382 [1] : vector<16x32xf32> to vector<16xf32>
    %1230 = vector.shape_cast %1229 : vector<16xf32> to vector<16x1xf32>
    %cst_383 = arith.constant 3.200000e+01 : f32
    %1231 = vector.broadcast %cst_383 : f32 to vector<16x1xf32>
    %1232 = arith.divf %1230, %1231 : vector<16x1xf32>
    %1233 = arith.mulf %1228, %1228 : vector<16x32xf32>
    %cst_384 = arith.constant dense<0.000000e+00> : vector<16xf32>
    %1234 = vector.multi_reduction <add>, %1233, %cst_384 [1] : vector<16x32xf32> to vector<16xf32>
    %1235 = vector.shape_cast %1234 : vector<16xf32> to vector<16x1xf32>
    %cst_385 = arith.constant 3.200000e+01 : f32
    %1236 = vector.broadcast %cst_385 : f32 to vector<16x1xf32>
    %1237 = arith.divf %1235, %1236 : vector<16x1xf32>
    %1238 = arith.mulf %1232, %1232 : vector<16x1xf32>
    %1239 = arith.subf %1237, %1238 : vector<16x1xf32>
    %cst_386 = arith.constant 0.000000e+00 : f32
    %1240 = vector.broadcast %cst_386 : f32 to vector<16x1xf32>
    %1241 = arith.maximumf %1239, %1240 : vector<16x1xf32>
    %1242 = vector.broadcast %1232 : vector<16x1xf32> to vector<16x32xf32>
    %1243 = arith.subf %1228, %1242 : vector<16x32xf32>
    %cst_387 = arith.constant 9.99999974E-6 : f32
    %1244 = vector.broadcast %cst_387 : f32 to vector<16x1xf32>
    %1245 = arith.addf %1241, %1244 : vector<16x1xf32>
    %1246 = math.rsqrt %1245 : vector<16x1xf32>
    %1247 = vector.broadcast %1246 : vector<16x1xf32> to vector<16x32xf32>
    %1248 = arith.mulf %1243, %1247 : vector<16x32xf32>
    %1249 = vector.extract_strided_slice %1225 {offsets = [0, 0], sizes = [16, 1], strides = [1, 1]} : vector<16x5xf32> to vector<16x1xf32>
    %1250 = vector.broadcast %1249 : vector<16x1xf32> to vector<16x32xf32>
    %1251 = arith.mulf %1248, %1250 : vector<16x32xf32>
    %1252 = vector.extract_strided_slice %1225 {offsets = [0, 1], sizes = [16, 1], strides = [1, 1]} : vector<16x5xf32> to vector<16x1xf32>
    %1253 = vector.broadcast %1252 : vector<16x1xf32> to vector<16x32xf32>
    %1254 = arith.addf %1251, %1253 : vector<16x32xf32>
    %cst_388 = arith.constant 0.000000e+00 : f32
    %1255 = vector.broadcast %cst_388 : f32 to vector<16x32xf32>
    %1256 = arith.cmpf oge, %1254, %1255 : vector<16x32xf32>
    %1257 = vector.extract_strided_slice %1225 {offsets = [0, 2], sizes = [16, 1], strides = [1, 1]} : vector<16x5xf32> to vector<16x1xf32>
    %1258 = vector.broadcast %1257 : vector<16x1xf32> to vector<16x32xf32>
    %1259 = arith.mulf %1258, %1254 : vector<16x32xf32>
    %1260 = arith.select %1256, %1254, %1259 : vector<16x32xi1>, vector<16x32xf32>
    %1261 = arith.addf %1162, %1260 : vector<16x32xf32>
    %1262 = arith.truncf %1261 : vector<16x32xf32> to vector<16x32xbf16>
    %c0_389 = arith.constant 0 : index
    %c0_390 = arith.constant 0 : index
    %1263 = vector.load %arg6[%c0_389, %c0_390] : memref<32x8xbf16, #tpu.memory_space<vmem>>, vector<32x8xbf16>
    %cst_391 = arith.constant 0.000000e+00 : bf16
    %1264 = vector.broadcast %cst_391 : bf16 to vector<16x1xbf16>
    %1265 = vector.extract_strided_slice %1262 {offsets = [0, 1], sizes = [16, 31], strides = [1, 1]} : vector<16x32xbf16> to vector<16x31xbf16>
    %1266 = tpu.concatenate %1265, %1264 in 1 : vector<16x31xbf16>, vector<16x1xbf16> -> vector<16x32xbf16>
    %cst_392 = arith.constant 0.000000e+00 : bf16
    %1267 = vector.broadcast %cst_392 : bf16 to vector<16x2xbf16>
    %1268 = vector.extract_strided_slice %1262 {offsets = [0, 2], sizes = [16, 30], strides = [1, 1]} : vector<16x32xbf16> to vector<16x30xbf16>
    %1269 = tpu.concatenate %1268, %1267 in 1 : vector<16x30xbf16>, vector<16x2xbf16> -> vector<16x32xbf16>
    %1270 = tpu.concatenate %1262, %1266, %1269 in 0 : vector<16x32xbf16>, vector<16x32xbf16>, vector<16x32xbf16> -> vector<48x32xbf16>
    %cst_393 = arith.constant dense<0.000000e+00> : vector<48x8xf32>
    %1271 = tpu.matmul %1270, %1263, %cst_393 {dimension_numbers = #tpu.dot_dimension_numbers<[1], [0], [0], [1], [0, 0, 1, 1], [], []>} : vector<48x32xbf16>, vector<32x8xbf16>, vector<48x8xf32> -> vector<48x8xf32>
    %c576 = arith.constant 576 : index
    %c0_394 = arith.constant 0 : index
    %1272 = vector.load %arg11[%c576, %c0_394] : memref<832x96xbf16, #tpu.memory_space<vmem>>, vector<256x48xbf16>
    %1273 = arith.truncf %1271 : vector<48x8xf32> to vector<48x8xbf16>
    %cst_395 = arith.constant dense<0.000000e+00> : vector<256x8xf32>
    %1274 = tpu.matmul %1272, %1273, %cst_395 {dimension_numbers = #tpu.dot_dimension_numbers<[1], [0], [0], [1], [0, 0, 1, 1], [], []>} : vector<256x48xbf16>, vector<48x8xbf16>, vector<256x8xf32> -> vector<256x8xf32>
    %1275 = vector.extract_strided_slice %1274 {offsets = [128, 0], sizes = [128, 8], strides = [1, 1]} : vector<256x8xf32> to vector<128x8xf32>
    %1276 = vector.extract_strided_slice %1274 {offsets = [0, 0], sizes = [128, 8], strides = [1, 1]} : vector<256x8xf32> to vector<128x8xf32>
    %cst_396 = arith.constant 0.000000e+00 : f32
    %1277 = vector.broadcast %cst_396 : f32 to vector<128x1xf32>
    %1278 = vector.extract_strided_slice %1276 {offsets = [0, 0], sizes = [128, 7], strides = [1, 1]} : vector<128x8xf32> to vector<128x7xf32>
    %1279 = tpu.concatenate %1277, %1278 in 1 : vector<128x1xf32>, vector<128x7xf32> -> vector<128x8xf32>
    %1280 = arith.addf %1275, %1279 : vector<128x8xf32>
    %c384 = arith.constant 384 : index
    %c0_397 = arith.constant 0 : index
    %1281 = vector.load %arg12[%c384, %c0_397] : memref<448x5xf32, #tpu.memory_space<vmem>>, vector<64x5xf32>
    %1282 = vector.extract_strided_slice %1280 {offsets = [0, 0], sizes = [64, 8], strides = [1, 1]} : vector<128x8xf32> to vector<64x8xf32>
    %1283 = vector.extract_strided_slice %1281 {offsets = [0, 3], sizes = [64, 1], strides = [1, 1]} : vector<64x5xf32> to vector<64x1xf32>
    %1284 = vector.broadcast %1283 : vector<64x1xf32> to vector<64x8xf32>
    %1285 = arith.addf %1282, %1284 : vector<64x8xf32>
    %1286 = vector.extract_strided_slice %1280 {offsets = [64, 0], sizes = [64, 8], strides = [1, 1]} : vector<128x8xf32> to vector<64x8xf32>
    %1287 = vector.extract_strided_slice %1281 {offsets = [0, 4], sizes = [64, 1], strides = [1, 1]} : vector<64x5xf32> to vector<64x1xf32>
    %1288 = vector.broadcast %1287 : vector<64x1xf32> to vector<64x8xf32>
    %1289 = arith.addf %1286, %1288 : vector<64x8xf32>
    %1290 = arith.negf %1289 : vector<64x8xf32>
    %1291 = math.exp %1290 : vector<64x8xf32>
    %cst_398 = arith.constant 1.000000e+00 : f32
    %1292 = vector.broadcast %cst_398 : f32 to vector<64x8xf32>
    %1293 = arith.addf %1292, %1291 : vector<64x8xf32>
    %1294 = arith.divf %1292, %1293 : vector<64x8xf32>
    %1295 = arith.mulf %1285, %1294 : vector<64x8xf32>
    %cst_399 = arith.constant dense<0.000000e+00> : vector<64xf32>
    %1296 = vector.multi_reduction <add>, %1295, %cst_399 [1] : vector<64x8xf32> to vector<64xf32>
    %1297 = vector.shape_cast %1296 : vector<64xf32> to vector<64x1xf32>
    %cst_400 = arith.constant 8.000000e+00 : f32
    %1298 = vector.broadcast %cst_400 : f32 to vector<64x1xf32>
    %1299 = arith.divf %1297, %1298 : vector<64x1xf32>
    %1300 = arith.mulf %1295, %1295 : vector<64x8xf32>
    %cst_401 = arith.constant dense<0.000000e+00> : vector<64xf32>
    %1301 = vector.multi_reduction <add>, %1300, %cst_401 [1] : vector<64x8xf32> to vector<64xf32>
    %1302 = vector.shape_cast %1301 : vector<64xf32> to vector<64x1xf32>
    %cst_402 = arith.constant 8.000000e+00 : f32
    %1303 = vector.broadcast %cst_402 : f32 to vector<64x1xf32>
    %1304 = arith.divf %1302, %1303 : vector<64x1xf32>
    %1305 = arith.mulf %1299, %1299 : vector<64x1xf32>
    %1306 = arith.subf %1304, %1305 : vector<64x1xf32>
    %cst_403 = arith.constant 0.000000e+00 : f32
    %1307 = vector.broadcast %cst_403 : f32 to vector<64x1xf32>
    %1308 = arith.maximumf %1306, %1307 : vector<64x1xf32>
    %1309 = vector.broadcast %1299 : vector<64x1xf32> to vector<64x8xf32>
    %1310 = arith.subf %1295, %1309 : vector<64x8xf32>
    %cst_404 = arith.constant 9.99999974E-6 : f32
    %1311 = vector.broadcast %cst_404 : f32 to vector<64x1xf32>
    %1312 = arith.addf %1308, %1311 : vector<64x1xf32>
    %1313 = math.rsqrt %1312 : vector<64x1xf32>
    %1314 = vector.broadcast %1313 : vector<64x1xf32> to vector<64x8xf32>
    %1315 = arith.mulf %1310, %1314 : vector<64x8xf32>
    %1316 = vector.extract_strided_slice %1281 {offsets = [0, 0], sizes = [64, 1], strides = [1, 1]} : vector<64x5xf32> to vector<64x1xf32>
    %1317 = vector.broadcast %1316 : vector<64x1xf32> to vector<64x8xf32>
    %1318 = arith.mulf %1315, %1317 : vector<64x8xf32>
    %1319 = vector.extract_strided_slice %1281 {offsets = [0, 1], sizes = [64, 1], strides = [1, 1]} : vector<64x5xf32> to vector<64x1xf32>
    %1320 = vector.broadcast %1319 : vector<64x1xf32> to vector<64x8xf32>
    %1321 = arith.addf %1318, %1320 : vector<64x8xf32>
    %cst_405 = arith.constant 0.000000e+00 : f32
    %1322 = vector.broadcast %cst_405 : f32 to vector<64x8xf32>
    %1323 = arith.cmpf oge, %1321, %1322 : vector<64x8xf32>
    %1324 = vector.extract_strided_slice %1281 {offsets = [0, 2], sizes = [64, 1], strides = [1, 1]} : vector<64x5xf32> to vector<64x1xf32>
    %1325 = vector.broadcast %1324 : vector<64x1xf32> to vector<64x8xf32>
    %1326 = arith.mulf %1325, %1321 : vector<64x8xf32>
    %1327 = arith.select %1323, %1321, %1326 : vector<64x8xi1>, vector<64x8xf32>
    %c0_406 = arith.constant 0 : index
    %c0_407 = arith.constant 0 : index
    %c0_408 = arith.constant 0 : index
    %1328 = vector.load %arg13[%c0_406, %c0_407, %c0_408] : memref<1x64x8xf32, #tpu.memory_space<vmem>>, vector<1x64x8xf32>
    %1329 = vector.shape_cast %1328 : vector<1x64x8xf32> to vector<64x8xf32>
    %1330 = vector.shape_cast %1327 : vector<64x8xf32> to vector<1x64x8xf32>
    tpu.vector_store %arg13[%c0_406, %c0_407, %c0_408], %1330 {strides = array<i32>} : memref<1x64x8xf32, #tpu.memory_space<vmem>>, vector<1x64x8xf32>,
    return
  }
  func.func @transform_0(%arg0: i32) -> (i32, i32, i32) {
    %c0_i32 = arith.constant 0 : i32
    %c0_i32_0 = arith.constant 0 : i32
    %c0_i32_1 = arith.constant 0 : i32
    return %arg0, %c0_i32, %c0_i32_0 : i32, i32, i32
  }
  func.func @transform_1(%arg0: i32) -> (i32, i32) {
    %c0_i32 = arith.constant 0 : i32
    %c0_i32_0 = arith.constant 0 : i32
    %c0_i32_1 = arith.constant 0 : i32
    return %c0_i32, %c0_i32_0 : i32, i32
  }
  func.func @transform_2(%arg0: i32) -> (i32, i32) {
    %c0_i32 = arith.constant 0 : i32
    %c0_i32_0 = arith.constant 0 : i32
    %c0_i32_1 = arith.constant 0 : i32
    return %c0_i32, %c0_i32_0 : i32, i32
  }
  func.func @transform_3(%arg0: i32) -> (i32, i32) {
    %c0_i32 = arith.constant 0 : i32
    %c0_i32_0 = arith.constant 0 : i32
    %c0_i32_1 = arith.constant 0 : i32
    return %c0_i32, %c0_i32_0 : i32, i32
  }
  func.func @transform_4(%arg0: i32) -> (i32, i32) {
    %c0_i32 = arith.constant 0 : i32
    %c0_i32_0 = arith.constant 0 : i32
    %c0_i32_1 = arith.constant 0 : i32
    return %c0_i32, %c0_i32_0 : i32, i32
  }
  func.func @transform_5(%arg0: i32) -> (i32, i32) {
    %c0_i32 = arith.constant 0 : i32
    %c0_i32_0 = arith.constant 0 : i32
    %c0_i32_1 = arith.constant 0 : i32
    return %c0_i32, %c0_i32_0 : i32, i32
  }
  func.func @transform_6(%arg0: i32) -> (i32, i32) {
    %c0_i32 = arith.constant 0 : i32
    %c0_i32_0 = arith.constant 0 : i32
    %c0_i32_1 = arith.constant 0 : i32
    return %c0_i32, %c0_i32_0 : i32, i32
  }
  func.func @transform_7(%arg0: i32) -> (i32, i32) {
    %c0_i32 = arith.constant 0 : i32
    %c0_i32_0 = arith.constant 0 : i32
    %c0_i32_1 = arith.constant 0 : i32
    return %c0_i32, %c0_i32_0 : i32, i32
  }
  func.func @transform_8(%arg0: i32) -> (i32, i32) {
    %c0_i32 = arith.constant 0 : i32
    %c0_i32_0 = arith.constant 0 : i32
    %c0_i32_1 = arith.constant 0 : i32
    return %c0_i32, %c0_i32_0 : i32, i32
  }
  func.func @transform_9(%arg0: i32) -> (i32, i32) {
    %c0_i32 = arith.constant 0 : i32
    %c0_i32_0 = arith.constant 0 : i32
    %c0_i32_1 = arith.constant 0 : i32
    return %c0_i32, %c0_i32_0 : i32, i32
  }
  func.func @transform_10(%arg0: i32) -> (i32, i32) {
    %c0_i32 = arith.constant 0 : i32
    %c0_i32_0 = arith.constant 0 : i32
    %c0_i32_1 = arith.constant 0 : i32
    return %c0_i32, %c0_i32_0 : i32, i32
  }
  func.func @transform_11(%arg0: i32) -> (i32, i32) {
    %c0_i32 = arith.constant 0 : i32
    %c0_i32_0 = arith.constant 0 : i32
    %c0_i32_1 = arith.constant 0 : i32
    return %c0_i32, %c0_i32_0 : i32, i32
  }
  func.func @transform_12(%arg0: i32) -> (i32, i32, i32) {
    %c0_i32 = arith.constant 0 : i32
    %c0_i32_0 = arith.constant 0 : i32
    %c0_i32_1 = arith.constant 0 : i32
    return %arg0, %c0_i32, %c0_i32_0 : i32, i32, i32
  }
}

</mosaic_0001>

<bundles_post_ra>
// kernel: tpu_custom_call.1
= control target key start
LH: loop header
LB: loop body
LE: loop exit
PB: predicated region body
PF: predicated region fallthrough
CT: control target
= control target key end

     0   :  { %s11629_s21 = smov 0   ;;  %s14738_s0 = inlined_call_operand.vmem [shape: f32[2,8,648], index: 0, kind: input, shape index: {}]   ;;  %s14739_s1 = inlined_call_operand.vmem [shape: bf16[648,312], index: 1, kind: input, shape index: {}]   ;;  %s14740_s2 = inlined_call_operand.vmem [shape: bf16[312,152], index: 2, kind: input, shape index: {}]   ;;  %s14741_s3 = inlined_call_operand.vmem [shape: bf16[152,72], index: 3, kind: input, shape index: {}]   ;;  %s14742_s4 = inlined_call_operand.vmem [shape: bf16[72,32], index: 4, kind: input, shape index: {}]   ;;  %s14743_s5 = inlined_call_operand.vmem [shape: bf16[32,8], index: 5, kind: input, shape index: {}]   ;;  %s14744_s6 = inlined_call_operand.vmem [shape: bf16[8,32], index: 6, kind: input, shape index: {}]   ;;  %s14745_s7 = inlined_call_operand.vmem [shape: bf16[32,72], index: 7, kind: input, shape index: {}]   ;;  %s14746_s8 = inlined_call_operand.vmem [shape: bf16[72,152], index: 8, kind: input, shape index: {}]   ;;  %s14747_s9 = inlined_call_operand.vmem [shape: bf16[152,312], index: 9, kind: input, shape index: {}]   ;;  %s14748_s10 = inlined_call_operand.vmem [shape: bf16[832,96], index: 10, kind: input, shape index: {}]   ;;  %s14749_s11 = inlined_call_operand.vmem [shape: f32[448,5], index: 11, kind: input, shape index: {}]   ;;  %s14750_s12 = inlined_call_operand.vmem [shape: f32[2,64,8], index: 12, kind: output, shape index: {}]  }
   0x1 LB: > { %s9420_s22 = sadd.s32 4294967295, %s11545_s21   ;;  %p9424_p0 = scmp.ge.s32.totalorder %s11545_s21, 1  ;;  %s11545_s21 = sphi %s11629_s21, %s22_s21  }
   0x2   : > { %p362_p1 = scmp.lt.s32.totalorder %s11545_s21, 3 }
   0x4   : > { %p363_p2 = pnand %p9424_p0, %p362_p1 }
   0x5   : > { %p404_p3 = scmp.lt.s32.totalorder (!%p363_p2), %s9420_s22, 1  ;;  %v10911_v0 = vld [vmem:[%s14739_s1 + $0x4] ss:$12 sps:$4 sm:$0xff] (!%p363_p2)   ;;  %v10913_v1 = vld [vmem:[%s14739_s1] ss:$12 sps:$4 sm:$0xff] (!%p363_p2)   ;;  %s11547_s25 = smov (!%p363_p2), 127  }
   0x6   : > { %366 = sbr.rel (%p363_p2) target bundleno = 20119 (0x4e97), region = 68  ;;  %1409 = vmatprep.subr.bf16.mxu0 (!%p363_p2), %v10911_v0  ;;  %v10914_v2 = vld [vmem:[%s14739_s1 + $0x1c] ss:$12 sps:$4 sm:$0xff] (!%p363_p2)   ;;  %v10916_v3 = vld [vmem:[%s14739_s1 + $0x18] ss:$12 sps:$4 sm:$0xff] (!%p363_p2)   ;;  %s11548_s14 = smov (!%p363_p2), 125  }
   0x7   : > { %1410 = vmatpush1.bf16.msra.mxu0 (!%p363_p2), %v10913_v1  ;;  %v10917_v4 = vld [vmem:[%s14739_s1 + $0x34] ss:$12 sps:$4 sm:$0xff] (!%p363_p2)   ;;  %v10919_v5 = vld [vmem:[%s14739_s1 + $0x30] ss:$12 sps:$4 sm:$0xff] (!%p363_p2)   ;;  %v10920_v11 = vld [vmem:[%s14739_s1 + $0x4c] ss:$12 sps:$4 sm:$0xff] (!%p363_p2)  }
   0x8   : > { %1411 = vmatprep.subr.bf16.mxu0 (!%p363_p2), %v10914_v2  ;;  %v10922_v13 = vld [vmem:[%s14739_s1 + $0x48] ss:$12 sps:$4 sm:$0xff] (!%p363_p2)   ;;  %v10923_v14 = vld [vmem:[%s14739_s1 + $0x64] ss:$12 sps:$4 sm:$0xff] (!%p363_p2)   ;;  %v10925_v15 = vld [vmem:[%s14739_s1 + $0x60] ss:$12 sps:$4 sm:$0xff] (!%p363_p2)  }
   0x9   : > { %v10926_v16 = vld [vmem:[%s14739_s1 + $0x7c] ss:$12 sps:$4 sm:$0xff] (!%p363_p2)   ;;  %v10928_v19 = vld [vmem:[%s14739_s1 + $0x78] ss:$12 sps:$4 sm:$0xff] (!%p363_p2)   ;;  %v10942_v20 = vld [vmem:[%s14739_s1 + $0xe0] ss:$12 sps:$4 sm:$0xff] (!%p363_p2)  }
   0xa   : > { %v10937_v17 = vld [vmem:[%s14739_s1 + $0xc8] ss:$12 sps:$4 sm:$0xff] (!%p363_p2)   ;;  %v10944_v22 = vld [vmem:[%s14739_s1 + $0x20] ss:$12 sps:$4 sm:$0xff] (!%p363_p2)   ;;  %s11549_s16 = smov (!%p363_p2), 126   ;;  %vm607_vm0 = vcmask (!%p363_p2), 1039360  }
   0xb   : > { %1412 = vmatpush1.bf16.msra.mxu0 (!%p363_p2), %v10916_v3  ;;  %v10939_v18 = vld [vmem:[%s14739_s1 + $0x8] ss:$12 sps:$4 sm:$0xff] (!%p363_p2)   ;;  %9921 = vmatprep.subr.bf16.mxu1 (!%p363_p2), %v10937_v17  ;;  %v10931_v23 = vld [vmem:[%s14739_s1 + $0x90] ss:$12 sps:$4 sm:$0xff] (!%p363_p2)   ;;  %v10947_v24 = vld [vmem:[%s14739_s1 + $0xf8] ss:$12 sps:$4 sm:$0xff] (!%p363_p2)  }
   0xc   : > { %1413 = vmatprep.subr.bf16.mxu0 (!%p363_p2), %v10917_v4  ;;  %v10929_v21 = vld [vmem:[%s14739_s1 + $0x94] ss:$12 sps:$4 sm:$0xff] (!%p363_p2)   ;;  %9922 = vmatpush3.bf16.msra.mxu1 (!%p363_p2), %v10939_v18  ;;  %v10949_v25 = vld [vmem:[%s14739_s1 + $0x38] ss:$12 sps:$4 sm:$0xff] (!%p363_p2)   ;;  %v10952_v29 = vld [vmem:[%s14739_s1 + $0x110] ss:$12 sps:$4 sm:$0xff] (!%p363_p2)  }
   0xd   : > { %s14950_s22 = smov (!%p404_p3, %s9420_s22), 1  ;;  %9923 = vmatprep.subr.bf16.mxu1 %v10942_v20  ;;  %v10932_v26 = vld [vmem:[%s14739_s1 + $0xac] ss:$12 sps:$4 sm:$0xff]   ;;  %v10934_v30 = vld [vmem:[%s14739_s1 + $0xa8] ss:$12 sps:$4 sm:$0xff]   ;;  %vm699_vm1 = vcmask 1043456  }
   0xe   : > { %s10725_s13 = smul.u32 48, %s14950_s22  ;;  %v10954_v31 = vld [vmem:[%s14739_s1 + $0x50] ss:$12 sps:$4 sm:$0xff]   ;;  %v10938_v33 = vld [vmem:[%s14739_s1 + $0xc0] ss:$12 sps:$4 sm:$0xff]   ;;  %vm650_vm2 = vcmask 1022976  }
   0xf   : > { %1414 = vmatpush1.bf16.msra.mxu0 %v10919_v5  ;;  %v10935_v32 = vld [vmem:[%s14739_s1 + $0xc4] ss:$12 sps:$4 sm:$0xff]   ;;  %v10957_v34 = vld [vmem:[%s14739_s1 + $0x128] ss:$12 sps:$4 sm:$0xff]   ;;  %v10962_v40 = vld [vmem:[%s14739_s1 + $0x140] ss:$12 sps:$4 sm:$0xff]  }
  0x10   : > { %s11658_s18 = scalar_lea.vmem %s14738_s0, %s10725_s13  ;;  %1415 = vmatprep.subr.bf16.mxu0 %v10920_v11  ;;  %9924 = vmatpush3.bf16.msra.mxu1 %v10944_v22  ;;  %s11550_s13 = smov 124   ;;  %v10959_v37 = vld [vmem:[%s14739_s1 + $0x68] ss:$12 sps:$4 sm:$0xff]   ;;  %v10943_v39 = vld [vmem:[%s14739_s1 + $0xd8] ss:$12 sps:$4 sm:$0xff]   ;;  %vm629_vm3 = vcmask 1031168  }
  0x11   : > { %v416_v6 = vld [vmem:[%s11658_s18 + $0x8] sm:$0xff]  ;;  %v415_v7 = vld [vmem:[%s11658_s18] sm:$0xff]  ;;  %v417_v8 = vld [vmem:[%s11658_s18 + $0x10] sm:$0xff]  ;;  %9925 = vmatprep.subr.bf16.mxu1 %v10947_v24  ;;  %vm671_vm4 = vcmask 1014784   ;;  %vm613_vm5 = vcmask 56320   ;;  %vm14756_vm6 = vcmask 64512  }
  0x12   : > { %v11666_v9 = vpack.c.bf16 %v416_v6, %v416_v6  ;;  %v11668_v10 = vpack.c.bf16 %v415_v7, %v415_v7  ;;  %v11677_v12 = vpack.c.bf16 %v417_v8, %v417_v8  ;;  %v418_v27 = vld [vmem:[%s11658_s18 + $0x18] sm:$0xff]  ;;  %v419_v28 = vld [vmem:[%s11658_s18 + $0x20] sm:$0xff]  ;;  %v420_v48 = vld [vmem:[%s11658_s18 + $0x28] sm:$0xff]  ;;  %vm656_vm7 = vcmask 39936   ;;  %s11554_s30 = smov 39   ;;  %s11559_s29 = smov 1  }
  0x13   : > { %1416 = vmatpush1.bf16.msra.mxu0 %v10922_v13  ;;  %v11759_v35 = vpack.c.bf16 %v418_v27, %v418_v27  ;;  %v11763_v36 = vpack.c.bf16 %v419_v28, %v419_v28  ;;  %v10940_v38 = vld [vmem:[%s14739_s1 + $0xdc] ss:$12 sps:$4 sm:$0xff]   ;;  %v10945_v41 = vld [vmem:[%s14739_s1 + $0xf4] ss:$12 sps:$4 sm:$0xff]   ;;  %v10967_v43 = vld [vmem:[%s14739_s1 + $0x158] ss:$12 sps:$4 sm:$0xff]   ;;  %v11827_v53 = vpack.c.bf16 %v420_v48, %v420_v48 }
  0x14   : > { %597 = vrot.lane.b32.xlu0 %v11666_v9, %s11547_s25  ;;  %595 = vrot.lane.b32.xlu1 %v11668_v10, %s11547_s25  ;;  %v10964_v42 = vld [vmem:[%s14739_s1 + $0x80] ss:$12 sps:$4 sm:$0xff]   ;;  %v10948_v44 = vld [vmem:[%s14739_s1 + $0xf0] ss:$12 sps:$4 sm:$0xff]   ;;  %vm635_vm8 = vcmask 48128   ;;  %vm14751_vm9 = vcmask 31744  }
  0x15   : > { %1417 = vmatprep.subr.bf16.mxu0 %v10923_v14  ;;  %9926 = vmatpush3.bf16.msra.mxu1 %v10949_v25  ;;  %v10969_v45 = vld [vmem:[%s14739_s1 + $0x98] ss:$12 sps:$4 sm:$0xff]   ;;  %v10972_v47 = vld [vmem:[%s14739_s1 + $0x170] ss:$12 sps:$4 sm:$0xff]   ;;  %v10953_v49 = vld [vmem:[%s14739_s1 + $0x108] ss:$12 sps:$4 sm:$0xff]  }
  0x16   : > { %9927 = vmatprep.subr.bf16.mxu1 %v10952_v29  ;;  %v10950_v46 = vld [vmem:[%s14739_s1 + $0x10c] ss:$12 sps:$4 sm:$0xff]   ;;  %v10955_v50 = vld [vmem:[%s14739_s1 + $0x124] ss:$12 sps:$4 sm:$0xff]   ;;  %v10978_v52 = vld [vmem:[%s14739_s1 + $0x248] ss:$12 sps:$4 sm:$0xff]  }
  0x17   : > { %1418 = vmatpush1.bf16.msra.mxu0 %v10925_v15  ;;  %v10974_v51 = vld [vmem:[%s14739_s1 + $0xb0] ss:$12 sps:$4 sm:$0xff]   ;;  %v10958_v54 = vld [vmem:[%s14739_s1 + $0x120] ss:$12 sps:$4 sm:$0xff]   ;;  %v10963_v56 = vld [vmem:[%s14739_s1 + $0x138] ss:$12 sps:$4 sm:$0xff]  }
  0x18   : > { %599 = vrot.lane.b32.xlu0 %v11677_v12, %s11547_s25  ;;  %640 = vrot.lane.b32.xlu1 %v11666_v9, %s11548_s14  ;;  %v10960_v55 = vld [vmem:[%s14739_s1 + $0x13c] ss:$12 sps:$4 sm:$0xff]   ;;  %v10965_v57 = vld [vmem:[%s14739_s1 + $0x154] ss:$12 sps:$4 sm:$0xff]   ;;  %vm1797_vm10 = vcmask 326656   ;;  %vm1993_vm11 = vcmask 318464  }
  0x19   : > { %1419 = vmatprep.subr.bf16.mxu0 %v10926_v16  ;;  %9928 = vmatpush3.bf16.msra.mxu1 %v10954_v31  ;;  %v10968_v58 = vld [vmem:[%s14739_s1 + $0x150] ss:$12 sps:$4 sm:$0xff]   ;;  %v10970_v59 = vld [vmem:[%s14739_s1 + $0x16c] ss:$12 sps:$4 sm:$0xff]   ;;  %v10973_v60 = vld [vmem:[%s14739_s1 + $0x168] ss:$12 sps:$4 sm:$0xff]  }
  0x1a   : > { %9929 = vmatprep.subr.bf16.mxu1 %v10957_v34  ;;  %v10977_v61 = vld [vmem:[%s14739_s1 + $0x184] ss:$12 sps:$4 sm:$0xff]   ;;  %v10975_v5 = vld [vmem:[%s14739_s1 + $0x180] ss:$12 sps:$4 sm:$0xff]   ;;  %v10979_v6 = vld [vmem:[%s14739_s1 + $0x188] ss:$12 sps:$4 sm:$0xff]  }
  0x1b   : > { %1420 = vmatpush1.bf16.msra.mxu0 %v10928_v19  ;;  %v10982_v8 = vld [vmem:[%s14739_s1 + $0x19c] ss:$12 sps:$4 sm:$0xff]   ;;  %v10983_v11 = vld [vmem:[%s14739_s1 + $0x260] ss:$12 sps:$4 sm:$0xff]   ;;  %v10980_v17 = vld [vmem:[%s14739_s1 + $0x198] ss:$12 sps:$4 sm:$0xff]  }
  0x1c   : > { %642 = vrot.lane.b32.xlu0 %v11677_v12, %s11548_s14  ;;  %638 = vrot.lane.b32.xlu1 %v11668_v10, %s11548_s14  ;;  %v10984_v19 = vld [vmem:[%s14739_s1 + $0x1a0] ss:$12 sps:$4 sm:$0xff]   ;;  %v10985_v24 = vld [vmem:[%s14739_s1 + $0x1b0] ss:$12 sps:$4 sm:$0xff]   ;;  %vm2105_vm12 = vcmask 457728   ;;  %s11561_s19 = smov 19  }
  0x1d   : > { %1421 = vmatprep.subr.bf16.mxu0 %v10929_v21  ;;  %9930 = vmatpush3.bf16.msra.mxu1 %v10959_v37  ;;  %v10987_v20 = vld [vmem:[%s14739_s1 + $0x1b4] ss:$12 sps:$4 sm:$0xff]   ;;  %v10989_v25 = vld [vmem:[%s14739_s1 + $0x1b8] ss:$12 sps:$4 sm:$0xff]   ;;  %v10993_v29 = vld [vmem:[%s14739_s1 + $0x290] ss:$12 sps:$4 sm:$0xff]  }
  0x1e   : > { %9931 = vmatprep.subr.bf16.mxu1 %v10962_v40  ;;  %v10992_v28 = vld [vmem:[%s14739_s1 + $0x1cc] ss:$12 sps:$4 sm:$0xff]   ;;  %v10990_v34 = vld [vmem:[%s14739_s1 + $0x1c8] ss:$12 sps:$4 sm:$0xff]   ;;  %v10994_v37 = vld [vmem:[%s14739_s1 + $0x1d0] ss:$12 sps:$4 sm:$0xff]  }
  0x1f   : > { %1422 = vmatpush1.bf16.msra.mxu0 %v10931_v23  ;;  %v10998_v40 = vld [vmem:[%s14739_s1 + $0x2a8] ss:$12 sps:$4 sm:$0xff]  }
  0x20   : > { %619 = vrot.lane.b32.xlu0 %v11666_v9, %s11549_s16  ;;  %621 = vrot.lane.b32.xlu1 %v11677_v12, %s11549_s16 }
  0x21   : > { %1423 = vmatprep.subr.bf16.mxu0 %v10932_v26  ;;  %9932 = vmatpush3.bf16.msra.mxu1 %v10964_v42 }
  0x22   : > { %9933 = vmatprep.subr.bf16.mxu1 %v10967_v43  ;;  %v10995_v43 = vld [vmem:[%s14739_s1 + $0x1e0] ss:$12 sps:$4 sm:$0xff]  }
  0x23   : > { %1424 = vmatpush1.bf16.msra.mxu0 %v10934_v30 }
  0x24   : > { %617 = vrot.lane.b32.xlu0 %v11668_v10, %s11549_s16  ;;  %661 = vrot.lane.b32.xlu1 %v11666_v9, %s11550_s13 }
  0x25   : > { %1425 = vmatprep.subr.bf16.mxu0 %v10935_v32  ;;  %9934 = vmatpush3.bf16.msra.mxu1 %v10969_v45 }
  0x26   : > { %9935 = vmatprep.subr.bf16.mxu1 %v10972_v47  ;;  %v11003_v47 = vld [vmem:[%s14739_s1 + $0x2c0] ss:$12 sps:$4 sm:$0xff]  }
  0x27   : > { %1426 = vmatpush1.bf16.msra.mxu0 %v10938_v33 }
  0x28   : > { %663 = vrot.lane.b32.xlu0 %v11677_v12, %s11550_s13  ;;  %659 = vrot.lane.b32.xlu1 %v11668_v10, %s11550_s13 }
  0x29   : > { %1427 = vmatprep.subr.bf16.mxu0 %v10940_v38  ;;  %9936 = vmatpush3.bf16.msra.mxu1 %v10974_v51  ;;  %v10997_v38 = vld [vmem:[%s14739_s1 + $0x1e4] ss:$12 sps:$4 sm:$0xff]   ;;  %v11004_v51 = vld [vmem:[%s14739_s1 + $0x200] ss:$12 sps:$4 sm:$0xff]  }
  0x2a   : > { %9955 = vmatprep.subr.bf16.mxu1 %v10978_v52 }
  0x2b   : > { %1428 = vmatpush1.bf16.msra.mxu0 %v10943_v39 }
  0x2c   : > { %601 = vrot.lane.b32.xlu0 %v11759_v35, %s11547_s25  ;;  %603 = vrot.lane.b32.xlu1 %v11763_v36, %s11547_s25 }
  0x2d   : > { %1429 = vmatprep.subr.bf16.mxu0 %v10945_v41 }
  0x2f   : > { %1430 = vmatpush1.bf16.msra.mxu0 %v10948_v44  ;;  %v10999_v44 = vld [vmem:[%s14739_s1 + $0x1e8] ss:$12 sps:$4 sm:$0xff]  }
  0x30   : > { %644 = vrot.lane.b32.xlu0 %v11759_v35, %s11548_s14  ;;  %646 = vrot.lane.b32.xlu1 %v11763_v36, %s11548_s14 }
  0x31   : > { %1431 = vmatprep.subr.bf16.mxu0 %v10950_v46  ;;  %v11002_v46 = vld [vmem:[%s14739_s1 + $0x1fc] ss:$12 sps:$4 sm:$0xff]  }
  0x33   : > { %1432 = vmatpush1.bf16.msra.mxu0 %v10953_v49 }
  0x34   : > { %623 = vrot.lane.b32.xlu0 %v11759_v35, %s11549_s16  ;;  %625 = vrot.lane.b32.xlu1 %v11763_v36, %s11549_s16 }
  0x35   : > { %1433 = vmatprep.subr.bf16.mxu0 %v10955_v50  ;;  %v11000_v50 = vld [vmem:[%s14739_s1 + $0x1f8] ss:$12 sps:$4 sm:$0xff]  }
  0x37   : > { %1434 = vmatpush1.bf16.msra.mxu0 %v10958_v54  ;;  %v11007_v54 = vld [vmem:[%s14739_s1 + $0x214] ss:$12 sps:$4 sm:$0xff]  }
  0x38   : > { %665 = vrot.lane.b32.xlu0 %v11759_v35, %s11550_s13  ;;  %667 = vrot.lane.b32.xlu1 %v11763_v36, %s11550_s13 }
  0x39   : > { %1435 = vmatprep.subr.bf16.mxu0 %v10960_v55 }
  0x3b   : > { %1436 = vmatpush1.bf16.msra.mxu0 %v10963_v56  ;;  %v11008_v56 = vld [vmem:[%s14739_s1 + $0x2d8] ss:$12 sps:$4 sm:$0xff]  }
  0x3c   : > { %605 = vrot.lane.b32.xlu0 %v11827_v53, %s11547_s25  ;;  %648 = vrot.lane.b32.xlu1 %v11827_v53, %s11548_s14  ;;  %s11562_s14 = smov 9  }
  0x3d   : > { %1437 = vmatprep.subr.bf16.mxu0 %v10965_v57 }
  0x3f   : > { %1438 = vmatpush1.bf16.msra.mxu0 %v10968_v58 }
  0x40   : > { %627 = vrot.lane.b32.xlu0 %v11827_v53, %s11549_s16  ;;  %669 = vrot.lane.b32.xlu1 %v11827_v53, %s11550_s13 }
  0x41   : > { %1439 = vmatprep.subr.bf16.mxu0 %v10970_v59 }
  0x43   : > { %1440 = vmatpush1.bf16.msra.mxu0 %v10973_v60 }
  0x44   : > { %1470 = vmatprep.subr.bf16.mxu0 %v10977_v61 }
  0x86   : > { %v598_v62 = vpop.permute.xlu0 %597  ;;  %v596_v63 = vpop.permute.xlu1 %595 }
  0x87   : > { %v608_v0 = vsel %vm607_vm0, %v596_v63, %v598_v62  ;;  %v11009_v63 = vld [vmem:[%s14739_s1 + $0x218] ss:$12 sps:$4 sm:$0xff]  }
  0x88   : > { %v686_v1 = vrot.slane %v608_v0, 4 }
  0x8a   : > { %v11862_v2 = vpop.permute.xlu0 %599  ;;  %v641_v3 = vpop.permute.xlu1 %640  ;;  %v702_v16 = vsel %vm699_vm1, %v11668_v10, %v686_v1  ;;  %v10988_v10 = vld [vmem:[%s14739_s1 + $0x278] ss:$12 sps:$4 sm:$0xff]  }
  0x8b   : > { %v609_v4 = vsel %vm607_vm0, %v598_v62, %v11862_v2  ;;  %v11005_v62 = vld [vmem:[%s14739_s1 + $0x210] ss:$12 sps:$4 sm:$0xff]  }
  0x8c   : > { %v687_v7 = vrot.slane %v609_v4, 4  ;;  %v11010_v4 = vld [vmem:[%s14739_s1 + $0x228] ss:$12 sps:$4 sm:$0xff]  }
  0x8e   : > { %v11878_v13 = vpop.permute.xlu0 %642  ;;  %v706_v14 = vsel %vm699_vm1, %v11666_v9, %v687_v7  ;;  %v639_v15 = vpop.permute.xlu1 %638 }
  0x8f   : > { %1441 = vmatprep.mubr.bf16.mxu0 %v706_v14  ;;  %1624 = vmatprep.mubr.bf16.mxu1 %v706_v14  ;;  %v652_v18 = vsel %vm650_vm2, %v641_v3, %v11878_v13  ;;  %v651_v21 = vsel %vm650_vm2, %v639_v15, %v641_v3  ;;  %v11018_v14 = vld [vmem:[%s14739_s1 + $0x308] ss:$12 sps:$4 sm:$0xff]  }
  0x90   : > { %1442 = vmatmul.mubr.bf16.vlgmr.msra.gmra.mrb[0].mxu0 %v702_v16  ;;  %1625 = vmatmul.mubr.bf16.vlgmr.msra.gmra.mrb[0].mxu1 %v702_v16  ;;  %v694_v9 = vrot.slane %v652_v18, 4  ;;  %v693_v27 = vrot.slane %v651_v21, 4  ;;  %v11021_v15 = vld [vmem:[%s14739_s1 + $0x25c] ss:$12 sps:$4 sm:$0xff]   ;;  %v11551_v18 = vmov 0  }
  0x91   : > { %1471 = vmatpush1.bf16.msra.mxu0 %v10975_v5  ;;  %9956 = vmatpush3.bf16.msra.mxu1 %v10979_v6  ;;  %v11014_v5 = vld [vmem:[%s14739_s1 + $0x230] ss:$12 sps:$4 sm:$0xff]  }
  0x92   : > { %v620_v22 = vpop.permute.xlu0 %619  ;;  %1472 = vmatprep.subr.bf16.mxu0 %v10982_v8  ;;  %9957 = vmatprep.subr.bf16.mxu1 %v10983_v11  ;;  %v11899_v23 = vpop.permute.xlu1 %621  ;;  %v11017_v6 = vld [vmem:[%s14739_s1 + $0x244] ss:$12 sps:$4 sm:$0xff]   ;;  %v11015_v11 = vld [vmem:[%s14739_s1 + $0x240] ss:$12 sps:$4 sm:$0xff]  }
  0x93   : > { %v631_v26 = vsel %vm629_vm3, %v620_v22, %v11899_v23 }
  0x94   : > { %v729_v30 = vsel %vm699_vm1, %v631_v26, %v694_v9  ;;  %v11026_v26 = vld [vmem:[%s14739_s1 + $0x338] ss:$12 sps:$4 sm:$0xff]  }
  0x95   : > { %1473 = vmatpush1.bf16.msra.mxu0 %v10980_v17  ;;  %9958 = vmatpush3.bf16.msra.mxu1 %v10984_v19 }
  0x96   : > { %v618_v31 = vpop.permute.xlu0 %617  ;;  %1474 = vmatprep.subr.bf16.mxu0 %v10987_v20  ;;  %9959 = vmatprep.subr.bf16.mxu1 %v10988_v10  ;;  %v662_v32 = vpop.permute.xlu1 %661  ;;  %v11019_v20 = vld [vmem:[%s14739_s1 + $0x258] ss:$12 sps:$4 sm:$0xff]  }
  0x97   : > { %v630_v33 = vsel %vm629_vm3, %v618_v31, %v620_v22  ;;  %1632 = vmatprep.mubr.bf16.mxu1 %v729_v30  ;;  %1451 = vmatprep.mubr.bf16.mxu0 %v729_v30  ;;  %v11025_v22 = vld [vmem:[%s14739_s1 + $0x274] ss:$12 sps:$4 sm:$0xff]   ;;  %v11030_v31 = vld [vmem:[%s14739_s1 + $0x350] ss:$12 sps:$4 sm:$0xff]  }
  0x98   : > { %v725_v39 = vsel %vm699_vm1, %v630_v33, %v693_v27  ;;  %v11027_v30 = vld [vmem:[%s14739_s1 + $0x288] ss:$12 sps:$4 sm:$0xff]   ;;  %v11033_v33 = vld [vmem:[%s14739_s1 + $0x2a4] ss:$12 sps:$4 sm:$0xff]  }
  0x99   : > { %1475 = vmatpush1.bf16.msra.mxu0 %v10985_v24  ;;  %9960 = vmatpush3.bf16.msra.mxu1 %v10989_v25  ;;  %v11023_v25 = vld [vmem:[%s14739_s1 + $0x270] ss:$12 sps:$4 sm:$0xff]  }
  0x9a   : > { %v11930_v41 = vpop.permute.xlu0 %663  ;;  %1476 = vmatprep.subr.bf16.mxu0 %v10992_v28  ;;  %9961 = vmatprep.subr.bf16.mxu1 %v10993_v29  ;;  %v660_v42 = vpop.permute.xlu1 %659  ;;  %v11029_v28 = vld [vmem:[%s14739_s1 + $0x28c] ss:$12 sps:$4 sm:$0xff]  }
  0x9b   : > { %1633 = vmatmul.mubr.bf16.gmra.mrb[4].mxu1 %v725_v39  ;;  %v673_v45 = vsel %vm671_vm4, %v662_v32, %v11930_v41  ;;  %1452 = vmatmul.mubr.bf16.gmra.mrb[4].mxu0 %v725_v39  ;;  %v672_v55 = vsel %vm671_vm4, %v660_v42, %v662_v32 }
  0x9c   : > { %1640 = vmatprep.mubr.bf16.mxu1 %v673_v45  ;;  %1461 = vmatprep.mubr.bf16.mxu0 %v673_v45  ;;  %v11042_v45 = vld [vmem:[%s14739_s1 + $0x398] ss:$12 sps:$4 sm:$0xff]  }
  0x9d   : > { %1477 = vmatpush1.bf16.msra.mxu0 %v10990_v34  ;;  %9962 = vmatpush3.bf16.msra.mxu1 %v10994_v37  ;;  %v11031_v37 = vld [vmem:[%s14739_s1 + $0x2a0] ss:$12 sps:$4 sm:$0xff]  }
  0x9e   : > { %v602_v48 = vpop.permute.xlu0 %601  ;;  %1478 = vmatprep.subr.bf16.mxu0 %v10997_v38  ;;  %9963 = vmatprep.subr.bf16.mxu1 %v10998_v40  ;;  %v11946_v49 = vpop.permute.xlu1 %603  ;;  %v11034_v38 = vld [vmem:[%s14739_s1 + $0x368] ss:$12 sps:$4 sm:$0xff]  }
  0x9f   : > { %v611_v52 = vsel %vm607_vm0, %v602_v48, %v11946_v49  ;;  %v610_v58 = vsel %vm607_vm0, %v11862_v2, %v602_v48  ;;  %v11013_v2 = vld [vmem:[%s14739_s1 + $0x2f0] ss:$12 sps:$4 sm:$0xff]   ;;  %v11043_v48 = vld [vmem:[%s14739_s1 + $0x2e8] ss:$12 sps:$4 sm:$0xff]  }
  0xa0   : > { %v689_v57 = vrot.slane %v611_v52, 4  ;;  %v688_v1 = vrot.slane %v610_v58, 4  ;;  %v11037_v40 = vld [vmem:[%s14739_s1 + $0x2bc] ss:$12 sps:$4 sm:$0xff]  }
  0xa1   : > { %1479 = vmatpush1.bf16.msra.mxu0 %v10995_v43  ;;  %9964 = vmatpush3.bf16.msra.mxu1 %v10999_v44  ;;  %v11038_v43 = vld [vmem:[%s14739_s1 + $0x380] ss:$12 sps:$4 sm:$0xff]   ;;  %v11050_v52 = vld [vmem:[%s14739_s1 + $0x3c8] ss:$0 sps:$4 sm:$0xff]  }
  0xa2   : > { %1480 = vmatprep.subr.bf16.mxu0 %v11002_v46  ;;  %9965 = vmatprep.subr.bf16.mxu1 %v11003_v47  ;;  %v714_v59 = vsel %vm699_vm1, %v11759_v35, %v689_v57  ;;  %v645_v60 = vpop.permute.xlu0 %644  ;;  %v11967_v61 = vpop.permute.xlu1 %646  ;;  %v11012_v35 = vld [vmem:[%s14739_s1 + $0x22c] ss:$12 sps:$4 sm:$0xff]   ;;  %v12010_v9 = vsel %vm699_vm1, %v11677_v12, %v688_v1  ;;  %v11041_v44 = vld [vmem:[%s14739_s1 + $0x2d4] ss:$12 sps:$4 sm:$0xff]   ;;  %v1407_v58 = vsel %vm699_vm1, %v11050_v52, 0 }
  0xa3   : > { %1641 = vmatmul.mubr.bf16.gmra.mrb[8].mxu1 %v672_v55  ;;  %v654_v0 = vsel %vm650_vm2, %v645_v60, %v11967_v61  ;;  %1462 = vmatmul.mubr.bf16.gmra.mrb[8].mxu0 %v672_v55  ;;  %v653_v16 = vsel %vm650_vm2, %v11878_v13, %v645_v60  ;;  %v11022_v13 = vld [vmem:[%s14739_s1 + $0x320] ss:$12 sps:$4 sm:$0xff]  }
  0xa4   : > { %1680 = vmatprep.mubr.bf16.mxu1 %v714_v59  ;;  %v696_v3 = vrot.slane %v654_v0, 4  ;;  %1502 = vmatprep.mubr.bf16.mxu0 %v714_v59  ;;  %v695_v10 = vrot.slane %v653_v16, 4  ;;  %v11045_v46 = vld [vmem:[%s14739_s1 + $0x2ec] ss:$12 sps:$4 sm:$0xff]   ;;  %v11053_v59 = vld [vmem:[%s14739_s1 + $0x31c] ss:$12 sps:$4 sm:$0xff]  }
  0xa5   : > { %1481 = vmatpush1.bf16.msra.mxu0 %v11000_v50  ;;  %9966 = vmatpush3.bf16.msra.mxu1 %v11004_v51  ;;  %v11046_v50 = vld [vmem:[%s14739_s1 + $0x3b0] ss:$12 sps:$4 sm:$0xff]   ;;  %v11047_v57 = vld [vmem:[%s14739_s1 + $0x300] ss:$12 sps:$4 sm:$0xff]   ;;  %v11063_v16 = vld [vmem:[%s14739_s1 + $0x378] ss:$12 sps:$4 sm:$0xff]  }
  0xa6   : > { %1482 = vmatprep.subr.bf16.mxu0 %v11007_v54  ;;  %9967 = vmatprep.subr.bf16.mxu1 %v11008_v56  ;;  %v624_v7 = vpop.permute.xlu0 %623  ;;  %v11992_v8 = vpop.permute.xlu1 %625  ;;  %v11049_v51 = vld [vmem:[%s14739_s1 + $0x304] ss:$12 sps:$4 sm:$0xff]   ;;  %v11056_v1 = vld [vmem:[%s14739_s1 + $0x334] ss:$12 sps:$4 sm:$0xff]  }
  0xa7   : > { %v633_v17 = vsel %vm629_vm3, %v624_v7, %v11992_v8  ;;  %v632_v12 = vsel %vm629_vm3, %v11899_v23, %v624_v7 }
  0xa8   : > { %v12020_v21 = vsel %vm699_vm1, %v633_v17, %v696_v3  ;;  %v12039_v23 = vsel %vm699_vm1, %v632_v12, %v695_v10  ;;  %v11069_v10 = vld [vmem:[%s14739_s1 + $0x3a8] ss:$12 sps:$4 sm:$0xff]  }
  0xa9   : > { %1483 = vmatpush1.bf16.msra.mxu0 %v11005_v62  ;;  %9968 = vmatpush3.bf16.msra.mxu1 %v11009_v63  ;;  %v11051_v63 = vld [vmem:[%s14739_s1 + $0x318] ss:$12 sps:$4 sm:$0xff]  }
  0xaa   : > { %1484 = vmatprep.subr.bf16.mxu0 %v11012_v35  ;;  %9969 = vmatprep.subr.bf16.mxu1 %v11013_v2  ;;  %v666_v19 = vpop.permute.xlu0 %665  ;;  %v12041_v29 = vpop.permute.xlu1 %667 }
  0xab   : > { %v12053_v32 = vsel %vm671_vm4, %v666_v19, %v12041_v29  ;;  %v12068_v39 = vsel %vm671_vm4, %v11930_v41, %v666_v19  ;;  %v11035_v41 = vld [vmem:[%s14739_s1 + $0x2b8] ss:$12 sps:$4 sm:$0xff]   ;;  %v11068_v19 = vld [vmem:[%s14739_s1 + $0x394] ss:$12 sps:$4 sm:$0xff]  }
  0xad   : > { %1485 = vmatpush1.bf16.msra.mxu0 %v11010_v4  ;;  %9970 = vmatpush3.bf16.msra.mxu1 %v11014_v5  ;;  %v11054_v4 = vld [vmem:[%s14739_s1 + $0x330] ss:$12 sps:$4 sm:$0xff]   ;;  %v11059_v5 = vld [vmem:[%s14739_s1 + $0x34c] ss:$12 sps:$4 sm:$0xff]  }
  0xae   : > { %1486 = vmatprep.subr.bf16.mxu0 %v11017_v6  ;;  %1704 = vmatprep.subr.bf16.mxu1 %v11551_v18  ;;  %v606_v24 = vpop.permute.xlu0 %605  ;;  %v649_v47 = vpop.permute.xlu1 %648 }
  0xaf   : > { %v616_v27 = vsel %vm613_vm5, %v606_v24, 0  ;;  %v658_v54 = vsel %vm656_vm7, %v649_v47, 0  ;;  %v612_v55 = vsel %vm607_vm0, %v11946_v49, %v606_v24  ;;  %v655_v0 = vsel %vm650_vm2, %v11967_v61, %v649_v47 }
  0xb0   : > { %1681 = vmatmul.mubr.bf16.vlgmr.msra.gmra.mrb[12].mxu1 %v12010_v9  ;;  %v691_v34 = vrot.slane %v616_v27, 4  ;;  %v698_v60 = vrot.slane %v658_v54, 4  ;;  %v690_v62 = vrot.slane %v612_v55, 4  ;;  %v697_v3 = vrot.slane %v655_v0, 4 }
  0xb1   : > { %1487 = vmatpush1.bf16.msra.mxu0 %v11015_v11  ;;  %1705 = vmatpush1.bf16.msra.mxu1 %v11018_v14  ;;  %v11060_v14 = vld [vmem:[%s14739_s1 + $0x360] ss:$12 sps:$4 sm:$0xff]   ;;  %vm2267_vm7 = vcmask 449536  }
  0xb2   : > { %1488 = vmatprep.subr.bf16.mxu0 %v11021_v15  ;;  %1706 = vmatprep.subr.bf16.mxu1 %v11551_v18  ;;  %v12077_v42 = vsel %vm699_vm1, %v11827_v53, %v691_v34  ;;  %v11039_v53 = vld [vmem:[%s14739_s1 + $0x2d0] ss:$12 sps:$4 sm:$0xff]   ;;  %v628_v56 = vpop.permute.xlu0 %627  ;;  %v718_v2 = vsel %vm699_vm1, %v11763_v36, %v690_v62  ;;  %v670_v6 = vpop.permute.xlu1 %669  ;;  %v11057_v36 = vld [vmem:[%s14739_s1 + $0x348] ss:$12 sps:$4 sm:$0xff]  }
  0xb3   : > { %1688 = vmatprep.mubr.bf16.mxu1 %v12020_v21  ;;  %v637_v49 = vsel %vm635_vm8, %v628_v56, 0  ;;  %v634_v61 = vsel %vm629_vm3, %v11992_v8, %v628_v56  ;;  %v11062_v8 = vld [vmem:[%s14739_s1 + $0x364] ss:$12 sps:$4 sm:$0xff]   ;;  %v684_v11 = vsel %vm14751_vm9, %v670_v6, 0  ;;  %v11065_v15 = vld [vmem:[%s14739_s1 + $0x37c] ss:$12 sps:$4 sm:$0xff]   ;;  %v676_v17 = vsel %vm671_vm4, %v12041_v29, %v670_v6 }
  0xb4   : > { %v744_v35 = vsel %vm699_vm1, %v637_v49, %v698_v60  ;;  %v741_v7 = vsel %vm699_vm1, %v634_v61, %v697_v3  ;;  %vm14762_vm8 = vcmask 441344   ;;  %vm14753_vm9 = vcmask 580608  }
  0xb5   : > { %1489 = vmatpush1.bf16.msra.mxu0 %v11019_v20  ;;  %1707 = vmatpush1.bf16.msra.mxu1 %v11022_v13  ;;  %v11071_v20 = vld [vmem:[%s14739_s1 + $0x3ac] ss:$12 sps:$4 sm:$0xff]   ;;  %v587_v13 = vld [vmem:[%s14739_s1 + $0x3c0] sm:$0xff] }
  0xb6   : > { %1490 = vmatprep.subr.bf16.mxu0 %v11025_v22  ;;  %1708 = vmatprep.subr.bf16.mxu1 %v11551_v18  ;;  %v9548_v22 = vcombine.low %v587_v13, %v587_v13 }
  0xb8   : > { %1689 = vmatmul.mubr.bf16.gmra.mrb[16].mxu1 %v12039_v23  ;;  %v1401_v12 = vsel %vm699_vm1, %v9548_v22, 0 }
  0xb9   : > { %1491 = vmatpush1.bf16.msra.mxu0 %v11023_v25  ;;  %1709 = vmatpush1.bf16.msra.mxu1 %v11026_v26 }
  0xba   : > { %1492 = vmatprep.subr.bf16.mxu0 %v11029_v28  ;;  %1710 = vmatprep.subr.bf16.mxu1 %v11551_v18 }
  0xbb   : > { %1696 = vmatprep.mubr.bf16.mxu1 %v12053_v32 }
  0xbd   : > { %1493 = vmatpush1.bf16.msra.mxu0 %v11027_v30  ;;  %1711 = vmatpush1.bf16.msra.mxu1 %v11030_v31 }
  0xbe   : > { %1494 = vmatprep.subr.bf16.mxu0 %v11033_v33  ;;  %1712 = vmatprep.subr.bf16.mxu1 %v11551_v18 }
  0xc0   : > { %1697 = vmatmul.mubr.bf16.gmra.mrb[20].mxu1 %v12068_v39 }
  0xc1   : > { %1495 = vmatpush1.bf16.msra.mxu0 %v11031_v37  ;;  %1713 = vmatpush1.bf16.msra.mxu1 %v11034_v38 }
  0xc2   : > { %1496 = vmatprep.subr.bf16.mxu0 %v11037_v40  ;;  %1714 = vmatprep.subr.bf16.mxu1 %v11551_v18 }
  0xc3   : > { %9555 = vmatprep.mubr.msk.bf16.mxu1 %vm14756_vm6, %v12077_v42 }
  0xc5   : > { %1497 = vmatpush1.bf16.msra.mxu0 %v11035_v41  ;;  %1715 = vmatpush1.bf16.msra.mxu1 %v11038_v43 }
  0xc6   : > { %1498 = vmatprep.subr.bf16.mxu0 %v11041_v44  ;;  %1716 = vmatprep.subr.bf16.mxu1 %v11551_v18 }
  0xc9   : > { %1499 = vmatpush1.bf16.msra.mxu0 %v11039_v53  ;;  %1717 = vmatpush1.bf16.msra.mxu1 %v11042_v45 }
  0xca   : > { %1500 = vmatprep.subr.bf16.mxu0 %v11045_v46  ;;  %1718 = vmatprep.subr.bf16.mxu1 %v11551_v18 }
  0xcd   : > { %1501 = vmatpush1.bf16.msra.mxu0 %v11043_v48  ;;  %1719 = vmatpush1.bf16.msra.mxu1 %v11046_v50  ;;  %v12195_v48 = vld [vmem:[%s14749_s11 + $0x8] sm:$0xff]  ;;  %v12200_v50 = vld [vmem:[%s14749_s11] sm:$0xff] }
  0xce   : > { %1531 = vmatprep.subr.bf16.mxu0 %v11049_v51  ;;  %1720 = vmatprep.subr.bf16.mxu1 %v11551_v18  ;;  %v11552_v51 = vmov 4  }
  0xcf   : > { %10752 = vset.pattern.permute.xlu1 %v11552_v51  ;;  %10751 = vset.pattern.permute.xlu0 %v11552_v51 }
  0xd0   : > { %1503 = vmatmul.mubr.bf16.vlgmr.msra.gmra.mrb[0].mxu0 %v12010_v9  ;;  %v11066_v9 = vld [vmem:[%s14739_s1 + $0x390] ss:$12 sps:$4 sm:$0xff]   ;;  %2053 = vperm.xlu1 %10752, %v12195_v48  }
  0xd1   : > { %1532 = vmatpush1.bf16.msra.mxu0 %v11047_v57  ;;  %1721 = vmatpush1.bf16.msra.mxu1 %v1407_v58 }
  0xd2   : > { %1533 = vmatprep.subr.bf16.mxu0 %v11053_v59  ;;  %1512 = vmatprep.mubr.bf16.mxu0 %v12020_v21  ;;  %v9549_v21 = vcombine.high %v587_v13, %v587_v13 }
  0xd3   : > { %2049 = vperm.xlu0 %10751, %v12200_v50  }
  0xd4   : > { %1737 = vmatmul.mubr.bf16.vlgmr.msra.gmra.mrb[24].mxu1 %v718_v2 }
  0xd5   : > { %1534 = vmatpush1.bf16.msra.mxu0 %v11051_v63  ;;  %9556 = vmatprep.mubr.msk.bf16.mxu1 %vm14756_vm6, %v744_v35 }
  0xd6   : > { %1535 = vmatprep.subr.bf16.mxu0 %v11056_v1 }
  0xd8   : > { %1513 = vmatmul.mubr.bf16.gmra.mrb[4].mxu0 %v12039_v23 }
  0xd9   : > { %1536 = vmatpush1.bf16.msra.mxu0 %v11054_v4  ;;  %1522 = vmatprep.mubr.bf16.mxu0 %v12053_v32 }
  0xda   : > { %1537 = vmatprep.subr.bf16.mxu0 %v11059_v5 }
  0xdc   : > { %1745 = vmatmul.mubr.bf16.gmra.mrb[28].mxu1 %v741_v7 }
  0xdd   : > { %1538 = vmatpush1.bf16.msra.mxu0 %v11057_v36  ;;  %9557 = vmatprep.mubr.msk.bf16.mxu1 %vm14756_vm6, %v684_v11 }
  0xde   : > { %1539 = vmatprep.subr.bf16.mxu0 %v11062_v8 }
  0xe0   : > { %1523 = vmatmul.mubr.bf16.gmra.mrb[8].mxu0 %v12068_v39 }
  0xe1   : > { %1540 = vmatpush1.bf16.msra.mxu0 %v11060_v14  ;;  %9552 = vmatprep.mubr.msk.bf16.mxu0 %vm14756_vm6, %v12077_v42 }
  0xe2   : > { %1541 = vmatprep.subr.bf16.mxu0 %v11065_v15 }
  0xe4   : > { %1753 = vmatmul.mubr.bf16.gmra.mrb[32].mxu1 %v676_v17 }
  0xe5   : > { %1542 = vmatpush1.bf16.msra.mxu0 %v11063_v16  ;;  %1851 = vmatprep.mubr.bf16.mxu1 %v11551_v18 }
  0xe6   : > { %1543 = vmatprep.subr.bf16.mxu0 %v11068_v19 }
  0xe9   : > { %1544 = vmatpush1.bf16.msra.mxu0 %v11066_v9 }
  0xea   : > { %1545 = vmatprep.subr.bf16.mxu0 %v11071_v20 }
  0xed   : > { %1546 = vmatpush1.bf16.msra.mxu0 %v11069_v10 }
  0xee   : > { %9551 = vmatprep.subr.msk.bf16.mxu0 %vm699_vm1, %v9549_v21 }
  0xf1   : > { %1548 = vmatpush1.bf16.msra.mxu0 %v1401_v12 }
  0xf2   : > { %2885 = vmatprep.subr.bf16.mxu0 %v11551_v18 }
  0xf4   : > { %1564 = vmatmul.mubr.bf16.vlgmr.msra.gmra.mrb[0].mxu0 %v718_v2 }
  0xf5   : > { %9553 = vmatprep.mubr.msk.bf16.mxu0 %vm14756_vm6, %v744_v35 }
  0xfc   : > { %1574 = vmatmul.mubr.bf16.gmra.mrb[4].mxu0 %v741_v7 }
  0xfd   : > { %9554 = vmatprep.mubr.msk.bf16.mxu0 %vm14756_vm6, %v684_v11 }
 0x104   : > { %1584 = vmatmul.mubr.bf16.gmra.mrb[8].mxu0 %v676_v17 }
 0x163   : > { %v9937_v24 = vpop.f32.mrb[0].mxu1 }
 0x164   : > { %v9938_v25 = vpop.f32.mrb[1].mxu1 }
 0x165   : > { %v9939_v26 = vadd.f32 %v9938_v25, %v9937_v24  ;;  %v9940_v27 = vpop.f32.mrb[2].mxu1 }
 0x166   : > { %v9941_v28 = vpop.f32.mrb[3].mxu1 }
 0x167   : > { %v9942_v23 = vadd.f32 %v9941_v28, %v9940_v27 }
 0x16e   : > { %v9943_v29 = vpop.f32.mrb[4].mxu1 }
 0x16f   : > { %v9944_v30 = vpop.f32.mrb[5].mxu1 }
 0x170   : > { %v9945_v31 = vadd.f32 %v9944_v30, %v9943_v29  ;;  %v9946_v32 = vpop.f32.mrb[6].mxu1 }
 0x171   : > { %v9947_v33 = vpop.f32.mrb[7].mxu1 }
 0x172   : > { %v9948_v34 = vadd.f32 %v9947_v33, %v9946_v32 }
 0x176   : > { %v9949_v37 = vpop.f32.mrb[8].mxu1 }
 0x177   : > { %v9950_v38 = vpop.f32.mrb[9].mxu1 }
 0x178   : > { %v9951_v39 = vadd.f32 %v9950_v38, %v9949_v37  ;;  %v9952_v40 = vpop.f32.mrb[10].mxu1 }
 0x179   : > { %v9953_v42 = vpop.f32.mrb[11].mxu1 }
 0x183   : > { %v9971_v41 = vpop.f32.mrb[12].mxu1 }
 0x184   : > { %v9972_v43 = vpop.f32.mrb[13].mxu1 }
 0x185   : > { %v9973_v44 = vadd.f32 %v9972_v43, %v9971_v41  ;;  %v9974_v53 = vpop.f32.mrb[14].mxu1  ;;  %v11074_v41 = vld [vmem:[%s14748_s10] sm:$0xff]  }
 0x186   : > { %v9975_v45 = vpop.f32.mrb[15].mxu1 }
 0x187   : > { %v9976_v46 = vadd.f32 %v9975_v45, %v9974_v53  ;;  %v1683_v47 = vadd.f32 %v9973_v44, %v9939_v26  ;;  %v11075_v44 = vld [vmem:[%s14748_s10 + $0x8] sm:$0xff]   ;;  %v11076_v45 = vld [vmem:[%s14748_s10 + $0x10] sm:$0xff]  }
 0x189   : > { %v1686_v52 = vadd.f32 %v9976_v46, %v9942_v23  ;;  %v11077_v46 = vld [vmem:[%s14748_s10 + $0x18] sm:$0xff]  }
 0x18b   : > { %v9977_v54 = vpop.f32.mrb[16].mxu1 }
 0x18c   : > { %v9978_v55 = vpop.f32.mrb[17].mxu1 }
 0x18d   : > { %v9979_v56 = vadd.f32 %v9978_v55, %v9977_v54  ;;  %v9980_v57 = vpop.f32.mrb[18].mxu1 }
 0x18e   : > { %v9981_v58 = vpop.f32.mrb[19].mxu1 }
 0x18f   : > { %v9982_v59 = vadd.f32 %v9981_v58, %v9980_v57  ;;  %v1691_v60 = vadd.f32 %v9979_v56, %v9945_v31 }
 0x191   : > { %v1694_v62 = vadd.f32 %v9982_v59, %v9948_v34 }
 0x193   : > { %v9983_v49 = vpop.f32.mrb[20].mxu1 }
 0x194   : > { %v9984_v63 = vpop.f32.mrb[21].mxu1 }
 0x195   : > { %v9985_v0 = vadd.f32 %v9984_v63, %v9983_v49  ;;  %v9986_v1 = vpop.f32.mrb[22].mxu1 }
 0x196   : > { %v9987_v35 = vpop.f32.mrb[23].mxu1 }
 0x197   : > { %v1699_v2 = vadd.f32 %v9985_v0, %v9951_v39 }
 0x1a7   : > { %v1738_v3 = vpop.f32.mrb[24].mxu1 }
 0x1a8   : > { %v1739_v4 = vadd.f32 %v1738_v3, %v1683_v47  ;;  %v1740_v61 = vpop.f32.mrb[25].mxu1  ;;  %v11553_v47 = vmov 3  }
 0x1a9   : > { %v1741_v5 = vpop.f32.mrb[26].mxu1  ;;  %10753 = vset.pattern.permute.xlu1 %v11553_v47  ;;  %10754 = vset.pattern.permute.xlu0 %v11553_v47 }
 0x1aa   : > { %v1742_v6 = vadd.f32 %v1741_v5, %v1686_v52  ;;  %v1743_v36 = vpop.f32.mrb[27].mxu1 }
 0x1ac   : > { %v1770_v7 = vpack.c.bf16 %v1742_v6, %v1739_v4 }
 0x1af   : > { %v1746_v8 = vpop.f32.mrb[28].mxu1 }
 0x1b0   : > { %v1747_v11 = vadd.f32 %v1746_v8, %v1691_v60  ;;  %v1748_v14 = vpop.f32.mrb[29].mxu1 }
 0x1b1   : > { %v1749_v15 = vpop.f32.mrb[30].mxu1  ;;  %v11555_v14 = vmov 1  }
 0x1b2   : > { %v1750_v16 = vadd.f32 %v1749_v15, %v1694_v62  ;;  %v1751_v17 = vpop.f32.mrb[31].mxu1  ;;  %v11078_v15 = vld [vmem:[%s14740_s2] ss:$8 sps:$4 sm:$0xff]  }
 0x1b3   : > { %v11083_v17 = vld [vmem:[%s14740_s2 + $0x14] ss:$8 sps:$4 sm:$0xff]  }
 0x1b4   : > { %v1773_v19 = vpack.c.bf16 %v1750_v16, %v1747_v11  ;;  %v11080_v16 = vld [vmem:[%s14740_s2 + $0x4] ss:$8 sps:$4 sm:$0xff]  }
 0x1b7   : > { %v1754_v9 = vpop.f32.mrb[32].mxu1 }
 0x1b8   : > { %v1755_v20 = vadd.f32 %v1754_v9, %v1699_v2  ;;  %v1756_v13 = vpop.f32.mrb[33].mxu1  ;;  %v11086_v9 = vld [vmem:[%s14740_s2 + $0x24] ss:$8 sps:$4 sm:$0xff]  }
 0x1b9   : > { %v1757_v10 = vpop.f32.mrb[34].mxu1  ;;  %v11089_v13 = vld [vmem:[%s14740_s2 + $0x34] ss:$8 sps:$4 sm:$0xff]  }
 0x1ba   : > { %v1758_v21 = vpop.f32.mrb[35].mxu1  ;;  %v1776_v43 = vpack.c.bf16 %v1755_v20, %v1755_v20  ;;  %v11084_v20 = vld [vmem:[%s14740_s2 + $0x20] ss:$8 sps:$4 sm:$0xff]   ;;  %v11087_v10 = vld [vmem:[%s14740_s2 + $0x30] ss:$8 sps:$4 sm:$0xff]  }
 0x1bb   : > { %v11092_v21 = vld [vmem:[%s14740_s2 + $0x44] ss:$8 sps:$4 sm:$0xff]  }
 0x1bc   : > { %v1817_v53 = vsel %vm699_vm1, %v1776_v43, 0 }
 0x1c7   : > { %v1565_v22 = vpop.f32.mrb[0].mxu0 }
 0x1c8   : > { %v1567_v12 = vpop.f32.mrb[1].mxu0 }
 0x1c9   : > { %v1569_v24 = vpop.f32.mrb[2].mxu0 }
 0x1ca   : > { %v1768_v25 = vpack.c.bf16 %v1569_v24, %v1565_v22  ;;  %v1571_v26 = vpop.f32.mrb[3].mxu0  ;;  %v11090_v22 = vld [vmem:[%s14740_s2 + $0x40] ss:$8 sps:$4 sm:$0xff]   ;;  %v11093_v24 = vld [vmem:[%s14740_s2 + $0x50] ss:$8 sps:$4 sm:$0xff]  }
 0x1cb   : > { %v1769_v27 = vpack.c.bf16 %v1571_v26, %v1567_v12  ;;  %v11095_v12 = vld [vmem:[%s14740_s2 + $0x54] ss:$8 sps:$4 sm:$0xff]   ;;  %v11096_v26 = vld [vmem:[%s14740_s2 + $0x60] ss:$8 sps:$4 sm:$0xff]  }
 0x1cd   : > { %1819 = vmatprep.subr.bf16.mxu1 %v1769_v27  ;;  %v2054_v27 = vpop.permute.xlu1 %2053 }
 0x1ce   : > { %1820 = vmatpush1.bf16.msra.mxu1 %v1768_v25  ;;  %v11098_v25 = vld [vmem:[%s14740_s2 + $0x64] ss:$8 sps:$4 sm:$0xff]  }
 0x1cf   : > { %v1575_v28 = vpop.f32.mrb[4].mxu0 }
 0x1d0   : > { %v1577_v23 = vpop.f32.mrb[5].mxu0 }
 0x1d1   : > { %v1579_v29 = vpop.f32.mrb[6].mxu0 }
 0x1d2   : > { %v1771_v30 = vpack.c.bf16 %v1579_v29, %v1575_v28  ;;  %v1581_v31 = vpop.f32.mrb[7].mxu0  ;;  %v2050_v28 = vpop.permute.xlu0 %2049 }
 0x1d3   : > { %v1772_v32 = vpack.c.bf16 %v1581_v31, %v1577_v23 }
 0x1d5   : > { %1821 = vmatprep.subr.bf16.mxu1 %v1772_v32 }
 0x1d6   : > { %1822 = vmatpush1.bf16.msra.mxu1 %v1771_v30 }
 0x1d7   : > { %v1585_v33 = vpop.f32.mrb[8].mxu0 }
 0x1d8   : > { %v1774_v34 = vpack.c.bf16 %v1585_v33, %v1585_v33  ;;  %v1587_v37 = vpop.f32.mrb[9].mxu0 }
 0x1d9   : > { %v1775_v38 = vpack.c.bf16 %v1587_v37, %v1587_v37  ;;  %v1589_v39 = vpop.f32.mrb[10].mxu0 }
 0x1da   : > { %v1811_v40 = vsel %vm699_vm1, %v1774_v34, 0  ;;  %v1590_v42 = vpop.f32.mrb[11].mxu0 }
 0x1db   : > { %9562 = vmatprep.subr.msk.bf16.mxu1 %vm699_vm1, %v1775_v38 }
 0x1dc   : > { %1824 = vmatpush1.bf16.msra.mxu1 %v1811_v40 }
 0x1dd   : > { %10186 = vmatprep.subr.bf16.mxu1 %v1770_v7 }
 0x1df   : > { %9563 = vmatmul.mubr.msk.bf16.vlgmr.msra.gmra.mrb[36].mxu1 %vm1797_vm10, %v11074_v41 }
 0x1e0   : > { %10187 = vmatpush3.bf16.msra.mxu1 %v1770_v7  ;;  %1861 = vmatprep.mubr.bf16.mxu1 %v11551_v18 }
 0x1e1   : > { %10188 = vmatprep.subr.bf16.mxu1 %v1773_v19 }
 0x1e4   : > { %10189 = vmatpush3.bf16.msra.mxu1 %v1773_v19  ;;  %v11081_v19 = vld [vmem:[%s14740_s2 + $0x10] ss:$8 sps:$4 sm:$0xff]  }
 0x1e5   : > { %10724 = vmatprep.subr.msk.bf16.mxu1 %vm699_vm1, %v1776_v43 }
 0x1e7   : > { %9564 = vmatmul.mubr.msk.bf16.gmra.mrb[40].mxu1 %vm1797_vm10, %v11075_v44 }
 0x1e8   : > { %10191 = vmatpush3.bf16.msra.mxu1 %v1817_v53  ;;  %1871 = vmatprep.mubr.bf16.mxu1 %v11551_v18 }
 0x1e9   : > { %2491 = vmatprep.subr.bf16.mxu1 %v11080_v16 }
 0x1ef   : > { %9565 = vmatmul.mubr.msk.bf16.gmra.mrb[44].mxu1 %vm1797_vm10, %v11076_v45 }
 0x1f0   : > { %1881 = vmatprep.mubr.bf16.mxu1 %v11551_v18 }
 0x1f7   : > { %9566 = vmatmul.mubr.msk.bf16.gmra.mrb[48].mxu1 %vm1797_vm10, %v11077_v46 }
 0x1f8   : > { %10192 = vmatprep.mubr.msk.bf16.mxu1 %vm1797_vm10, %v11074_v41 }
 0x1ff   : > { %10193 = vmatmul.mubr.msk.bf16.vlgmr.msra.gmra.mrb[52].mxu1 %vm1797_vm10, %v11075_v44 }
 0x200   : > { %10196 = vmatprep.mubr.msk.bf16.mxu1 %vm1797_vm10, %v11076_v45  ;;  %2492 = vmatpush1.bf16.msra.mxu1 %v11078_v15 }
 0x201   : > { %2493 = vmatprep.subr.bf16.mxu1 %v11083_v17 }
 0x204   : > { %2494 = vmatpush1.bf16.msra.mxu1 %v11081_v19 }
 0x205   : > { %2495 = vmatprep.subr.bf16.mxu1 %v11086_v9 }
 0x207   : > { %10197 = vmatmul.mubr.msk.bf16.gmra.mrb[56].mxu1 %vm1797_vm10, %v11077_v46  ;;  %vm14759_vm10 = vcmask 392192  }
 0x208   : > { %2496 = vmatpush1.bf16.msra.mxu1 %v11084_v20 }
 0x209   : > { %2497 = vmatprep.subr.bf16.mxu1 %v11089_v13 }
 0x20c   : > { %2498 = vmatpush1.bf16.msra.mxu1 %v11087_v10 }
 0x20d   : > { %2499 = vmatprep.subr.bf16.mxu1 %v11092_v21 }
 0x210   : > { %2500 = vmatpush1.bf16.msra.mxu1 %v11090_v22 }
 0x211   : > { %2501 = vmatprep.subr.bf16.mxu1 %v11095_v12 }
 0x214   : > { %2502 = vmatpush1.bf16.msra.mxu1 %v11093_v24 }
 0x215   : > { %2503 = vmatprep.subr.bf16.mxu1 %v11098_v25 }
 0x218   : > { %2504 = vmatpush1.bf16.msra.mxu1 %v11096_v26 }
 0x2b2   : > { %v1853_v52 = vpop.f32.mrb[36].mxu1 }
 0x2b3   : > { %v1855_v54 = vpop.f32.mrb[37].mxu1 }
 0x2b4   : > { %v1857_v55 = vpop.f32.mrb[38].mxu1 }
 0x2b5   : > { %v1859_v56 = vpop.f32.mrb[39].mxu1 }
 0x2ba   : > { %v1863_v57 = vpop.f32.mrb[40].mxu1 }
 0x2bb   : > { %1981 = vrot.lane.b32.xlu1 %v1863_v57, %s11554_s30  ;;  %v1865_v58 = vpop.f32.mrb[41].mxu1 }
 0x2bc   : > { %1983 = vrot.lane.b32.xlu0 %v1865_v58, %s11554_s30  ;;  %v1867_v59 = vpop.f32.mrb[42].mxu1 }
 0x2bd   : > { %v1869_v60 = vpop.f32.mrb[43].mxu1 }
 0x2bf   : > { %1987 = vrot.lane.b32.xlu1 %v1867_v59, %s11554_s30 }
 0x2c0   : > { %1989 = vrot.lane.b32.xlu0 %v1869_v60, %s11554_s30 }
 0x2c2   : > { %v12239_v62 = vpop.f32.mrb[44].mxu1 }
 0x2c3   : > { %v12241_v49 = vpop.f32.mrb[45].mxu1 }
 0x2c4   : > { %v12243_v63 = vpop.f32.mrb[46].mxu1 }
 0x2c5   : > { %v12245_v0 = vpop.f32.mrb[47].mxu1 }
 0x2ca   : > { %v12247_v1 = vpop.f32.mrb[48].mxu1 }
 0x2cb   : > { %v12249_v35 = vpop.f32.mrb[49].mxu1 }
 0x2cc   : > { %v12251_v2 = vpop.f32.mrb[50].mxu1 }
 0x2cd   : > { %v12253_v3 = vpop.f32.mrb[51].mxu1 }
 0x2d2   : > { %v10194_v4 = vpop.f32.mrb[52].mxu1 }
 0x2d3   : > { %1985 = vrot.lane.b32.xlu1 %v10194_v4, %s11554_s30  ;;  %v1926_v61 = vpop.f32.mrb[53].mxu1 }
 0x2d4   : > { %v10195_v5 = vpop.f32.mrb[54].mxu1 }
 0x2d5   : > { %1991 = vrot.lane.b32.xlu0 %v10195_v5, %s11554_s30  ;;  %v1929_v6 = vpop.f32.mrb[55].mxu1 }
 0x2d7   : > { %2034 = vperm.xlu1 %10753, %v12200_v50  }
 0x2d9   : > { %2039 = vperm.xlu0 %10754, %v12195_v48  }
 0x2da   : > { %v12259_v36 = vpop.f32.mrb[56].mxu1 }
 0x2db   : > { %1969 = vrot.lane.b32.xlu1 %v1853_v52, %s11554_s30  ;;  %v12262_v7 = vpop.f32.mrb[57].mxu1 }
 0x2dc   : > { %v12264_v8 = vpop.f32.mrb[58].mxu1  ;;  %10755 = vset.pattern.permute.xlu1 %v11551_v18 }
 0x2dd   : > { %1975 = vrot.lane.b32.xlu0 %v1857_v55, %s11554_s30  ;;  %v12268_v11 = vpop.f32.mrb[59].mxu1 }
 0x2de   : > { %10756 = vset.pattern.permute.xlu0 %v11551_v18 }
 0x2df   : > { %1971 = vrot.lane.b32.xlu1 %v1855_v54, %s11554_s30 }
 0x2e1   : > { %1973 = vrot.lane.b32.xlu0 %v1926_v61, %s11554_s30 }
 0x2e3   : > { %1977 = vrot.lane.b32.xlu1 %v1859_v56, %s11554_s30 }
 0x2e7   : > { %1979 = vrot.lane.b32.xlu1 %v1929_v6, %s11554_s30  ;;  %s11560_s30 = smov 2  }
 0x2eb   : > { %2159 = vperm.xlu1 %10755, %v12200_v50  }
 0x2ef   : > { %10757 = vset.pattern.permute.xlu1 %v11555_v14 }
 0x32d   : > { %v1982_v23 = vpop.permute.xlu1 %1981 }
 0x32e   : > { %v1984_v29 = vpop.permute.xlu0 %1983  ;;  %v2016_v31 = vsel %vm1993_vm11, 0.0, %v1982_v23 }
 0x32f   : > { %v2024_v33 = vadd.f32 %v2016_v31, %v12247_v1  ;;  %v1998_v34 = vsel %vm1993_vm11, %v1982_v23, %v1984_v29 }
 0x330   : > { %v2025_v40 = vadd.f32 %v1998_v34, %v12249_v35 }
 0x331   : > { %v1988_v30 = vpop.permute.xlu1 %1987  ;;  %v2056_v39 = vadd.f32 %v2050_v28, %v2024_v33 }
 0x332   : > { %v2017_v32 = vsel %vm1993_vm11, 0.0, %v1988_v30  ;;  %v1990_v38 = vpop.permute.xlu0 %1989  ;;  %v2057_v44 = vadd.f32 %v2050_v28, %v2025_v40 }
 0x333   : > { %v2027_v37 = vadd.f32 %v2017_v32, %v12251_v2  ;;  %v2000_v42 = vsel %vm1993_vm11, %v1988_v30, %v1990_v38  ;;  %v9571_v43 = vmul.f32 -1.442695, %v2056_v39 }
 0x334   : > { %v2028_v53 = vadd.f32 %v2000_v42, %v12253_v3  ;;  %v9572_v46 = vmul.f32 -1.442695, %v2057_v44 }
 0x335   : > { %v2059_v41 = vadd.f32 %v2054_v27, %v2027_v37  ;;  %11257 = vpow2.f32 %v9571_v43 }
 0x336   : > { %v2060_v52 = vadd.f32 %v2054_v27, %v2028_v53 }
 0x337   : > { %v9574_v45 = vmul.f32 -1.442695, %v2059_v41 }
 0x338   : > { %v9575_v58 = vmul.f32 -1.442695, %v2060_v52 }
 0x339   : > { %11259 = vpow2.f32 %v9574_v45 }
 0x33a   : > { %11261 = vpow2.f32 %v9572_v46 }
 0x33b   : > { %11263 = vpow2.f32 %v9575_v58 }
 0x33f   : > { %v11258_v4 = vpop.eup %11257 }
 0x340   : > { %v2080_v5 = vadd.f32 1.0, %v11258_v4 }
 0x343   : > { %v11260_v61 = vpop.eup %11259 }
 0x344   : > { %v11262_v6 = vpop.eup %11261  ;;  %v2083_v15 = vadd.f32 1.0, %v11260_v61 }
 0x345   : > { %v1986_v54 = vpop.permute.xlu1 %1985  ;;  %v11264_v16 = vpop.eup %11263 }
 0x346   : > { %v1999_v55 = vsel %vm1993_vm11, %v1984_v29, %v1986_v54  ;;  %v2084_v13 = vadd.f32 1.0, %v11264_v16 }
 0x347   : > { %v2026_v56 = vadd.f32 %v12259_v36, %v1999_v55  ;;  %v1992_v57 = vpop.permute.xlu0 %1991  ;;  %v2081_v36 = vadd.f32 1.0, %v11262_v6 }
 0x348   : > { %v2001_v59 = vsel %vm1993_vm11, %v1990_v38, %v1992_v57 }
 0x349   : > { %v2058_v60 = vadd.f32 %v2050_v28, %v2026_v56  ;;  %v2029_v1 = vadd.f32 %v12264_v8, %v2001_v59 }
 0x34b   : > { %v9573_v35 = vmul.f32 -1.442695, %v2058_v60  ;;  %v2061_v2 = vadd.f32 %v2054_v27, %v2029_v1 }
 0x34d   : > { %11265 = vpow2.f32 %v9573_v35  ;;  %v9576_v3 = vmul.f32 -1.442695, %v2061_v2 }
 0x34f   : > { %11267 = vpow2.f32 %v9576_v3 }
 0x350   : > { %11269 = vrcp.f32 %v2080_v5 }
 0x351   : > { %11271 = vrcp.f32 %v2083_v15 }
 0x352   : > { %11273 = vrcp.f32 %v2081_v36 }
 0x356   : > { %v2035_v17 = vpop.permute.xlu1 %2034 }
 0x357   : > { %v11266_v19 = vpop.eup %11265 }
 0x358   : > { %v2082_v9 = vadd.f32 1.0, %v11266_v19  ;;  %v2040_v20 = vpop.permute.xlu0 %2039 }
 0x359   : > { %v11268_v8 = vpop.eup %11267 }
 0x35a   : > { %11275 = vrcp.f32 %v2082_v9  ;;  %v1970_v10 = vpop.permute.xlu1 %1969  ;;  %v2085_v24 = vadd.f32 1.0, %v11268_v8  ;;  %v11270_v23 = vpop.eup %11269  ;;  %v11101_v8 = vld [vmem:[%s14740_s2 + $0x74] ss:$8 sps:$4 sm:$0xff]  }
 0x35b   : > { %v2014_v21 = vsel %vm1993_vm11, 0.0, %v1970_v10  ;;  %11277 = vrcp.f32 %v2084_v13  ;;  %v11272_v34 = vpop.eup %11271  ;;  %2505 = vmatprep.subr.bf16.mxu1 %v11101_v8  ;;  %v11104_v13 = vld [vmem:[%s14740_s2 + $0x84] ss:$8 sps:$4 sm:$0xff]  }
 0x35c   : > { %v2018_v22 = vadd.f32 %v2014_v21, %v12239_v62  ;;  %v1976_v12 = vpop.permute.xlu0 %1975  ;;  %11279 = vrcp.f32 %v2085_v24  ;;  %v11107_v21 = vld [vmem:[%s14740_s2 + $0x94] ss:$8 sps:$4 sm:$0xff]   ;;  %v11108_v24 = vld [vmem:[%s14740_s2 + $0xa0] ss:$8 sps:$4 sm:$0xff]  }
 0x35d   : > { %v2015_v25 = vsel %vm1993_vm11, 0.0, %v1976_v12 }
 0x35e   : > { %v2042_v26 = vadd.f32 %v2035_v17, %v2018_v22  ;;  %v2021_v27 = vadd.f32 %v2015_v25, %v12243_v63  ;;  %v1972_v28 = vpop.permute.xlu1 %1971  ;;  %v11274_v63 = vpop.eup %11273  ;;  %v11105_v22 = vld [vmem:[%s14740_s2 + $0x90] ss:$8 sps:$4 sm:$0xff]   ;;  %v11556_v25 = vmov 2  }
 0x35f   : > { %v1994_v29 = vsel %vm1993_vm11, %v1970_v10, %v1972_v28  ;;  %v11102_v10 = vld [vmem:[%s14740_s2 + $0x80] ss:$8 sps:$4 sm:$0xff]  }
 0x360   : > { %v2045_v30 = vadd.f32 %v2040_v20, %v2021_v27  ;;  %v2019_v31 = vadd.f32 %v1994_v29, %v12241_v49  ;;  %v1974_v32 = vpop.permute.xlu0 %1973  ;;  %v12337_v33 = vmul.f32 %v11270_v23, %v2042_v26  ;;  %v11113_v26 = vld [vmem:[%s14740_s2 + $0xb4] ss:$8 sps:$4 sm:$0xff]   ;;  %v11111_v27 = vld [vmem:[%s14740_s2 + $0xb0] ss:$8 sps:$4 sm:$0xff]   ;;  %v11122_v29 = vld [vmem:[%s14740_s2 + $0xe4] ss:$8 sps:$4 sm:$0xff]  }
 0x361   : > { %v1995_v62 = vsel %vm1993_vm11, %v1972_v28, %v1974_v32  ;;  %v11116_v28 = vld [vmem:[%s14740_s2 + $0xc4] ss:$8 sps:$4 sm:$0xff]   ;;  %v11119_v23 = vld [vmem:[%s14740_s2 + $0xd4] ss:$8 sps:$4 sm:$0xff]   ;;  %v11123_v32 = vld [vmem:[%s14740_s2 + $0xf0] ss:$8 sps:$4 sm:$0xff]  }
 0x362   : > { %v2043_v37 = vadd.f32 %v2035_v17, %v2019_v31  ;;  %v2020_v38 = vadd.f32 %v1995_v62, %v12262_v7  ;;  %v1978_v39 = vpop.permute.xlu1 %1977  ;;  %v12341_v40 = vmul.f32 %v11272_v34, %v2045_v30  ;;  %v2118_v55 = vmul.f32 %v12337_v33, %v12337_v33  ;;  %v11120_v30 = vld [vmem:[%s14740_s2 + $0xe0] ss:$8 sps:$4 sm:$0xff]   ;;  %v11125_v31 = vld [vmem:[%s14740_s2 + $0xf4] ss:$8 sps:$4 sm:$0xff]  }
 0x363   : > { %v1996_v42 = vsel %vm1993_vm11, %v1976_v12, %v1978_v39  ;;  %v11110_v12 = vld [vmem:[%s14740_s2 + $0xa4] ss:$8 sps:$4 sm:$0xff]  }
 0x364   : > { %v11276_v41 = vpop.eup %11275  ;;  %v2044_v43 = vadd.f32 %v2035_v17, %v2020_v38  ;;  %v2022_v49 = vadd.f32 %v1996_v42, %v12245_v0  ;;  %v12345_v44 = vmul.f32 %v11274_v63, %v2043_v37  ;;  %v2121_v6 = vmul.f32 %v12341_v40, %v12341_v40 }
 0x365   : > { %v11278_v56 = vpop.eup %11277 }
 0x366   : > { %v12347_v53 = vmul.f32 %v11276_v41, %v2044_v43  ;;  %v2046_v45 = vadd.f32 %v2040_v20, %v2022_v49  ;;  %v1980_v46 = vpop.permute.xlu1 %1979  ;;  %v2104_v7 = vadd.f32 %v12345_v44, %v12337_v33  ;;  %v2119_v52 = vmul.f32 %v12345_v44, %v12345_v44  ;;  %v11280_v3 = vpop.eup %11279 }
 0x367   : > { %v1997_v54 = vsel %vm1993_vm11, %v1978_v39, %v1980_v46  ;;  %vm2689_vm11 = vcmask 195584  }
 0x368   : > { %v2023_v0 = vadd.f32 %v1997_v54, %v12268_v11  ;;  %v2106_v57 = vsel %vm2105_vm12, %v12347_v53, 0.0  ;;  %v2120_v58 = vmul.f32 %v12347_v53, %v12347_v53  ;;  %v2124_v60 = vadd.f32 %v2119_v52, %v2118_v55 }
 0x369   : > { %v2107_v59 = vadd.f32 %v2106_v57, %v2104_v7  ;;  %v12361_v1 = vmul.f32 %v11278_v56, %v2046_v45 }
 0x36a   : > { %v2047_v35 = vadd.f32 %v2040_v20, %v2023_v0  ;;  %v2125_v2 = vsel %vm2105_vm12, %v2120_v58, 0.0  ;;  %v11099_v20 = vld [vmem:[%s14740_s2 + $0x70] ss:$8 sps:$4 sm:$0xff]   ;;  %v2160_v37 = vpop.permute.xlu1 %2159 }
 0x36b   : > { %2108 = vadd.xlane.f32.xlu0 %v2107_v59  ;;  %v2122_v4 = vmul.f32 %v12361_v1, %v12361_v1  ;;  %v2126_v11 = vadd.f32 %v2125_v2, %v2124_v60  ;;  %v2110_v5 = vadd.f32 %v12361_v1, %v12341_v40  ;;  %2506 = vmatpush1.bf16.msra.mxu1 %v11099_v20 }
 0x36c   : > { %v12366_v61 = vmul.f32 %v11280_v3, %v2047_v35  ;;  %2507 = vmatprep.subr.bf16.mxu1 %v11104_v13 }
 0x36d   : > { %v2129_v17 = vadd.f32 %v2122_v4, %v2121_v6 }
 0x36e   : > { %v2111_v15 = vsel %vm2105_vm12, %v12366_v61, 0.0  ;;  %v2123_v36 = vmul.f32 %v12366_v61, %v12366_v61 }
 0x36f   : > { %2127 = vadd.xlane.f32.xlu0 %v2126_v11  ;;  %v2112_v16 = vadd.f32 %v2111_v15, %v2110_v5  ;;  %2508 = vmatpush1.bf16.msra.mxu1 %v11102_v10 }
 0x370   : > { %v2130_v19 = vsel %vm2105_vm12, %v2123_v36, 0.0  ;;  %2509 = vmatprep.subr.bf16.mxu1 %v11107_v21 }
 0x371   : > { %2113 = vadd.xlane.f32.xlu1 %v2112_v16  ;;  %v2131_v9 = vadd.f32 %v2130_v19, %v2129_v17 }
 0x373   : > { %2132 = vadd.xlane.f32.xlu0 %v2131_v9  ;;  %2510 = vmatpush1.bf16.msra.mxu1 %v11105_v22 }
 0x374   : > { %2511 = vmatprep.subr.bf16.mxu1 %v11110_v12 }
 0x377   : > { %2512 = vmatpush1.bf16.msra.mxu1 %v11108_v24 }
 0x378   : > { %2513 = vmatprep.subr.bf16.mxu1 %v11113_v26 }
 0x37b   : > { %2514 = vmatpush1.bf16.msra.mxu1 %v11111_v27 }
 0x37c   : > { %2515 = vmatprep.subr.bf16.mxu1 %v11116_v28 }
 0x382   : > { %2173 = vperm.xlu1 %10757, %v12200_v50  }
 0x386   : > { %2177 = vperm.xlu1 %10757, %v12195_v48  }
 0x389   : > { %2163 = vperm.xlu0 %10756, %v12195_v48  }
 0x38a   : > { %10758 = vset.pattern.permute.xlu1 %v11556_v25 }
 0x38b   : > { %2193 = vperm.xlu1 %10758, %v12200_v50   ;;  %v11114_v50 = vld [vmem:[%s14740_s2 + $0xc0] ss:$8 sps:$4 sm:$0xff]  }
 0x38c   : > { %2516 = vmatpush1.bf16.msra.mxu1 %v11114_v50 }
 0x38d   : > { %10759 = vset.pattern.permute.xlu0 %v11553_v47  ;;  %2517 = vmatprep.subr.bf16.mxu1 %v11119_v23 }
 0x38f   : > { %2197 = vperm.xlu1 %10758, %v12195_v48   ;;  %v11117_v48 = vld [vmem:[%s14740_s2 + $0xd0] ss:$8 sps:$4 sm:$0xff]  }
 0x390   : > { %2518 = vmatpush1.bf16.msra.mxu1 %v11117_v48  ;;  %v11128_v48 = vld [vmem:[%s14740_s2 + $0x104] ss:$8 sps:$4 sm:$0xff]  }
 0x391   : > { %2519 = vmatprep.subr.bf16.mxu1 %v11122_v29 }
 0x393   : > { %10760 = vset.pattern.permute.xlu1 %v11553_v47 }
 0x394   : > { %2520 = vmatpush1.bf16.msra.mxu1 %v11120_v30 }
 0x395   : > { %2521 = vmatprep.subr.bf16.mxu1 %v11125_v31 }
 0x398   : > { %2522 = vmatpush1.bf16.msra.mxu1 %v11123_v32 }
 0x399   : > { %2554 = vmatprep.subr.bf16.mxu1 %v11128_v48 }
 0x3f8   : > { %v2109_v34 = vpop.xlane.xlu0 %2108 }
 0x3f9   : > { %v2116_v62 = vmul.f32 0.0032051282, %v2109_v34 }
 0x3fb   : > { %v2136_v39 = vmul.f32 %v2116_v62, %v2116_v62  ;;  %v2142_v57 = vsub.f32 %v12337_v33, %v2116_v62  ;;  %v2143_v58 = vsub.f32 %v12345_v44, %v2116_v62  ;;  %v2144_v59 = vsub.f32 %v12347_v53, %v2116_v62 }
 0x3fc   : > { %v2128_v38 = vpop.xlane.xlu0 %2127 }
 0x3fd   : > { %v2134_v63 = vmul.f32 0.0032051282, %v2128_v38 }
 0x3fe   : > { %v2114_v42 = vpop.xlane.xlu1 %2113 }
 0x3ff   : > { %v2138_v41 = vsub.f32 %v2134_v63, %v2136_v39  ;;  %v2117_v43 = vmul.f32 0.0032051282, %v2114_v42  ;;  %v11126_v63 = vld [vmem:[%s14740_s2 + $0x100] ss:$8 sps:$4 sm:$0xff]   ;;  %v11131_v42 = vld [vmem:[%s14740_s2 + $0x114] ss:$8 sps:$4 sm:$0xff]  }
 0x400   : > { %v2133_v49 = vpop.xlane.xlu0 %2132 }
 0x401   : > { %v2140_v45 = vmax.f32 %v2138_v41, 0.0  ;;  %v2135_v46 = vmul.f32 0.0032051282, %v2133_v49  ;;  %v2137_v7 = vmul.f32 %v2117_v43, %v2117_v43  ;;  %v2145_v15 = vsub.f32 %v12341_v40, %v2117_v43  ;;  %v11129_v41 = vld [vmem:[%s14740_s2 + $0x110] ss:$8 sps:$4 sm:$0xff]  }
 0x402   : > { %v2174_v0 = vpop.permute.xlu1 %2173  ;;  %v2146_v16 = vsub.f32 %v12361_v1, %v2117_v43  ;;  %v2147_v17 = vsub.f32 %v12366_v61, %v2117_v43  ;;  %v11134_v43 = vld [vmem:[%s14740_s2 + $0x124] ss:$8 sps:$4 sm:$0xff]   ;;  %v2253_v49 = vld [vmem:[%s14740_s2 + $0x130] sm:$0xff] }
 0x403   : > { %v2148_v52 = vadd.f32 1e-05, %v2140_v45  ;;  %v2139_v54 = vsub.f32 %v2135_v46, %v2137_v7  ;;  %v11132_v45 = vld [vmem:[%s14740_s2 + $0x120] ss:$8 sps:$4 sm:$0xff]   ;;  %v12488_v46 = vcombine.high %v2253_v49, %v2253_v49  ;;  %v9615_v7 = vcombine.low %v2253_v49, %v2253_v49 }
 0x405   : > { %11281 = vrsqrt.f32 %v2148_v52  ;;  %v2141_v55 = vmax.f32 %v2139_v54, 0.0  ;;  %v12494_v52 = vsel %vm699_vm1, %v9615_v7, 0 }
 0x406   : > { %v2178_v60 = vpop.permute.xlu1 %2177 }
 0x407   : > { %v2149_v56 = vadd.f32 1e-05, %v2141_v55 }
 0x408   : > { %v2164_v53 = vpop.permute.xlu0 %2163 }
 0x409   : > { %11283 = vrsqrt.f32 %v2149_v56 }
 0x40a   : > { %v2194_v9 = vpop.permute.xlu1 %2193 }
 0x40e   : > { %v2198_v61 = vpop.permute.xlu1 %2197 }
 0x40f   : > { %v11282_v35 = vpop.eup %11281 }
 0x410   : > { %v2152_v2 = vmul.f32 %v11282_v35, %v2142_v57  ;;  %v2153_v3 = vmul.f32 %v11282_v35, %v2143_v58  ;;  %v2154_v4 = vmul.f32 %v11282_v35, %v2144_v59 }
 0x412   : > { %v2166_v11 = vmul.f32 %v2160_v37, %v2152_v2  ;;  %v2167_v5 = vmul.f32 %v2160_v37, %v2153_v3  ;;  %v2168_v6 = vmul.f32 %v2160_v37, %v2154_v4 }
 0x413   : > { %v11284_v36 = vpop.eup %11283 }
 0x414   : > { %v2180_v33 = vadd.f32 %v2174_v0, %v2166_v11  ;;  %v2181_v19 = vadd.f32 %v2174_v0, %v2167_v5  ;;  %v2182_v44 = vadd.f32 %v2174_v0, %v2168_v6  ;;  %v2155_v20 = vmul.f32 %v11284_v36, %v2145_v15  ;;  %v2625_v11 = vld [vmem:[%s14749_s11 + $0x10] sm:$0xff]  ;;  %v12517_v5 = vld [vmem:[%s14749_s11 + $0x18] sm:$0xff] }
 0x415   : > { %v2156_v8 = vmul.f32 %v11284_v36, %v2146_v16  ;;  %v2157_v13 = vmul.f32 %v11284_v36, %v2147_v17 }
 0x416   : > { %v2169_v10 = vmul.f32 %v2164_v53, %v2155_v20  ;;  %vm2186_vm13 = vcmp.ge.f32.partialorder %v2180_v33, 0.0  ;;  %v2200_v12 = vmul.f32 %v2194_v9, %v2180_v33  ;;  %v2201_v24 = vmul.f32 %v2194_v9, %v2181_v19 }
 0x417   : > { %v2170_v21 = vmul.f32 %v2164_v53, %v2156_v8  ;;  %v2171_v22 = vmul.f32 %v2164_v53, %v2157_v13  ;;  %v2202_v40 = vmul.f32 %v2194_v9, %v2182_v44  ;;  %vm2188_vm14 = vcmp.ge.f32.partialorder %v2182_v44, 0.0 }
 0x418   : > { %v2183_v26 = vadd.f32 %v2178_v60, %v2169_v10  ;;  %vm2187_vm15 = vcmp.ge.f32.partialorder %v2181_v19, 0.0  ;;  %v12448_v29 = vsel %vm2186_vm13, %v2180_v33, %v2200_v12 }
 0x419   : > { %v2184_v27 = vadd.f32 %v2178_v60, %v2170_v21  ;;  %v2185_v1 = vadd.f32 %v2178_v60, %v2171_v22  ;;  %v12450_v30 = vsel %vm2188_vm14, %v2182_v44, %v2202_v40  ;;  %v12456_v34 = vsel %vm2187_vm15, %v2181_v19, %v2201_v24  ;;  %v11137_v40 = vld [vmem:[%s14748_s10 + $0x20] sm:$0xff]  }
 0x41a   : > { %vm2189_vm2 = vcmp.ge.f32.partialorder %v2183_v26, 0.0  ;;  %v2203_v28 = vmul.f32 %v2198_v61, %v2183_v26 }
 0x41b   : > { %v2204_v50 = vmul.f32 %v2198_v61, %v2184_v27  ;;  %v2205_v23 = vmul.f32 %v2198_v61, %v2185_v1  ;;  %vm2191_vm4 = vcmp.ge.f32.partialorder %v2185_v1, 0.0  ;;  %vm2190_vm5 = vcmp.ge.f32.partialorder %v2184_v27, 0.0 }
 0x41c   : > { %v12452_v31 = vsel %vm2189_vm2, %v2183_v26, %v2203_v28 }
 0x41d   : > { %v12454_v32 = vsel %vm2191_vm4, %v2185_v1, %v2205_v23  ;;  %v12458_v62 = vsel %vm2190_vm5, %v2184_v27, %v2204_v50  ;;  %v2212_v37 = vpack.c.bf16 %v12452_v31, %v12448_v29  ;;  %vm14758_vm4 = vcmask 187392  }
 0x41e   : > { %v2214_v38 = vpack.c.bf16 %v12454_v32, %v12450_v30  ;;  %v2213_v39 = vpack.c.bf16 %v12458_v62, %v12456_v34  ;;  %vm14754_vm5 = vcmask 179200  }
 0x420   : > { %2274 = vrot.lane.b32.xlu0 %v2214_v38, %s11549_s16  ;;  %2259 = vrot.lane.b32.xlu1 %v2213_v39, %s11547_s25 }
 0x421   : > { %2523 = vmatprep.mubr.bf16.mxu1 %v2213_v39 }
 0x422   : > { %2524 = vmatmul.mubr.bf16.vlgmr.msra.gmra.mrb[60].mxu1 %v2212_v37 }
 0x423   : > { %2555 = vmatpush1.bf16.msra.mxu1 %v11126_v63 }
 0x424   : > { %2261 = vrot.lane.b32.xlu1 %v2214_v38, %s11547_s25  ;;  %2556 = vmatprep.subr.bf16.mxu1 %v11131_v42 }
 0x425   : > { %2629 = vperm.xlu0 %10759, %v2625_v11  }
 0x427   : > { %2557 = vmatpush1.bf16.msra.mxu1 %v11129_v41 }
 0x428   : > { %2257 = vrot.lane.b32.xlu1 %v2212_v37, %s11547_s25  ;;  %2558 = vmatprep.subr.bf16.mxu1 %v11134_v43 }
 0x429   : > { %10761 = vset.pattern.permute.xlu0 %v11551_v18 }
 0x42b   : > { %2559 = vmatpush1.bf16.msra.mxu1 %v11132_v45 }
 0x42c   : > { %2272 = vrot.lane.b32.xlu1 %v2213_v39, %s11549_s16  ;;  %9617 = vmatprep.subr.msk.bf16.mxu1 %vm699_vm1, %v12488_v46 }
 0x42f   : > { %2561 = vmatpush1.bf16.msra.mxu1 %v12494_v52 }
 0x430   : > { %2270 = vrot.lane.b32.xlu1 %v2212_v37, %s11549_s16 }
 0x434   : > { %2634 = vperm.xlu1 %10760, %v12517_v5  }
 0x438   : > { %10762 = vset.pattern.permute.xlu1 %v11551_v18 }
 0x492   : > { %v2260_v54 = vpop.permute.xlu1 %2259  ;;  %v2275_v58 = vpop.permute.xlu0 %2274 }
 0x493   : > { %v2282_v4 = vsel %vm14762_vm8, %v2275_v58, 0 }
 0x496   : > { %v2262_v55 = vpop.permute.xlu1 %2261 }
 0x497   : > { %v2264_v56 = vsel %vm607_vm0, %v2260_v54, %v2262_v55  ;;  %v2269_v3 = vsel %vm2267_vm7, %v2262_v55, 0  ;;  %v11139_v55 = vld [vmem:[%s14741_s3 + $0x8] sm:$0xff]  }
 0x498   : > { %2533 = vmatprep.mubr.bf16.mxu1 %v2264_v56 }
 0x49a   : > { %v2258_v0 = vpop.permute.xlu1 %2257 }
 0x49b   : > { %v2263_v57 = vsel %vm607_vm0, %v2258_v0, %v2260_v54  ;;  %v11138_v54 = vld [vmem:[%s14741_s3] sm:$0xff]  }
 0x49c   : > { %2534 = vmatmul.mubr.bf16.gmra.mrb[64].mxu1 %v2263_v57  ;;  %2886 = vmatpush1.bf16.msra.mxu0 %v11138_v54 }
 0x49d   : > { %2887 = vmatprep.subr.bf16.mxu0 %v11551_v18 }
 0x49e   : > { %v2273_v59 = vpop.permute.xlu1 %2272 }
 0x49f   : > { %v2277_v60 = vsel %vm629_vm3, %v2273_v59, %v2275_v58 }
 0x4a0   : > { %2543 = vmatprep.mubr.bf16.mxu1 %v2277_v60  ;;  %2888 = vmatpush1.bf16.msra.mxu0 %v11139_v55  ;;  %v11141_v60 = vld [vmem:[%s14741_s3 + $0x18] sm:$0xff]  }
 0x4a1   : > { %2889 = vmatprep.subr.bf16.mxu0 %v11551_v18 }
 0x4a2   : > { %v2271_v35 = vpop.permute.xlu1 %2270 }
 0x4a3   : > { %v2276_v2 = vsel %vm629_vm3, %v2271_v35, %v2273_v59  ;;  %v11140_v59 = vld [vmem:[%s14741_s3 + $0x10] sm:$0xff]   ;;  %v11142_v35 = vld [vmem:[%s14741_s3 + $0x20] sm:$0xff]  }
 0x4a4   : > { %2544 = vmatmul.mubr.bf16.gmra.mrb[68].mxu1 %v2276_v2  ;;  %v2630_v26 = vpop.permute.xlu0 %2629  ;;  %2890 = vmatpush1.bf16.msra.mxu0 %v11140_v59  ;;  %v11143_v2 = vld [vmem:[%s14741_s3 + $0x28] sm:$0xff]  }
 0x4a5   : > { %2586 = vmatprep.mubr.bf16.mxu1 %v11551_v18  ;;  %2891 = vmatprep.subr.bf16.mxu0 %v11551_v18 }
 0x4a8   : > { %2892 = vmatpush1.bf16.msra.mxu0 %v11141_v60 }
 0x4a9   : > { %2893 = vmatprep.subr.bf16.mxu0 %v11551_v18 }
 0x4ac   : > { %9618 = vmatmul.mubr.msk.bf16.vlgmr.msra.gmra.mrb[60].mxu1 %vm2105_vm12, %v2214_v38  ;;  %2894 = vmatpush1.bf16.msra.mxu0 %v11142_v35 }
 0x4ad   : > { %2596 = vmatprep.mubr.bf16.mxu1 %v11551_v18  ;;  %2895 = vmatprep.subr.bf16.mxu0 %v11551_v18 }
 0x4b0   : > { %2896 = vmatpush1.bf16.msra.mxu0 %v11143_v2 }
 0x4b1   : > { %2897 = vmatprep.subr.bf16.mxu0 %v11551_v18 }
 0x4b3   : > { %v2635_v61 = vpop.permute.xlu1 %2634 }
 0x4b4   : > { %9619 = vmatmul.mubr.msk.bf16.gmra.mrb[64].mxu1 %vm2105_vm12, %v2269_v3  ;;  %v11144_v3 = vld [vmem:[%s14741_s3 + $0x30] sm:$0xff]  }
 0x4b5   : > { %2606 = vmatprep.mubr.bf16.mxu1 %v11551_v18  ;;  %2898 = vmatpush1.bf16.msra.mxu0 %v11144_v3 }
 0x4b6   : > { %2899 = vmatprep.subr.bf16.mxu0 %v11551_v18 }
 0x4bc   : > { %9620 = vmatmul.mubr.msk.bf16.gmra.mrb[68].mxu1 %vm2105_vm12, %v2282_v4  ;;  %v11145_v4 = vld [vmem:[%s14741_s3 + $0x38] sm:$0xff]  }
 0x4bd   : > { %2678 = vmatprep.mubr.bf16.mxu1 %v11551_v18  ;;  %2900 = vmatpush1.bf16.msra.mxu0 %v11145_v4 }
 0x4be   : > { %2901 = vmatprep.subr.bf16.mxu0 %v11551_v18 }
 0x57f   : > { %v2588_v6 = vpop.f32.mrb[60].mxu1 }
 0x580   : > { %v2590_v15 = vpop.f32.mrb[61].mxu1 }
 0x581   : > { %v2592_v36 = vpop.f32.mrb[62].mxu1 }
 0x582   : > { %v2619_v16 = vpack.c.bf16 %v2592_v36, %v2588_v6  ;;  %v2594_v17 = vpop.f32.mrb[63].mxu1 }
 0x583   : > { %v2620_v33 = vpack.c.bf16 %v2594_v17, %v2590_v15 }
 0x585   : > { %2646 = vmatprep.subr.bf16.mxu1 %v2620_v33 }
 0x586   : > { %2647 = vmatpush1.bf16.msra.mxu1 %v2619_v16 }
 0x587   : > { %v2598_v19 = vpop.f32.mrb[64].mxu1 }
 0x588   : > { %v2600_v44 = vpop.f32.mrb[65].mxu1 }
 0x589   : > { %v2602_v9 = vpop.f32.mrb[66].mxu1 }
 0x58a   : > { %v2621_v53 = vpack.c.bf16 %v2602_v9, %v2598_v19  ;;  %v2604_v20 = vpop.f32.mrb[67].mxu1 }
 0x58b   : > { %v2622_v8 = vpack.c.bf16 %v2604_v20, %v2600_v44 }
 0x58d   : > { %2648 = vmatprep.subr.bf16.mxu1 %v2622_v8 }
 0x58e   : > { %2649 = vmatpush1.bf16.msra.mxu1 %v2621_v53 }
 0x58f   : > { %v2608_v13 = vpop.f32.mrb[68].mxu1 }
 0x590   : > { %v2610_v10 = vpop.f32.mrb[69].mxu1 }
 0x591   : > { %v2612_v21 = vpop.f32.mrb[70].mxu1 }
 0x592   : > { %v2623_v22 = vpack.c.bf16 %v2612_v21, %v2608_v13  ;;  %v2614_v12 = vpop.f32.mrb[71].mxu1 }
 0x593   : > { %v2624_v24 = vpack.c.bf16 %v2614_v12, %v2610_v10 }
 0x595   : > { %2650 = vmatprep.subr.bf16.mxu1 %v2624_v24 }
 0x596   : > { %2651 = vmatpush1.bf16.msra.mxu1 %v2623_v22 }
 0x599   : > { %9622 = vmatmul.mubr.msk.bf16.vlgmr.msra.gmra.mrb[72].mxu1 %vm14759_vm10, %v11137_v40 }
 0x66c   : > { %v2680_v27 = vpop.f32.mrb[72].mxu1 }
 0x66d   : > { %v2682_v1 = vpop.f32.mrb[73].mxu1  ;;  %v12528_v23 = vadd.f32 %v2680_v27, %v2630_v26 }
 0x66e   : > { %v12526_v28 = vadd.f32 %v2682_v1, %v2630_v26  ;;  %v2684_v50 = vpop.f32.mrb[74].mxu1 }
 0x66f   : > { %v2686_v48 = vpop.f32.mrb[75].mxu1  ;;  %v12536_v63 = vadd.f32 %v2684_v50, %v2635_v61  ;;  %v2701_v45 = vmul.f32 %v12528_v23, %v12528_v23 }
 0x670   : > { %v12530_v37 = vadd.f32 %v2686_v48, %v2635_v61  ;;  %v2690_v38 = vsel %vm2689_vm11, %v12526_v28, 0.0  ;;  %v2702_v39 = vmul.f32 %v12526_v28, %v12526_v28 }
 0x671   : > { %v2691_v42 = vadd.f32 %v2690_v38, %v12528_v23  ;;  %v2703_v57 = vmul.f32 %v12536_v63, %v12536_v63 }
 0x672   : > { %v2694_v41 = vsel %vm2689_vm11, %v12530_v37, 0.0  ;;  %v2705_v49 = vsel %vm2689_vm11, %v2702_v39, 0.0  ;;  %v2704_v56 = vmul.f32 %v12530_v37, %v12530_v37 }
 0x673   : > { %2692 = vadd.xlane.f32.xlu1 %v2691_v42  ;;  %v2695_v43 = vadd.f32 %v2694_v41, %v12536_v63  ;;  %v2706_v7 = vadd.f32 %v2705_v49, %v2701_v45 }
 0x674   : > { %v2709_v0 = vsel %vm2689_vm11, %v2704_v56, 0.0 }
 0x675   : > { %2696 = vadd.xlane.f32.xlu0 %v2695_v43  ;;  %v2710_v58 = vadd.f32 %v2709_v0, %v2703_v57 }
 0x679   : > { %2707 = vadd.xlane.f32.xlu0 %v2706_v7 }
 0x684   : > { %2738 = vperm.xlu1 %10762, %v12517_v5  }
 0x688   : > { %10763 = vset.pattern.permute.xlu1 %v11555_v14 }
 0x689   : > { %2746 = vperm.xlu1 %10763, %v2625_v11  }
 0x68d   : > { %2750 = vperm.xlu1 %10763, %v12517_v5  }
 0x68f   : > { %2734 = vperm.xlu0 %10761, %v2625_v11  }
 0x691   : > { %10764 = vset.pattern.permute.xlu1 %v11556_v25 }
 0x692   : > { %2762 = vperm.xlu1 %10764, %v2625_v11   ;;  %v11146_v11 = vld [vmem:[%s14741_s3 + $0x40] sm:$0xff]  }
 0x693   : > { %10765 = vset.pattern.permute.xlu0 %v11553_v47  ;;  %2902 = vmatpush1.bf16.msra.mxu0 %v11146_v11 }
 0x694   : > { %2903 = vmatprep.subr.bf16.mxu0 %v11551_v18 }
 0x6b6   : > { %2711 = vadd.xlane.f32.xlu1 %v2710_v58 }
 0x6c7   : > { %2766 = vperm.xlu1 %10764, %v12517_v5   ;;  %v11147_v5 = vld [vmem:[%s14741_s3 + $0x48] ss:$0 sps:$4 sm:$0xff]  }
 0x6c8   : > { %v12597_v6 = vsel %vm699_vm1, %v11147_v5, 0 }
 0x6c9   : > { %2904 = vmatpush1.bf16.msra.mxu0 %v12597_v6 }
 0x6cb   : > { %10766 = vset.pattern.permute.xlu1 %v11553_v47 }
 0x700   : > { %v2693_v15 = vpop.xlane.xlu1 %2692 }
 0x701   : > { %v2699_v33 = vmul.f32 0.0065789474, %v2693_v15  ;;  %v11557_v15 = vmov 0.0  }
 0x702   : > { %v2697_v36 = vpop.xlane.xlu0 %2696  ;;  %10200 = vmatprep.subr.bf16.mxu0 %v11557_v15  ;;  %10210 = vmatprep.subr.bf16.mxu1 %v11557_v15 }
 0x703   : > { %v2715_v9 = vmul.f32 %v2699_v33, %v2699_v33  ;;  %v2700_v21 = vmul.f32 0.0065789474, %v2697_v36  ;;  %v2721_v61 = vsub.f32 %v12528_v23, %v2699_v33  ;;  %v2722_v50 = vsub.f32 %v12526_v28, %v2699_v33 }
 0x704   : > { %v2739_v16 = vpop.permute.xlu1 %2738 }
 0x705   : > { %v2716_v12 = vmul.f32 %v2700_v21, %v2700_v21  ;;  %v2723_v43 = vsub.f32 %v12536_v63, %v2700_v21  ;;  %v2724_v49 = vsub.f32 %v12530_v37, %v2700_v21 }
 0x706   : > { %v2708_v17 = vpop.xlane.xlu0 %2707 }
 0x707   : > { %v2713_v19 = vmul.f32 0.0065789474, %v2708_v17 }
 0x708   : > { %v2747_v44 = vpop.permute.xlu1 %2746 }
 0x709   : > { %v2717_v53 = vsub.f32 %v2713_v19, %v2715_v9 }
 0x70b   : > { %v2719_v8 = vmax.f32 %v2717_v53, 0.0 }
 0x70c   : > { %v2751_v20 = vpop.permute.xlu1 %2750 }
 0x70d   : > { %v2725_v13 = vadd.f32 1e-05, %v2719_v8 }
 0x70e   : > { %v2735_v39 = vpop.permute.xlu0 %2734 }
 0x70f   : > { %11285 = vrsqrt.f32 %v2725_v13 }
 0x711   : > { %v2763_v10 = vpop.permute.xlu1 %2762 }
 0x719   : > { %v11286_v1 = vpop.eup %11285 }
 0x71a   : > { %v2729_v48 = vmul.f32 %v11286_v1, %v2721_v61  ;;  %v2730_v38 = vmul.f32 %v11286_v1, %v2722_v50 }
 0x71c   : > { %v2741_v42 = vmul.f32 %v2735_v39, %v2729_v48  ;;  %v2742_v41 = vmul.f32 %v2735_v39, %v2730_v38 }
 0x71e   : > { %v2753_v7 = vadd.f32 %v2747_v44, %v2741_v42  ;;  %v2754_v54 = vadd.f32 %v2747_v44, %v2742_v41  ;;  %v11148_v42 = vld [vmem:[%s14748_s10 + $0x28] sm:$0xff]  }
 0x720   : > { %v2769_v58 = vmul.f32 %v2763_v10, %v2753_v7  ;;  %v2770_v23 = vmul.f32 %v2763_v10, %v2754_v54  ;;  %vm2757_vm13 = vcmp.ge.f32.partialorder %v2753_v7, 0.0  ;;  %vm2758_vm14 = vcmp.ge.f32.partialorder %v2754_v54, 0.0 }
 0x722   : > { %v2773_v2 = vsel %vm2757_vm13, %v2753_v7, %v2769_v58  ;;  %v2774_v37 = vsel %vm2758_vm14, %v2754_v54, %v2770_v23  ;;  %vm11558_vm13 = vmmov 0   ;;  %vm14761_vm14 = vcmask 588800  }
 0x723   : > { %10220 = vmatprep.mubr.msk.bf16.mxu1 %vm11558_vm13, %v11557_v15 }
 0x743   : > { %v2712_v22 = vpop.xlane.xlu1 %2711 }
 0x744   : > { %v2714_v24 = vmul.f32 0.0065789474, %v2712_v22  ;;  %v2947_v22 = vld [vmem:[%s14749_s11 + $0x20] sm:$0xff] }
 0x746   : > { %v2718_v40 = vsub.f32 %v2714_v24, %v2716_v12  ;;  %v2948_v12 = vld [vmem:[%s14749_s11 + $0x28] sm:$0xff] }
 0x747   : > { %v2767_v60 = vpop.permute.xlu1 %2766 }
 0x748   : > { %v2720_v26 = vmax.f32 %v2718_v40, 0.0 }
 0x74a   : > { %v2726_v27 = vadd.f32 1e-05, %v2720_v26 }
 0x74c   : > { %11287 = vrsqrt.f32 %v2726_v27 }
 0x756   : > { %v11288_v45 = vpop.eup %11287 }
 0x757   : > { %v2731_v55 = vmul.f32 %v11288_v45, %v2723_v43  ;;  %v2732_v56 = vmul.f32 %v11288_v45, %v2724_v49 }
 0x759   : > { %v2743_v0 = vmul.f32 %v2739_v16, %v2731_v55  ;;  %v2744_v57 = vmul.f32 %v2739_v16, %v2732_v56 }
 0x75b   : > { %v2755_v59 = vadd.f32 %v2751_v20, %v2743_v0  ;;  %v2756_v28 = vadd.f32 %v2751_v20, %v2744_v57 }
 0x75d   : > { %vm2759_vm15 = vcmp.ge.f32.partialorder %v2755_v59, 0.0  ;;  %vm2760_vm2 = vcmp.ge.f32.partialorder %v2756_v28, 0.0  ;;  %v2771_v35 = vmul.f32 %v2767_v60, %v2755_v59  ;;  %v2772_v63 = vmul.f32 %v2767_v60, %v2756_v28  ;;  %v11149_v60 = vld [vmem:[%s14742_s4] sm:$0xff]  }
 0x75e   : > { %10211 = vmatpush3.bf16.msra.mxu1 %v11149_v60 }
 0x75f   : > { %v2775_v3 = vsel %vm2759_vm15, %v2755_v59, %v2771_v35  ;;  %v2776_v4 = vsel %vm2760_vm2, %v2756_v28, %v2772_v63  ;;  %10212 = vmatprep.subr.bf16.mxu1 %v11557_v15  ;;  %v11150_v35 = vld [vmem:[%s14742_s4 + $0x8] sm:$0xff]   ;;  %v11151_v63 = vld [vmem:[%s14742_s4 + $0x10] sm:$0xff]  }
 0x760   : > { %v12604_v11 = vpack.c.bf16 %v2775_v3, %v2773_v2  ;;  %v12606_v5 = vpack.c.bf16 %v2776_v4, %v2774_v37  ;;  %v11152_v2 = vld [vmem:[%s14742_s4 + $0x18] sm:$0xff]   ;;  %v11153_v37 = vld [vmem:[%s14742_s4 + $0x20] ss:$0 sps:$4 sm:$0xff]  }
 0x761   : > { %v12686_v3 = vsel %vm699_vm1, %v11153_v37, 0 }
 0x762   : > { %2811 = vrot.lane.b32.xlu0 %v12606_v5, %s11549_s16  ;;  %2802 = vrot.lane.b32.xlu1 %v12606_v5, %s11547_s25 }
 0x763   : > { %9633 = vmatprep.mubr.msk.bf16.mxu0 %vm2689_vm11, %v12606_v5  ;;  %10213 = vmatpush3.bf16.msra.mxu1 %v11150_v35 }
 0x764   : > { %2918 = vmatmul.mubr.bf16.vlgmr.msra.gmra.mrb[12].mxu0 %v12604_v11  ;;  %10214 = vmatprep.subr.bf16.mxu1 %v11557_v15 }
 0x766   : > { %2800 = vrot.lane.b32.xlu1 %v12604_v11, %s11547_s25  ;;  %2951 = vperm.xlu0 %10765, %v2947_v22  }
 0x767   : > { %10215 = vmatpush3.bf16.msra.mxu1 %v11151_v63 }
 0x768   : > { %10216 = vmatprep.subr.bf16.mxu1 %v11557_v15 }
 0x76a   : > { %2809 = vrot.lane.b32.xlu1 %v12604_v11, %s11549_s16  ;;  %10767 = vset.pattern.permute.xlu0 %v11551_v18 }
 0x76b   : > { %10217 = vmatpush3.bf16.msra.mxu1 %v11152_v2 }
 0x76c   : > { %10218 = vmatprep.subr.bf16.mxu1 %v11557_v15 }
 0x76e   : > { %2956 = vperm.xlu1 %10766, %v2948_v12  }
 0x76f   : > { %10219 = vmatpush3.bf16.msra.mxu1 %v12686_v3 }
 0x770   : > { %10258 = vmatprep.subr.bf16.mxu1 %v11557_v15 }
 0x772   : > { %10768 = vset.pattern.permute.xlu1 %v11551_v18 }
 0x7d4   : > { %v2803_v36 = vpop.permute.xlu1 %2802  ;;  %v2812_v17 = vpop.permute.xlu0 %2811 }
 0x7d5   : > { %v2808_v16 = vsel %vm14758_vm4, %v2803_v36, 0  ;;  %v2817_v44 = vsel %vm14754_vm5, %v2812_v17, 0  ;;  %vm14757_vm5 = vcmask 252928  }
 0x7d6   : > { %9634 = vmatprep.mubr.msk.bf16.mxu0 %vm2689_vm11, %v2808_v16 }
 0x7d8   : > { %v2801_v33 = vpop.permute.xlu1 %2800 }
 0x7d9   : > { %v2804_v19 = vsel %vm607_vm0, %v2801_v33, %v2803_v36 }
 0x7da   : > { %2926 = vmatmul.mubr.bf16.gmra.mrb[16].mxu0 %v2804_v19 }
 0x7db   : > { %9635 = vmatprep.mubr.msk.bf16.mxu0 %vm2689_vm11, %v2817_v44 }
 0x7dc   : > { %v2810_v9 = vpop.permute.xlu1 %2809 }
 0x7dd   : > { %v2813_v53 = vsel %vm629_vm3, %v2810_v9, %v2812_v17 }
 0x7e2   : > { %2934 = vmatmul.mubr.bf16.gmra.mrb[20].mxu0 %v2813_v53 }
 0x7e3   : > { %10206 = vmatprep.mubr.msk.bf16.mxu0 %vm11558_vm13, %v11557_v15 }
 0x7e5   : > { %v2952_v41 = vpop.permute.xlu0 %2951 }
 0x7ed   : > { %v2957_v49 = vpop.permute.xlu1 %2956 }
 0x837   : > { %v2919_v20 = vpop.f32.mrb[12].mxu0 }
 0x838   : > { %v2921_v8 = vpop.f32.mrb[13].mxu0 }
 0x839   : > { %v2922_v13 = vpop.f32.mrb[14].mxu0 }
 0x83a   : > { %v2944_v10 = vpack.c.bf16 %v2922_v13, %v2919_v20  ;;  %v2924_v21 = vpop.f32.mrb[15].mxu0 }
 0x83c   : > { %10201 = vmatpush3.bf16.msra.mxu0 %v2944_v10 }
 0x83d   : > { %10202 = vmatprep.subr.bf16.mxu0 %v11557_v15 }
 0x8ad   : > { %v2927_v24 = vpop.f32.mrb[16].mxu0 }
 0x8ae   : > { %v2929_v40 = vpop.f32.mrb[17].mxu0 }
 0x8af   : > { %v2930_v26 = vpop.f32.mrb[18].mxu0 }
 0x8b0   : > { %v2945_v27 = vpack.c.bf16 %v2930_v26, %v2927_v24  ;;  %v2932_v1 = vpop.f32.mrb[19].mxu0 }
 0x8b2   : > { %10203 = vmatpush3.bf16.msra.mxu0 %v2945_v27 }
 0x8b3   : > { %10204 = vmatprep.subr.bf16.mxu0 %v11557_v15 }
 0x8b5   : > { %v2935_v61 = vpop.f32.mrb[20].mxu0 }
 0x8b6   : > { %v2937_v50 = vpop.f32.mrb[21].mxu0 }
 0x8b7   : > { %v2938_v48 = vpop.f32.mrb[22].mxu0 }
 0x8b8   : > { %v2946_v38 = vpack.c.bf16 %v2938_v48, %v2935_v61  ;;  %v2940_v39 = vpop.f32.mrb[23].mxu0 }
 0x8ba   : > { %10205 = vmatpush3.bf16.msra.mxu0 %v2946_v38 }
 0x8bb   : > { %10232 = vmatprep.subr.bf16.mxu0 %v11557_v15 }
 0x8bd   : > { %10207 = vmatmul.mubr.msk.bf16.vlgmr.msra.gmra.mrb[24].mxu0 %vm14759_vm10, %v11148_v42 }
 0x8be   : > { %10238 = vmatprep.mubr.msk.bf16.mxu0 %vm11558_vm13, %v11557_v15 }
 0x990   : > { %v3001_v43 = vpop.f32.mrb[24].mxu0 }
 0x991   : > { %v12648_v45 = vadd.f32 %v3001_v43, %v2952_v41  ;;  %v10208_v7 = vpop.f32.mrb[25].mxu0 }
 0x992   : > { %v3004_v54 = vpop.f32.mrb[26].mxu0 }
 0x993   : > { %v12650_v55 = vadd.f32 %v3004_v54, %v2957_v49  ;;  %v10209_v56 = vpop.f32.mrb[27].mxu0  ;;  %v3009_v0 = vsel %vm14761_vm14, %v12648_v45, 0.0  ;;  %v3018_v58 = vmul.f32 %v12648_v45, %v12648_v45 }
 0x994   : > { %3010 = vadd.xlane.f32.xlu1 %v3009_v0 }
 0x995   : > { %v3012_v57 = vsel %vm14761_vm14, %v12650_v55, 0.0  ;;  %v3020_v23 = vsel %vm14761_vm14, %v3018_v58, 0.0  ;;  %v3019_v59 = vmul.f32 %v12650_v55, %v12650_v55 }
 0x996   : > { %3013 = vadd.xlane.f32.xlu0 %v3012_v57 }
 0x997   : > { %v3023_v28 = vsel %vm14761_vm14, %v3019_v59, 0.0 }
 0x99a   : > { %3021 = vadd.xlane.f32.xlu0 %v3020_v23 }
 0x9a5   : > { %3047 = vperm.xlu1 %10768, %v2948_v12  }
 0x9a9   : > { %10769 = vset.pattern.permute.xlu1 %v11555_v14 }
 0x9aa   : > { %3053 = vperm.xlu1 %10769, %v2947_v22  }
 0x9ae   : > { %3057 = vperm.xlu1 %10769, %v2948_v12  }
 0x9b0   : > { %3043 = vperm.xlu0 %10767, %v2947_v22  }
 0x9b2   : > { %10770 = vset.pattern.permute.xlu1 %v11556_v25 }
 0x9b3   : > { %3065 = vperm.xlu1 %10770, %v2947_v22  }
 0x9b4   : > { %10772 = vset.pattern.permute.xlu0 %v11553_v47 }
 0x9d7   : > { %3024 = vadd.xlane.f32.xlu1 %v3023_v28 }
 0x9e8   : > { %3069 = vperm.xlu1 %10770, %v2948_v12  }
 0x9ec   : > { %10771 = vset.pattern.permute.xlu1 %v11553_v47 }
 0xa21   : > { %v3011_v4 = vpop.xlane.xlu1 %3010 }
 0xa22   : > { %v3016_v33 = vmul.f32 0.013888889, %v3011_v4  ;;  %v3196_v4 = vld [vmem:[%s14749_s11 + $0x30] sm:$0xff] }
 0xa23   : > { %v3014_v36 = vpop.xlane.xlu0 %3013 }
 0xa24   : > { %v3028_v9 = vmul.f32 %v3016_v33, %v3016_v33  ;;  %v3017_v21 = vmul.f32 0.013888889, %v3014_v36  ;;  %v3034_v61 = vsub.f32 %v12648_v45, %v3016_v33  ;;  %v3197_v36 = vld [vmem:[%s14749_s11 + $0x38] sm:$0xff] }
 0xa25   : > { %v3048_v16 = vpop.permute.xlu1 %3047  ;;  %3205 = vperm.xlu0 %10772, %v3197_v36  }
 0xa26   : > { %v3029_v12 = vmul.f32 %v3017_v21, %v3017_v21  ;;  %v3035_v39 = vsub.f32 %v12650_v55, %v3017_v21 }
 0xa27   : > { %v3022_v17 = vpop.xlane.xlu0 %3021 }
 0xa28   : > { %v3026_v19 = vmul.f32 0.013888889, %v3022_v17 }
 0xa29   : > { %v3054_v44 = vpop.permute.xlu1 %3053  ;;  %10774 = vset.pattern.permute.xlu0 %v11551_v18 }
 0xa2a   : > { %v3030_v53 = vsub.f32 %v3026_v19, %v3028_v9 }
 0xa2c   : > { %v3032_v8 = vmax.f32 %v3030_v53, 0.0 }
 0xa2d   : > { %v3058_v20 = vpop.permute.xlu1 %3057 }
 0xa2e   : > { %v3036_v13 = vadd.f32 1e-05, %v3032_v8 }
 0xa2f   : > { %v3044_v48 = vpop.permute.xlu0 %3043 }
 0xa30   : > { %11289 = vrsqrt.f32 %v3036_v13 }
 0xa32   : > { %v3066_v10 = vpop.permute.xlu1 %3065 }
 0xa3a   : > { %v11290_v1 = vpop.eup %11289 }
 0xa3b   : > { %v3040_v50 = vmul.f32 %v11290_v1, %v3034_v61 }
 0xa3d   : > { %v3050_v38 = vmul.f32 %v3044_v48, %v3040_v50 }
 0xa3f   : > { %v3060_v41 = vadd.f32 %v3054_v44, %v3050_v38 }
 0xa41   : > { %v3072_v7 = vmul.f32 %v3066_v10, %v3060_v41  ;;  %vm3062_vm15 = vcmp.ge.f32.partialorder %v3060_v41, 0.0  ;;  %v11154_v10 = vld [vmem:[%s14748_s10 + $0x30] sm:$0xff]  }
 0xa43   : > { %v3074_v57 = vsel %vm3062_vm15, %v3060_v41, %v3072_v7  ;;  %vm14752_vm15 = vcmask 572416   ;;  %v11155_v41 = vld [vmem:[%s14743_s5] sm:$0xff]  }
 0xa64   : > { %v3025_v22 = vpop.xlane.xlu1 %3024 }
 0xa65   : > { %v3027_v24 = vmul.f32 0.013888889, %v3025_v22 }
 0xa67   : > { %v3031_v40 = vsub.f32 %v3027_v24, %v3029_v12 }
 0xa68   : > { %v3070_v56 = vpop.permute.xlu1 %3069 }
 0xa69   : > { %v3033_v26 = vmax.f32 %v3031_v40, 0.0 }
 0xa6b   : > { %v3037_v27 = vadd.f32 1e-05, %v3033_v26 }
 0xa6d   : > { %11291 = vrsqrt.f32 %v3037_v27 }
 0xa77   : > { %v11292_v42 = vpop.eup %11291 }
 0xa78   : > { %v3041_v43 = vmul.f32 %v11292_v42, %v3035_v39 }
 0xa7a   : > { %v3051_v49 = vmul.f32 %v3048_v16, %v3041_v43  ;;  %v11156_v43 = vld [vmem:[%s14743_s5 + $0x8] sm:$0xff]  }
 0xa7c   : > { %v3061_v54 = vadd.f32 %v3058_v20, %v3051_v49 }
 0xa7e   : > { %vm3063_vm2 = vcmp.ge.f32.partialorder %v3061_v54, 0.0  ;;  %v3073_v0 = vmul.f32 %v3070_v56, %v3061_v54 }
 0xa80   : > { %v3075_v58 = vsel %vm3063_vm2, %v3061_v54, %v3073_v0  ;;  %vm14760_vm2 = vcmask 261120  }
 0xa81   : > { %v12692_v23 = vpack.c.bf16 %v3075_v58, %v3074_v57 }
 0xa83   : > { %3087 = vrot.lane.b32.xlu1 %v12692_v23, %s11547_s25  ;;  %10221 = vmatmul.mubr.msk.bf16.vlgmr.msra.gmra.mrb[76].mxu1 %vm14761_vm14, %v12692_v23 }
 0xa84   : > { %10224 = vmatprep.mubr.msk.bf16.mxu1 %vm11558_vm13, %v11557_v15 }
 0xa87   : > { %3092 = vrot.lane.b32.xlu1 %v12692_v23, %s11549_s16 }
 0xa8b   : > { %3200 = vperm.xlu1 %10771, %v3196_v4  }
 0xa8f   : > { %10773 = vset.pattern.permute.xlu1 %v11551_v18 }
 0xa90   : > { %3292 = vperm.xlu1 %10773, %v3196_v4  }
 0xa94   : > { %10775 = vset.pattern.permute.xlu1 %v11555_v14 }
 0xaa4   : > { %v3206_v12 = vpop.permute.xlu0 %3205 }
 0xaf5   : > { %v3088_v45 = vpop.permute.xlu1 %3087 }
 0xaf6   : > { %v3091_v55 = vsel %vm14753_vm9, %v3088_v45, 0 }
 0xaf7   : > { %10225 = vmatmul.mubr.msk.bf16.gmra.mrb[80].mxu1 %vm14761_vm14, %v3091_v55 }
 0xaf8   : > { %10228 = vmatprep.mubr.msk.bf16.mxu1 %vm11558_vm13, %v11557_v15 }
 0xaf9   : > { %v3093_v59 = vpop.permute.xlu1 %3092 }
 0xafa   : > { %v3096_v28 = vsel %vm14752_vm15, %v3093_v59, 0 }
 0xaff   : > { %10229 = vmatmul.mubr.msk.bf16.gmra.mrb[84].mxu1 %vm14761_vm14, %v3096_v28 }
 0xb00   : > { %10264 = vmatprep.mubr.msk.bf16.mxu1 %vm11558_vm13, %v11557_v15 }
 0xb0a   : > { %v3201_v21 = vpop.permute.xlu1 %3200 }
 0xb0f   : > { %v3293_v49 = vpop.permute.xlu1 %3292 }
 0xb56   : > { %v3168_v60 = vpop.f32.mrb[76].mxu1 }
 0xb57   : > { %v10222_v35 = vpop.f32.mrb[77].mxu1 }
 0xb58   : > { %v3171_v63 = vpop.f32.mrb[78].mxu1 }
 0xb59   : > { %v3193_v2 = vpack.c.bf16 %v3171_v63, %v3168_v60  ;;  %v10223_v37 = vpop.f32.mrb[79].mxu1 }
 0xb5b   : > { %10233 = vmatpush3.bf16.msra.mxu0 %v3193_v2 }
 0xb5c   : > { %10234 = vmatprep.subr.bf16.mxu0 %v11557_v15 }
 0xbca   : > { %v3176_v16 = vpop.f32.mrb[80].mxu1 }
 0xbcb   : > { %v10226_v17 = vpop.f32.mrb[81].mxu1 }
 0xbcc   : > { %v3179_v33 = vpop.f32.mrb[82].mxu1 }
 0xbcd   : > { %v3194_v19 = vpack.c.bf16 %v3179_v33, %v3176_v16  ;;  %v10227_v44 = vpop.f32.mrb[83].mxu1 }
 0xbcf   : > { %10235 = vmatpush3.bf16.msra.mxu0 %v3194_v19 }
 0xbd0   : > { %10236 = vmatprep.subr.bf16.mxu0 %v11557_v15 }
 0xbd2   : > { %v3184_v9 = vpop.f32.mrb[84].mxu1 }
 0xbd3   : > { %v10230_v53 = vpop.f32.mrb[85].mxu1 }
 0xbd4   : > { %v3187_v20 = vpop.f32.mrb[86].mxu1 }
 0xbd5   : > { %v3195_v8 = vpack.c.bf16 %v3187_v20, %v3184_v9  ;;  %v10231_v13 = vpop.f32.mrb[87].mxu1 }
 0xbd7   : > { %10237 = vmatpush3.bf16.msra.mxu0 %v3195_v8 }
 0xbd8   : > { %10242 = vmatprep.subr.bf16.mxu0 %v11557_v15 }
 0xbda   : > { %10239 = vmatmul.mubr.msk.bf16.vlgmr.msra.gmra.mrb[28].mxu0 %vm14759_vm10, %v11154_v10 }
 0xbdb   : > { %10246 = vmatprep.mubr.msk.bf16.mxu0 %vm11558_vm13, %v11557_v15  ;;  %10243 = vmatpush3.bf16.msra.mxu0 %v11155_v41 }
 0xbdc   : > { %10244 = vmatprep.subr.bf16.mxu0 %v11557_v15 }
 0xbdf   : > { %10245 = vmatpush3.bf16.msra.mxu0 %v11156_v43 }
 0xcad   : > { %v3250_v22 = vpop.f32.mrb[28].mxu0 }
 0xcae   : > { %v3251_v24 = vadd.f32 %v3250_v22, %v3201_v21  ;;  %v10240_v40 = vpop.f32.mrb[29].mxu0 }
 0xcaf   : > { %v3253_v26 = vpop.f32.mrb[30].mxu0 }
 0xcb0   : > { %v3254_v27 = vadd.f32 %v3253_v26, %v3206_v12  ;;  %v10241_v1 = vpop.f32.mrb[31].mxu0  ;;  %v3258_v61 = vsel %vm14760_vm2, %v3251_v24, 0.0  ;;  %v3267_v50 = vmul.f32 %v3251_v24, %v3251_v24 }
 0xcb1   : > { %3259 = vadd.xlane.f32.xlu1 %v3258_v61 }
 0xcb2   : > { %v3261_v48 = vsel %vm14760_vm2, %v3254_v27, 0.0  ;;  %v3268_v38 = vmul.f32 %v3254_v27, %v3254_v27  ;;  %v3269_v39 = vsel %vm14760_vm2, %v3267_v50, 0.0 }
 0xcb3   : > { %3262 = vadd.xlane.f32.xlu0 %v3261_v48 }
 0xcb4   : > { %v3272_v42 = vsel %vm14760_vm2, %v3268_v38, 0.0 }
 0xcb5   : > { %3270 = vadd.xlane.f32.xlu1 %v3269_v39 }
 0xcb7   : > { %3273 = vadd.xlane.f32.xlu0 %v3272_v42 }
 0xcc6   : > { %3302 = vperm.xlu1 %10775, %v3196_v4  }
 0xcca   : > { %3306 = vperm.xlu1 %10775, %v3197_v36  }
 0xccd   : > { %3296 = vperm.xlu0 %10774, %v3197_v36  }
 0xcce   : > { %10776 = vset.pattern.permute.xlu1 %v11556_v25 }
 0xccf   : > { %3314 = vperm.xlu1 %10776, %v3196_v4  }
 0xcd1   : > { %10778 = vset.pattern.permute.xlu0 %v11553_v47 }
 0xcd3   : > { %3318 = vperm.xlu1 %10776, %v3197_v36  }
 0xcd7   : > { %10777 = vset.pattern.permute.xlu1 %v11553_v47 }
 0xd3e   : > { %v3260_v7 = vpop.xlane.xlu1 %3259 }
 0xd3f   : > { %v3265_v54 = vmul.f32 0.03125, %v3260_v7  ;;  %v3422_v7 = vld [vmem:[%s14749_s11 + $0x40] sm:$0xff] }
 0xd40   : > { %v3263_v56 = vpop.xlane.xlu0 %3262 }
 0xd41   : > { %v3266_v0 = vmul.f32 0.03125, %v3263_v56  ;;  %v3277_v58 = vmul.f32 %v3265_v54, %v3265_v54  ;;  %v3283_v17 = vsub.f32 %v3251_v24, %v3265_v54  ;;  %v3423_v54 = vld [vmem:[%s14749_s11 + $0x48] sm:$0xff] }
 0xd42   : > { %v3271_v57 = vpop.xlane.xlu1 %3270  ;;  %3431 = vperm.xlu0 %10778, %v3423_v54  }
 0xd43   : > { %v3275_v45 = vmul.f32 0.03125, %v3271_v57  ;;  %v3278_v59 = vmul.f32 %v3266_v0, %v3266_v0  ;;  %v3284_v19 = vsub.f32 %v3254_v27, %v3266_v0 }
 0xd44   : > { %v3274_v55 = vpop.xlane.xlu0 %3273 }
 0xd45   : > { %v3279_v28 = vsub.f32 %v3275_v45, %v3277_v58  ;;  %v3276_v60 = vmul.f32 0.03125, %v3274_v55 }
 0xd46   : > { %v3303_v36 = vpop.permute.xlu1 %3302  ;;  %10780 = vset.pattern.permute.xlu0 %v11551_v18 }
 0xd47   : > { %v3281_v35 = vmax.f32 %v3279_v28, 0.0  ;;  %v3280_v63 = vsub.f32 %v3276_v60, %v3278_v59 }
 0xd49   : > { %v3285_v2 = vadd.f32 1e-05, %v3281_v35  ;;  %v3282_v37 = vmax.f32 %v3280_v63, 0.0  ;;  %v11157_v63 = vld [vmem:[%s14748_s10 + $0x38] sm:$0xff]  }
 0xd4a   : > { %v3307_v16 = vpop.permute.xlu1 %3306 }
 0xd4b   : > { %11293 = vrsqrt.f32 %v3285_v2  ;;  %v3286_v4 = vadd.f32 1e-05, %v3282_v37 }
 0xd4c   : > { %v3297_v20 = vpop.permute.xlu0 %3296 }
 0xd4d   : > { %11295 = vrsqrt.f32 %v3286_v4 }
 0xd4e   : > { %v3315_v53 = vpop.permute.xlu1 %3314 }
 0xd52   : > { %v3319_v40 = vpop.permute.xlu1 %3318 }
 0xd55   : > { %v11294_v33 = vpop.eup %11293 }
 0xd56   : > { %v3289_v44 = vmul.f32 %v11294_v33, %v3283_v17 }
 0xd57   : > { %v11296_v9 = vpop.eup %11295 }
 0xd58   : > { %v3299_v8 = vmul.f32 %v3293_v49, %v3289_v44  ;;  %v3290_v13 = vmul.f32 %v11296_v9, %v3284_v19 }
 0xd5a   : > { %v3309_v10 = vadd.f32 %v3303_v36, %v3299_v8  ;;  %v3300_v21 = vmul.f32 %v3297_v20, %v3290_v13 }
 0xd5c   : > { %v3321_v22 = vmul.f32 %v3315_v53, %v3309_v10  ;;  %v3310_v12 = vadd.f32 %v3307_v16, %v3300_v21  ;;  %vm3311_vm15 = vcmp.ge.f32.partialorder %v3309_v10, 0.0 }
 0xd5e   : > { %vm3312_vm9 = vcmp.ge.f32.partialorder %v3310_v12, 0.0  ;;  %v3322_v26 = vmul.f32 %v3319_v40, %v3310_v12  ;;  %v3323_v1 = vsel %vm3311_vm15, %v3309_v10, %v3321_v22  ;;  %v3551_v10 = vld [vmem:[%s14744_s6] sm:$0xf] }
 0xd5f   : > { %v12786_v21 = vsel %vm699_vm1, %v3551_v10, 0  ;;  %v3615_v10 = vld [vmem:[%s14749_s11 + $0x50] sm:$0xff] }
 0xd60   : > { %v3324_v61 = vsel %vm3312_vm9, %v3310_v12, %v3322_v26  ;;  %vm14755_vm9 = vcmask 244736  }
 0xd61   : > { %v12742_v50 = vpack.c.bf16 %v3324_v61, %v3323_v1 }
 0xd63   : > { %3331 = vrot.lane.b32.xlu1 %v12742_v50, %s11547_s25  ;;  %10247 = vmatmul.mubr.msk.bf16.vlgmr.msra.gmra.mrb[32].mxu0 %vm14760_vm2, %v12742_v50 }
 0xd64   : > { %10250 = vmatprep.mubr.msk.bf16.mxu0 %vm11558_vm13, %v11557_v15 }
 0xd67   : > { %3336 = vrot.lane.b32.xlu1 %v12742_v50, %s11549_s16 }
 0xd6b   : > { %3426 = vperm.xlu1 %10777, %v3422_v7  }
 0xd6f   : > { %10779 = vset.pattern.permute.xlu1 %v11551_v18 }
 0xd70   : > { %3517 = vperm.xlu1 %10779, %v3422_v7  }
 0xd74   : > { %10781 = vset.pattern.permute.xlu1 %v11555_v14 }
 0xdc1   : > { %v3432_v4 = vpop.permute.xlu0 %3431 }
 0xdd5   : > { %v3332_v24 = vpop.permute.xlu1 %3331 }
 0xdd6   : > { %v3335_v27 = vsel %vm14757_vm5, %v3332_v24, 0 }
 0xdd7   : > { %10251 = vmatmul.mubr.msk.bf16.gmra.mrb[36].mxu0 %vm14760_vm2, %v3335_v27 }
 0xdd8   : > { %10254 = vmatprep.mubr.msk.bf16.mxu0 %vm11558_vm13, %v11557_v15 }
 0xdd9   : > { %v3337_v48 = vpop.permute.xlu1 %3336 }
 0xdda   : > { %v3340_v38 = vsel %vm14755_vm9, %v3337_v48, 0 }
 0xddf   : > { %10255 = vmatmul.mubr.msk.bf16.gmra.mrb[40].mxu0 %vm14760_vm2, %v3340_v38 }
 0xdea   : > { %v3427_v2 = vpop.permute.xlu1 %3426 }
 0xdef   : > { %v3518_v22 = vpop.permute.xlu1 %3517 }
 0xe36   : > { %v3394_v39 = vpop.f32.mrb[32].mxu0 }
 0xe37   : > { %v10248_v42 = vpop.f32.mrb[33].mxu0 }
 0xe38   : > { %v3397_v41 = vpop.f32.mrb[34].mxu0 }
 0xe39   : > { %v3419_v43 = vpack.c.bf16 %v3397_v41, %v3394_v39  ;;  %v10249_v49 = vpop.f32.mrb[35].mxu0 }
 0xe3b   : > { %10259 = vmatpush3.bf16.msra.mxu1 %v3419_v43 }
 0xe3c   : > { %10260 = vmatprep.subr.bf16.mxu1 %v11557_v15 }
 0xeaa   : > { %v3402_v56 = vpop.f32.mrb[36].mxu0 }
 0xeab   : > { %v10252_v0 = vpop.f32.mrb[37].mxu0 }
 0xeac   : > { %v3405_v57 = vpop.f32.mrb[38].mxu0 }
 0xead   : > { %v3420_v58 = vpack.c.bf16 %v3405_v57, %v3402_v56  ;;  %v10253_v45 = vpop.f32.mrb[39].mxu0 }
 0xeaf   : > { %10261 = vmatpush3.bf16.msra.mxu1 %v3420_v58 }
 0xeb0   : > { %10262 = vmatprep.subr.bf16.mxu1 %v11557_v15 }
 0xeb2   : > { %v3410_v55 = vpop.f32.mrb[40].mxu0 }
 0xeb3   : > { %v10256_v59 = vpop.f32.mrb[41].mxu0 }
 0xeb4   : > { %v3413_v28 = vpop.f32.mrb[42].mxu0 }
 0xeb5   : > { %v3421_v60 = vpack.c.bf16 %v3413_v28, %v3410_v55  ;;  %v10257_v35 = vpop.f32.mrb[43].mxu0 }
 0xeb7   : > { %10263 = vmatpush3.bf16.msra.mxu1 %v3421_v60 }
 0xeb8   : > { %10268 = vmatprep.subr.bf16.mxu1 %v11557_v15 }
 0xeba   : > { %10265 = vmatmul.mubr.msk.bf16.vlgmr.msra.gmra.mrb[88].mxu1 %vm14759_vm10, %v11157_v63 }
 0xebb   : > { %10270 = vmatprep.mubr.msk.bf16.mxu1 %vm11558_vm13, %v11557_v15  ;;  %10269 = vmatpush3.bf16.msra.mxu1 %v12786_v21 }
 0xebc   : > { %10274 = vmatprep.subr.bf16.mxu1 %v11557_v15 }
 0xf8d   : > { %v3476_v37 = vpop.f32.mrb[88].mxu1 }
 0xf8e   : > { %v3477_v36 = vadd.f32 %v3476_v37, %v3427_v2  ;;  %v10266_v16 = vpop.f32.mrb[89].mxu1 }
 0xf8f   : > { %v3479_v17 = vpop.f32.mrb[90].mxu1 }
 0xf90   : > { %v3480_v33 = vadd.f32 %v3479_v17, %v3432_v4  ;;  %v10267_v19 = vpop.f32.mrb[91].mxu1  ;;  %v3483_v44 = vsel %vm14756_vm6, %v3477_v36, 0.0  ;;  %v3492_v9 = vmul.f32 %v3477_v36, %v3477_v36 }
 0xf91   : > { %3484 = vadd.xlane.f32.xlu1 %v3483_v44 }
 0xf92   : > { %v3486_v53 = vsel %vm14756_vm6, %v3480_v33, 0.0  ;;  %v3493_v20 = vmul.f32 %v3480_v33, %v3480_v33  ;;  %v3494_v8 = vsel %vm14756_vm6, %v3492_v9, 0.0 }
 0xf93   : > { %3487 = vadd.xlane.f32.xlu0 %v3486_v53 }
 0xf94   : > { %v3497_v13 = vsel %vm14756_vm6, %v3493_v20, 0.0 }
 0xf95   : > { %3495 = vadd.xlane.f32.xlu1 %v3494_v8 }
 0xf97   : > { %3498 = vadd.xlane.f32.xlu0 %v3497_v13 }
 0xfa6   : > { %3527 = vperm.xlu1 %10781, %v3422_v7  }
 0xfaa   : > { %3531 = vperm.xlu1 %10781, %v3423_v54  }
 0xfad   : > { %3521 = vperm.xlu0 %10780, %v3423_v54  }
 0xfae   : > { %10782 = vset.pattern.permute.xlu1 %v11556_v25 }
 0xfaf   : > { %3539 = vperm.xlu1 %10782, %v3422_v7  }
 0xfb3   : > { %3543 = vperm.xlu1 %10782, %v3423_v54  }
 0xfb7   : > { %10783 = vset.pattern.permute.xlu1 %v11553_v47 }
0x101e   : > { %v3485_v12 = vpop.xlane.xlu1 %3484 }
0x101f   : > { %v3490_v40 = vmul.f32 0.125, %v3485_v12 }
0x1020   : > { %v3488_v26 = vpop.xlane.xlu0 %3487 }
0x1021   : > { %v3491_v1 = vmul.f32 0.125, %v3488_v26  ;;  %v3502_v24 = vmul.f32 %v3490_v40, %v3490_v40  ;;  %v3508_v57 = vsub.f32 %v3477_v36, %v3490_v40 }
0x1022   : > { %v3496_v61 = vpop.xlane.xlu1 %3495 }
0x1023   : > { %v3500_v27 = vmul.f32 0.125, %v3496_v61  ;;  %v3503_v38 = vmul.f32 %v3491_v1, %v3491_v1  ;;  %v3509_v45 = vsub.f32 %v3480_v33, %v3491_v1  ;;  %v11158_v61 = vld [vmem:[%s14748_s10 + $0x40] sm:$0xff]  }
0x1024   : > { %v3499_v48 = vpop.xlane.xlu0 %3498 }
0x1025   : > { %v3504_v39 = vsub.f32 %v3500_v27, %v3502_v24  ;;  %v3501_v42 = vmul.f32 0.125, %v3499_v48 }
0x1026   : > { %v3528_v56 = vpop.permute.xlu1 %3527 }
0x1027   : > { %v3506_v41 = vmax.f32 %v3504_v39, 0.0  ;;  %v3505_v43 = vsub.f32 %v3501_v42, %v3503_v38 }
0x1029   : > { %v3510_v49 = vadd.f32 1e-05, %v3506_v41  ;;  %v3507_v7 = vmax.f32 %v3505_v43, 0.0 }
0x102a   : > { %v3532_v0 = vpop.permute.xlu1 %3531 }
0x102b   : > { %11297 = vrsqrt.f32 %v3510_v49  ;;  %v3511_v54 = vadd.f32 1e-05, %v3507_v7 }
0x102c   : > { %v3522_v60 = vpop.permute.xlu0 %3521 }
0x102d   : > { %11299 = vrsqrt.f32 %v3511_v54 }
0x102e   : > { %v3540_v28 = vpop.permute.xlu1 %3539 }
0x1032   : > { %v3544_v17 = vpop.permute.xlu1 %3543 }
0x1035   : > { %v11298_v58 = vpop.eup %11297 }
0x1036   : > { %v3514_v55 = vmul.f32 %v11298_v58, %v3508_v57  ;;  %v11159_v58 = vld [vmem:[%s14745_s7] sm:$0xff]  }
0x1037   : > { %v11300_v59 = vpop.eup %11299  ;;  %10284 = vmatprep.subr.bf16.mxu0 %v11159_v58 }
0x1038   : > { %v3524_v35 = vmul.f32 %v3518_v22, %v3514_v55  ;;  %v3515_v63 = vmul.f32 %v11300_v59, %v3509_v45  ;;  %v3616_v22 = vld [vmem:[%s14749_s11 + $0x58] sm:$0xff]  ;;  %10285 = vmatpush3.bf16.msra.mxu0 %v11159_v58  ;;  %v11160_v45 = vld [vmem:[%s14745_s7 + $0x8] sm:$0xff]  }
0x1039   : > { %10286 = vmatprep.subr.bf16.mxu0 %v11160_v45 }
0x103a   : > { %v3534_v2 = vadd.f32 %v3528_v56, %v3524_v35  ;;  %v3525_v37 = vmul.f32 %v3522_v60, %v3515_v63 }
0x103c   : > { %v3546_v4 = vmul.f32 %v3540_v28, %v3534_v2  ;;  %v3535_v16 = vadd.f32 %v3532_v0, %v3525_v37  ;;  %vm3536_vm15 = vcmp.ge.f32.partialorder %v3534_v2, 0.0  ;;  %10287 = vmatpush3.bf16.msra.mxu0 %v11160_v45 }
0x103d   : > { %10292 = vmatprep.subr.bf16.mxu0 %v11557_v15 }
0x103e   : > { %vm3537_vm9 = vcmp.ge.f32.partialorder %v3535_v16, 0.0  ;;  %v3547_v19 = vmul.f32 %v3544_v17, %v3535_v16  ;;  %v3548_v44 = vsel %vm3536_vm15, %v3534_v2, %v3546_v4 }
0x1040   : > { %v3549_v9 = vsel %vm3537_vm9, %v3535_v16, %v3547_v19  ;;  %vm14764_vm9 = vcmask 7168  }
0x1041   : > { %v3550_v53 = vpack.c.bf16 %v3549_v9, %v3548_v44  ;;  %vm12805_vm15 = vmneg %vm14764_vm9 }
0x1043   : > { %10271 = vmatmul.mubr.msk.bf16.vlgmr.msra.gmra.mrb[92].mxu1 %vm14756_vm6, %v3550_v53  ;;  %vm14763_vm6 = vcmask 15360  }
0x1044   : > { %10280 = vmatprep.mubr.msk.bf16.mxu1 %vm11558_vm13, %v11557_v15  ;;  %vm12813_vm5 = vmneg %vm14763_vm6 }
0x1116   : > { %v3592_v36 = vpop.f32.mrb[92].mxu1 }
0x1117   : > { %v10272_v33 = vpop.f32.mrb[93].mxu1 }
0x1118   : > { %v3595_v20 = vpop.f32.mrb[94].mxu1 }
0x1119   : > { %v3599_v8 = vpack.c.bf16 %v3595_v20, %v3592_v36  ;;  %v10273_v13 = vpop.f32.mrb[95].mxu1 }
0x111b   : > { %3601 = vrot.lane.b32.xlu1 %v3599_v8, %s11559_s29  ;;  %10275 = vmatpush3.bf16.msra.mxu1 %v3599_v8 }
0x111c   : > { %10276 = vmatprep.subr.bf16.mxu1 %v11557_v15 }
0x111f   : > { %3607 = vrot.lane.b32.xlu1 %v3599_v8, %s11560_s30 }
0x1123   : > { %3619 = vperm.xlu1 %10783, %v3615_v10  }
0x1127   : > { %3624 = vperm.xlu1 %10783, %v3616_v22  }
0x112b   : > { %10784 = vset.pattern.permute.xlu1 %v11551_v18 }
0x112c   : > { %3709 = vperm.xlu1 %10784, %v3615_v10  }
0x1130   : > { %10785 = vset.pattern.permute.xlu1 %v11555_v14 }
0x118d   : > { %v3602_v40 = vpop.permute.xlu1 %3601 }
0x118e   : > { %10277 = vmatpush3.bf16.msk.msra.mxu1 %vm12805_vm15, %v3602_v40 }
0x118f   : > { %10278 = vmatprep.subr.bf16.mxu1 %v11557_v15 }
0x1191   : > { %v3608_v1 = vpop.permute.xlu1 %3607 }
0x1192   : > { %10279 = vmatpush3.bf16.msk.msra.mxu1 %vm12813_vm5, %v3608_v1 }
0x1195   : > { %10281 = vmatmul.mubr.msk.bf16.vlgmr.msra.gmra.mrb[96].mxu1 %vm14759_vm10, %v11158_v61 }
0x1196   : > { %4061 = vmatprep.mubr.bf16.mxu1 %v11551_v18 }
0x11a2   : > { %v3620_v24 = vpop.permute.xlu1 %3619 }
0x11a6   : > { %v3625_v39 = vpop.permute.xlu1 %3624 }
0x11ab   : > { %v3710_v55 = vpop.permute.xlu1 %3709 }
0x1268   : > { %v3669_v27 = vpop.f32.mrb[96].mxu1 }
0x1269   : > { %v3670_v48 = vadd.f32 %v3669_v27, %v3620_v24  ;;  %v10282_v38 = vpop.f32.mrb[97].mxu1 }
0x126a   : > { %v3672_v42 = vpop.f32.mrb[98].mxu1 }
0x126b   : > { %v3673_v41 = vadd.f32 %v3672_v42, %v3625_v39  ;;  %v10283_v43 = vpop.f32.mrb[99].mxu1  ;;  %v3676_v49 = vsel %vm14760_vm2, %v3670_v48, 0.0  ;;  %v3684_v7 = vmul.f32 %v3670_v48, %v3670_v48 }
0x126c   : > { %3677 = vadd.xlane.f32.xlu0 %v3676_v49 }
0x126d   : > { %v3679_v54 = vsel %vm14760_vm2, %v3673_v41, 0.0  ;;  %v3686_v56 = vsel %vm14760_vm2, %v3684_v7, 0.0  ;;  %v3685_v0 = vmul.f32 %v3673_v41, %v3673_v41 }
0x126e   : > { %3680 = vadd.xlane.f32.xlu1 %v3679_v54 }
0x126f   : > { %v3689_v57 = vsel %vm14760_vm2, %v3685_v0, 0.0 }
0x1270   : > { %3687 = vadd.xlane.f32.xlu0 %v3686_v56 }
0x1274   : > { %3690 = vadd.xlane.f32.xlu0 %v3689_v57 }
0x127f   : > { %3719 = vperm.xlu1 %10785, %v3615_v10  }
0x1283   : > { %3723 = vperm.xlu1 %10785, %v3616_v22  }
0x1287   : > { %10787 = vset.pattern.permute.xlu1 %v11556_v25 }
0x1288   : > { %3735 = vperm.xlu1 %10787, %v3616_v22  }
0x128a   : > { %3713 = vperm.xlu0 %10780, %v3616_v22  }
0x128c   : > { %10788 = vset.pattern.permute.xlu1 %v11553_v47 }
0x128e   : > { %10786 = vset.pattern.permute.xlu0 %v11556_v25 }
0x128f   : > { %3731 = vperm.xlu0 %10786, %v3615_v10  }
0x1293   : > { %10789 = vset.pattern.permute.xlu0 %v11553_v47 }
0x12f9   : > { %v3678_v59 = vpop.xlane.xlu0 %3677 }
0x12fa   : > { %v3682_v28 = vmul.f32 0.03125, %v3678_v59 }
0x12fb   : > { %v3681_v60 = vpop.xlane.xlu1 %3680 }
0x12fc   : > { %v3694_v63 = vmul.f32 %v3682_v28, %v3682_v28  ;;  %v3683_v2 = vmul.f32 0.03125, %v3681_v60  ;;  %v3700_v8 = vsub.f32 %v3670_v48, %v3682_v28  ;;  %v3837_v28 = vld [vmem:[%s14749_s11 + $0x60] sm:$0xff] }
0x12fd   : > { %v3688_v35 = vpop.xlane.xlu0 %3687 }
0x12fe   : > { %v3692_v37 = vmul.f32 0.03125, %v3688_v35  ;;  %v3695_v17 = vmul.f32 %v3683_v2, %v3683_v2  ;;  %v3701_v40 = vsub.f32 %v3673_v41, %v3683_v2 }
0x12ff   : > { %v3720_v20 = vpop.permute.xlu1 %3719 }
0x1300   : > { %v3696_v4 = vsub.f32 %v3692_v37, %v3694_v63  ;;  %v11161_v37 = vld [vmem:[%s14748_s10 + $0x48] sm:$0xff]  }
0x1301   : > { %v3691_v16 = vpop.xlane.xlu0 %3690 }
0x1302   : > { %v3698_v19 = vmax.f32 %v3696_v4, 0.0  ;;  %v3693_v44 = vmul.f32 0.03125, %v3691_v16 }
0x1303   : > { %v3724_v24 = vpop.permute.xlu1 %3723 }
0x1304   : > { %v3702_v9 = vadd.f32 1e-05, %v3698_v19  ;;  %v3697_v53 = vsub.f32 %v3693_v44, %v3695_v17 }
0x1306   : > { %11301 = vrsqrt.f32 %v3702_v9  ;;  %v3699_v36 = vmax.f32 %v3697_v53, 0.0 }
0x1307   : > { %v3736_v43 = vpop.permute.xlu1 %3735 }
0x1308   : > { %v3703_v33 = vadd.f32 1e-05, %v3699_v36 }
0x1309   : > { %v3714_v22 = vpop.permute.xlu0 %3713 }
0x130a   : > { %11303 = vrsqrt.f32 %v3703_v33 }
0x130e   : > { %v3732_v39 = vpop.permute.xlu0 %3731 }
0x1310   : > { %v11302_v13 = vpop.eup %11301 }
0x1311   : > { %v3706_v10 = vmul.f32 %v11302_v13, %v3700_v8 }
0x1313   : > { %v3716_v1 = vmul.f32 %v3710_v55, %v3706_v10 }
0x1314   : > { %v11304_v61 = vpop.eup %11303 }
0x1315   : > { %v3707_v27 = vmul.f32 %v11304_v61, %v3701_v40  ;;  %v3726_v38 = vadd.f32 %v3720_v20, %v3716_v1  ;;  %v11164_v40 = vld [vmem:[%s14746_s8 + $0x4] ss:$8 sps:$4 sm:$0xff]   ;;  %v11162_v1 = vld [vmem:[%s14746_s8] ss:$8 sps:$4 sm:$0xff]   ;;  %v11167_v61 = vld [vmem:[%s14746_s8 + $0x14] ss:$8 sps:$4 sm:$0xff]  }
0x1316   : > { %4029 = vmatprep.subr.bf16.mxu1 %v11164_v40 }
0x1317   : > { %v3717_v42 = vmul.f32 %v3714_v22, %v3707_v27  ;;  %v3738_v7 = vmul.f32 %v3732_v39, %v3726_v38  ;;  %vm3728_vm4 = vcmp.ge.f32.partialorder %v3726_v38, 0.0  ;;  %4030 = vmatpush1.bf16.msra.mxu1 %v11162_v1  ;;  %v11170_v27 = vld [vmem:[%s14746_s8 + $0x24] ss:$8 sps:$4 sm:$0xff]   ;;  %v11173_v39 = vld [vmem:[%s14746_s8 + $0x34] ss:$8 sps:$4 sm:$0xff]  }
0x1318   : > { %4031 = vmatprep.subr.bf16.mxu1 %v11167_v61 }
0x1319   : > { %v3727_v49 = vadd.f32 %v3724_v24, %v3717_v42  ;;  %v3740_v56 = vsel %vm3728_vm4, %v3726_v38, %v3738_v7  ;;  %v11165_v24 = vld [vmem:[%s14746_s8 + $0x10] ss:$8 sps:$4 sm:$0xff]   ;;  %v11168_v38 = vld [vmem:[%s14746_s8 + $0x20] ss:$8 sps:$4 sm:$0xff]  }
0x131a   : > { %v11171_v42 = vld [vmem:[%s14746_s8 + $0x30] ss:$8 sps:$4 sm:$0xff]  }
0x131b   : > { %vm3729_vm10 = vcmp.ge.f32.partialorder %v3727_v49, 0.0  ;;  %v3739_v54 = vmul.f32 %v3736_v43, %v3727_v49  ;;  %4032 = vmatpush1.bf16.msra.mxu1 %v11165_v24  ;;  %v3974_v43 = vld [vmem:[%s14746_s8 + $0x40] sm:$0xff] }
0x131c   : > { %4033 = vmatprep.subr.bf16.mxu1 %v11170_v27  ;;  %v9684_v7 = vcombine.low %v3974_v43, %v3974_v43 }
0x131d   : > { %v3741_v0 = vsel %vm3729_vm10, %v3727_v49, %v3739_v54  ;;  %vm3854_vm10 = vcmask 785408   ;;  %v12918_v49 = vcombine.high %v3974_v43, %v3974_v43 }
0x131e   : > { %v3742_v48 = vpack.c.bf16 %v3741_v0, %v3740_v56  ;;  %v12923_v54 = vsel %vm699_vm1, %v9684_v7, 0 }
0x131f   : > { %4034 = vmatpush1.bf16.msra.mxu1 %v11168_v38 }
0x1320   : > { %10288 = vmatprep.mubr.msk.bf16.mxu0 %vm14760_vm2, %v3742_v48  ;;  %4035 = vmatprep.subr.bf16.mxu1 %v11173_v39 }
0x1321   : > { %10289 = vmatmul.mubr.msk.bf16.vlgmr.msra.gmra.mrb[44].mxu0 %vm14760_vm2, %v12742_v50  ;;  %v3838_v50 = vld [vmem:[%s14749_s11 + $0x68] sm:$0xff] }
0x1322   : > { %10304 = vmatprep.mubr.msk.bf16.mxu0 %vm11558_vm13, %v11557_v15 }
0x1323   : > { %4036 = vmatpush1.bf16.msra.mxu1 %v11171_v42 }
0x1324   : > { %9686 = vmatprep.subr.msk.bf16.mxu1 %vm699_vm1, %v12918_v49 }
0x1327   : > { %4038 = vmatpush1.bf16.msra.mxu1 %v12923_v54 }
0x13f4   : > { %v10290_v41 = vpop.f32.mrb[44].mxu0 }
0x13f5   : > { %v3796_v57 = vpop.f32.mrb[45].mxu0 }
0x13f6   : > { %v10291_v58 = vpop.f32.mrb[46].mxu0 }
0x13f7   : > { %v3812_v45 = vpack.c.bf16 %v10291_v58, %v10290_v41  ;;  %v3799_v55 = vpop.f32.mrb[47].mxu0 }
0x13f8   : > { %v3811_v59 = vpack.c.bf16 %v3799_v55, %v3796_v57 }
0x13f9   : > { %3817 = vrot.lane.b32.xlu0 %v3812_v45, %s11559_s29 }
0x13fa   : > { %3815 = vrot.lane.b32.xlu1 %v3811_v59, %s11559_s29  ;;  %10293 = vmatpush3.bf16.msra.mxu0 %v3811_v59 }
0x13fb   : > { %10294 = vmatprep.subr.bf16.mxu0 %v11557_v15 }
0x13fd   : > { %3827 = vrot.lane.b32.xlu0 %v3812_v45, %s11560_s30 }
0x13fe   : > { %3825 = vrot.lane.b32.xlu1 %v3811_v59, %s11560_s30  ;;  %10295 = vmatpush3.bf16.msra.mxu0 %v3812_v45 }
0x13ff   : > { %10296 = vmatprep.subr.bf16.mxu0 %v11557_v15 }
0x1401   : > { %3846 = vperm.xlu0 %10789, %v3838_v50  }
0x1402   : > { %3841 = vperm.xlu1 %10788, %v3837_v28  }
0x1405   : > { %10791 = vset.pattern.permute.xlu0 %v11551_v18 }
0x1406   : > { %10790 = vset.pattern.permute.xlu1 %v11551_v18 }
0x1407   : > { %3932 = vperm.xlu1 %10790, %v3837_v28  }
0x140b   : > { %10792 = vset.pattern.permute.xlu1 %v11555_v14 }
0x146b   : > { %v3818_v35 = vpop.permute.xlu0 %3817 }
0x146c   : > { %v3816_v60 = vpop.permute.xlu1 %3815 }
0x146d   : > { %10297 = vmatpush3.bf16.msk.msra.mxu0 %vm12805_vm15, %v3816_v60 }
0x146e   : > { %10298 = vmatprep.subr.bf16.mxu0 %v11557_v15 }
0x146f   : > { %v3828_v2 = vpop.permute.xlu0 %3827 }
0x1470   : > { %v3826_v63 = vpop.permute.xlu1 %3825 }
0x1471   : > { %10299 = vmatpush3.bf16.msk.msra.mxu0 %vm12805_vm15, %v3818_v35 }
0x1472   : > { %10300 = vmatprep.subr.bf16.mxu0 %v11557_v15 }
0x1475   : > { %10301 = vmatpush3.bf16.msk.msra.mxu0 %vm12813_vm5, %v3826_v63 }
0x1476   : > { %10302 = vmatprep.subr.bf16.mxu0 %v11557_v15 }
0x1479   : > { %10303 = vmatpush3.bf16.msk.msra.mxu0 %vm12813_vm5, %v3828_v2 }
0x147c   : > { %10305 = vmatmul.mubr.msk.bf16.vlgmr.msra.gmra.mrb[48].mxu0 %vm3854_vm10, %v11161_v37 }
0x1480   : > { %v3847_v17 = vpop.permute.xlu0 %3846 }
0x1481   : > { %v3842_v4 = vpop.permute.xlu1 %3841 }
0x1486   : > { %v3933_v56 = vpop.permute.xlu1 %3932 }
0x154f   : > { %v3892_v16 = vpop.f32.mrb[48].mxu0 }
0x1550   : > { %v12874_v19 = vadd.f32 %v3892_v16, %v3842_v4  ;;  %v10306_v44 = vpop.f32.mrb[49].mxu0 }
0x1551   : > { %v3895_v9 = vpop.f32.mrb[50].mxu0 }
0x1552   : > { %v12876_v53 = vadd.f32 %v3895_v9, %v3847_v17  ;;  %v10307_v36 = vpop.f32.mrb[51].mxu0  ;;  %v3899_v33 = vsel %vm14761_vm14, %v12874_v19, 0.0  ;;  %v3907_v20 = vmul.f32 %v12874_v19, %v12874_v19 }
0x1553   : > { %3900 = vadd.xlane.f32.xlu1 %v3899_v33 }
0x1554   : > { %v3902_v8 = vsel %vm14761_vm14, %v12876_v53, 0.0  ;;  %v3908_v13 = vmul.f32 %v12876_v53, %v12876_v53  ;;  %v3909_v10 = vsel %vm14761_vm14, %v3907_v20, 0.0 }
0x1555   : > { %3903 = vadd.xlane.f32.xlu0 %v3902_v8 }
0x1556   : > { %v3912_v22 = vsel %vm14761_vm14, %v3908_v13, 0.0 }
0x1557   : > { %3910 = vadd.xlane.f32.xlu1 %v3909_v10 }
0x1559   : > { %3913 = vadd.xlane.f32.xlu0 %v3912_v22 }
0x1568   : > { %3942 = vperm.xlu1 %10792, %v3837_v28  }
0x156c   : > { %3946 = vperm.xlu1 %10792, %v3838_v50  }
0x156f   : > { %3936 = vperm.xlu0 %10791, %v3838_v50  }
0x1570   : > { %10793 = vset.pattern.permute.xlu1 %v11556_v25 }
0x1571   : > { %3954 = vperm.xlu1 %10793, %v3837_v28  }
0x1573   : > { %10795 = vset.pattern.permute.xlu0 %v11553_v47 }
0x1575   : > { %3958 = vperm.xlu1 %10793, %v3838_v50  }
0x1579   : > { %10794 = vset.pattern.permute.xlu1 %v11553_v47 }
0x15e0   : > { %v3901_v0 = vpop.xlane.xlu1 %3900 }
0x15e1   : > { %v3905_v48 = vmul.f32 0.013888889, %v3901_v0 }
0x15e2   : > { %v3904_v41 = vpop.xlane.xlu0 %3903 }
0x15e3   : > { %v3906_v57 = vmul.f32 0.013888889, %v3904_v41  ;;  %v3917_v45 = vmul.f32 %v3905_v48, %v3905_v48  ;;  %v3923_v44 = vsub.f32 %v12874_v19, %v3905_v48 }
0x15e4   : > { %v3911_v58 = vpop.xlane.xlu1 %3910 }
0x15e5   : > { %v3915_v55 = vmul.f32 0.013888889, %v3911_v58  ;;  %v3918_v50 = vmul.f32 %v3906_v57, %v3906_v57  ;;  %v3924_v36 = vsub.f32 %v12876_v53, %v3906_v57 }
0x15e6   : > { %v3914_v59 = vpop.xlane.xlu0 %3913 }
0x15e7   : > { %v3919_v28 = vsub.f32 %v3915_v55, %v3917_v45  ;;  %v3916_v60 = vmul.f32 0.013888889, %v3914_v59  ;;  %v12944_v59 = vld [vmem:[%s14749_s11 + $0x70] sm:$0xff] }
0x15e8   : > { %v3943_v16 = vpop.permute.xlu1 %3942 }
0x15e9   : > { %v3921_v35 = vmax.f32 %v3919_v28, 0.0  ;;  %v3920_v63 = vsub.f32 %v3916_v60, %v3918_v50  ;;  %v12949_v50 = vld [vmem:[%s14749_s11 + $0x78] sm:$0xff] }
0x15eb   : > { %v3925_v2 = vadd.f32 1e-05, %v3921_v35  ;;  %v3922_v37 = vmax.f32 %v3920_v63, 0.0 }
0x15ec   : > { %v3947_v17 = vpop.permute.xlu1 %3946 }
0x15ed   : > { %11305 = vrsqrt.f32 %v3925_v2  ;;  %v3926_v4 = vadd.f32 1e-05, %v3922_v37 }
0x15ee   : > { %v3937_v13 = vpop.permute.xlu0 %3936 }
0x15ef   : > { %11307 = vrsqrt.f32 %v3926_v4 }
0x15f0   : > { %v3955_v8 = vpop.permute.xlu1 %3954 }
0x15f4   : > { %v3959_v27 = vpop.permute.xlu1 %3958 }
0x15f7   : > { %v11306_v9 = vpop.eup %11305 }
0x15f8   : > { %v3929_v33 = vmul.f32 %v11306_v9, %v3923_v44 }
0x15f9   : > { %v11308_v20 = vpop.eup %11307 }
0x15fa   : > { %v3939_v10 = vmul.f32 %v3933_v56, %v3929_v33  ;;  %v3930_v22 = vmul.f32 %v11308_v20, %v3924_v36  ;;  %v11176_v33 = vld [vmem:[%s14748_s10 + $0x50] sm:$0xff]   ;;  %v11177_v20 = vld [vmem:[%s14747_s9] ss:$12 sps:$4 sm:$0xff]  }
0x15fc   : > { %v3949_v40 = vadd.f32 %v3943_v16, %v3939_v10  ;;  %v3940_v1 = vmul.f32 %v3937_v13, %v3930_v22  ;;  %v11180_v13 = vld [vmem:[%s14747_s9 + $0x8] ss:$12 sps:$4 sm:$0xff]  }
0x15fe   : > { %v3961_v61 = vmul.f32 %v3955_v8, %v3949_v40  ;;  %v3950_v24 = vadd.f32 %v3947_v17, %v3940_v1  ;;  %vm3951_vm4 = vcmp.ge.f32.partialorder %v3949_v40, 0.0  ;;  %v11179_v8 = vld [vmem:[%s14747_s9 + $0x4] ss:$12 sps:$4 sm:$0xff]  }
0x15ff   : > { %4483 = vmatprep.subr.bf16.mxu0 %v11179_v8  ;;  %v11201_v8 = vld [vmem:[%s14747_s9 + $0x90] ss:$12 sps:$4 sm:$0xff]  }
0x1600   : > { %vm3952_vm2 = vcmp.ge.f32.partialorder %v3950_v24, 0.0  ;;  %v3962_v38 = vmul.f32 %v3959_v27, %v3950_v24  ;;  %v3963_v39 = vsel %vm3951_vm4, %v3949_v40, %v3961_v61  ;;  %4484 = vmatpush1.bf16.msra.mxu0 %v11177_v20  ;;  %v11200_v20 = vld [vmem:[%s14747_s9 + $0x80] ss:$12 sps:$4 sm:$0xff]  }
0x1602   : > { %v3964_v42 = vsel %vm3952_vm2, %v3950_v24, %v3962_v38 }
0x1603   : > { %v3965_v19 = vpack.c.bf16 %v3964_v42, %v3963_v39 }
0x1605   : > { %9687 = vmatmul.mubr.msk.bf16.vlgmr.msra.gmra.mrb[100].mxu1 %vm14761_vm14, %v3965_v19 }
0x1606   : > { %4071 = vmatprep.mubr.bf16.mxu1 %v11551_v18 }
0x160d   : > { %9688 = vmatmul.mubr.msk.bf16.gmra.mrb[104].mxu1 %vm14761_vm14, %v12692_v23 }
0x160e   : > { %4182 = vmatprep.mubr.bf16.mxu1 %v11551_v18 }
0x16d8   : > { %v4063_v53 = vpop.f32.mrb[100].mxu1 }
0x16d9   : > { %v4065_v43 = vpop.f32.mrb[101].mxu1 }
0x16da   : > { %v4067_v7 = vpop.f32.mrb[102].mxu1 }
0x16db   : > { %v4082_v56 = vpack.c.bf16 %v4067_v7, %v4063_v53  ;;  %v4069_v0 = vpop.f32.mrb[103].mxu1 }
0x16dc   : > { %v4083_v48 = vpack.c.bf16 %v4069_v0, %v4065_v43 }
0x16dd   : > { %4090 = vrot.lane.b32.xlu1 %v4082_v56, %s11559_s29 }
0x16de   : > { %4150 = vmatprep.subr.bf16.mxu1 %v4083_v48 }
0x16df   : > { %4151 = vmatpush1.bf16.msra.mxu1 %v4082_v56 }
0x16e0   : > { %v4073_v41 = vpop.f32.mrb[104].mxu1 }
0x16e1   : > { %4092 = vrot.lane.b32.xlu1 %v4083_v48, %s11559_s29  ;;  %v4075_v57 = vpop.f32.mrb[105].mxu1 }
0x16e2   : > { %v4077_v58 = vpop.f32.mrb[106].mxu1 }
0x16e3   : > { %v4084_v45 = vpack.c.bf16 %v4077_v58, %v4073_v41  ;;  %v4079_v55 = vpop.f32.mrb[107].mxu1 }
0x16e4   : > { %v4085_v23 = vpack.c.bf16 %v4079_v55, %v4075_v57 }
0x16e5   : > { %4094 = vrot.lane.b32.xlu1 %v4084_v45, %s11559_s29 }
0x16e6   : > { %4096 = vrot.lane.b32.xlu0 %v4085_v23, %s11559_s29  ;;  %4152 = vmatprep.subr.bf16.mxu1 %v4085_v23 }
0x16e7   : > { %4153 = vmatpush1.bf16.msra.mxu1 %v4084_v45 }
0x16e9   : > { %4109 = vrot.lane.b32.xlu1 %v4082_v56, %s11560_s30 }
0x16ea   : > { %4111 = vrot.lane.b32.xlu0 %v4083_v48, %s11560_s30 }
0x16ed   : > { %4113 = vrot.lane.b32.xlu1 %v4084_v45, %s11560_s30 }
0x16ee   : > { %4115 = vrot.lane.b32.xlu0 %v4085_v23, %s11560_s30  ;;  %v11183_v23 = vld [vmem:[%s14747_s9 + $0x1c] ss:$12 sps:$4 sm:$0xff]  }
0x16ef   : > { %4485 = vmatprep.subr.bf16.mxu0 %v11183_v23 }
0x16f1   : > { %4134 = vperm.xlu1 %10794, %v12944_v59  }
0x16f2   : > { %4139 = vperm.xlu0 %10795, %v12949_v50  }
0x16f5   : > { %10796 = vset.pattern.permute.xlu1 %v11551_v18 }
0x16f6   : > { %4236 = vperm.xlu1 %10796, %v12944_v59   ;;  %10797 = vset.pattern.permute.xlu0 %v11551_v18 }
0x16fa   : > { %10798 = vset.pattern.permute.xlu1 %v11555_v14 }
0x174f   : > { %v4091_v28 = vpop.permute.xlu1 %4090 }
0x1753   : > { %v4093_v60 = vpop.permute.xlu1 %4092 }
0x1754   : > { %v4099_v35 = vsel %vm14764_vm9, %v4091_v28, %v4093_v60  ;;  %v11184_v60 = vld [vmem:[%s14747_s9 + $0x20] ss:$12 sps:$4 sm:$0xff]  }
0x1755   : > { %4154 = vmatprep.subr.bf16.mxu1 %v4099_v35  ;;  %v11187_v35 = vld [vmem:[%s14747_s9 + $0x34] ss:$12 sps:$4 sm:$0xff]  }
0x1756   : > { %9691 = vmatpush1.bf16.msk.msra.mxu1 %vm12805_vm15, %v4091_v28  ;;  %v11181_v28 = vld [vmem:[%s14747_s9 + $0x18] ss:$12 sps:$4 sm:$0xff]  }
0x1757   : > { %v4095_v63 = vpop.permute.xlu1 %4094  ;;  %4486 = vmatpush1.bf16.msra.mxu0 %v11181_v28 }
0x1758   : > { %v4097_v2 = vpop.permute.xlu0 %4096  ;;  %4487 = vmatprep.subr.bf16.mxu0 %v11187_v35 }
0x1759   : > { %v4100_v37 = vsel %vm14764_vm9, %v4095_v63, %v4097_v2  ;;  %v11188_v2 = vld [vmem:[%s14747_s9 + $0x38] ss:$12 sps:$4 sm:$0xff]  }
0x175a   : > { %4156 = vmatprep.subr.bf16.mxu1 %v4100_v37  ;;  %v11191_v37 = vld [vmem:[%s14747_s9 + $0x4c] ss:$12 sps:$4 sm:$0xff]  }
0x175b   : > { %v4110_v4 = vpop.permute.xlu1 %4109  ;;  %9693 = vmatpush1.bf16.msk.msra.mxu1 %vm12805_vm15, %v4095_v63  ;;  %v11185_v63 = vld [vmem:[%s14747_s9 + $0x30] ss:$12 sps:$4 sm:$0xff]  }
0x175c   : > { %v4112_v16 = vpop.permute.xlu0 %4111  ;;  %4488 = vmatpush1.bf16.msra.mxu0 %v11185_v63 }
0x175d   : > { %v4118_v17 = vsel %vm14763_vm6, %v4110_v4, %v4112_v16  ;;  %v11192_v16 = vld [vmem:[%s14747_s9 + $0x50] ss:$12 sps:$4 sm:$0xff]   ;;  %4489 = vmatprep.subr.bf16.mxu0 %v11191_v37 }
0x175e   : > { %4158 = vmatprep.subr.bf16.mxu1 %v4118_v17  ;;  %v11195_v17 = vld [vmem:[%s14747_s9 + $0x64] ss:$12 sps:$4 sm:$0xff]  }
0x175f   : > { %v4114_v44 = vpop.permute.xlu1 %4113  ;;  %9695 = vmatpush1.bf16.msk.msra.mxu1 %vm12813_vm5, %v4110_v4  ;;  %v11189_v4 = vld [vmem:[%s14747_s9 + $0x48] ss:$12 sps:$4 sm:$0xff]  }
0x1760   : > { %v4116_v9 = vpop.permute.xlu0 %4115  ;;  %4490 = vmatpush1.bf16.msra.mxu0 %v11189_v4 }
0x1761   : > { %v4119_v36 = vsel %vm14763_vm6, %v4114_v44, %v4116_v9  ;;  %v11196_v9 = vld [vmem:[%s14747_s9 + $0x68] ss:$12 sps:$4 sm:$0xff]   ;;  %4491 = vmatprep.subr.bf16.mxu0 %v11195_v17 }
0x1762   : > { %4160 = vmatprep.subr.bf16.mxu1 %v4119_v36  ;;  %v11199_v36 = vld [vmem:[%s14747_s9 + $0x7c] ss:$12 sps:$4 sm:$0xff]  }
0x1763   : > { %9697 = vmatpush1.bf16.msk.msra.mxu1 %vm12813_vm5, %v4114_v44  ;;  %v11193_v44 = vld [vmem:[%s14747_s9 + $0x60] ss:$12 sps:$4 sm:$0xff]  }
0x1764   : > { %4536 = vmatprep.subr.bf16.mxu1 %v11551_v18  ;;  %4492 = vmatpush1.bf16.msra.mxu0 %v11193_v44 }
0x1765   : > { %4493 = vmatprep.subr.bf16.mxu0 %v11199_v36 }
0x1766   : > { %9698 = vmatmul.mubr.msk.bf16.vlgmr.msra.gmra.mrb[108].mxu1 %vm3854_vm10, %v11176_v33  ;;  %v11197_v33 = vld [vmem:[%s14747_s9 + $0x78] ss:$12 sps:$4 sm:$0xff]  }
0x1767   : > { %4537 = vmatpush1.bf16.msra.mxu1 %v11180_v13  ;;  %v11204_v13 = vld [vmem:[%s14747_s9 + $0x98] ss:$12 sps:$4 sm:$0xff]  }
0x1768   : > { %4538 = vmatprep.subr.bf16.mxu1 %v11551_v18  ;;  %4494 = vmatpush1.bf16.msra.mxu0 %v11197_v33 }
0x176b   : > { %4539 = vmatpush1.bf16.msra.mxu1 %v11184_v60 }
0x176c   : > { %4540 = vmatprep.subr.bf16.mxu1 %v11551_v18 }
0x176f   : > { %4541 = vmatpush1.bf16.msra.mxu1 %v11188_v2 }
0x1770   : > { %v4135_v10 = vpop.permute.xlu1 %4134  ;;  %4542 = vmatprep.subr.bf16.mxu1 %v11551_v18 }
0x1771   : > { %v4140_v1 = vpop.permute.xlu0 %4139 }
0x1773   : > { %4543 = vmatpush1.bf16.msra.mxu1 %v11192_v16 }
0x1774   : > { %4544 = vmatprep.subr.bf16.mxu1 %v11551_v18 }
0x1777   : > { %4545 = vmatpush1.bf16.msra.mxu1 %v11196_v9 }
0x1778   : > { %4546 = vmatprep.subr.bf16.mxu1 %v11551_v18 }
0x177b   : > { %4547 = vmatpush1.bf16.msra.mxu1 %v11200_v20 }
0x177c   : > { %4548 = vmatprep.subr.bf16.mxu1 %v11551_v18 }
0x177f   : > { %4549 = vmatpush1.bf16.msra.mxu1 %v11204_v13 }
0x1780   : > { %4550 = vmatprep.subr.bf16.mxu1 %v11551_v18 }
0x1839   : > { %v4184_v22 = vpop.f32.mrb[108].mxu1 }
0x183a   : > { %v4186_v40 = vpop.f32.mrb[109].mxu1  ;;  %v12986_v27 = vadd.f32 %v4184_v22, %v4135_v10  ;;  %v11208_v22 = vld [vmem:[%s14747_s9 + $0xb0] ss:$12 sps:$4 sm:$0xff]  }
0x183b   : > { %v12984_v61 = vadd.f32 %v4186_v40, %v4135_v10  ;;  %v4188_v24 = vpop.f32.mrb[110].mxu1  ;;  %v11205_v10 = vld [vmem:[%s14747_s9 + $0xa8] ss:$12 sps:$4 sm:$0xff]   ;;  %4551 = vmatpush1.bf16.msra.mxu1 %v11208_v22  ;;  %v11211_v40 = vld [vmem:[%s14747_s9 + $0xc4] ss:$12 sps:$4 sm:$0xff]  }
0x183c   : > { %v4190_v38 = vpop.f32.mrb[111].mxu1  ;;  %v12994_v53 = vadd.f32 %v4188_v24, %v4140_v1  ;;  %v4203_v48 = vmul.f32 %v12986_v27, %v12986_v27  ;;  %4552 = vmatprep.subr.bf16.mxu1 %v11551_v18  ;;  %v11212_v24 = vld [vmem:[%s14747_s9 + $0xc8] ss:$12 sps:$4 sm:$0xff]  }
0x183d   : > { %v4204_v39 = vmul.f32 %v12984_v61, %v12984_v61  ;;  %v12990_v42 = vadd.f32 %v4190_v38, %v4140_v1  ;;  %v4193_v19 = vsel %vm2689_vm11, %v12984_v61, 0.0  ;;  %v11209_v1 = vld [vmem:[%s14747_s9 + $0xc0] ss:$12 sps:$4 sm:$0xff]   ;;  %v4317_v38 = vld [vmem:[%s14747_s9 + $0xd8] sm:$0xff] }
0x183e   : > { %v4194_v43 = vadd.f32 %v4193_v19, %v12986_v27  ;;  %v4205_v58 = vmul.f32 %v12994_v53, %v12994_v53  ;;  %v9726_v19 = vcombine.low %v4317_v38, %v4317_v38 }
0x183f   : > { %v4206_v7 = vmul.f32 %v12990_v42, %v12990_v42  ;;  %v4197_v56 = vsel %vm2689_vm11, %v12990_v42, 0.0  ;;  %v4207_v0 = vsel %vm2689_vm11, %v4204_v39, 0.0  ;;  %4553 = vmatpush1.bf16.msra.mxu1 %v11212_v24  ;;  %v9727_v39 = vcombine.high %v4317_v38, %v4317_v38 }
0x1840   : > { %4195 = vadd.xlane.f32.xlu1 %v4194_v43  ;;  %v4198_v41 = vadd.f32 %v4197_v56, %v12994_v53  ;;  %v4208_v45 = vadd.f32 %v4207_v0, %v4203_v48  ;;  %v11215_v43 = vld [vmem:[%s14747_s9 + $0xe0] ss:$0 sps:$4 sm:$0xff]   ;;  %4554 = vmatprep.subr.bf16.mxu1 %v11551_v18  ;;  %v4237_v0 = vpop.permute.xlu1 %4236 }
0x1841   : > { %v4211_v57 = vsel %vm2689_vm11, %v4206_v7, 0.0  ;;  %v4475_v7 = vsel %vm699_vm1, %v9726_v19, 0  ;;  %v4481_v56 = vsel %vm699_vm1, %v11215_v43, 0 }
0x1842   : > { %4199 = vadd.xlane.f32.xlu0 %v4198_v41  ;;  %v4212_v55 = vadd.f32 %v4211_v57, %v4205_v58 }
0x1843   : > { %4555 = vmatpush1.bf16.msra.mxu1 %v4481_v56 }
0x1844   : > { %4209 = vadd.xlane.f32.xlu1 %v4208_v45  ;;  %10308 = vmatprep.subr.bf16.mxu1 %v11557_v15 }
0x1846   : > { %4213 = vadd.xlane.f32.xlu0 %v4212_v55 }
0x1855   : > { %4248 = vperm.xlu1 %10798, %v12944_v59  }
0x1859   : > { %4252 = vperm.xlu1 %10798, %v12949_v50  }
0x185c   : > { %4240 = vperm.xlu0 %10797, %v12949_v50  }
0x185d   : > { %10799 = vset.pattern.permute.xlu1 %v11556_v25 }
0x185e   : > { %4264 = vperm.xlu1 %10799, %v12944_v59   ;;  %v11203_v59 = vld [vmem:[%s14747_s9 + $0x94] ss:$12 sps:$4 sm:$0xff]  }
0x185f   : > { %4495 = vmatprep.subr.bf16.mxu0 %v11203_v59 }
0x1860   : > { %10800 = vset.pattern.permute.xlu0 %v11553_v47  ;;  %4496 = vmatpush1.bf16.msra.mxu0 %v11201_v8 }
0x1862   : > { %4268 = vperm.xlu1 %10799, %v12949_v50   ;;  %v11207_v50 = vld [vmem:[%s14747_s9 + $0xac] ss:$12 sps:$4 sm:$0xff]  }
0x1863   : > { %4497 = vmatprep.subr.bf16.mxu0 %v11207_v50 }
0x1864   : > { %4498 = vmatpush1.bf16.msra.mxu0 %v11205_v10 }
0x1865   : > { %4499 = vmatprep.subr.bf16.mxu0 %v11211_v40 }
0x1866   : > { %10801 = vset.pattern.permute.xlu1 %v11553_v47 }
0x1868   : > { %4500 = vmatpush1.bf16.msra.mxu0 %v11209_v1 }
0x1869   : > { %9729 = vmatprep.subr.msk.bf16.mxu0 %vm699_vm1, %v9727_v39 }
0x186c   : > { %4502 = vmatpush1.bf16.msra.mxu0 %v4475_v7 }
0x18cd   : > { %v4196_v48 = vpop.xlane.xlu1 %4195 }
0x18ce   : > { %v4201_v41 = vmul.f32 0.0065789474, %v4196_v48 }
0x18cf   : > { %v4200_v57 = vpop.xlane.xlu0 %4199 }
0x18d0   : > { %v4202_v58 = vmul.f32 0.0065789474, %v4200_v57  ;;  %v4217_v55 = vmul.f32 %v4201_v41, %v4201_v41  ;;  %v4223_v36 = vsub.f32 %v12986_v27, %v4201_v41  ;;  %v4224_v33 = vsub.f32 %v12984_v61, %v4201_v41 }
0x18d1   : > { %v4210_v45 = vpop.xlane.xlu1 %4209 }
0x18d2   : > { %v4215_v23 = vmul.f32 0.0065789474, %v4210_v45  ;;  %v4218_v35 = vmul.f32 %v4202_v58, %v4202_v58  ;;  %v4225_v59 = vsub.f32 %v12994_v53, %v4202_v58  ;;  %v4226_v8 = vsub.f32 %v12990_v42, %v4202_v58 }
0x18d3   : > { %v4214_v28 = vpop.xlane.xlu0 %4213 }
0x18d4   : > { %v4219_v60 = vsub.f32 %v4215_v23, %v4217_v55  ;;  %v4216_v63 = vmul.f32 0.0065789474, %v4214_v28 }
0x18d5   : > { %v4249_v44 = vpop.permute.xlu1 %4248 }
0x18d6   : > { %v4221_v2 = vmax.f32 %v4219_v60, 0.0  ;;  %v4220_v37 = vsub.f32 %v4216_v63, %v4218_v35 }
0x18d8   : > { %v4227_v4 = vadd.f32 1e-05, %v4221_v2  ;;  %v4222_v16 = vmax.f32 %v4220_v37, 0.0 }
0x18d9   : > { %v4253_v9 = vpop.permute.xlu1 %4252 }
0x18da   : > { %11309 = vrsqrt.f32 %v4227_v4  ;;  %v4228_v17 = vadd.f32 1e-05, %v4222_v16 }
0x18db   : > { %v4241_v22 = vpop.permute.xlu0 %4240 }
0x18dc   : > { %11311 = vrsqrt.f32 %v4228_v17 }
0x18dd   : > { %v4265_v24 = vpop.permute.xlu1 %4264 }
0x18e1   : > { %v4269_v42 = vpop.permute.xlu1 %4268 }
0x18e4   : > { %v11310_v20 = vpop.eup %11309 }
0x18e5   : > { %v4231_v13 = vmul.f32 %v11310_v20, %v4223_v36  ;;  %v4232_v50 = vmul.f32 %v11310_v20, %v4224_v33 }
0x18e6   : > { %v11312_v10 = vpop.eup %11311 }
0x18e7   : > { %v4243_v40 = vmul.f32 %v4237_v0, %v4231_v13  ;;  %v4244_v1 = vmul.f32 %v4237_v0, %v4232_v50  ;;  %v4233_v38 = vmul.f32 %v11312_v10, %v4225_v59  ;;  %v4234_v39 = vmul.f32 %v11312_v10, %v4226_v8 }
0x18e9   : > { %v4255_v19 = vadd.f32 %v4249_v44, %v4243_v40  ;;  %v4256_v43 = vadd.f32 %v4249_v44, %v4244_v1  ;;  %v4245_v7 = vmul.f32 %v4241_v22, %v4233_v38  ;;  %v4246_v27 = vmul.f32 %v4241_v22, %v4234_v39  ;;  %v13135_v1 = vld [vmem:[%s14749_s11 + $0x80] sm:$0xff] }
0x18eb   : > { %v4271_v56 = vmul.f32 %v4265_v24, %v4255_v19  ;;  %v4272_v61 = vmul.f32 %v4265_v24, %v4256_v43  ;;  %v4257_v48 = vadd.f32 %v4253_v9, %v4245_v7  ;;  %v4258_v41 = vadd.f32 %v4253_v9, %v4246_v27  ;;  %v13145_v24 = vld [vmem:[%s14749_s11 + $0x88] sm:$0xff] }
0x18ec   : > { %vm4259_vm2 = vcmp.ge.f32.partialorder %v4255_v19, 0.0  ;;  %vm4260_vm4 = vcmp.ge.f32.partialorder %v4256_v43, 0.0 }
0x18ed   : > { %vm4261_vm14 = vcmp.ge.f32.partialorder %v4257_v48, 0.0  ;;  %vm4262_vm8 = vcmp.ge.f32.partialorder %v4258_v41, 0.0  ;;  %v4273_v53 = vmul.f32 %v4269_v42, %v4257_v48  ;;  %v4274_v57 = vmul.f32 %v4269_v42, %v4258_v41 }
0x18ee   : > { %v4275_v58 = vsel %vm4259_vm2, %v4255_v19, %v4271_v56  ;;  %v4276_v0 = vsel %vm4260_vm4, %v4256_v43, %v4272_v61 }
0x18ef   : > { %v4277_v45 = vsel %vm4261_vm14, %v4257_v48, %v4273_v53  ;;  %v4278_v55 = vsel %vm4262_vm8, %v4258_v41, %v4274_v57 }
0x18f0   : > { %v4280_v23 = vpack.c.bf16 %v4278_v55, %v4276_v0  ;;  %v4279_v28 = vpack.c.bf16 %v4277_v45, %v4275_v58 }
0x18f2   : > { %9730 = vmatprep.mubr.msk.bf16.mxu0 %vm2689_vm11, %v4280_v23  ;;  %9732 = vmatprep.mubr.msk.bf16.mxu1 %vm2689_vm11, %v4280_v23 }
0x18f3   : > { %4516 = vmatmul.mubr.bf16.vlgmr.msra.gmra.mrb[52].mxu0 %v4279_v28  ;;  %4569 = vmatmul.mubr.bf16.vlgmr.msra.gmra.mrb[112].mxu1 %v4279_v28  ;;  %v11216_v28 = vld [vmem:[%s14748_s10 + $0x58] sm:$0xff]  }
0x18f4   : > { %9731 = vmatprep.mubr.msk.bf16.mxu0 %vm2689_vm11, %v12606_v5  ;;  %9733 = vmatprep.mubr.msk.bf16.mxu1 %vm2689_vm11, %v12606_v5 }
0x18fb   : > { %4526 = vmatmul.mubr.bf16.gmra.mrb[56].mxu0 %v12604_v11  ;;  %4577 = vmatmul.mubr.bf16.gmra.mrb[116].mxu1 %v12604_v11 }
0x18fc   : > { %4703 = vmatprep.mubr.bf16.mxu0 %v11551_v18  ;;  %10320 = vmatprep.mubr.msk.bf16.mxu1 %vm11558_vm13, %v11557_v15 }
0x19c6   : > { %v4517_v60 = vpop.f32.mrb[52].mxu0  ;;  %v4570_v35 = vpop.f32.mrb[112].mxu1 }
0x19c7   : > { %v4519_v63 = vpop.f32.mrb[53].mxu0  ;;  %v4572_v2 = vpop.f32.mrb[113].mxu1 }
0x19c8   : > { %v4521_v37 = vpop.f32.mrb[54].mxu0  ;;  %v4573_v4 = vpop.f32.mrb[114].mxu1  ;;  %v11458_v2 = vld [vmem:[%s14740_s2] ss:$8 sps:$4 sm:$0xff]  }
0x19c9   : > { %v4585_v16 = vpack.c.bf16 %v4521_v37, %v4517_v60  ;;  %v4587_v17 = vpack.c.bf16 %v4573_v4, %v4570_v35  ;;  %v4523_v44 = vpop.f32.mrb[55].mxu0  ;;  %v4575_v9 = vpop.f32.mrb[115].mxu1  ;;  %v11457_v35 = vld [vmem:[%s14740_s2 + $0x4] ss:$8 sps:$4 sm:$0xff]   ;;  %v11459_v37 = vld [vmem:[%s14740_s2 + $0x14] ss:$8 sps:$4 sm:$0xff]  }
0x19ca   : > { %v4586_v5 = vpack.c.bf16 %v4523_v44, %v4519_v63  ;;  %v11460_v4 = vld [vmem:[%s14740_s2 + $0x10] ss:$8 sps:$4 sm:$0xff]   ;;  %v11463_v44 = vld [vmem:[%s14740_s2 + $0x34] ss:$8 sps:$4 sm:$0xff]  }
0x19cb   : > { %10309 = vmatpush3.bf16.msra.mxu1 %v4587_v17  ;;  %4623 = vrot.lane.b32.xlu0 %v4585_v16, %s11560_s30  ;;  %v11464_v9 = vld [vmem:[%s14740_s2 + $0x30] ss:$8 sps:$4 sm:$0xff]  }
0x19cc   : > { %4597 = vrot.lane.b32.xlu1 %v4585_v16, %s11559_s29  ;;  %4671 = vmatprep.subr.bf16.mxu0 %v4586_v5 }
0x19cd   : > { %4672 = vmatpush1.bf16.msra.mxu0 %v4585_v16  ;;  %10310 = vmatprep.subr.bf16.mxu1 %v11557_v15  ;;  %v11461_v16 = vld [vmem:[%s14740_s2 + $0x24] ss:$8 sps:$4 sm:$0xff]  }
0x19ce   : > { %v4527_v11 = vpop.f32.mrb[56].mxu0  ;;  %v4578_v36 = vpop.f32.mrb[116].mxu1 }
0x19cf   : > { %v4580_v33 = vpop.f32.mrb[117].mxu1  ;;  %v4529_v20 = vpop.f32.mrb[57].mxu0 }
0x19d0   : > { %4601 = vrot.lane.b32.xlu1 %v4587_v17, %s11559_s29  ;;  %v4531_v59 = vpop.f32.mrb[58].mxu0  ;;  %v4581_v8 = vpop.f32.mrb[118].mxu1  ;;  %v11468_v33 = vld [vmem:[%s14740_s2 + $0x50] ss:$8 sps:$4 sm:$0xff]  }
0x19d1   : > { %v4588_v13 = vpack.c.bf16 %v4531_v59, %v4527_v11  ;;  %v4590_v50 = vpack.c.bf16 %v4581_v8, %v4578_v36  ;;  %v4533_v10 = vpop.f32.mrb[59].mxu0  ;;  %v4583_v22 = vpop.f32.mrb[119].mxu1  ;;  %v11466_v11 = vld [vmem:[%s14740_s2 + $0x40] ss:$8 sps:$4 sm:$0xff]   ;;  %v11467_v36 = vld [vmem:[%s14740_s2 + $0x54] ss:$8 sps:$4 sm:$0xff]  }
0x19d2   : > { %v4589_v40 = vpack.c.bf16 %v4533_v10, %v4529_v20  ;;  %v11469_v20 = vld [vmem:[%s14740_s2 + $0x64] ss:$8 sps:$4 sm:$0xff]   ;;  %v11470_v59 = vld [vmem:[%s14740_s2 + $0x60] ss:$8 sps:$4 sm:$0xff]   ;;  %v11471_v8 = vld [vmem:[%s14740_s2 + $0x74] ss:$8 sps:$4 sm:$0xff]  }
0x19d3   : > { %10311 = vmatpush3.bf16.msra.mxu1 %v4590_v50  ;;  %v11474_v10 = vld [vmem:[%s14740_s2 + $0x80] ss:$8 sps:$4 sm:$0xff]   ;;  %v11475_v22 = vld [vmem:[%s14740_s2 + $0x94] ss:$8 sps:$4 sm:$0xff]  }
0x19d4   : > { %4599 = vrot.lane.b32.xlu1 %v4586_v5, %s11559_s29  ;;  %4605 = vrot.lane.b32.xlu0 %v4589_v40, %s11559_s29 }
0x19d5   : > { %4673 = vmatprep.subr.bf16.mxu0 %v4589_v40  ;;  %10312 = vmatprep.subr.bf16.mxu1 %v11557_v15 }
0x19d6   : > { %4674 = vmatpush1.bf16.msra.mxu0 %v4588_v13 }
0x19d8   : > { %4625 = vrot.lane.b32.xlu1 %v4586_v5, %s11560_s30  ;;  %4627 = vrot.lane.b32.xlu0 %v4587_v17, %s11560_s30  ;;  %v11462_v17 = vld [vmem:[%s14740_s2 + $0x20] ss:$8 sps:$4 sm:$0xff]   ;;  %v11465_v5 = vld [vmem:[%s14740_s2 + $0x44] ss:$8 sps:$4 sm:$0xff]  }
0x19dc   : > { %4603 = vrot.lane.b32.xlu1 %v4588_v13, %s11559_s29  ;;  %4631 = vrot.lane.b32.xlu0 %v4589_v40, %s11560_s30  ;;  %v11476_v40 = vld [vmem:[%s14740_s2 + $0x90] ss:$8 sps:$4 sm:$0xff]  }
0x19e0   : > { %4607 = vrot.lane.b32.xlu1 %v4590_v50, %s11559_s29  ;;  %4655 = vperm.xlu0 %10800, %v13135_v1  }
0x19e4   : > { %4629 = vrot.lane.b32.xlu1 %v4588_v13, %s11560_s30  ;;  %10802 = vset.pattern.permute.xlu0 %v11551_v18  ;;  %v11472_v13 = vld [vmem:[%s14740_s2 + $0x70] ss:$8 sps:$4 sm:$0xff]  }
0x19e8   : > { %4633 = vrot.lane.b32.xlu1 %v4590_v50, %s11560_s30  ;;  %v11473_v50 = vld [vmem:[%s14740_s2 + $0x84] ss:$8 sps:$4 sm:$0xff]  }
0x19ec   : > { %4660 = vperm.xlu1 %10801, %v13145_v24  }
0x19f0   : > { %10803 = vset.pattern.permute.xlu1 %v11551_v18 }
0x1a3d   : > { %v4624_v19 = vpop.permute.xlu0 %4623 }
0x1a3e   : > { %v4598_v38 = vpop.permute.xlu1 %4597 }
0x1a42   : > { %v4602_v39 = vpop.permute.xlu1 %4601 }
0x1a46   : > { %v4600_v43 = vpop.permute.xlu1 %4599  ;;  %v4606_v56 = vpop.permute.xlu0 %4605 }
0x1a47   : > { %v4609_v7 = vsel %vm14764_vm9, %v4598_v38, %v4600_v43  ;;  %v4610_v27 = vsel %vm14764_vm9, %v4600_v43, %v4602_v39  ;;  %v11478_v39 = vld [vmem:[%s14740_s2 + $0xa0] ss:$8 sps:$4 sm:$0xff]   ;;  %v11480_v43 = vld [vmem:[%s14740_s2 + $0xb0] ss:$8 sps:$4 sm:$0xff]  }
0x1a48   : > { %4675 = vmatprep.subr.bf16.mxu0 %v4609_v7  ;;  %10313 = vmatpush3.bf16.msra.mxu1 %v4610_v27  ;;  %v11481_v7 = vld [vmem:[%s14740_s2 + $0xc4] ss:$8 sps:$4 sm:$0xff]   ;;  %v11482_v27 = vld [vmem:[%s14740_s2 + $0xc0] ss:$8 sps:$4 sm:$0xff]  }
0x1a49   : > { %9736 = vmatpush1.bf16.msk.msra.mxu0 %vm12805_vm15, %v4598_v38  ;;  %10314 = vmatprep.subr.bf16.mxu1 %v11557_v15  ;;  %v11477_v38 = vld [vmem:[%s14740_s2 + $0xa4] ss:$8 sps:$4 sm:$0xff]  }
0x1a4a   : > { %v4626_v61 = vpop.permute.xlu1 %4625  ;;  %v4628_v42 = vpop.permute.xlu0 %4627 }
0x1a4b   : > { %v4635_v53 = vsel %vm14763_vm6, %v4624_v19, %v4626_v61  ;;  %v4636_v55 = vsel %vm14763_vm6, %v4626_v61, %v4628_v42  ;;  %v11484_v61 = vld [vmem:[%s14740_s2 + $0xd0] ss:$8 sps:$4 sm:$0xff]   ;;  %v11487_v42 = vld [vmem:[%s14740_s2 + $0xf4] ss:$8 sps:$4 sm:$0xff]  }
0x1a4e   : > { %v4604_v48 = vpop.permute.xlu1 %4603  ;;  %v4632_v0 = vpop.permute.xlu0 %4631 }
0x1a4f   : > { %v4611_v41 = vsel %vm14764_vm9, %v4604_v48, %v4606_v56 }
0x1a50   : > { %4677 = vmatprep.subr.bf16.mxu0 %v4611_v41  ;;  %v11486_v41 = vld [vmem:[%s14740_s2 + $0xe0] ss:$8 sps:$4 sm:$0xff]  }
0x1a51   : > { %9738 = vmatpush1.bf16.msk.msra.mxu0 %vm12805_vm15, %v4604_v48  ;;  %v11485_v48 = vld [vmem:[%s14740_s2 + $0xe4] ss:$8 sps:$4 sm:$0xff]  }
0x1a52   : > { %v4608_v57 = vpop.permute.xlu1 %4607  ;;  %4679 = vmatprep.subr.bf16.mxu0 %v4635_v53  ;;  %v11488_v53 = vld [vmem:[%s14740_s2 + $0xf0] ss:$8 sps:$4 sm:$0xff]  }
0x1a53   : > { %v4612_v58 = vsel %vm14764_vm9, %v4606_v56, %v4608_v57  ;;  %v11483_v56 = vld [vmem:[%s14740_s2 + $0xd4] ss:$8 sps:$4 sm:$0xff]   ;;  %v11489_v57 = vld [vmem:[%s14740_s2 + $0x104] ss:$8 sps:$4 sm:$0xff]  }
0x1a54   : > { %10315 = vmatpush3.bf16.msra.mxu1 %v4612_v58 }
0x1a55   : > { %9740 = vmatpush1.bf16.msk.msra.mxu0 %vm12813_vm5, %v4624_v19  ;;  %10316 = vmatprep.subr.bf16.mxu1 %v11557_v15  ;;  %v11479_v19 = vld [vmem:[%s14740_s2 + $0xb4] ss:$8 sps:$4 sm:$0xff]  }
0x1a56   : > { %v4630_v45 = vpop.permute.xlu1 %4629 }
0x1a57   : > { %v4637_v23 = vsel %vm14763_vm6, %v4630_v45, %v4632_v0 }
0x1a58   : > { %4681 = vmatprep.subr.bf16.mxu0 %v4637_v23  ;;  %10317 = vmatpush3.bf16.msra.mxu1 %v4636_v55 }
0x1a59   : > { %9742 = vmatpush1.bf16.msk.msra.mxu0 %vm12813_vm5, %v4630_v45  ;;  %10318 = vmatprep.subr.bf16.mxu1 %v11557_v15 }
0x1a5a   : > { %v4634_v60 = vpop.permute.xlu1 %4633  ;;  %4904 = vmatprep.subr.bf16.mxu0 %v11457_v35 }
0x1a5b   : > { %v4638_v63 = vsel %vm14763_vm6, %v4632_v0, %v4634_v60 }
0x1a5c   : > { %9743 = vmatmul.mubr.msk.bf16.vlgmr.msra.gmra.mrb[60].mxu0 %vm3854_vm10, %v11216_v28  ;;  %10319 = vmatpush3.bf16.msra.mxu1 %v4638_v63 }
0x1a5d   : > { %4905 = vmatpush1.bf16.msra.mxu0 %v11458_v2 }
0x1a5e   : > { %4906 = vmatprep.subr.bf16.mxu0 %v11459_v37 }
0x1a5f   : > { %10321 = vmatmul.mubr.msk.bf16.vlgmr.msra.gmra.mrb[120].mxu1 %vm3854_vm10, %v11216_v28  ;;  %v4656_v58 = vpop.permute.xlu0 %4655 }
0x1a60   : > { %5108 = vmatprep.mubr.bf16.mxu1 %v11551_v18 }
0x1a61   : > { %4907 = vmatpush1.bf16.msra.mxu0 %v11460_v4 }
0x1a62   : > { %4908 = vmatprep.subr.bf16.mxu0 %v11461_v16 }
0x1a65   : > { %4909 = vmatpush1.bf16.msra.mxu0 %v11462_v17 }
0x1a66   : > { %4910 = vmatprep.subr.bf16.mxu0 %v11463_v44 }
0x1a69   : > { %4911 = vmatpush1.bf16.msra.mxu0 %v11464_v9 }
0x1a6a   : > { %4912 = vmatprep.subr.bf16.mxu0 %v11465_v5 }
0x1a6b   : > { %v4661_v45 = vpop.permute.xlu1 %4660 }
0x1a6d   : > { %4913 = vmatpush1.bf16.msra.mxu0 %v11466_v11 }
0x1a6e   : > { %4914 = vmatprep.subr.bf16.mxu0 %v11467_v36 }
0x1a71   : > { %4915 = vmatpush1.bf16.msra.mxu0 %v11468_v33 }
0x1a72   : > { %4916 = vmatprep.subr.bf16.mxu0 %v11469_v20 }
0x1a75   : > { %4917 = vmatpush1.bf16.msra.mxu0 %v11470_v59 }
0x1a76   : > { %4918 = vmatprep.subr.bf16.mxu0 %v11471_v8 }
0x1a79   : > { %4919 = vmatpush1.bf16.msra.mxu0 %v11472_v13 }
0x1a7a   : > { %4920 = vmatprep.subr.bf16.mxu0 %v11473_v50 }
0x1a7d   : > { %4921 = vmatpush1.bf16.msra.mxu0 %v11474_v10 }
0x1a7e   : > { %4922 = vmatprep.subr.bf16.mxu0 %v11475_v22 }
0x1a81   : > { %4923 = vmatpush1.bf16.msra.mxu0 %v11476_v40 }
0x1a82   : > { %4924 = vmatprep.subr.bf16.mxu0 %v11477_v38 }
0x1a85   : > { %4925 = vmatpush1.bf16.msra.mxu0 %v11478_v39 }
0x1a86   : > { %4926 = vmatprep.subr.bf16.mxu0 %v11479_v19 }
0x1a89   : > { %4927 = vmatpush1.bf16.msra.mxu0 %v11480_v43 }
0x1a8a   : > { %4928 = vmatprep.subr.bf16.mxu0 %v11481_v7 }
0x1a8d   : > { %4929 = vmatpush1.bf16.msra.mxu0 %v11482_v27 }
0x1a8e   : > { %4930 = vmatprep.subr.bf16.mxu0 %v11483_v56 }
0x1a91   : > { %4931 = vmatpush1.bf16.msra.mxu0 %v11484_v61 }
0x1a92   : > { %4932 = vmatprep.subr.bf16.mxu0 %v11485_v48 }
0x1a95   : > { %4933 = vmatpush1.bf16.msra.mxu0 %v11486_v41 }
0x1a96   : > { %4934 = vmatprep.subr.bf16.mxu0 %v11487_v42 }
0x1a99   : > { %4935 = vmatpush1.bf16.msra.mxu0 %v11488_v53 }
0x1a9a   : > { %4967 = vmatprep.subr.bf16.mxu0 %v11489_v57 }
0x1b2f   : > { %v4705_v0 = vpop.f32.mrb[60].mxu0 }
0x1b30   : > { %v13273_v55 = vadd.f32 %v4705_v0, %v4656_v58  ;;  %v4707_v23 = vpop.f32.mrb[61].mxu0 }
0x1b31   : > { %v13275_v28 = vadd.f32 %v4707_v23, %v4656_v58  ;;  %v4709_v60 = vpop.f32.mrb[62].mxu0 }
0x1b32   : > { %v13277_v35 = vadd.f32 %v4709_v60, %v4661_v45  ;;  %v4711_v63 = vpop.f32.mrb[63].mxu0  ;;  %v4748_v2 = vpop.f32.mrb[120].mxu1  ;;  %v4767_v5 = vmul.f32 %v13273_v55, %v13273_v55 }
0x1b33   : > { %v4755_v37 = vadd.f32 %v13275_v28, %v13273_v55  ;;  %v13281_v4 = vadd.f32 %v4711_v63, %v4661_v45  ;;  %v13283_v16 = vadd.f32 %v4748_v2, %v4656_v58  ;;  %v10322_v17 = vpop.f32.mrb[121].mxu1  ;;  %v4768_v44 = vmul.f32 %v13275_v28, %v13275_v28 }
0x1b34   : > { %v4751_v9 = vpop.f32.mrb[122].mxu1  ;;  %v4770_v38 = vmul.f32 %v13277_v35, %v13277_v35 }
0x1b35   : > { %v4760_v11 = vadd.f32 %v13281_v4, %v13277_v35  ;;  %v4769_v36 = vmul.f32 %v13283_v16, %v13283_v16  ;;  %v13293_v33 = vadd.f32 %v4751_v9, %v4661_v45  ;;  %v10323_v20 = vpop.f32.mrb[123].mxu1  ;;  %v4756_v59 = vsel %vm2105_vm12, %v13283_v16, 0.0 }
0x1b36   : > { %v4757_v8 = vadd.f32 %v4756_v59, %v4755_v37  ;;  %v4773_v10 = vadd.f32 %v4768_v44, %v4767_v5  ;;  %v4771_v39 = vmul.f32 %v13281_v4, %v13281_v4 }
0x1b37   : > { %v4761_v13 = vsel %vm2105_vm12, %v13293_v33, 0.0  ;;  %v4774_v22 = vsel %vm2105_vm12, %v4769_v36, 0.0  ;;  %v4772_v19 = vmul.f32 %v13293_v33, %v13293_v33 }
0x1b38   : > { %v4762_v50 = vadd.f32 %v4761_v13, %v4760_v11  ;;  %4758 = vadd.xlane.f32.xlu1 %v4757_v8  ;;  %v4775_v40 = vadd.f32 %v4774_v22, %v4773_v10  ;;  %v4778_v43 = vadd.f32 %v4771_v39, %v4770_v38 }
0x1b39   : > { %v4779_v7 = vsel %vm2105_vm12, %v4772_v19, 0.0 }
0x1b3a   : > { %4763 = vadd.xlane.f32.xlu0 %v4762_v50  ;;  %v4780_v27 = vadd.f32 %v4779_v7, %v4778_v43 }
0x1b3e   : > { %4776 = vadd.xlane.f32.xlu0 %v4775_v40 }
0x1b49   : > { %4812 = vperm.xlu1 %10803, %v13145_v24  }
0x1b4d   : > { %10804 = vset.pattern.permute.xlu1 %v11555_v14 }
0x1b4e   : > { %4822 = vperm.xlu1 %10804, %v13135_v1  }
0x1b52   : > { %4826 = vperm.xlu1 %10804, %v13145_v24  }
0x1b54   : > { %4808 = vperm.xlu0 %10802, %v13135_v1  }
0x1b56   : > { %10805 = vset.pattern.permute.xlu1 %v11556_v25 }
0x1b57   : > { %4842 = vperm.xlu1 %10805, %v13135_v1  }
0x1b58   : > { %10806 = vset.pattern.permute.xlu0 %v11552_v51 }
0x1b7b   : > { %4781 = vadd.xlane.f32.xlu1 %v4780_v27 }
0x1b8c   : > { %4846 = vperm.xlu1 %10805, %v13145_v24  }
0x1b90   : > { %10807 = vset.pattern.permute.xlu1 %v11552_v51 }
0x1bc5   : > { %v4759_v56 = vpop.xlane.xlu1 %4758 }
0x1bc6   : > { %v4765_v48 = vmul.f32 0.0032051282, %v4759_v56 }
0x1bc7   : > { %v4764_v1 = vpop.xlane.xlu0 %4763 }
0x1bc8   : > { %v4785_v53 = vmul.f32 %v4765_v48, %v4765_v48  ;;  %v4766_v63 = vmul.f32 0.0032051282, %v4764_v1  ;;  %v4791_v5 = vsub.f32 %v13273_v55, %v4765_v48  ;;  %v4792_v36 = vsub.f32 %v13275_v28, %v4765_v48 }
0x1bc9   : > { %v4813_v41 = vpop.permute.xlu1 %4812  ;;  %v4793_v8 = vsub.f32 %v13283_v16, %v4765_v48 }
0x1bca   : > { %v4786_v37 = vmul.f32 %v4766_v63, %v4766_v63  ;;  %v4794_v39 = vsub.f32 %v13277_v35, %v4766_v63  ;;  %v4795_v19 = vsub.f32 %v13281_v4, %v4766_v63  ;;  %v4796_v55 = vsub.f32 %v13293_v33, %v4766_v63 }
0x1bcb   : > { %v4777_v61 = vpop.xlane.xlu0 %4776 }
0x1bcc   : > { %v4783_v42 = vmul.f32 0.0032051282, %v4777_v61 }
0x1bcd   : > { %v4823_v58 = vpop.permute.xlu1 %4822 }
0x1bce   : > { %v4787_v57 = vsub.f32 %v4783_v42, %v4785_v53 }
0x1bd0   : > { %v4789_v0 = vmax.f32 %v4787_v57, 0.0 }
0x1bd1   : > { %v4827_v45 = vpop.permute.xlu1 %4826 }
0x1bd2   : > { %v4797_v23 = vadd.f32 1e-05, %v4789_v0 }
0x1bd3   : > { %v4809_v59 = vpop.permute.xlu0 %4808 }
0x1bd4   : > { %11313 = vrsqrt.f32 %v4797_v23 }
0x1bd6   : > { %v4843_v60 = vpop.permute.xlu1 %4842 }
0x1bde   : > { %v11314_v9 = vpop.eup %11313 }
0x1bdf   : > { %v4801_v20 = vmul.f32 %v11314_v9, %v4791_v5  ;;  %v4802_v13 = vmul.f32 %v11314_v9, %v4792_v36  ;;  %v4803_v50 = vmul.f32 %v11314_v9, %v4793_v8 }
0x1be1   : > { %v4815_v10 = vmul.f32 %v4809_v59, %v4801_v20  ;;  %v4816_v22 = vmul.f32 %v4809_v59, %v4802_v13  ;;  %v4817_v40 = vmul.f32 %v4809_v59, %v4803_v50 }
0x1be3   : > { %v4829_v38 = vadd.f32 %v4823_v58, %v4815_v10  ;;  %v4830_v7 = vadd.f32 %v4823_v58, %v4816_v22  ;;  %v4831_v56 = vadd.f32 %v4823_v58, %v4817_v40 }
0x1be5   : > { %v4849_v61 = vmul.f32 %v4843_v60, %v4829_v38  ;;  %vm4835_vm8 = vcmp.ge.f32.partialorder %v4829_v38, 0.0  ;;  %v4850_v53 = vmul.f32 %v4843_v60, %v4830_v7  ;;  %vm4836_vm14 = vcmp.ge.f32.partialorder %v4830_v7, 0.0 }
0x1be6   : > { %v4851_v23 = vmul.f32 %v4843_v60, %v4831_v56  ;;  %vm4837_vm9 = vcmp.ge.f32.partialorder %v4831_v56, 0.0 }
0x1be8   : > { %v4857_v5 = vsel %vm4837_vm9, %v4831_v56, %v4851_v23  ;;  %v13394_v56 = vld [vmem:[%s14749_s11 + $0x90] sm:$0xff] }
0x1be9   : > { %v4863_v59 = vadd.f32 %v4857_v5, %v12450_v30  ;;  %v11492_v30 = vld [vmem:[%s14740_s2 + $0x110] ss:$8 sps:$4 sm:$0xff]  }
0x1bea   : > { %v11501_v5 = vld [vmem:[%s14741_s3 + $0x10] sm:$0xff]  }
0x1c08   : > { %v4782_v2 = vpop.xlane.xlu1 %4781 }
0x1c09   : > { %v4784_v24 = vmul.f32 0.0032051282, %v4782_v2  ;;  %v4855_v2 = vsel %vm4835_vm8, %v4829_v38, %v4849_v61 }
0x1c0b   : > { %v4788_v17 = vsub.f32 %v4784_v24, %v4786_v37  ;;  %v4856_v37 = vsel %vm4836_vm14, %v4830_v7, %v4850_v53  ;;  %v11497_v7 = vld [vmem:[%s14742_s4 + $0x10] sm:$0xff]   ;;  %vm5173_vm14 = vcmask 154624  }
0x1c0c   : > { %v4847_v4 = vpop.permute.xlu1 %4846 }
0x1c0d   : > { %v4790_v44 = vmax.f32 %v4788_v17, 0.0 }
0x1c0f   : > { %v4798_v11 = vadd.f32 1e-05, %v4790_v44 }
0x1c11   : > { %11315 = vrsqrt.f32 %v4798_v11 }
0x1c1b   : > { %v11316_v43 = vpop.eup %11315 }
0x1c1c   : > { %v4804_v28 = vmul.f32 %v11316_v43, %v4794_v39  ;;  %v4805_v27 = vmul.f32 %v11316_v43, %v4795_v19  ;;  %v4806_v1 = vmul.f32 %v11316_v43, %v4796_v55  ;;  %v11496_v55 = vld [vmem:[%s14742_s4 + $0x8] sm:$0xff]  }
0x1c1e   : > { %v4818_v16 = vmul.f32 %v4813_v41, %v4804_v28  ;;  %v4819_v48 = vmul.f32 %v4813_v41, %v4805_v27  ;;  %v4820_v42 = vmul.f32 %v4813_v41, %v4806_v1  ;;  %v4861_v41 = vadd.f32 %v4855_v2, %v12448_v29  ;;  %v11498_v28 = vld [vmem:[%s14742_s4 + $0x18] sm:$0xff]  }
0x1c1f   : > { %v13389_v1 = vld [vmem:[%s14749_s11 + $0x98] sm:$0xff] }
0x1c20   : > { %v4832_v57 = vadd.f32 %v4827_v45, %v4818_v16  ;;  %v4833_v0 = vadd.f32 %v4827_v45, %v4819_v48  ;;  %v4834_v35 = vadd.f32 %v4827_v45, %v4820_v42  ;;  %v4862_v45 = vadd.f32 %v4856_v37, %v12456_v34  ;;  %v11493_v34 = vld [vmem:[%s14740_s2 + $0x124] ss:$8 sps:$4 sm:$0xff]  }
0x1c22   : > { %vm4838_vm2 = vcmp.ge.f32.partialorder %v4832_v57, 0.0  ;;  %vm4839_vm4 = vcmp.ge.f32.partialorder %v4833_v0, 0.0  ;;  %vm4840_vm6 = vcmp.ge.f32.partialorder %v4834_v35, 0.0  ;;  %v4852_v33 = vmul.f32 %v4847_v4, %v4832_v57 }
0x1c23   : > { %v4853_v63 = vmul.f32 %v4847_v4, %v4833_v0  ;;  %v4854_v58 = vmul.f32 %v4847_v4, %v4834_v35 }
0x1c24   : > { %v4858_v24 = vsel %vm4838_vm2, %v4832_v57, %v4852_v33 }
0x1c25   : > { %v4859_v17 = vsel %vm4839_vm4, %v4833_v0, %v4853_v63  ;;  %v4860_v44 = vsel %vm4840_vm6, %v4834_v35, %v4854_v58  ;;  %v4864_v9 = vadd.f32 %v4858_v24, %v12452_v31  ;;  %v11490_v31 = vld [vmem:[%s14740_s2 + $0x100] ss:$8 sps:$4 sm:$0xff]   ;;  %vm14769_vm6 = vcmask 441344  }
0x1c26   : > { %v4865_v60 = vadd.f32 %v4859_v17, %v12458_v62  ;;  %v4866_v36 = vadd.f32 %v4860_v44, %v12454_v32  ;;  %v11491_v32 = vld [vmem:[%s14740_s2 + $0x114] ss:$8 sps:$4 sm:$0xff]   ;;  %v11494_v62 = vld [vmem:[%s14740_s2 + $0x120] ss:$8 sps:$4 sm:$0xff]  }
0x1c27   : > { %v4867_v11 = vpack.c.bf16 %v4864_v9, %v4861_v41  ;;  %v11217_v41 = vld [vmem:[%s14748_s10 + $0x60] sm:$0xff]  }
0x1c28   : > { %v4868_v20 = vpack.c.bf16 %v4865_v60, %v4862_v45  ;;  %v4869_v29 = vpack.c.bf16 %v4866_v36, %v4863_v59  ;;  %v11499_v9 = vld [vmem:[%s14741_s3] sm:$0xff]   ;;  %v11218_v45 = vld [vmem:[%s14748_s10 + $0x68] sm:$0xff]   ;;  %v11502_v36 = vld [vmem:[%s14741_s3 + $0x18] sm:$0xff]  }
0x1c29   : > { %4873 = vrot.lane.b32.xlu0 %v4867_v11, %s11547_s25  ;;  %v11500_v60 = vld [vmem:[%s14741_s3 + $0x8] sm:$0xff]   ;;  %v11220_v59 = vld [vmem:[%s14748_s10 + $0x78] sm:$0xff]  }
0x1c2a   : > { %4875 = vrot.lane.b32.xlu1 %v4868_v20, %s11547_s25  ;;  %4936 = vmatprep.mubr.bf16.mxu0 %v4868_v20 }
0x1c2b   : > { %4937 = vmatmul.mubr.bf16.vlgmr.msra.gmra.mrb[64].mxu0 %v4867_v11 }
0x1c2c   : > { %4968 = vmatpush1.bf16.msra.mxu0 %v11490_v31  ;;  %v11505_v31 = vld [vmem:[%s14741_s3 + $0x30] sm:$0xff]  }
0x1c2d   : > { %4889 = vrot.lane.b32.xlu0 %v4869_v29, %s11549_s16  ;;  %4969 = vmatprep.subr.bf16.mxu0 %v11491_v32  ;;  %v11506_v32 = vld [vmem:[%s14741_s3 + $0x38] sm:$0xff]  }
0x1c2e   : > { %4877 = vrot.lane.b32.xlu1 %v4869_v29, %s11547_s25 }
0x1c30   : > { %4970 = vmatpush1.bf16.msra.mxu0 %v11492_v30  ;;  %v11507_v30 = vld [vmem:[%s14741_s3 + $0x40] sm:$0xff]  }
0x1c31   : > { %4971 = vmatprep.subr.bf16.mxu0 %v11493_v34  ;;  %5215 = vperm.xlu0 %10806, %v13394_v56  }
0x1c32   : > { %4887 = vrot.lane.b32.xlu1 %v4868_v20, %s11549_s16  ;;  %v11503_v20 = vld [vmem:[%s14741_s3 + $0x20] sm:$0xff]  }
0x1c34   : > { %4972 = vmatpush1.bf16.msra.mxu0 %v11494_v62 }
0x1c35   : > { %9745 = vmatprep.subr.msk.bf16.mxu0 %vm699_vm1, %v12488_v46  ;;  %10809 = vset.pattern.permute.xlu0 %v11553_v47 }
0x1c36   : > { %4885 = vrot.lane.b32.xlu1 %v4867_v11, %s11549_s16  ;;  %v11219_v11 = vld [vmem:[%s14748_s10 + $0x70] sm:$0xff]  }
0x1c38   : > { %4974 = vmatpush1.bf16.msra.mxu0 %v12494_v52  ;;  %v11495_v52 = vld [vmem:[%s14742_s4] sm:$0xff]  }
0x1c39   : > { %10334 = vmatprep.subr.bf16.mxu0 %v11557_v15 }
0x1c3a   : > { %5219 = vperm.xlu1 %10807, %v13389_v1  }
0x1c3e   : > { %10808 = vset.pattern.permute.xlu1 %v11553_v47 }
0x1c9b   : > { %v4874_v13 = vpop.permute.xlu0 %4873 }
0x1c9c   : > { %v4876_v8 = vpop.permute.xlu1 %4875 }
0x1c9d   : > { %v4879_v22 = vsel %vm607_vm0, %v4874_v13, %v4876_v8 }
0x1c9f   : > { %v4890_v40 = vpop.permute.xlu0 %4889 }
0x1ca0   : > { %v4878_v50 = vpop.permute.xlu1 %4877  ;;  %v4896_v27 = vsel %vm14769_vm6, %v4890_v40, 0 }
0x1ca1   : > { %v4880_v10 = vsel %vm607_vm0, %v4876_v8, %v4878_v50  ;;  %v4884_v43 = vsel %vm2267_vm7, %v4878_v50, 0 }
0x1ca2   : > { %4946 = vmatprep.mubr.bf16.mxu0 %v4880_v10 }
0x1ca3   : > { %4947 = vmatmul.mubr.bf16.gmra.mrb[68].mxu0 %v4879_v22 }
0x1ca4   : > { %v4888_v38 = vpop.permute.xlu1 %4887 }
0x1ca5   : > { %v4892_v39 = vsel %vm629_vm3, %v4888_v38, %v4890_v40 }
0x1ca6   : > { %4956 = vmatprep.mubr.bf16.mxu0 %v4892_v39 }
0x1ca8   : > { %v4886_v46 = vpop.permute.xlu1 %4885 }
0x1ca9   : > { %v4891_v19 = vsel %vm629_vm3, %v4886_v46, %v4888_v38 }
0x1cab   : > { %4957 = vmatmul.mubr.bf16.gmra.mrb[72].mxu0 %v4891_v19 }
0x1cac   : > { %4999 = vmatprep.mubr.bf16.mxu0 %v11551_v18 }
0x1cb3   : > { %9746 = vmatmul.mubr.msk.bf16.vlgmr.msra.gmra.mrb[64].mxu0 %vm2105_vm12, %v4869_v29  ;;  %v11504_v29 = vld [vmem:[%s14741_s3 + $0x28] sm:$0xff]  }
0x1cb4   : > { %5009 = vmatprep.mubr.bf16.mxu0 %v11551_v18  ;;  %10335 = vmatpush3.bf16.msra.mxu0 %v11495_v52 }
0x1cb5   : > { %10336 = vmatprep.subr.bf16.mxu0 %v11557_v15 }
0x1cb8   : > { %10337 = vmatpush3.bf16.msra.mxu0 %v11496_v55 }
0x1cb9   : > { %10338 = vmatprep.subr.bf16.mxu0 %v11557_v15 }
0x1cbb   : > { %9747 = vmatmul.mubr.msk.bf16.gmra.mrb[68].mxu0 %vm2105_vm12, %v4884_v43 }
0x1cbc   : > { %5019 = vmatprep.mubr.bf16.mxu0 %v11551_v18  ;;  %10339 = vmatpush3.bf16.msra.mxu0 %v11497_v7 }
0x1cbd   : > { %10340 = vmatprep.subr.bf16.mxu0 %v11557_v15 }
0x1cc0   : > { %10341 = vmatpush3.bf16.msra.mxu0 %v11498_v28  ;;  %v5220_v28 = vpop.permute.xlu1 %5219 }
0x1cc1   : > { %10342 = vmatprep.subr.bf16.mxu0 %v11557_v15 }
0x1cc3   : > { %9748 = vmatmul.mubr.msk.bf16.gmra.mrb[72].mxu0 %vm2105_vm12, %v4896_v27  ;;  %vm14770_vm12 = vcmask 392192   ;;  %v5216_v27 = vpop.permute.xlu0 %5215 }
0x1cc4   : > { %10343 = vmatpush3.bf16.msra.mxu0 %v12686_v3  ;;  %10344 = vmatprep.mubr.msk.bf16.mxu0 %vm11558_vm13, %v11557_v15  ;;  %vm14771_vm7 = vmmov %vm14770_vm12 }
0x1cc5   : > { %10382 = vmatprep.subr.bf16.mxu0 %v11557_v15  ;;  %vm14772_vm9 = vmmov %vm14771_vm7 }
0x1cc6   : > { %vm14773_vm8 = vmmov %vm14771_vm7 }
0x1d86   : > { %v5001_v61 = vpop.f32.mrb[64].mxu0 }
0x1d87   : > { %v5003_v16 = vpop.f32.mrb[65].mxu0 }
0x1d88   : > { %v5005_v48 = vpop.f32.mrb[66].mxu0 }
0x1d89   : > { %v5038_v42 = vpack.c.bf16 %v5005_v48, %v5001_v61  ;;  %v5007_v53 = vpop.f32.mrb[67].mxu0 }
0x1d8a   : > { %v5039_v57 = vpack.c.bf16 %v5007_v53, %v5003_v16 }
0x1d8c   : > { %5076 = vmatprep.subr.bf16.mxu1 %v5039_v57 }
0x1d8d   : > { %5077 = vmatpush1.bf16.msra.mxu1 %v5038_v42 }
0x1d8e   : > { %v5011_v0 = vpop.f32.mrb[68].mxu0 }
0x1d8f   : > { %v5013_v35 = vpop.f32.mrb[69].mxu0 }
0x1d90   : > { %v5015_v23 = vpop.f32.mrb[70].mxu0 }
0x1d91   : > { %v5040_v4 = vpack.c.bf16 %v5015_v23, %v5011_v0  ;;  %v5017_v2 = vpop.f32.mrb[71].mxu0 }
0x1d92   : > { %v5041_v33 = vpack.c.bf16 %v5017_v2, %v5013_v35 }
0x1d94   : > { %5078 = vmatprep.subr.bf16.mxu1 %v5041_v33 }
0x1d95   : > { %5079 = vmatpush1.bf16.msra.mxu1 %v5040_v4 }
0x1d96   : > { %v5021_v63 = vpop.f32.mrb[72].mxu0 }
0x1d97   : > { %v5023_v58 = vpop.f32.mrb[73].mxu0 }
0x1d98   : > { %v5025_v37 = vpop.f32.mrb[74].mxu0 }
0x1d99   : > { %v5042_v24 = vpack.c.bf16 %v5025_v37, %v5021_v63  ;;  %v5027_v17 = vpop.f32.mrb[75].mxu0 }
0x1d9a   : > { %v5043_v44 = vpack.c.bf16 %v5027_v17, %v5023_v58 }
0x1d9c   : > { %5080 = vmatprep.subr.bf16.mxu1 %v5043_v44 }
0x1d9d   : > { %5081 = vmatpush1.bf16.msra.mxu1 %v5042_v24 }
0x1d9e   : > { %5367 = vmatprep.subr.bf16.mxu1 %v11551_v18 }
0x1da0   : > { %9753 = vmatmul.mubr.msk.bf16.vlgmr.msra.gmra.mrb[124].mxu1 %vm14770_vm12, %v11217_v41 }
0x1da1   : > { %5118 = vmatprep.mubr.bf16.mxu1 %v11551_v18  ;;  %5368 = vmatpush1.bf16.msra.mxu1 %v11499_v9 }
0x1da2   : > { %5369 = vmatprep.subr.bf16.mxu1 %v11551_v18 }
0x1da5   : > { %5370 = vmatpush1.bf16.msra.mxu1 %v11500_v60 }
0x1da6   : > { %5371 = vmatprep.subr.bf16.mxu1 %v11551_v18 }
0x1da8   : > { %9754 = vmatmul.mubr.msk.bf16.gmra.mrb[128].mxu1 %vm14771_vm7, %v11218_v45  ;;  %vm14774_vm7 = vcmask 187392  }
0x1da9   : > { %5128 = vmatprep.mubr.bf16.mxu1 %v11551_v18  ;;  %5372 = vmatpush1.bf16.msra.mxu1 %v11501_v5 }
0x1daa   : > { %5373 = vmatprep.subr.bf16.mxu1 %v11551_v18 }
0x1dad   : > { %5374 = vmatpush1.bf16.msra.mxu1 %v11502_v36 }
0x1dae   : > { %5375 = vmatprep.subr.bf16.mxu1 %v11551_v18 }
0x1db0   : > { %9755 = vmatmul.mubr.msk.bf16.gmra.mrb[132].mxu1 %vm14772_vm9, %v11219_v11  ;;  %vm14775_vm9 = vcmask 179200  }
0x1db1   : > { %5138 = vmatprep.mubr.bf16.mxu1 %v11551_v18  ;;  %5376 = vmatpush1.bf16.msra.mxu1 %v11503_v20 }
0x1db2   : > { %5377 = vmatprep.subr.bf16.mxu1 %v11551_v18 }
0x1db5   : > { %5378 = vmatpush1.bf16.msra.mxu1 %v11504_v29 }
0x1db6   : > { %5379 = vmatprep.subr.bf16.mxu1 %v11551_v18 }
0x1db8   : > { %9756 = vmatmul.mubr.msk.bf16.gmra.mrb[136].mxu1 %vm14773_vm8, %v11220_v59 }
0x1db9   : > { %5380 = vmatpush1.bf16.msra.mxu1 %v11505_v31 }
0x1dba   : > { %5381 = vmatprep.subr.bf16.mxu1 %v11551_v18 }
0x1dbd   : > { %5382 = vmatpush1.bf16.msra.mxu1 %v11506_v32 }
0x1dbe   : > { %5383 = vmatprep.subr.bf16.mxu1 %v11551_v18 }
0x1dc1   : > { %5384 = vmatpush1.bf16.msra.mxu1 %v11507_v30 }
0x1dc2   : > { %5385 = vmatprep.subr.bf16.mxu1 %v11551_v18 }
0x1dc5   : > { %5386 = vmatpush1.bf16.msra.mxu1 %v12597_v6 }
0x1dc6   : > { %10324 = vmatprep.subr.bf16.mxu1 %v11557_v15 }
0x1e73   : > { %v5110_v34 = vpop.f32.mrb[124].mxu1 }
0x1e74   : > { %v5112_v62 = vpop.f32.mrb[125].mxu1 }
0x1e75   : > { %v5114_v8 = vpop.f32.mrb[126].mxu1 }
0x1e76   : > { %v5116_v13 = vpop.f32.mrb[127].mxu1 }
0x1e7b   : > { %v5120_v50 = vpop.f32.mrb[128].mxu1 }
0x1e7c   : > { %5165 = vrot.lane.b32.xlu1 %v5120_v50, %s11561_s19  ;;  %v5122_v10 = vpop.f32.mrb[129].mxu1 }
0x1e7d   : > { %5167 = vrot.lane.b32.xlu0 %v5122_v10, %s11561_s19  ;;  %v5124_v22 = vpop.f32.mrb[130].mxu1 }
0x1e7e   : > { %v5126_v40 = vpop.f32.mrb[131].mxu1 }
0x1e80   : > { %5169 = vrot.lane.b32.xlu1 %v5124_v22, %s11561_s19 }
0x1e81   : > { %5171 = vrot.lane.b32.xlu0 %v5126_v40, %s11561_s19 }
0x1e83   : > { %v5130_v38 = vpop.f32.mrb[132].mxu1 }
0x1e84   : > { %5202 = vperm.xlu1 %10808, %v13394_v56   ;;  %v13459_v39 = vpop.f32.mrb[133].mxu1 }
0x1e85   : > { %5207 = vperm.xlu0 %10809, %v13389_v1   ;;  %v5134_v46 = vpop.f32.mrb[134].mxu1 }
0x1e86   : > { %v13462_v19 = vpop.f32.mrb[135].mxu1 }
0x1e88   : > { %5157 = vrot.lane.b32.xlu1 %v5110_v34, %s11561_s19 }
0x1e89   : > { %5161 = vrot.lane.b32.xlu0 %v5114_v8, %s11561_s19  ;;  %10810 = vset.pattern.permute.xlu1 %v11551_v18 }
0x1e8a   : > { %10811 = vset.pattern.permute.xlu0 %v11551_v18 }
0x1e8b   : > { %v5140_v52 = vpop.f32.mrb[136].mxu1 }
0x1e8c   : > { %5159 = vrot.lane.b32.xlu1 %v5112_v62, %s11561_s19  ;;  %v5142_v55 = vpop.f32.mrb[137].mxu1 }
0x1e8d   : > { %v5144_v43 = vpop.f32.mrb[138].mxu1 }
0x1e8e   : > { %v5146_v7 = vpop.f32.mrb[139].mxu1 }
0x1e90   : > { %5163 = vrot.lane.b32.xlu1 %v5116_v13, %s11561_s19  ;;  %s11563_s19 = smov 4  }
0x1e94   : > { %5297 = vperm.xlu1 %10810, %v13394_v56  }
0x1e98   : > { %10812 = vset.pattern.permute.xlu1 %v11555_v14 }
0x1eee   : > { %v5166_v61 = vpop.permute.xlu1 %5165 }
0x1eef   : > { %v5188_v16 = vsel %vm5173_vm14, 0.0, %v5166_v61  ;;  %v5168_v48 = vpop.permute.xlu0 %5167 }
0x1ef0   : > { %v5194_v42 = vadd.f32 %v5188_v16, %v5140_v52  ;;  %v5176_v53 = vsel %vm5173_vm14, %v5166_v61, %v5168_v48 }
0x1ef1   : > { %v5195_v57 = vadd.f32 %v5176_v53, %v5142_v55 }
0x1ef2   : > { %v5222_v0 = vadd.f32 %v5216_v27, %v5194_v42  ;;  %v5170_v35 = vpop.permute.xlu1 %5169 }
0x1ef3   : > { %v5223_v23 = vadd.f32 %v5216_v27, %v5195_v57  ;;  %v5189_v4 = vsel %vm5173_vm14, 0.0, %v5170_v35  ;;  %v5172_v2 = vpop.permute.xlu0 %5171 }
0x1ef4   : > { %v9757_v33 = vmul.f32 -1.442695, %v5222_v0  ;;  %v5196_v63 = vadd.f32 %v5189_v4, %v5144_v43  ;;  %v5177_v58 = vsel %vm5173_vm14, %v5170_v35, %v5172_v2 }
0x1ef5   : > { %v9758_v37 = vmul.f32 -1.442695, %v5223_v23  ;;  %v5197_v24 = vadd.f32 %v5177_v58, %v5146_v7 }
0x1ef6   : > { %11317 = vpow2.f32 %v9757_v33  ;;  %v5224_v17 = vadd.f32 %v5220_v28, %v5196_v63 }
0x1ef7   : > { %11319 = vpow2.f32 %v9758_v37  ;;  %v5225_v44 = vadd.f32 %v5220_v28, %v5197_v24 }
0x1ef8   : > { %v9759_v41 = vmul.f32 -1.442695, %v5224_v17 }
0x1ef9   : > { %v9760_v9 = vmul.f32 -1.442695, %v5225_v44 }
0x1efa   : > { %11321 = vpow2.f32 %v9759_v41 }
0x1efb   : > { %11323 = vpow2.f32 %v9760_v9 }
0x1f00   : > { %v11318_v45 = vpop.eup %11317 }
0x1f01   : > { %v11320_v60 = vpop.eup %11319  ;;  %v5238_v5 = vadd.f32 1.0, %v11318_v45 }
0x1f02   : > { %v5239_v11 = vadd.f32 1.0, %v11320_v60 }
0x1f03   : > { %11325 = vrcp.f32 %v5238_v5  ;;  %v5203_v36 = vpop.permute.xlu1 %5202 }
0x1f04   : > { %v11322_v20 = vpop.eup %11321  ;;  %v5208_v59 = vpop.permute.xlu0 %5207  ;;  %11327 = vrcp.f32 %v5239_v11 }
0x1f05   : > { %v11324_v29 = vpop.eup %11323  ;;  %v5240_v31 = vadd.f32 1.0, %v11322_v20 }
0x1f06   : > { %v5241_v32 = vadd.f32 1.0, %v11324_v29 }
0x1f07   : > { %11329 = vrcp.f32 %v5240_v31  ;;  %v5158_v30 = vpop.permute.xlu1 %5157 }
0x1f08   : > { %v5186_v34 = vsel %vm5173_vm14, 0.0, %v5158_v30  ;;  %v5162_v62 = vpop.permute.xlu0 %5161  ;;  %11331 = vrcp.f32 %v5241_v32 }
0x1f09   : > { %v5190_v8 = vadd.f32 %v5186_v34, %v5130_v38  ;;  %v5187_v13 = vsel %vm5173_vm14, 0.0, %v5162_v62 }
0x1f0a   : > { %v5192_v22 = vadd.f32 %v5187_v13, %v5134_v46 }
0x1f0b   : > { %v5210_v50 = vadd.f32 %v5203_v36, %v5190_v8  ;;  %v5160_v10 = vpop.permute.xlu1 %5159 }
0x1f0c   : > { %v5174_v40 = vsel %vm5173_vm14, %v5158_v30, %v5160_v10  ;;  %v5212_v61 = vadd.f32 %v5208_v59, %v5192_v22 }
0x1f0d   : > { %v11326_v52 = vpop.eup %11325  ;;  %v5191_v55 = vadd.f32 %v5174_v40, %v13459_v39 }
0x1f0e   : > { %v5250_v43 = vmul.f32 %v11326_v52, %v5210_v50  ;;  %v11328_v27 = vpop.eup %11327 }
0x1f0f   : > { %v5211_v7 = vadd.f32 %v5203_v36, %v5191_v55  ;;  %v5164_v28 = vpop.permute.xlu1 %5163 }
0x1f10   : > { %v5175_v16 = vsel %vm5173_vm14, %v5162_v62, %v5164_v28  ;;  %v5264_v2 = vmul.f32 %v5250_v43, %v5250_v43  ;;  %vm14776_vm14 = vcmask 588800  }
0x1f11   : > { %v11330_v48 = vpop.eup %11329  ;;  %v5251_v38 = vmul.f32 %v11328_v27, %v5211_v7  ;;  %v5193_v42 = vadd.f32 %v5175_v16, %v13462_v19 }
0x1f12   : > { %v5252_v53 = vmul.f32 %v11330_v48, %v5212_v61  ;;  %v11332_v35 = vpop.eup %11331 }
0x1f13   : > { %v5213_v57 = vadd.f32 %v5208_v59, %v5193_v42  ;;  %v5254_v46 = vsel %vm2689_vm11, %v5251_v38, 0.0  ;;  %v5265_v0 = vmul.f32 %v5251_v38, %v5251_v38  ;;  %v5298_v44 = vpop.permute.xlu1 %5297 }
0x1f14   : > { %v5255_v23 = vadd.f32 %v5254_v46, %v5250_v43  ;;  %v5266_v19 = vmul.f32 %v5252_v53, %v5252_v53 }
0x1f15   : > { %v5253_v4 = vmul.f32 %v11332_v35, %v5213_v57  ;;  %v5268_v39 = vsel %vm2689_vm11, %v5265_v0, 0.0 }
0x1f16   : > { %5256 = vadd.xlane.f32.xlu0 %v5255_v23  ;;  %v5269_v58 = vadd.f32 %v5268_v39, %v5264_v2 }
0x1f17   : > { %v5258_v33 = vsel %vm2689_vm11, %v5253_v4, 0.0  ;;  %v5267_v63 = vmul.f32 %v5253_v4, %v5253_v4 }
0x1f18   : > { %v5259_v37 = vadd.f32 %v5258_v33, %v5252_v53 }
0x1f19   : > { %v5272_v24 = vsel %vm2689_vm11, %v5267_v63, 0.0 }
0x1f1a   : > { %5270 = vadd.xlane.f32.xlu0 %v5269_v58  ;;  %5260 = vadd.xlane.f32.xlu1 %v5259_v37  ;;  %v5273_v17 = vadd.f32 %v5272_v24, %v5266_v19 }
0x1f1e   : > { %5274 = vadd.xlane.f32.xlu0 %v5273_v17 }
0x1f2b   : > { %5309 = vperm.xlu1 %10812, %v13394_v56  }
0x1f2f   : > { %5313 = vperm.xlu1 %10812, %v13389_v1  }
0x1f33   : > { %10813 = vset.pattern.permute.xlu1 %v11556_v25 }
0x1f34   : > { %5325 = vperm.xlu1 %10813, %v13394_v56   ;;  %5301 = vperm.xlu0 %10811, %v13389_v1  }
0x1f38   : > { %5329 = vperm.xlu1 %10813, %v13389_v1   ;;  %10814 = vset.pattern.permute.xlu0 %v11553_v47 }
0x1f3c   : > { %10815 = vset.pattern.permute.xlu1 %v11553_v47 }
0x1fa3   : > { %v5257_v41 = vpop.xlane.xlu0 %5256 }
0x1fa4   : > { %v5262_v9 = vmul.f32 0.0065789474, %v5257_v41 }
0x1fa6   : > { %v5278_v5 = vmul.f32 %v5262_v9, %v5262_v9  ;;  %v5284_v8 = vsub.f32 %v5250_v43, %v5262_v9  ;;  %v5285_v13 = vsub.f32 %v5251_v38, %v5262_v9 }
0x1fa7   : > { %v5271_v45 = vpop.xlane.xlu0 %5270  ;;  %v5261_v60 = vpop.xlane.xlu1 %5260 }
0x1fa8   : > { %v5276_v11 = vmul.f32 0.0065789474, %v5271_v45  ;;  %v5263_v36 = vmul.f32 0.0065789474, %v5261_v60 }
0x1faa   : > { %v5280_v20 = vsub.f32 %v5276_v11, %v5278_v5  ;;  %v5279_v31 = vmul.f32 %v5263_v36, %v5263_v36  ;;  %v5286_v52 = vsub.f32 %v5252_v53, %v5263_v36  ;;  %v5287_v55 = vsub.f32 %v5253_v4, %v5263_v36 }
0x1fab   : > { %v5275_v59 = vpop.xlane.xlu0 %5274  ;;  %v5310_v62 = vpop.permute.xlu1 %5309 }
0x1fac   : > { %v5282_v29 = vmax.f32 %v5280_v20, 0.0  ;;  %v5277_v56 = vmul.f32 0.0065789474, %v5275_v59 }
0x1fae   : > { %v5288_v32 = vadd.f32 1e-05, %v5282_v29  ;;  %v5281_v30 = vsub.f32 %v5277_v56, %v5279_v31  ;;  %v5429_v31 = vld [vmem:[%s14749_s11 + $0xa0] sm:$0xff] }
0x1faf   : > { %v5314_v50 = vpop.permute.xlu1 %5313  ;;  %5433 = vperm.xlu0 %10814, %v5429_v31  }
0x1fb0   : > { %11333 = vrsqrt.f32 %v5288_v32  ;;  %v5283_v1 = vmax.f32 %v5281_v30, 0.0  ;;  %v5430_v32 = vld [vmem:[%s14749_s11 + $0xa8] sm:$0xff] }
0x1fb2   : > { %v5289_v34 = vadd.f32 1e-05, %v5283_v1 }
0x1fb3   : > { %v5326_v61 = vpop.permute.xlu1 %5325  ;;  %v5302_v16 = vpop.permute.xlu0 %5301  ;;  %10816 = vset.pattern.permute.xlu0 %v11551_v18 }
0x1fb4   : > { %11335 = vrsqrt.f32 %v5289_v34 }
0x1fb7   : > { %v5330_v2 = vpop.permute.xlu1 %5329 }
0x1fba   : > { %v11334_v10 = vpop.eup %11333 }
0x1fbb   : > { %v5292_v22 = vmul.f32 %v11334_v10, %v5284_v8  ;;  %v5293_v40 = vmul.f32 %v11334_v10, %v5285_v13 }
0x1fbd   : > { %v5304_v7 = vmul.f32 %v5298_v44, %v5292_v22  ;;  %v5305_v28 = vmul.f32 %v5298_v44, %v5293_v40 }
0x1fbe   : > { %v11336_v27 = vpop.eup %11335 }
0x1fbf   : > { %v5294_v48 = vmul.f32 %v11336_v27, %v5286_v52  ;;  %v5295_v42 = vmul.f32 %v11336_v27, %v5287_v55  ;;  %v5316_v57 = vadd.f32 %v5310_v62, %v5304_v7  ;;  %v5317_v46 = vadd.f32 %v5310_v62, %v5305_v28  ;;  %v11221_v52 = vld [vmem:[%s14748_s10 + $0x80] sm:$0xff]  }
0x1fc1   : > { %v5306_v0 = vmul.f32 %v5302_v16, %v5294_v48  ;;  %v5307_v35 = vmul.f32 %v5302_v16, %v5295_v42  ;;  %v5332_v23 = vmul.f32 %v5326_v61, %v5316_v57  ;;  %v5333_v43 = vmul.f32 %v5326_v61, %v5317_v46 }
0x1fc2   : > { %vm5320_vm2 = vcmp.ge.f32.partialorder %v5316_v57, 0.0  ;;  %vm5321_vm4 = vcmp.ge.f32.partialorder %v5317_v46, 0.0 }
0x1fc3   : > { %v5318_v38 = vadd.f32 %v5314_v50, %v5306_v0  ;;  %v5319_v39 = vadd.f32 %v5314_v50, %v5307_v35  ;;  %v13490_v33 = vsel %vm5320_vm2, %v5316_v57, %v5332_v23  ;;  %v13492_v63 = vsel %vm5321_vm4, %v5317_v46, %v5333_v43  ;;  %vm14777_vm2 = vmmov %vm14776_vm14 }
0x1fc4   : > { %vm14778_vm4 = vmmov %vm14777_vm2 }
0x1fc5   : > { %vm5322_vm6 = vcmp.ge.f32.partialorder %v5318_v38, 0.0  ;;  %vm5323_vm12 = vcmp.ge.f32.partialorder %v5319_v39, 0.0  ;;  %v5334_v53 = vmul.f32 %v5330_v2, %v5318_v38  ;;  %v5335_v4 = vmul.f32 %v5330_v2, %v5319_v39 }
0x1fc7   : > { %v13494_v58 = vsel %vm5322_vm6, %v5318_v38, %v5334_v53  ;;  %v13496_v37 = vsel %vm5323_vm12, %v5319_v39, %v5335_v4  ;;  %vm14779_vm6 = vmmov %vm14777_vm2 }
0x1fc8   : > { %v5340_v24 = vpack.c.bf16 %v13494_v58, %v13490_v33  ;;  %v5341_v19 = vpack.c.bf16 %v13496_v37, %v13492_v63 }
0x1fca   : > { %5346 = vrot.lane.b32.xlu1 %v5341_v19, %s11547_s25  ;;  %9761 = vmatprep.mubr.msk.bf16.mxu1 %vm2689_vm11, %v5341_v19 }
0x1fcb   : > { %5400 = vmatmul.mubr.bf16.vlgmr.msra.gmra.mrb[140].mxu1 %v5340_v24 }
0x1fce   : > { %5344 = vrot.lane.b32.xlu1 %v5340_v24, %s11547_s25 }
0x1fd2   : > { %5354 = vrot.lane.b32.xlu1 %v5341_v19, %s11549_s16 }
0x1fd6   : > { %5352 = vrot.lane.b32.xlu1 %v5340_v24, %s11549_s16 }
0x1fda   : > { %5438 = vperm.xlu1 %10815, %v5430_v32  }
0x1fde   : > { %10817 = vset.pattern.permute.xlu1 %v11551_v18 }
0x202e   : > { %v5434_v55 = vpop.permute.xlu0 %5433 }
0x203c   : > { %v5347_v17 = vpop.permute.xlu1 %5346 }
0x203d   : > { %v5351_v44 = vsel %vm14774_vm7, %v5347_v17, 0 }
0x203e   : > { %9762 = vmatprep.mubr.msk.bf16.mxu1 %vm2689_vm11, %v5351_v44 }
0x2040   : > { %v5345_v41 = vpop.permute.xlu1 %5344 }
0x2041   : > { %v5348_v9 = vsel %vm607_vm0, %v5345_v41, %v5347_v17 }
0x2042   : > { %5408 = vmatmul.mubr.bf16.gmra.mrb[144].mxu1 %v5348_v9 }
0x2044   : > { %v5355_v45 = vpop.permute.xlu1 %5354 }
0x2045   : > { %v5359_v60 = vsel %vm14775_vm9, %v5355_v45, 0  ;;  %vm14780_vm9 = vmmov %vm14777_vm2 }
0x2046   : > { %9763 = vmatprep.mubr.msk.bf16.mxu1 %vm2689_vm11, %v5359_v60 }
0x2048   : > { %v5353_v5 = vpop.permute.xlu1 %5352 }
0x2049   : > { %v5356_v11 = vsel %vm629_vm3, %v5353_v5, %v5355_v45 }
0x204a   : > { %5416 = vmatmul.mubr.bf16.gmra.mrb[148].mxu1 %v5356_v11 }
0x204b   : > { %10330 = vmatprep.mubr.msk.bf16.mxu1 %vm11558_vm13, %v11557_v15 }
0x2059   : > { %v5439_v28 = vpop.permute.xlu1 %5438 }
0x209e   : > { %v5401_v36 = vpop.f32.mrb[140].mxu1 }
0x209f   : > { %v5403_v20 = vpop.f32.mrb[141].mxu1 }
0x20a0   : > { %v5404_v59 = vpop.f32.mrb[142].mxu1 }
0x20a1   : > { %v5426_v29 = vpack.c.bf16 %v5404_v59, %v5401_v36  ;;  %v5406_v56 = vpop.f32.mrb[143].mxu1 }
0x20a3   : > { %10325 = vmatpush3.bf16.msra.mxu1 %v5426_v29 }
0x20a4   : > { %10326 = vmatprep.subr.bf16.mxu1 %v11557_v15 }
0x2115   : > { %v5409_v30 = vpop.f32.mrb[144].mxu1 }
0x2116   : > { %v5411_v1 = vpop.f32.mrb[145].mxu1 }
0x2117   : > { %v5412_v34 = vpop.f32.mrb[146].mxu1 }
0x2118   : > { %v5427_v62 = vpack.c.bf16 %v5412_v34, %v5409_v30  ;;  %v5414_v8 = vpop.f32.mrb[147].mxu1 }
0x211a   : > { %10327 = vmatpush3.bf16.msra.mxu1 %v5427_v62 }
0x211b   : > { %10328 = vmatprep.subr.bf16.mxu1 %v11557_v15 }
0x211d   : > { %v5417_v13 = vpop.f32.mrb[148].mxu1 }
0x211e   : > { %v5419_v50 = vpop.f32.mrb[149].mxu1 }
0x211f   : > { %v5420_v10 = vpop.f32.mrb[150].mxu1 }
0x2120   : > { %v5428_v22 = vpack.c.bf16 %v5420_v10, %v5417_v13  ;;  %v5422_v40 = vpop.f32.mrb[151].mxu1 }
0x2122   : > { %10329 = vmatpush3.bf16.msra.mxu1 %v5428_v22 }
0x2123   : > { %10356 = vmatprep.subr.bf16.mxu1 %v11557_v15 }
0x2125   : > { %10331 = vmatmul.mubr.msk.bf16.vlgmr.msra.gmra.mrb[152].mxu1 %vm14773_vm8, %v11221_v52  ;;  %vm14781_vm8 = vcmask 580608  }
0x2126   : > { %10362 = vmatprep.mubr.msk.bf16.mxu1 %vm11558_vm13, %v11557_v15 }
0x21f8   : > { %v5483_v7 = vpop.f32.mrb[152].mxu1 }
0x21f9   : > { %v5484_v27 = vadd.f32 %v5483_v7, %v5434_v55  ;;  %v10332_v61 = vpop.f32.mrb[153].mxu1 }
0x21fa   : > { %v5486_v16 = vpop.f32.mrb[154].mxu1 }
0x21fb   : > { %v5487_v48 = vadd.f32 %v5486_v16, %v5439_v28  ;;  %v10333_v42 = vpop.f32.mrb[155].mxu1  ;;  %v5490_v57 = vsel %vm14776_vm14, %v5484_v27, 0.0  ;;  %v5498_v0 = vmul.f32 %v5484_v27, %v5484_v27  ;;  %vm14782_vm14 = vmmov %vm14777_vm2 }
0x21fc   : > { %5491 = vadd.xlane.f32.xlu1 %v5490_v57 }
0x21fd   : > { %v5493_v46 = vsel %vm14777_vm2, %v5487_v48, 0.0  ;;  %v5500_v35 = vsel %vm14778_vm4, %v5498_v0, 0.0  ;;  %v5499_v23 = vmul.f32 %v5487_v48, %v5487_v48  ;;  %vm14783_vm2 = vcmask 572416  }
0x21fe   : > { %5494 = vadd.xlane.f32.xlu0 %v5493_v46 }
0x21ff   : > { %v5503_v43 = vsel %vm14779_vm6, %v5499_v23, 0.0  ;;  %vm14784_vm6 = vcmask 392192  }
0x2202   : > { %5501 = vadd.xlane.f32.xlu0 %v5500_v35 }
0x220d   : > { %5527 = vperm.xlu1 %10817, %v5430_v32  }
0x2211   : > { %10818 = vset.pattern.permute.xlu1 %v11555_v14 }
0x2212   : > { %5533 = vperm.xlu1 %10818, %v5429_v31  }
0x2216   : > { %5537 = vperm.xlu1 %10818, %v5430_v32  }
0x2218   : > { %5523 = vperm.xlu0 %10816, %v5429_v31  }
0x221a   : > { %10819 = vset.pattern.permute.xlu1 %v11556_v25 }
0x221b   : > { %5545 = vperm.xlu1 %10819, %v5429_v31  }
0x221c   : > { %10820 = vset.pattern.permute.xlu0 %v11553_v47 }
0x223f   : > { %5504 = vadd.xlane.f32.xlu1 %v5503_v43  ;;  %v5635_v43 = vld [vmem:[%s14749_s11 + $0xb0] sm:$0xff] }
0x2240   : > { %5639 = vperm.xlu0 %10820, %v5635_v43  }
0x2244   : > { %10822 = vset.pattern.permute.xlu0 %v11551_v18 }
0x2250   : > { %5549 = vperm.xlu1 %10819, %v5430_v32  }
0x2254   : > { %10821 = vset.pattern.permute.xlu1 %v11553_v47 }
0x2289   : > { %v5492_v38 = vpop.xlane.xlu1 %5491 }
0x228a   : > { %v5496_v4 = vmul.f32 0.013888889, %v5492_v38  ;;  %v5636_v38 = vld [vmem:[%s14749_s11 + $0xb8] sm:$0xff] }
0x228b   : > { %v5495_v39 = vpop.xlane.xlu0 %5494 }
0x228c   : > { %v5508_v17 = vmul.f32 %v5496_v4, %v5496_v4  ;;  %v5497_v5 = vmul.f32 0.013888889, %v5495_v39  ;;  %v5514_v32 = vsub.f32 %v5484_v27, %v5496_v4 }
0x228d   : > { %v5528_v2 = vpop.permute.xlu1 %5527 }
0x228e   : > { %v5509_v36 = vmul.f32 %v5497_v5, %v5497_v5  ;;  %v5515_v62 = vsub.f32 %v5487_v48, %v5497_v5  ;;  %v11509_v5 = vld [vmem:[%s14743_s5 + $0x8] sm:$0xff]  }
0x228f   : > { %v5502_v53 = vpop.xlane.xlu0 %5501 }
0x2290   : > { %v5506_v24 = vmul.f32 0.013888889, %v5502_v53 }
0x2291   : > { %v5534_v19 = vpop.permute.xlu1 %5533 }
0x2292   : > { %v5510_v44 = vsub.f32 %v5506_v24, %v5508_v17 }
0x2294   : > { %v5512_v9 = vmax.f32 %v5510_v44, 0.0 }
0x2295   : > { %v5538_v41 = vpop.permute.xlu1 %5537 }
0x2296   : > { %v5516_v45 = vadd.f32 1e-05, %v5512_v9 }
0x2297   : > { %v5524_v1 = vpop.permute.xlu0 %5523 }
0x2298   : > { %11337 = vrsqrt.f32 %v5516_v45  ;;  %v11222_v45 = vld [vmem:[%s14748_s10 + $0x88] sm:$0xff]  }
0x229a   : > { %v5546_v60 = vpop.permute.xlu1 %5545 }
0x22a2   : > { %v11338_v31 = vpop.eup %11337 }
0x22a3   : > { %v5520_v30 = vmul.f32 %v11338_v31, %v5514_v32 }
0x22a5   : > { %v5530_v34 = vmul.f32 %v5524_v1, %v5520_v30 }
0x22a7   : > { %v5540_v13 = vadd.f32 %v5534_v19, %v5530_v34 }
0x22a9   : > { %v5552_v22 = vmul.f32 %v5546_v60, %v5540_v13  ;;  %vm5542_vm12 = vcmp.ge.f32.partialorder %v5540_v13, 0.0  ;;  %v11508_v60 = vld [vmem:[%s14743_s5] sm:$0xff]  }
0x22ab   : > { %v5554_v7 = vsel %vm5542_vm12, %v5540_v13, %v5552_v22  ;;  %vm14785_vm12 = vcmask 261120  }
0x22cc   : > { %v5505_v11 = vpop.xlane.xlu1 %5504 }
0x22cd   : > { %v5507_v20 = vmul.f32 0.013888889, %v5505_v11  ;;  %v5640_v11 = vpop.permute.xlu0 %5639 }
0x22cf   : > { %v5511_v59 = vsub.f32 %v5507_v20, %v5509_v36 }
0x22d0   : > { %v5550_v52 = vpop.permute.xlu1 %5549 }
0x22d1   : > { %v5513_v29 = vmax.f32 %v5511_v59, 0.0 }
0x22d3   : > { %v5517_v56 = vadd.f32 1e-05, %v5513_v29 }
0x22d5   : > { %11339 = vrsqrt.f32 %v5517_v56 }
0x22df   : > { %v11340_v8 = vpop.eup %11339 }
0x22e0   : > { %v5521_v50 = vmul.f32 %v11340_v8, %v5515_v62 }
0x22e2   : > { %v5531_v10 = vmul.f32 %v5528_v2, %v5521_v50 }
0x22e4   : > { %v5541_v40 = vadd.f32 %v5538_v41, %v5531_v10 }
0x22e6   : > { %vm5543_vm7 = vcmp.ge.f32.partialorder %v5541_v40, 0.0  ;;  %v5553_v55 = vmul.f32 %v5550_v52, %v5541_v40 }
0x22e8   : > { %v5555_v28 = vsel %vm5543_vm7, %v5541_v40, %v5553_v55  ;;  %vm14786_vm7 = vmmov %vm14785_vm12 }
0x22e9   : > { %v13540_v61 = vpack.c.bf16 %v5555_v28, %v5554_v7 }
0x22eb   : > { %5558 = vrot.lane.b32.xlu1 %v13540_v61, %s11547_s25  ;;  %10345 = vmatmul.mubr.msk.bf16.vlgmr.msra.gmra.mrb[76].mxu0 %vm14780_vm9, %v13540_v61  ;;  %vm14787_vm9 = vmmov %vm14786_vm7 }
0x22ec   : > { %10348 = vmatprep.mubr.msk.bf16.mxu0 %vm11558_vm13, %v11557_v15 }
0x22ef   : > { %5562 = vrot.lane.b32.xlu1 %v13540_v61, %s11549_s16 }
0x22f3   : > { %5644 = vperm.xlu1 %10821, %v5636_v38  }
0x22f7   : > { %10823 = vset.pattern.permute.xlu1 %v11551_v18 }
0x235d   : > { %v5559_v27 = vpop.permute.xlu1 %5558 }
0x235e   : > { %v5561_v16 = vsel %vm14781_vm8, %v5559_v27, 0  ;;  %vm14788_vm8 = vmmov %vm14786_vm7 }
0x235f   : > { %10349 = vmatmul.mubr.msk.bf16.gmra.mrb[80].mxu0 %vm14782_vm14, %v5561_v16 }
0x2360   : > { %10352 = vmatprep.mubr.msk.bf16.mxu0 %vm11558_vm13, %v11557_v15 }
0x2361   : > { %v5563_v48 = vpop.permute.xlu1 %5562 }
0x2362   : > { %v5565_v42 = vsel %vm14783_vm2, %v5563_v48, 0 }
0x2367   : > { %10353 = vmatmul.mubr.msk.bf16.gmra.mrb[84].mxu0 %vm14778_vm4, %v5565_v42  ;;  %vm14789_vm4 = vmmov %vm14786_vm7 }
0x2368   : > { %10388 = vmatprep.mubr.msk.bf16.mxu0 %vm11558_vm13, %v11557_v15 }
0x2372   : > { %v5645_v20 = vpop.permute.xlu1 %5644 }
0x23be   : > { %v5607_v57 = vpop.f32.mrb[76].mxu0 }
0x23bf   : > { %v10346_v46 = vpop.f32.mrb[77].mxu0 }
0x23c0   : > { %v5610_v0 = vpop.f32.mrb[78].mxu0 }
0x23c1   : > { %v5632_v35 = vpack.c.bf16 %v5610_v0, %v5607_v57  ;;  %v10347_v23 = vpop.f32.mrb[79].mxu0 }
0x23c3   : > { %10357 = vmatpush3.bf16.msra.mxu1 %v5632_v35 }
0x23c4   : > { %10358 = vmatprep.subr.bf16.mxu1 %v11557_v15 }
0x2432   : > { %v5615_v39 = vpop.f32.mrb[80].mxu0 }
0x2433   : > { %v10350_v2 = vpop.f32.mrb[81].mxu0 }
0x2434   : > { %v5618_v53 = vpop.f32.mrb[82].mxu0 }
0x2435   : > { %v5633_v4 = vpack.c.bf16 %v5618_v53, %v5615_v39  ;;  %v10351_v24 = vpop.f32.mrb[83].mxu0 }
0x2437   : > { %10359 = vmatpush3.bf16.msra.mxu1 %v5633_v4 }
0x2438   : > { %10360 = vmatprep.subr.bf16.mxu1 %v11557_v15 }
0x243a   : > { %v5623_v19 = vpop.f32.mrb[84].mxu0 }
0x243b   : > { %v10354_v17 = vpop.f32.mrb[85].mxu0 }
0x243c   : > { %v5626_v44 = vpop.f32.mrb[86].mxu0 }
0x243d   : > { %v5634_v41 = vpack.c.bf16 %v5626_v44, %v5623_v19  ;;  %v10355_v9 = vpop.f32.mrb[87].mxu0 }
0x243f   : > { %10361 = vmatpush3.bf16.msra.mxu1 %v5634_v41 }
0x2440   : > { %10366 = vmatprep.subr.bf16.mxu1 %v11557_v15 }
0x2442   : > { %10363 = vmatmul.mubr.msk.bf16.vlgmr.msra.gmra.mrb[156].mxu1 %vm14784_vm6, %v11222_v45  ;;  %vm14790_vm6 = vcmask 252928  }
0x2443   : > { %10367 = vmatpush3.bf16.msra.mxu1 %v11508_v60  ;;  %10370 = vmatprep.mubr.msk.bf16.mxu1 %vm11558_vm13, %v11557_v15 }
0x2444   : > { %10368 = vmatprep.subr.bf16.mxu1 %v11557_v15 }
0x2447   : > { %10369 = vmatpush3.bf16.msra.mxu1 %v11509_v5 }
0x2448   : > { %10392 = vmatprep.subr.bf16.mxu1 %v11557_v15 }
0x2515   : > { %v5689_v36 = vpop.f32.mrb[156].mxu1 }
0x2516   : > { %v5690_v59 = vadd.f32 %v5689_v36, %v5640_v11  ;;  %v10364_v29 = vpop.f32.mrb[157].mxu1 }
0x2517   : > { %v5692_v56 = vpop.f32.mrb[158].mxu1 }
0x2518   : > { %v5693_v31 = vadd.f32 %v5692_v56, %v5645_v20  ;;  %v10365_v32 = vpop.f32.mrb[159].mxu1  ;;  %v5696_v30 = vsel %vm14785_vm12, %v5690_v59, 0.0  ;;  %v5704_v34 = vmul.f32 %v5690_v59, %v5690_v59  ;;  %vm14791_vm12 = vmmov %vm14789_vm4 }
0x2519   : > { %5697 = vadd.xlane.f32.xlu1 %v5696_v30 }
0x251a   : > { %v5699_v1 = vsel %vm14786_vm7, %v5693_v31, 0.0  ;;  %v5706_v62 = vsel %vm14787_vm9, %v5704_v34, 0.0  ;;  %v5705_v8 = vmul.f32 %v5693_v31, %v5693_v31  ;;  %vm14792_vm7 = vcmask 244736   ;;  %vm14793_vm9 = vmmov %vm14789_vm4 }
0x251b   : > { %5700 = vadd.xlane.f32.xlu0 %v5699_v1 }
0x251c   : > { %v5709_v13 = vsel %vm14788_vm8, %v5705_v8, 0.0  ;;  %vm14794_vm8 = vcmask 392192  }
0x251f   : > { %5707 = vadd.xlane.f32.xlu0 %v5706_v62 }
0x252a   : > { %5733 = vperm.xlu1 %10823, %v5636_v38  }
0x252e   : > { %10824 = vset.pattern.permute.xlu1 %v11555_v14 }
0x252f   : > { %5739 = vperm.xlu1 %10824, %v5635_v43  }
0x2533   : > { %5743 = vperm.xlu1 %10824, %v5636_v38  }
0x2535   : > { %5729 = vperm.xlu0 %10822, %v5635_v43  }
0x2537   : > { %10825 = vset.pattern.permute.xlu1 %v11556_v25 }
0x2538   : > { %5751 = vperm.xlu1 %10825, %v5635_v43  }
0x2539   : > { %10827 = vset.pattern.permute.xlu0 %v11553_v47 }
0x255c   : > { %5710 = vadd.xlane.f32.xlu1 %v5709_v13 }
0x256d   : > { %5755 = vperm.xlu1 %10825, %v5636_v38  }
0x2571   : > { %10826 = vset.pattern.permute.xlu1 %v11553_v47 }
0x25a6   : > { %v5698_v50 = vpop.xlane.xlu1 %5697 }
0x25a7   : > { %v5702_v52 = vmul.f32 0.03125, %v5698_v50 }
0x25a8   : > { %v5701_v10 = vpop.xlane.xlu0 %5700 }
0x25a9   : > { %v5714_v28 = vmul.f32 %v5702_v52, %v5702_v52  ;;  %v5703_v46 = vmul.f32 0.03125, %v5701_v10  ;;  %v5720_v53 = vsub.f32 %v5690_v59, %v5702_v52  ;;  %v13603_v59 = vld [vmem:[%s14745_s7] sm:$0xff]  }
0x25aa   : > { %v5734_v22 = vpop.permute.xlu1 %5733  ;;  %v5841_v10 = vld [vmem:[%s14749_s11 + $0xc0] sm:$0xff] }
0x25ab   : > { %v5715_v35 = vmul.f32 %v5703_v46, %v5703_v46  ;;  %v5721_v17 = vsub.f32 %v5693_v31, %v5703_v46  ;;  %v11223_v46 = vld [vmem:[%s14748_s10 + $0x90] sm:$0xff]  }
0x25ac   : > { %v5708_v40 = vpop.xlane.xlu0 %5707 }
0x25ad   : > { %v5712_v55 = vmul.f32 0.03125, %v5708_v40 }
0x25ae   : > { %v5740_v7 = vpop.permute.xlu1 %5739 }
0x25af   : > { %v5716_v27 = vsub.f32 %v5712_v55, %v5714_v28 }
0x25b1   : > { %v5718_v48 = vmax.f32 %v5716_v27, 0.0 }
0x25b2   : > { %v5744_v16 = vpop.permute.xlu1 %5743 }
0x25b3   : > { %v5722_v42 = vadd.f32 1e-05, %v5718_v48 }
0x25b4   : > { %v5730_v24 = vpop.permute.xlu0 %5729 }
0x25b5   : > { %11341 = vrsqrt.f32 %v5722_v42 }
0x25b7   : > { %v5752_v57 = vpop.permute.xlu1 %5751 }
0x25bf   : > { %v11342_v2 = vpop.eup %11341 }
0x25c0   : > { %v5726_v4 = vmul.f32 %v11342_v2, %v5720_v53 }
0x25c2   : > { %v5736_v19 = vmul.f32 %v5730_v24, %v5726_v4 }
0x25c4   : > { %v5746_v41 = vadd.f32 %v5740_v7, %v5736_v19 }
0x25c6   : > { %v5758_v60 = vmul.f32 %v5752_v57, %v5746_v41  ;;  %vm5748_vm14 = vcmp.ge.f32.partialorder %v5746_v41, 0.0 }
0x25c8   : > { %v5760_v20 = vsel %vm5748_vm14, %v5746_v41, %v5758_v60  ;;  %vm14795_vm14 = vcmask 64512  }
0x25e9   : > { %v5711_v0 = vpop.xlane.xlu1 %5710 }
0x25ea   : > { %v5713_v23 = vmul.f32 0.03125, %v5711_v0 }
0x25ec   : > { %v5717_v43 = vsub.f32 %v5713_v23, %v5715_v35 }
0x25ed   : > { %v5756_v11 = vpop.permute.xlu1 %5755 }
0x25ee   : > { %v5719_v38 = vmax.f32 %v5717_v43, 0.0 }
0x25f0   : > { %v5723_v39 = vadd.f32 1e-05, %v5719_v38 }
0x25f2   : > { %11343 = vrsqrt.f32 %v5723_v39 }
0x25fc   : > { %v11344_v44 = vpop.eup %11343 }
0x25fd   : > { %v5727_v9 = vmul.f32 %v11344_v44, %v5721_v17 }
0x25ff   : > { %v5737_v45 = vmul.f32 %v5734_v22, %v5727_v9  ;;  %v5842_v22 = vld [vmem:[%s14749_s11 + $0xc8] sm:$0xff] }
0x2600   : > { %5850 = vperm.xlu0 %10827, %v5842_v22  }
0x2601   : > { %v5747_v5 = vadd.f32 %v5744_v16, %v5737_v45 }
0x2603   : > { %vm5749_vm2 = vcmp.ge.f32.partialorder %v5747_v5, 0.0  ;;  %v5759_v36 = vmul.f32 %v5756_v11, %v5747_v5 }
0x2604   : > { %10829 = vset.pattern.permute.xlu0 %v11551_v18 }
0x2605   : > { %v5761_v29 = vsel %vm5749_vm2, %v5747_v5, %v5759_v36  ;;  %vm14796_vm2 = vmmov %vm14795_vm14 }
0x2606   : > { %v13591_v56 = vpack.c.bf16 %v5761_v29, %v5760_v20 }
0x2608   : > { %5764 = vrot.lane.b32.xlu1 %v13591_v56, %s11547_s25  ;;  %10371 = vmatmul.mubr.msk.bf16.vlgmr.msra.gmra.mrb[160].mxu1 %vm14789_vm4, %v13591_v56  ;;  %vm14797_vm4 = vmmov %vm14796_vm2 }
0x2609   : > { %10374 = vmatprep.mubr.msk.bf16.mxu1 %vm11558_vm13, %v11557_v15  ;;  %10393 = vmatpush3.bf16.msra.mxu1 %v12786_v21 }
0x260a   : > { %10408 = vmatprep.subr.bf16.mxu1 %v13603_v59 }
0x260c   : > { %5768 = vrot.lane.b32.xlu1 %v13591_v56, %s11549_s16 }
0x2610   : > { %5845 = vperm.xlu1 %10826, %v5841_v10  }
0x2614   : > { %10828 = vset.pattern.permute.xlu1 %v11551_v18 }
0x2615   : > { %5935 = vperm.xlu1 %10828, %v5841_v10  }
0x2619   : > { %10830 = vset.pattern.permute.xlu1 %v11555_v14 }
0x267a   : > { %v5765_v31 = vpop.permute.xlu1 %5764 }
0x267b   : > { %v5767_v32 = vsel %vm14790_vm6, %v5765_v31, 0  ;;  %vm14798_vm6 = vmmov %vm14796_vm2 }
0x267c   : > { %10375 = vmatmul.mubr.msk.bf16.gmra.mrb[164].mxu1 %vm14791_vm12, %v5767_v32 }
0x267d   : > { %10378 = vmatprep.mubr.msk.bf16.mxu1 %vm11558_vm13, %v11557_v15 }
0x267e   : > { %v5769_v30 = vpop.permute.xlu1 %5768 }
0x267f   : > { %v5771_v1 = vsel %vm14792_vm7, %v5769_v30, 0  ;;  %v5851_v23 = vpop.permute.xlu0 %5850 }
0x2684   : > { %10379 = vmatmul.mubr.msk.bf16.gmra.mrb[168].mxu1 %vm14793_vm9, %v5771_v1  ;;  %vm14799_vm9 = vmmov %vm14796_vm2 }
0x2685   : > { %10394 = vmatprep.mubr.msk.bf16.mxu1 %vm11558_vm13, %v11557_v15 }
0x268f   : > { %v5846_v0 = vpop.permute.xlu1 %5845 }
0x2694   : > { %v5936_v9 = vpop.permute.xlu1 %5935 }
0x26db   : > { %v5813_v34 = vpop.f32.mrb[160].mxu1 }
0x26dc   : > { %v10372_v62 = vpop.f32.mrb[161].mxu1 }
0x26dd   : > { %v5816_v8 = vpop.f32.mrb[162].mxu1 }
0x26de   : > { %v5838_v13 = vpack.c.bf16 %v5816_v8, %v5813_v34  ;;  %v10373_v50 = vpop.f32.mrb[163].mxu1 }
0x26e0   : > { %10383 = vmatpush3.bf16.msra.mxu0 %v5838_v13 }
0x26e1   : > { %10384 = vmatprep.subr.bf16.mxu0 %v11557_v15 }
0x274f   : > { %v5821_v40 = vpop.f32.mrb[164].mxu1 }
0x2750   : > { %v10376_v52 = vpop.f32.mrb[165].mxu1 }
0x2751   : > { %v5824_v55 = vpop.f32.mrb[166].mxu1 }
0x2752   : > { %v5839_v7 = vpack.c.bf16 %v5824_v55, %v5821_v40  ;;  %v10377_v28 = vpop.f32.mrb[167].mxu1 }
0x2754   : > { %10385 = vmatpush3.bf16.msra.mxu0 %v5839_v7 }
0x2755   : > { %10386 = vmatprep.subr.bf16.mxu0 %v11557_v15 }
0x2757   : > { %v5829_v27 = vpop.f32.mrb[168].mxu1 }
0x2758   : > { %v10380_v16 = vpop.f32.mrb[169].mxu1 }
0x2759   : > { %v5832_v48 = vpop.f32.mrb[170].mxu1 }
0x275a   : > { %v5840_v42 = vpack.c.bf16 %v5832_v48, %v5829_v27  ;;  %v10381_v57 = vpop.f32.mrb[171].mxu1 }
0x275c   : > { %10387 = vmatpush3.bf16.msra.mxu0 %v5840_v42 }
0x275d   : > { %10398 = vmatprep.subr.bf16.mxu0 %v11557_v15 }
0x275f   : > { %10389 = vmatmul.mubr.msk.bf16.vlgmr.msra.gmra.mrb[88].mxu0 %vm14794_vm8, %v11223_v46 }
0x2760   : > { %10404 = vmatprep.mubr.msk.bf16.mxu0 %vm11558_vm13, %v11557_v15 }
0x2832   : > { %v5895_v35 = vpop.f32.mrb[88].mxu0 }
0x2833   : > { %v5896_v43 = vadd.f32 %v5895_v35, %v5846_v0  ;;  %v10390_v38 = vpop.f32.mrb[89].mxu0 }
0x2834   : > { %v5898_v39 = vpop.f32.mrb[90].mxu0 }
0x2835   : > { %v5899_v2 = vadd.f32 %v5898_v39, %v5851_v23  ;;  %v10391_v53 = vpop.f32.mrb[91].mxu0  ;;  %v5902_v4 = vsel %vm14795_vm14, %v5896_v43, 0.0  ;;  %v5910_v24 = vmul.f32 %v5896_v43, %v5896_v43  ;;  %vm14800_vm14 = vcmask 261120  }
0x2836   : > { %5903 = vadd.xlane.f32.xlu1 %v5902_v4 }
0x2837   : > { %v5905_v19 = vsel %vm14796_vm2, %v5899_v2, 0.0  ;;  %v5911_v17 = vmul.f32 %v5899_v2, %v5899_v2  ;;  %v5912_v44 = vsel %vm14797_vm4, %v5910_v24, 0.0  ;;  %v6028_v24 = vld [vmem:[%s14749_s11 + $0xd8] sm:$0xff]  ;;  %vm14801_vm2 = vmmov %vm14800_vm14 }
0x2838   : > { %5906 = vadd.xlane.f32.xlu0 %v5905_v19  ;;  %vm14802_vm4 = vmmov %vm14801_vm2 }
0x2839   : > { %v5915_v41 = vsel %vm14798_vm6, %v5911_v17, 0.0  ;;  %vm14803_vm6 = vmmov %vm14801_vm2 }
0x283a   : > { %5913 = vadd.xlane.f32.xlu1 %v5912_v44 }
0x283c   : > { %5916 = vadd.xlane.f32.xlu0 %v5915_v41 }
0x284b   : > { %5945 = vperm.xlu1 %10830, %v5841_v10  }
0x284f   : > { %5949 = vperm.xlu1 %10830, %v5842_v22  }
0x2852   : > { %5939 = vperm.xlu0 %10829, %v5842_v22  }
0x2853   : > { %10831 = vset.pattern.permute.xlu1 %v11556_v25 }
0x2854   : > { %5957 = vperm.xlu1 %10831, %v5841_v10  }
0x2856   : > { %10833 = vset.pattern.permute.xlu0 %v11553_v47 }
0x2857   : > { %6036 = vperm.xlu0 %10833, %v6028_v24  }
0x2858   : > { %5961 = vperm.xlu1 %10831, %v5842_v22  }
0x285b   : > { %10835 = vset.pattern.permute.xlu0 %v11551_v18 }
0x285c   : > { %10832 = vset.pattern.permute.xlu1 %v11553_v47 }
0x28c3   : > { %v5904_v45 = vpop.xlane.xlu1 %5903 }
0x28c4   : > { %v5908_v60 = vmul.f32 0.125, %v5904_v45 }
0x28c5   : > { %v5907_v5 = vpop.xlane.xlu0 %5906 }
0x28c6   : > { %v5909_v11 = vmul.f32 0.125, %v5907_v5  ;;  %v5920_v20 = vmul.f32 %v5908_v60, %v5908_v60  ;;  %v5926_v40 = vsub.f32 %v5896_v43, %v5908_v60  ;;  %v11511_v43 = vld [vmem:[%s14745_s7 + $0x8] sm:$0xff]   ;;  %v11224_v5 = vld [vmem:[%s14748_s10 + $0x98] sm:$0xff]  }
0x28c7   : > { %v5914_v36 = vpop.xlane.xlu1 %5913 }
0x28c8   : > { %v5918_v29 = vmul.f32 0.125, %v5914_v36  ;;  %v5921_v32 = vmul.f32 %v5909_v11, %v5909_v11  ;;  %v5927_v55 = vsub.f32 %v5899_v2, %v5909_v11  ;;  %v11512_v2 = vld [vmem:[%s14746_s8 + $0x4] ss:$8 sps:$4 sm:$0xff]  }
0x28c9   : > { %v5917_v31 = vpop.xlane.xlu0 %5916 }
0x28ca   : > { %v5922_v30 = vsub.f32 %v5918_v29, %v5920_v20  ;;  %v5919_v1 = vmul.f32 0.125, %v5917_v31 }
0x28cb   : > { %v5946_v10 = vpop.permute.xlu1 %5945 }
0x28cc   : > { %v5924_v34 = vmax.f32 %v5922_v30, 0.0  ;;  %v5923_v62 = vsub.f32 %v5919_v1, %v5921_v32 }
0x28ce   : > { %v5928_v8 = vadd.f32 1e-05, %v5924_v34  ;;  %v5925_v13 = vmax.f32 %v5923_v62, 0.0 }
0x28cf   : > { %v5950_v22 = vpop.permute.xlu1 %5949 }
0x28d0   : > { %11345 = vrsqrt.f32 %v5928_v8  ;;  %v5929_v50 = vadd.f32 1e-05, %v5925_v13 }
0x28d1   : > { %v5940_v16 = vpop.permute.xlu0 %5939 }
0x28d2   : > { %11347 = vrsqrt.f32 %v5929_v50 }
0x28d3   : > { %v5958_v27 = vpop.permute.xlu1 %5957 }
0x28d6   : > { %v6037_v20 = vpop.permute.xlu0 %6036 }
0x28d7   : > { %v5962_v23 = vpop.permute.xlu1 %5961 }
0x28da   : > { %v11346_v52 = vpop.eup %11345 }
0x28db   : > { %v5932_v7 = vmul.f32 %v11346_v52, %v5926_v40 }
0x28dc   : > { %v11348_v28 = vpop.eup %11347 }
0x28dd   : > { %v5942_v48 = vmul.f32 %v5936_v9, %v5932_v7  ;;  %v5933_v42 = vmul.f32 %v11348_v28, %v5927_v55  ;;  %v6027_v9 = vld [vmem:[%s14749_s11 + $0xd0] sm:$0xff] }
0x28df   : > { %v5952_v57 = vadd.f32 %v5946_v10, %v5942_v48  ;;  %v5943_v46 = vmul.f32 %v5940_v16, %v5933_v42 }
0x28e1   : > { %v5964_v0 = vmul.f32 %v5958_v27, %v5952_v57  ;;  %v5953_v35 = vadd.f32 %v5950_v22, %v5943_v46  ;;  %vm5954_vm12 = vcmp.ge.f32.partialorder %v5952_v57, 0.0 }
0x28e3   : > { %vm5955_vm7 = vcmp.ge.f32.partialorder %v5953_v35, 0.0  ;;  %v5965_v38 = vmul.f32 %v5962_v23, %v5953_v35  ;;  %v5966_v39 = vsel %vm5954_vm12, %v5952_v57, %v5964_v0 }
0x28e5   : > { %v5967_v53 = vsel %vm5955_vm7, %v5953_v35, %v5965_v38 }
0x28e6   : > { %v5968_v4 = vpack.c.bf16 %v5967_v53, %v5966_v39 }
0x28e8   : > { %10395 = vmatmul.mubr.msk.bf16.vlgmr.msra.gmra.mrb[172].mxu1 %vm14799_vm9, %v5968_v4  ;;  %vm14804_vm9 = vmmov %vm14801_vm2 }
0x28e9   : > { %10409 = vmatpush3.bf16.msra.mxu1 %v13603_v59 }
0x28ea   : > { %10410 = vmatprep.subr.bf16.mxu1 %v11511_v43 }
0x28ed   : > { %10411 = vmatpush3.bf16.msra.mxu1 %v11511_v43 }
0x28ee   : > { %6364 = vmatprep.subr.bf16.mxu1 %v11512_v2 }
0x29bb   : > { %v6006_v19 = vpop.f32.mrb[172].mxu1 }
0x29bc   : > { %v10396_v17 = vpop.f32.mrb[173].mxu1 }
0x29bd   : > { %v6009_v44 = vpop.f32.mrb[174].mxu1 }
0x29be   : > { %v6013_v59 = vpack.c.bf16 %v6009_v44, %v6006_v19  ;;  %v10397_v41 = vpop.f32.mrb[175].mxu1 }
0x29c0   : > { %6015 = vrot.lane.b32.xlu1 %v6013_v59, %s11559_s29  ;;  %10399 = vmatpush3.bf16.msra.mxu0 %v6013_v59 }
0x29c1   : > { %10400 = vmatprep.subr.bf16.mxu0 %v11557_v15 }
0x29c4   : > { %6020 = vrot.lane.b32.xlu1 %v6013_v59, %s11560_s30 }
0x29c8   : > { %6031 = vperm.xlu1 %10832, %v6027_v9  }
0x29cc   : > { %10834 = vset.pattern.permute.xlu1 %v11551_v18 }
0x29cd   : > { %6121 = vperm.xlu1 %10834, %v6027_v9  }
0x29d1   : > { %10836 = vset.pattern.permute.xlu1 %v11555_v14 }
0x2a32   : > { %v6016_v45 = vpop.permute.xlu1 %6015 }
0x2a33   : > { %10401 = vmatpush3.bf16.msk.msra.mxu0 %vm12805_vm15, %v6016_v45 }
0x2a34   : > { %10402 = vmatprep.subr.bf16.mxu0 %v11557_v15 }
0x2a36   : > { %v6021_v60 = vpop.permute.xlu1 %6020 }
0x2a37   : > { %10403 = vmatpush3.bf16.msk.msra.mxu0 %vm12813_vm5, %v6021_v60 }
0x2a38   : > { %10416 = vmatprep.subr.bf16.mxu0 %v11557_v15 }
0x2a3a   : > { %10405 = vmatmul.mubr.msk.bf16.vlgmr.msra.gmra.mrb[92].mxu0 %vm14794_vm8, %v11224_v5  ;;  %vm14805_vm8 = vmmov %vm14801_vm2 }
0x2a3b   : > { %10428 = vmatprep.mubr.msk.bf16.mxu0 %vm11558_vm13, %v11557_v15 }
0x2a47   : > { %v6032_v11 = vpop.permute.xlu1 %6031 }
0x2a4c   : > { %v6122_v22 = vpop.permute.xlu1 %6121 }
0x2b0d   : > { %v6081_v36 = vpop.f32.mrb[92].mxu0 }
0x2b0e   : > { %v6082_v29 = vadd.f32 %v6081_v36, %v6032_v11  ;;  %v10406_v31 = vpop.f32.mrb[93].mxu0 }
0x2b0f   : > { %v6084_v32 = vpop.f32.mrb[94].mxu0 }
0x2b10   : > { %v6085_v30 = vadd.f32 %v6084_v32, %v6037_v20  ;;  %v10407_v1 = vpop.f32.mrb[95].mxu0  ;;  %v6088_v34 = vsel %vm14800_vm14, %v6082_v29, 0.0  ;;  %v6096_v62 = vmul.f32 %v6082_v29, %v6082_v29 }
0x2b11   : > { %6089 = vadd.xlane.f32.xlu1 %v6088_v34  ;;  %v11515_v34 = vld [vmem:[%s14746_s8 + $0x10] ss:$8 sps:$4 sm:$0xff]  }
0x2b12   : > { %v6091_v8 = vsel %vm14801_vm2, %v6085_v30, 0.0  ;;  %v6097_v13 = vmul.f32 %v6085_v30, %v6085_v30  ;;  %v6098_v50 = vsel %vm14802_vm4, %v6096_v62, 0.0  ;;  %v11517_v62 = vld [vmem:[%s14746_s8 + $0x20] ss:$8 sps:$4 sm:$0xff]  }
0x2b13   : > { %6092 = vadd.xlane.f32.xlu0 %v6091_v8  ;;  %v11518_v8 = vld [vmem:[%s14746_s8 + $0x34] ss:$8 sps:$4 sm:$0xff]  }
0x2b14   : > { %v6101_v10 = vsel %vm14803_vm6, %v6097_v13, 0.0  ;;  %v11519_v13 = vld [vmem:[%s14746_s8 + $0x30] ss:$8 sps:$4 sm:$0xff]  }
0x2b15   : > { %6099 = vadd.xlane.f32.xlu1 %v6098_v50 }
0x2b17   : > { %6102 = vadd.xlane.f32.xlu0 %v6101_v10 }
0x2b26   : > { %6131 = vperm.xlu1 %10836, %v6027_v9  }
0x2b2a   : > { %6135 = vperm.xlu1 %10836, %v6028_v24  }
0x2b2d   : > { %6125 = vperm.xlu0 %10835, %v6028_v24  }
0x2b2e   : > { %10837 = vset.pattern.permute.xlu1 %v11556_v25 }
0x2b2f   : > { %6143 = vperm.xlu1 %10837, %v6027_v9  }
0x2b31   : > { %10838 = vset.pattern.permute.xlu0 %v11553_v47 }
0x2b33   : > { %6147 = vperm.xlu1 %10837, %v6028_v24  }
0x2b37   : > { %10839 = vset.pattern.permute.xlu1 %v11553_v47 }
0x2b9e   : > { %v6090_v40 = vpop.xlane.xlu1 %6089 }
0x2b9f   : > { %v6094_v52 = vmul.f32 0.03125, %v6090_v40 }
0x2ba0   : > { %v6093_v55 = vpop.xlane.xlu0 %6092 }
0x2ba1   : > { %v6095_v7 = vmul.f32 0.03125, %v6093_v55  ;;  %v6106_v27 = vmul.f32 %v6094_v52, %v6094_v52  ;;  %v6112_v43 = vsub.f32 %v6082_v29, %v6094_v52  ;;  %v11513_v29 = vld [vmem:[%s14746_s8] ss:$8 sps:$4 sm:$0xff]  }
0x2ba2   : > { %v6100_v28 = vpop.xlane.xlu1 %6099 }
0x2ba3   : > { %v6104_v16 = vmul.f32 0.03125, %v6100_v28  ;;  %v6107_v42 = vmul.f32 %v6095_v7, %v6095_v7  ;;  %v6113_v24 = vsub.f32 %v6085_v30, %v6095_v7  ;;  %v11514_v30 = vld [vmem:[%s14746_s8 + $0x14] ss:$8 sps:$4 sm:$0xff]   ;;  %v13713_v7 = vld [vmem:[%s14749_s11 + $0xe0] sm:$0xff] }
0x2ba4   : > { %v6103_v48 = vpop.xlane.xlu0 %6102  ;;  %6237 = vperm.xlu0 %10838, %v13713_v7  }
0x2ba5   : > { %v6108_v57 = vsub.f32 %v6104_v16, %v6106_v27  ;;  %v6105_v46 = vmul.f32 0.03125, %v6103_v48  ;;  %v11225_v48 = vld [vmem:[%s14748_s10 + $0xa0] sm:$0xff]  }
0x2ba6   : > { %v6132_v53 = vpop.permute.xlu1 %6131 }
0x2ba7   : > { %v6110_v0 = vmax.f32 %v6108_v57, 0.0  ;;  %v6109_v35 = vsub.f32 %v6105_v46, %v6107_v42  ;;  %v11520_v42 = vld [vmem:[%s14741_s3] sm:$0xff]   ;;  %v11521_v57 = vld [vmem:[%s14741_s3 + $0x8] sm:$0xff]   ;;  %v11522_v46 = vld [vmem:[%s14741_s3 + $0x10] sm:$0xff]  }
0x2ba8   : > { %10840 = vset.pattern.permute.xlu0 %v11551_v18 }
0x2ba9   : > { %v6114_v23 = vadd.f32 1e-05, %v6110_v0  ;;  %v6111_v38 = vmax.f32 %v6109_v35, 0.0  ;;  %v11523_v0 = vld [vmem:[%s14741_s3 + $0x18] sm:$0xff]   ;;  %v11524_v35 = vld [vmem:[%s14741_s3 + $0x20] sm:$0xff]  }
0x2baa   : > { %v6136_v4 = vpop.permute.xlu1 %6135 }
0x2bab   : > { %11349 = vrsqrt.f32 %v6114_v23  ;;  %v6115_v39 = vadd.f32 1e-05, %v6111_v38  ;;  %v11525_v23 = vld [vmem:[%s14741_s3 + $0x28] sm:$0xff]   ;;  %v11526_v38 = vld [vmem:[%s14741_s3 + $0x30] sm:$0xff]  }
0x2bac   : > { %v6126_v59 = vpop.permute.xlu0 %6125 }
0x2bad   : > { %11351 = vrsqrt.f32 %v6115_v39  ;;  %v11527_v39 = vld [vmem:[%s14741_s3 + $0x38] sm:$0xff]  }
0x2bae   : > { %v6144_v44 = vpop.permute.xlu1 %6143 }
0x2bb2   : > { %v6148_v36 = vpop.permute.xlu1 %6147 }
0x2bb5   : > { %v11350_v2 = vpop.eup %11349 }
0x2bb6   : > { %v6118_v19 = vmul.f32 %v11350_v2, %v6112_v43 }
0x2bb7   : > { %v11352_v17 = vpop.eup %11351 }
0x2bb8   : > { %v6128_v41 = vmul.f32 %v6122_v22, %v6118_v19  ;;  %v6119_v9 = vmul.f32 %v11352_v17, %v6113_v24 }
0x2bba   : > { %v6138_v45 = vadd.f32 %v6132_v53, %v6128_v41  ;;  %v6129_v60 = vmul.f32 %v6126_v59, %v6119_v9  ;;  %v11528_v53 = vld [vmem:[%s14741_s3 + $0x40] sm:$0xff]  }
0x2bbc   : > { %v6150_v5 = vmul.f32 %v6144_v44, %v6138_v45  ;;  %v6139_v11 = vadd.f32 %v6136_v4, %v6129_v60  ;;  %vm6140_vm12 = vcmp.ge.f32.partialorder %v6138_v45, 0.0 }
0x2bbe   : > { %vm6141_vm7 = vcmp.ge.f32.partialorder %v6139_v11, 0.0  ;;  %v6151_v20 = vmul.f32 %v6148_v36, %v6139_v11  ;;  %v6152_v31 = vsel %vm6140_vm12, %v6138_v45, %v6150_v5 }
0x2bc0   : > { %v6153_v32 = vsel %vm6141_vm7, %v6139_v11, %v6151_v20 }
0x2bc1   : > { %v6154_v1 = vpack.c.bf16 %v6153_v32, %v6152_v31 }
0x2bc3   : > { %10412 = vmatprep.mubr.msk.bf16.mxu1 %vm14804_vm9, %v6154_v1 }
0x2bc4   : > { %10413 = vmatmul.mubr.msk.bf16.vlgmr.msra.gmra.mrb[176].mxu1 %vm14805_vm8, %v13591_v56  ;;  %v11516_v56 = vld [vmem:[%s14746_s8 + $0x24] ss:$8 sps:$4 sm:$0xff]   ;;  %vm14812_vm8 = vcmask 7168  }
0x2bc5   : > { %6365 = vmatpush1.bf16.msra.mxu1 %v11513_v29  ;;  %6396 = vmatprep.mubr.bf16.mxu1 %v11551_v18 }
0x2bc6   : > { %6366 = vmatprep.subr.bf16.mxu1 %v11514_v30 }
0x2bc9   : > { %6367 = vmatpush1.bf16.msra.mxu1 %v11515_v34 }
0x2bca   : > { %6368 = vmatprep.subr.bf16.mxu1 %v11516_v56 }
0x2bcd   : > { %6369 = vmatpush1.bf16.msra.mxu1 %v11517_v62 }
0x2bce   : > { %6370 = vmatprep.subr.bf16.mxu1 %v11518_v8 }
0x2bd1   : > { %6371 = vmatpush1.bf16.msra.mxu1 %v11519_v13 }
0x2bd2   : > { %9795 = vmatprep.subr.msk.bf16.mxu1 %vm699_vm1, %v12918_v49  ;;  %v13724_v49 = vld [vmem:[%s14749_s11 + $0xe8] sm:$0xff]  ;;  %vm14806_vm1 = vcmask 588800  }
0x2bd3   : > { %vm14807_vm14 = vmmov %vm14806_vm1 }
0x2bd4   : > { %vm14808_vm2 = vmmov %vm14806_vm1 }
0x2bd5   : > { %6373 = vmatpush1.bf16.msra.mxu1 %v12923_v54  ;;  %vm14809_vm4 = vmmov %vm14806_vm1 }
0x2bd6   : > { %vm14810_vm7 = vmmov %vm14806_vm1 }
0x2bd7   : > { %vm14811_vm9 = vmmov %vm14806_vm1 }
0x2c23   : > { %v6238_v4 = vpop.permute.xlu0 %6237 }
0x2c97   : > { %v10414_v50 = vpop.f32.mrb[176].mxu1 }
0x2c98   : > { %v6192_v10 = vpop.f32.mrb[177].mxu1 }
0x2c99   : > { %v10415_v22 = vpop.f32.mrb[178].mxu1 }
0x2c9a   : > { %v6208_v40 = vpack.c.bf16 %v10415_v22, %v10414_v50  ;;  %v6195_v52 = vpop.f32.mrb[179].mxu1 }
0x2c9b   : > { %v6207_v55 = vpack.c.bf16 %v6195_v52, %v6192_v10 }
0x2c9d   : > { %6211 = vrot.lane.b32.xlu1 %v6207_v55, %s11559_s29  ;;  %10417 = vmatpush3.bf16.msra.mxu0 %v6207_v55 }
0x2c9e   : > { %10418 = vmatprep.subr.bf16.mxu0 %v11557_v15 }
0x2ca1   : > { %6213 = vrot.lane.b32.xlu1 %v6208_v40, %s11559_s29  ;;  %10419 = vmatpush3.bf16.msra.mxu0 %v6208_v40 }
0x2ca2   : > { %10420 = vmatprep.subr.bf16.mxu0 %v11557_v15 }
0x2ca5   : > { %6221 = vrot.lane.b32.xlu1 %v6207_v55, %s11560_s30 }
0x2ca9   : > { %6223 = vrot.lane.b32.xlu1 %v6208_v40, %s11560_s30 }
0x2cad   : > { %6242 = vperm.xlu1 %10839, %v13724_v49  }
0x2cb1   : > { %10841 = vset.pattern.permute.xlu1 %v11551_v18 }
0x2d0f   : > { %v6212_v54 = vpop.permute.xlu1 %6211 }
0x2d10   : > { %10421 = vmatpush3.bf16.msk.msra.mxu0 %vm12805_vm15, %v6212_v54 }
0x2d11   : > { %10422 = vmatprep.subr.bf16.mxu0 %v11557_v15 }
0x2d13   : > { %v6214_v28 = vpop.permute.xlu1 %6213 }
0x2d14   : > { %10423 = vmatpush3.bf16.msk.msra.mxu0 %vm12805_vm15, %v6214_v28 }
0x2d15   : > { %10424 = vmatprep.subr.bf16.mxu0 %v11557_v15 }
0x2d17   : > { %v6222_v27 = vpop.permute.xlu1 %6221 }
0x2d18   : > { %10425 = vmatpush3.bf16.msk.msra.mxu0 %vm12813_vm5, %v6222_v27 }
0x2d19   : > { %10426 = vmatprep.subr.bf16.mxu0 %v11557_v15 }
0x2d1b   : > { %v6224_v16 = vpop.permute.xlu1 %6223 }
0x2d1c   : > { %10427 = vmatpush3.bf16.msk.msra.mxu0 %vm12813_vm5, %v6224_v16 }
0x2d1d   : > { %6643 = vmatprep.subr.bf16.mxu0 %v11551_v18 }
0x2d1f   : > { %10429 = vmatmul.mubr.msk.bf16.vlgmr.msra.gmra.mrb[96].mxu0 %vm3854_vm10, %v11225_v48 }
0x2d20   : > { %6644 = vmatpush1.bf16.msra.mxu0 %v11520_v42 }
0x2d21   : > { %6645 = vmatprep.subr.bf16.mxu0 %v11551_v18 }
0x2d24   : > { %6646 = vmatpush1.bf16.msra.mxu0 %v11521_v57 }
0x2d25   : > { %6647 = vmatprep.subr.bf16.mxu0 %v11551_v18 }
0x2d28   : > { %6648 = vmatpush1.bf16.msra.mxu0 %v11522_v46 }
0x2d29   : > { %6649 = vmatprep.subr.bf16.mxu0 %v11551_v18 }
0x2d2c   : > { %6650 = vmatpush1.bf16.msra.mxu0 %v11523_v0  ;;  %v6243_v2 = vpop.permute.xlu1 %6242 }
0x2d2d   : > { %6651 = vmatprep.subr.bf16.mxu0 %v11551_v18 }
0x2d30   : > { %6652 = vmatpush1.bf16.msra.mxu0 %v11524_v35 }
0x2d31   : > { %6653 = vmatprep.subr.bf16.mxu0 %v11551_v18 }
0x2d34   : > { %6654 = vmatpush1.bf16.msra.mxu0 %v11525_v23 }
0x2d35   : > { %6655 = vmatprep.subr.bf16.mxu0 %v11551_v18 }
0x2d38   : > { %6656 = vmatpush1.bf16.msra.mxu0 %v11526_v38 }
0x2d39   : > { %6657 = vmatprep.subr.bf16.mxu0 %v11551_v18 }
0x2d3c   : > { %6658 = vmatpush1.bf16.msra.mxu0 %v11527_v39 }
0x2d3d   : > { %6659 = vmatprep.subr.bf16.mxu0 %v11551_v18 }
0x2d40   : > { %6660 = vmatpush1.bf16.msra.mxu0 %v11528_v53 }
0x2d41   : > { %6661 = vmatprep.subr.bf16.mxu0 %v11551_v18 }
0x2d44   : > { %6662 = vmatpush1.bf16.msra.mxu0 %v12597_v6 }
0x2d45   : > { %10468 = vmatprep.subr.bf16.mxu0 %v11557_v15 }
0x2df2   : > { %v6287_v43 = vpop.f32.mrb[96].mxu0 }
0x2df3   : > { %v6288_v24 = vadd.f32 %v6287_v43, %v6238_v4  ;;  %v10430_v19 = vpop.f32.mrb[97].mxu0 }
0x2df4   : > { %v6290_v17 = vpop.f32.mrb[98].mxu0 }
0x2df5   : > { %v6291_v44 = vadd.f32 %v6290_v17, %v6243_v2  ;;  %v10431_v59 = vpop.f32.mrb[99].mxu0  ;;  %v6294_v41 = vsel %vm14806_vm1, %v6288_v24, 0.0  ;;  %v6302_v45 = vmul.f32 %v6288_v24, %v6288_v24  ;;  %vm14813_vm1 = vmmov %vm14812_vm8 }
0x2df6   : > { %6295 = vadd.xlane.f32.xlu1 %v6294_v41 }
0x2df7   : > { %v6297_v9 = vsel %vm14807_vm14, %v6291_v44, 0.0  ;;  %v6304_v60 = vsel %vm14808_vm2, %v6302_v45, 0.0  ;;  %v6303_v6 = vmul.f32 %v6291_v44, %v6291_v44  ;;  %vm14814_vm14 = vcmask 15360  }
0x2df8   : > { %6298 = vadd.xlane.f32.xlu0 %v6297_v9  ;;  %vm14815_vm2 = vmmov %vm14814_vm14 }
0x2df9   : > { %v6307_v5 = vsel %vm14809_vm4, %v6303_v6, 0.0 }
0x2dfc   : > { %6305 = vadd.xlane.f32.xlu0 %v6304_v60 }
0x2e07   : > { %6331 = vperm.xlu1 %10841, %v13724_v49  }
0x2e0b   : > { %10842 = vset.pattern.permute.xlu1 %v11555_v14 }
0x2e0c   : > { %6337 = vperm.xlu1 %10842, %v13713_v7  }
0x2e10   : > { %6341 = vperm.xlu1 %10842, %v13724_v49  }
0x2e12   : > { %6327 = vperm.xlu0 %10840, %v13713_v7  }
0x2e14   : > { %10843 = vset.pattern.permute.xlu1 %v11556_v25 }
0x2e15   : > { %6349 = vperm.xlu1 %10843, %v13713_v7  }
0x2e16   : > { %10844 = vset.pattern.permute.xlu0 %v11553_v47 }
0x2e39   : > { %6308 = vadd.xlane.f32.xlu1 %v6307_v5  ;;  %v6463_v5 = vld [vmem:[%s14749_s11 + $0xf0] sm:$0xff] }
0x2e4a   : > { %6353 = vperm.xlu1 %10843, %v13724_v49  }
0x2e4e   : > { %10845 = vset.pattern.permute.xlu1 %v11553_v47 }
0x2e83   : > { %v6296_v11 = vpop.xlane.xlu1 %6295 }
0x2e84   : > { %v6300_v32 = vmul.f32 0.013888889, %v6296_v11  ;;  %v6464_v11 = vld [vmem:[%s14749_s11 + $0xf8] sm:$0xff] }
0x2e85   : > { %v6299_v36 = vpop.xlane.xlu0 %6298 }
0x2e86   : > { %v6312_v30 = vmul.f32 %v6300_v32, %v6300_v32  ;;  %v6301_v50 = vmul.f32 0.013888889, %v6299_v36  ;;  %v6318_v54 = vsub.f32 %v6288_v24, %v6300_v32 }
0x2e87   : > { %v6332_v20 = vpop.permute.xlu1 %6331 }
0x2e88   : > { %v6313_v22 = vmul.f32 %v6301_v50, %v6301_v50  ;;  %v6319_v48 = vsub.f32 %v6291_v44, %v6301_v50  ;;  %v11226_v50 = vld [vmem:[%s14748_s10 + $0xa8] sm:$0xff]  }
0x2e89   : > { %v6306_v31 = vpop.xlane.xlu0 %6305 }
0x2e8a   : > { %v6310_v1 = vmul.f32 0.013888889, %v6306_v31 }
0x2e8b   : > { %v6338_v29 = vpop.permute.xlu1 %6337 }
0x2e8c   : > { %v6314_v34 = vsub.f32 %v6310_v1, %v6312_v30 }
0x2e8e   : > { %v6316_v62 = vmax.f32 %v6314_v34, 0.0 }
0x2e8f   : > { %v6342_v56 = vpop.permute.xlu1 %6341 }
0x2e90   : > { %v6320_v8 = vadd.f32 1e-05, %v6316_v62 }
0x2e91   : > { %v6328_v27 = vpop.permute.xlu0 %6327 }
0x2e92   : > { %11353 = vrsqrt.f32 %v6320_v8 }
0x2e94   : > { %v6350_v13 = vpop.permute.xlu1 %6349 }
0x2e9c   : > { %v11354_v49 = vpop.eup %11353 }
0x2e9d   : > { %v6324_v28 = vmul.f32 %v11354_v49, %v6318_v54 }
0x2e9f   : > { %v6334_v16 = vmul.f32 %v6328_v27, %v6324_v28 }
0x2ea1   : > { %v6344_v57 = vadd.f32 %v6338_v29, %v6334_v16 }
0x2ea3   : > { %v6356_v35 = vmul.f32 %v6350_v13, %v6344_v57  ;;  %vm6346_vm6 = vcmp.ge.f32.partialorder %v6344_v57, 0.0 }
0x2ea5   : > { %v6358_v53 = vsel %vm6346_vm6, %v6344_v57, %v6356_v35 }
0x2ec6   : > { %v6309_v10 = vpop.xlane.xlu1 %6308 }
0x2ec7   : > { %v6311_v40 = vmul.f32 0.013888889, %v6309_v10 }
0x2ec9   : > { %v6315_v52 = vsub.f32 %v6311_v40, %v6313_v22 }
0x2eca   : > { %v6354_v38 = vpop.permute.xlu1 %6353 }
0x2ecb   : > { %v6317_v55 = vmax.f32 %v6315_v52, 0.0 }
0x2ecd   : > { %v6321_v7 = vadd.f32 1e-05, %v6317_v55 }
0x2ecf   : > { %11355 = vrsqrt.f32 %v6321_v7 }
0x2ed9   : > { %v11356_v42 = vpop.eup %11355 }
0x2eda   : > { %v6325_v46 = vmul.f32 %v11356_v42, %v6319_v48 }
0x2edc   : > { %v6335_v0 = vmul.f32 %v6332_v20, %v6325_v46 }
0x2ede   : > { %v6345_v23 = vadd.f32 %v6342_v56, %v6335_v0 }
0x2ee0   : > { %vm6347_vm12 = vcmp.ge.f32.partialorder %v6345_v23, 0.0  ;;  %v6357_v39 = vmul.f32 %v6354_v38, %v6345_v23 }
0x2ee2   : > { %v6359_v4 = vsel %vm6347_vm12, %v6345_v23, %v6357_v39 }
0x2ee3   : > { %v6360_v43 = vpack.c.bf16 %v6359_v4, %v6358_v53 }
0x2ee5   : > { %9796 = vmatmul.mubr.msk.bf16.vlgmr.msra.gmra.mrb[180].mxu1 %vm14810_vm7, %v6360_v43 }
0x2ee6   : > { %6406 = vmatprep.mubr.bf16.mxu1 %v11551_v18 }
0x2eed   : > { %9797 = vmatmul.mubr.msk.bf16.gmra.mrb[184].mxu1 %vm14811_vm9, %v13540_v61  ;;  %vm14816_vm9 = vcmask 187392  }
0x2eee   : > { %6515 = vmatprep.mubr.bf16.mxu1 %v11551_v18 }
0x2fb8   : > { %v6398_v2 = vpop.f32.mrb[180].mxu1 }
0x2fb9   : > { %v6400_v24 = vpop.f32.mrb[181].mxu1 }
0x2fba   : > { %v6402_v19 = vpop.f32.mrb[182].mxu1 }
0x2fbb   : > { %v6417_v17 = vpack.c.bf16 %v6402_v19, %v6398_v2  ;;  %v6404_v44 = vpop.f32.mrb[183].mxu1 }
0x2fbc   : > { %v6418_v59 = vpack.c.bf16 %v6404_v44, %v6400_v24 }
0x2fbd   : > { %6425 = vrot.lane.b32.xlu1 %v6417_v17, %s11559_s29 }
0x2fbe   : > { %6483 = vmatprep.subr.bf16.mxu1 %v6418_v59 }
0x2fbf   : > { %6484 = vmatpush1.bf16.msra.mxu1 %v6417_v17 }
0x2fc0   : > { %v6408_v41 = vpop.f32.mrb[184].mxu1 }
0x2fc1   : > { %6427 = vrot.lane.b32.xlu1 %v6418_v59, %s11559_s29  ;;  %v6410_v9 = vpop.f32.mrb[185].mxu1 }
0x2fc2   : > { %v6412_v45 = vpop.f32.mrb[186].mxu1 }
0x2fc3   : > { %v6419_v60 = vpack.c.bf16 %v6412_v45, %v6408_v41  ;;  %v6414_v6 = vpop.f32.mrb[187].mxu1 }
0x2fc4   : > { %v6420_v61 = vpack.c.bf16 %v6414_v6, %v6410_v9 }
0x2fc5   : > { %6429 = vrot.lane.b32.xlu0 %v6419_v60, %s11559_s29 }
0x2fc6   : > { %6431 = vrot.lane.b32.xlu1 %v6420_v61, %s11559_s29  ;;  %6485 = vmatprep.subr.bf16.mxu1 %v6420_v61 }
0x2fc7   : > { %6486 = vmatpush1.bf16.msra.mxu1 %v6419_v60 }
0x2fc9   : > { %6443 = vrot.lane.b32.xlu0 %v6417_v17, %s11560_s30 }
0x2fca   : > { %6445 = vrot.lane.b32.xlu1 %v6418_v59, %s11560_s30 }
0x2fcd   : > { %6447 = vrot.lane.b32.xlu0 %v6419_v60, %s11560_s30 }
0x2fce   : > { %6449 = vrot.lane.b32.xlu1 %v6420_v61, %s11560_s30 }
0x2fd1   : > { %6467 = vperm.xlu0 %10844, %v6463_v5  }
0x2fd2   : > { %6472 = vperm.xlu1 %10845, %v6464_v11  }
0x2fd5   : > { %10846 = vset.pattern.permute.xlu0 %v11551_v18 }
0x2fd6   : > { %10847 = vset.pattern.permute.xlu1 %v11551_v18 }
0x302f   : > { %v6426_v36 = vpop.permute.xlu1 %6425 }
0x3033   : > { %v6428_v20 = vpop.permute.xlu1 %6427 }
0x3034   : > { %v6433_v31 = vsel %vm14812_vm8, %v6426_v36, %v6428_v20  ;;  %vm14817_vm8 = vcmask 179200  }
0x3035   : > { %6487 = vmatprep.subr.bf16.mxu1 %v6433_v31 }
0x3036   : > { %9800 = vmatpush1.bf16.msk.msra.mxu1 %vm12805_vm15, %v6426_v36 }
0x3037   : > { %v6430_v32 = vpop.permute.xlu0 %6429 }
0x3038   : > { %v6432_v1 = vpop.permute.xlu1 %6431 }
0x3039   : > { %v6434_v29 = vsel %vm14813_vm1, %v6430_v32, %v6432_v1 }
0x303a   : > { %6489 = vmatprep.subr.bf16.mxu1 %v6434_v29 }
0x303b   : > { %v6444_v30 = vpop.permute.xlu0 %6443  ;;  %9802 = vmatpush1.bf16.msk.msra.mxu1 %vm12805_vm15, %v6430_v32 }
0x303c   : > { %v6446_v34 = vpop.permute.xlu1 %6445 }
0x303d   : > { %v6451_v56 = vsel %vm14814_vm14, %v6444_v30, %v6446_v34  ;;  %vm6824_vm14 = vcmask 72704  }
0x303e   : > { %6491 = vmatprep.subr.bf16.mxu1 %v6451_v56 }
0x303f   : > { %v6448_v62 = vpop.permute.xlu0 %6447  ;;  %9804 = vmatpush1.bf16.msk.msra.mxu1 %vm12813_vm5, %v6444_v30 }
0x3040   : > { %v6450_v8 = vpop.permute.xlu1 %6449 }
0x3041   : > { %v6452_v13 = vsel %vm14815_vm2, %v6448_v62, %v6450_v8  ;;  %vm14822_vm2 = vcmask 588800  }
0x3042   : > { %6493 = vmatprep.subr.bf16.mxu1 %v6452_v13 }
0x3043   : > { %9806 = vmatpush1.bf16.msk.msra.mxu1 %vm12813_vm5, %v6448_v62 }
0x3046   : > { %9807 = vmatmul.mubr.msk.bf16.vlgmr.msra.gmra.mrb[188].mxu1 %vm3854_vm10, %v11226_v50 }
0x3050   : > { %v6468_v10 = vpop.permute.xlu0 %6467 }
0x3051   : > { %v6473_v52 = vpop.permute.xlu1 %6472 }
0x3119   : > { %v6517_v22 = vpop.f32.mrb[188].mxu1 }
0x311a   : > { %v6519_v40 = vpop.f32.mrb[189].mxu1  ;;  %v6518_v49 = vadd.f32 %v6517_v22, %v6468_v10 }
0x311b   : > { %v6520_v55 = vadd.f32 %v6519_v40, %v6468_v10  ;;  %v6521_v7 = vpop.f32.mrb[190].mxu1 }
0x311c   : > { %v6523_v54 = vpop.f32.mrb[191].mxu1  ;;  %v6522_v48 = vadd.f32 %v6521_v7, %v6473_v52  ;;  %v6536_v35 = vmul.f32 %v6518_v49, %v6518_v49 }
0x311d   : > { %v6537_v28 = vmul.f32 %v6520_v55, %v6520_v55  ;;  %v13833_v27 = vadd.f32 %v6523_v54, %v6473_v52  ;;  %v6526_v16 = vsel %vm2689_vm11, %v6520_v55, 0.0 }
0x311e   : > { %v6527_v42 = vadd.f32 %v6526_v16, %v6518_v49  ;;  %v6538_v53 = vmul.f32 %v6522_v48, %v6522_v48 }
0x311f   : > { %v6530_v57 = vsel %vm2689_vm11, %v13833_v27, 0.0  ;;  %v6540_v0 = vsel %vm2689_vm11, %v6537_v28, 0.0  ;;  %v6539_v38 = vmul.f32 %v13833_v27, %v13833_v27 }
0x3120   : > { %6528 = vadd.xlane.f32.xlu1 %v6527_v42  ;;  %v6531_v46 = vadd.f32 %v6530_v57, %v6522_v48  ;;  %v6541_v23 = vadd.f32 %v6540_v0, %v6536_v35 }
0x3121   : > { %v6544_v39 = vsel %vm2689_vm11, %v6539_v38, 0.0 }
0x3122   : > { %6532 = vadd.xlane.f32.xlu0 %v6531_v46  ;;  %v6545_v4 = vadd.f32 %v6544_v39, %v6538_v53 }
0x3126   : > { %6542 = vadd.xlane.f32.xlu0 %v6541_v23 }
0x3131   : > { %6573 = vperm.xlu1 %10847, %v6464_v11  }
0x3135   : > { %10848 = vset.pattern.permute.xlu1 %v11555_v14 }
0x3136   : > { %6581 = vperm.xlu1 %10848, %v6463_v5  }
0x313a   : > { %6585 = vperm.xlu1 %10848, %v6464_v11  }
0x313c   : > { %6569 = vperm.xlu0 %10846, %v6463_v5  }
0x313e   : > { %10849 = vset.pattern.permute.xlu1 %v11556_v25 }
0x313f   : > { %6597 = vperm.xlu1 %10849, %v6463_v5  }
0x3140   : > { %10851 = vset.pattern.permute.xlu0 %v11552_v51 }
0x3163   : > { %6546 = vadd.xlane.f32.xlu1 %v6545_v4 }
0x3174   : > { %6601 = vperm.xlu1 %10849, %v6464_v11  }
0x3178   : > { %10850 = vset.pattern.permute.xlu1 %v11552_v51 }
0x31ad   : > { %v6529_v2 = vpop.xlane.xlu1 %6528 }
0x31ae   : > { %v6534_v19 = vmul.f32 0.0065789474, %v6529_v2 }
0x31af   : > { %v6533_v43 = vpop.xlane.xlu0 %6532 }
0x31b0   : > { %v6550_v59 = vmul.f32 %v6534_v19, %v6534_v19  ;;  %v6535_v5 = vmul.f32 0.0065789474, %v6533_v43  ;;  %v6556_v29 = vsub.f32 %v6518_v49, %v6534_v19  ;;  %v6557_v30 = vsub.f32 %v6520_v55, %v6534_v19 }
0x31b1   : > { %v6574_v17 = vpop.permute.xlu1 %6573 }
0x31b2   : > { %v6551_v20 = vmul.f32 %v6535_v5, %v6535_v5  ;;  %v6558_v40 = vsub.f32 %v6522_v48, %v6535_v5  ;;  %v6559_v52 = vsub.f32 %v13833_v27, %v6535_v5  ;;  %v11227_v5 = vld [vmem:[%s14748_s10 + $0xb0] sm:$0xff]  }
0x31b3   : > { %v6543_v24 = vpop.xlane.xlu0 %6542 }
0x31b4   : > { %v6548_v44 = vmul.f32 0.0065789474, %v6543_v24 }
0x31b5   : > { %v6582_v9 = vpop.permute.xlu1 %6581 }
0x31b6   : > { %v6552_v41 = vsub.f32 %v6548_v44, %v6550_v59 }
0x31b8   : > { %v6554_v45 = vmax.f32 %v6552_v41, 0.0 }
0x31b9   : > { %v6586_v60 = vpop.permute.xlu1 %6585 }
0x31ba   : > { %v6560_v6 = vadd.f32 1e-05, %v6554_v45 }
0x31bb   : > { %v6570_v8 = vpop.permute.xlu0 %6569 }
0x31bc   : > { %11357 = vrsqrt.f32 %v6560_v6 }
0x31be   : > { %v6598_v61 = vpop.permute.xlu1 %6597 }
0x31c6   : > { %v11358_v1 = vpop.eup %11357 }
0x31c7   : > { %v6564_v56 = vmul.f32 %v11358_v1, %v6556_v29  ;;  %v6565_v62 = vmul.f32 %v11358_v1, %v6557_v30 }
0x31c9   : > { %v6576_v13 = vmul.f32 %v6570_v8, %v6564_v56  ;;  %v6577_v50 = vmul.f32 %v6570_v8, %v6565_v62 }
0x31cb   : > { %v6588_v10 = vadd.f32 %v6582_v9, %v6576_v13  ;;  %v6589_v22 = vadd.f32 %v6582_v9, %v6577_v50  ;;  %v11228_v13 = vld [vmem:[%s14748_s10 + $0xb8] sm:$0xff]   ;;  %v11229_v50 = vld [vmem:[%s14748_s10 + $0xc0] sm:$0xff]  }
0x31cd   : > { %v6604_v16 = vmul.f32 %v6598_v61, %v6588_v10  ;;  %v6605_v42 = vmul.f32 %v6598_v61, %v6589_v22  ;;  %vm6592_vm4 = vcmp.ge.f32.partialorder %v6588_v10, 0.0  ;;  %vm6593_vm6 = vcmp.ge.f32.partialorder %v6589_v22, 0.0 }
0x31cf   : > { %v6608_v0 = vsel %vm6592_vm4, %v6588_v10, %v6604_v16  ;;  %v6609_v35 = vsel %vm6593_vm6, %v6589_v22, %v6605_v42  ;;  %v13896_v10 = vld [vmem:[%s14742_s4] sm:$0xff]   ;;  %v11230_v22 = vld [vmem:[%s14748_s10 + $0xc8] sm:$0xff]   ;;  %vm14823_vm4 = vmmov %vm14822_vm2 }
0x31d0   : > { %v6613_v43 = vadd.f32 %v6609_v35, %v13492_v63  ;;  %v6612_v2 = vadd.f32 %v6608_v0, %v13490_v33  ;;  %vm14824_vm6 = vmmov %vm14822_vm2 }
0x31f0   : > { %v6547_v36 = vpop.xlane.xlu1 %6546 }
0x31f1   : > { %v6549_v11 = vmul.f32 0.0065789474, %v6547_v36  ;;  %v13871_v36 = vld [vmem:[%s14749_s11 + $0x108] sm:$0xff] }
0x31f3   : > { %v6553_v31 = vsub.f32 %v6549_v11, %v6551_v20  ;;  %v13876_v20 = vld [vmem:[%s14749_s11 + $0x100] sm:$0xff] }
0x31f4   : > { %v6602_v23 = vpop.permute.xlu1 %6601 }
0x31f5   : > { %v6555_v32 = vmax.f32 %v6553_v31, 0.0 }
0x31f7   : > { %v6561_v34 = vadd.f32 1e-05, %v6555_v32 }
0x31f9   : > { %11359 = vrsqrt.f32 %v6561_v34 }
0x3203   : > { %v11360_v7 = vpop.eup %11359 }
0x3204   : > { %v6566_v54 = vmul.f32 %v11360_v7, %v6558_v40  ;;  %v6567_v28 = vmul.f32 %v11360_v7, %v6559_v52  ;;  %v13906_v40 = vld [vmem:[%s14742_s4 + $0x8] sm:$0xff]   ;;  %v13914_v52 = vld [vmem:[%s14742_s4 + $0x10] sm:$0xff]   ;;  %v13923_v7 = vld [vmem:[%s14742_s4 + $0x18] sm:$0xff]  }
0x3206   : > { %v6578_v55 = vmul.f32 %v6574_v17, %v6566_v54  ;;  %v6579_v49 = vmul.f32 %v6574_v17, %v6567_v28 }
0x3208   : > { %v6590_v57 = vadd.f32 %v6586_v60, %v6578_v55  ;;  %v6591_v46 = vadd.f32 %v6586_v60, %v6579_v49 }
0x320a   : > { %vm6594_vm12 = vcmp.ge.f32.partialorder %v6590_v57, 0.0  ;;  %vm6595_vm7 = vcmp.ge.f32.partialorder %v6591_v46, 0.0  ;;  %v6606_v38 = vmul.f32 %v6602_v23, %v6590_v57  ;;  %v6607_v48 = vmul.f32 %v6602_v23, %v6591_v46 }
0x320c   : > { %v6610_v39 = vsel %vm6594_vm12, %v6590_v57, %v6606_v38  ;;  %v6611_v27 = vsel %vm6595_vm7, %v6591_v46, %v6607_v48  ;;  %vm14825_vm12 = vmmov %vm14822_vm2 }
0x320d   : > { %v6614_v53 = vadd.f32 %v6610_v39, %v13494_v58  ;;  %v6615_v4 = vadd.f32 %v6611_v27, %v13496_v37 }
0x320f   : > { %v6617_v24 = vpack.c.bf16 %v6615_v4, %v6613_v43  ;;  %v6616_v19 = vpack.c.bf16 %v6614_v53, %v6612_v2 }
0x3211   : > { %6622 = vrot.lane.b32.xlu1 %v6617_v24, %s11547_s25  ;;  %9808 = vmatprep.mubr.msk.bf16.mxu0 %vm2689_vm11, %v6617_v24 }
0x3212   : > { %6628 = vrot.lane.b32.xlu0 %v6616_v19, %s11549_s16  ;;  %6676 = vmatmul.mubr.bf16.vlgmr.msra.gmra.mrb[100].mxu0 %v6616_v19 }
0x3215   : > { %6620 = vrot.lane.b32.xlu1 %v6616_v19, %s11547_s25 }
0x3216   : > { %6852 = vperm.xlu0 %10851, %v13871_v36  }
0x3219   : > { %6630 = vrot.lane.b32.xlu1 %v6617_v24, %s11549_s16 }
0x321a   : > { %10852 = vset.pattern.permute.xlu0 %v11553_v47 }
0x321b   : > { %6837 = vperm.xlu0 %10852, %v13876_v20  }
0x321d   : > { %6848 = vperm.xlu1 %10850, %v13876_v20  }
0x321f   : > { %10854 = vset.pattern.permute.xlu0 %v11551_v18 }
0x3221   : > { %10853 = vset.pattern.permute.xlu1 %v11553_v47 }
0x3283   : > { %v6623_v58 = vpop.permute.xlu1 %6622 }
0x3284   : > { %v6627_v37 = vsel %vm14816_vm9, %v6623_v58, 0  ;;  %v6629_v59 = vpop.permute.xlu0 %6628 }
0x3285   : > { %9809 = vmatprep.mubr.msk.bf16.mxu0 %vm2689_vm11, %v6627_v37 }
0x3287   : > { %v6621_v63 = vpop.permute.xlu1 %6620 }
0x3288   : > { %v6624_v33 = vsel %vm607_vm0, %v6621_v63, %v6623_v58  ;;  %vm14818_vm0 = vcmask 392192  }
0x3289   : > { %6684 = vmatmul.mubr.bf16.gmra.mrb[104].mxu0 %v6624_v33  ;;  %10438 = vmatprep.mubr.msk.bf16.mxu1 %vm14818_vm0, %v11227_v5  ;;  %vm14821_vm1 = vmmov %vm14818_vm0 }
0x328b   : > { %v6631_v17 = vpop.permute.xlu1 %6630 }
0x328c   : > { %v6635_v44 = vsel %vm14817_vm8, %v6631_v17, 0  ;;  %v6632_v41 = vsel %vm629_vm3, %v6629_v59, %v6631_v17  ;;  %vm14819_vm3 = vmmov %vm14818_vm0 }
0x328d   : > { %9810 = vmatprep.mubr.msk.bf16.mxu0 %vm2689_vm11, %v6635_v44  ;;  %vm14820_vm11 = vmmov %vm14818_vm0  ;;  %vm14827_vm0 = vcmask 580608  }
0x328e   : > { %vm14826_vm8 = vmmov %vm14822_vm2 }
0x3291   : > { %6692 = vmatmul.mubr.bf16.gmra.mrb[108].mxu0 %v6632_v41 }
0x3292   : > { %10474 = vmatprep.mubr.msk.bf16.mxu0 %vm11558_vm13, %v11557_v15 }
0x3295   : > { %v6853_v43 = vpop.permute.xlu0 %6852 }
0x329a   : > { %v6838_v37 = vpop.permute.xlu0 %6837 }
0x329c   : > { %v6849_v0 = vpop.permute.xlu1 %6848 }
0x32e5   : > { %v6677_v9 = vpop.f32.mrb[100].mxu0 }
0x32e6   : > { %v6679_v45 = vpop.f32.mrb[101].mxu0 }
0x32e7   : > { %v6680_v60 = vpop.f32.mrb[102].mxu0 }
0x32e8   : > { %v6708_v6 = vpack.c.bf16 %v6680_v60, %v6677_v9  ;;  %v6682_v61 = vpop.f32.mrb[103].mxu0 }
0x32ea   : > { %10432 = vmatprep.subr.bf16.mxu1 %v6708_v6 }
0x32eb   : > { %10433 = vmatpush3.bf16.msra.mxu1 %v6708_v6 }
0x335c   : > { %v6685_v11 = vpop.f32.mrb[104].mxu0 }
0x335d   : > { %v6687_v31 = vpop.f32.mrb[105].mxu0 }
0x335e   : > { %v6688_v32 = vpop.f32.mrb[106].mxu0 }
0x335f   : > { %v6709_v1 = vpack.c.bf16 %v6688_v32, %v6685_v11  ;;  %v6690_v29 = vpop.f32.mrb[107].mxu0 }
0x3361   : > { %10434 = vmatprep.subr.bf16.mxu1 %v6709_v1 }
0x3362   : > { %10435 = vmatpush3.bf16.msra.mxu1 %v6709_v1 }
0x3364   : > { %v6693_v30 = vpop.f32.mrb[108].mxu0 }
0x3365   : > { %v6695_v34 = vpop.f32.mrb[109].mxu0 }
0x3366   : > { %v6696_v56 = vpop.f32.mrb[110].mxu0 }
0x3367   : > { %v6710_v62 = vpack.c.bf16 %v6696_v56, %v6693_v30  ;;  %v6698_v8 = vpop.f32.mrb[111].mxu0 }
0x3369   : > { %10436 = vmatprep.subr.bf16.mxu1 %v6710_v62 }
0x336a   : > { %10437 = vmatpush3.bf16.msra.mxu1 %v6710_v62 }
0x336b   : > { %10446 = vmatprep.subr.bf16.mxu1 %v11557_v15 }
0x336d   : > { %10439 = vmatmul.mubr.msk.bf16.vlgmr.msra.gmra.mrb[192].mxu1 %vm14819_vm3, %v11228_v13  ;;  %vm14828_vm3 = vmmov %vm14822_vm2 }
0x336e   : > { %10442 = vmatprep.mubr.msk.bf16.mxu1 %vm14820_vm11, %v11229_v50  ;;  %10447 = vmatpush3.bf16.msra.mxu1 %v13896_v10  ;;  %vm14829_vm11 = vcmask 572416  }
0x336f   : > { %10448 = vmatprep.subr.bf16.mxu1 %v11557_v15 }
0x3372   : > { %10449 = vmatpush3.bf16.msra.mxu1 %v13906_v40 }
0x3373   : > { %10450 = vmatprep.subr.bf16.mxu1 %v11557_v15 }
0x3375   : > { %10443 = vmatmul.mubr.msk.bf16.gmra.mrb[196].mxu1 %vm14821_vm1, %v11230_v22  ;;  %vm14830_vm1 = vmmov %vm14822_vm2 }
0x3376   : > { %10451 = vmatpush3.bf16.msra.mxu1 %v13914_v52  ;;  %10456 = vmatprep.mubr.msk.bf16.mxu1 %vm11558_vm13, %v11557_v15 }
0x3377   : > { %10452 = vmatprep.subr.bf16.mxu1 %v11557_v15 }
0x337a   : > { %10453 = vmatpush3.bf16.msra.mxu1 %v13923_v7 }
0x337b   : > { %10454 = vmatprep.subr.bf16.mxu1 %v11557_v15 }
0x337e   : > { %10455 = vmatpush3.bf16.msra.mxu1 %v12686_v3 }
0x337f   : > { %10494 = vmatprep.subr.bf16.mxu1 %v11557_v15 }
0x3440   : > { %v10440_v54 = vpop.f32.mrb[192].mxu1 }
0x3441   : > { %6816 = vrot.lane.b32.xlu1 %v10440_v54, %s11562_s14  ;;  %v6777_v28 = vpop.f32.mrb[193].mxu1 }
0x3442   : > { %v10441_v16 = vpop.f32.mrb[194].mxu1 }
0x3443   : > { %v6780_v42 = vpop.f32.mrb[195].mxu1 }
0x3444   : > { %6814 = vrot.lane.b32.xlu0 %v6780_v42, %s11562_s14 }
0x3445   : > { %6818 = vrot.lane.b32.xlu1 %v10441_v16, %s11562_s14 }
0x3448   : > { %v10444_v55 = vpop.f32.mrb[196].mxu1 }
0x3449   : > { %6842 = vperm.xlu1 %10853, %v13871_v36   ;;  %v6793_v49 = vpop.f32.mrb[197].mxu1 }
0x344a   : > { %v10445_v57 = vpop.f32.mrb[198].mxu1 }
0x344b   : > { %v6796_v46 = vpop.f32.mrb[199].mxu1 }
0x344d   : > { %6812 = vrot.lane.b32.xlu1 %v6777_v28, %s11562_s14 }
0x344e   : > { %10855 = vset.pattern.permute.xlu1 %v11551_v18 }
0x34b3   : > { %v6817_v35 = vpop.permute.xlu1 %6816 }
0x34b4   : > { %v6827_v23 = vsel %vm6824_vm14, 0.0, %v6817_v35 }
0x34b5   : > { %v6831_v38 = vadd.f32 %v10444_v55, %v6827_v23 }
0x34b6   : > { %v6815_v59 = vpop.permute.xlu0 %6814 }
0x34b7   : > { %v6855_v48 = vadd.f32 %v6849_v0, %v6831_v38  ;;  %v6819_v39 = vpop.permute.xlu1 %6818  ;;  %v6826_v45 = vsel %vm6824_vm14, 0.0, %v6815_v59 }
0x34b8   : > { %v6828_v27 = vsel %vm6824_vm14, 0.0, %v6819_v39  ;;  %v6830_v61 = vadd.f32 %v6826_v45, %v6796_v46 }
0x34b9   : > { %v9819_v53 = vmul.f32 -1.442695, %v6855_v48  ;;  %v6832_v4 = vadd.f32 %v10445_v57, %v6828_v27 }
0x34bb   : > { %11361 = vpow2.f32 %v9819_v53  ;;  %v6856_v2 = vadd.f32 %v6853_v43, %v6832_v4 }
0x34bd   : > { %v9820_v24 = vmul.f32 -1.442695, %v6856_v2 }
0x34bf   : > { %11363 = vpow2.f32 %v9820_v24 }
0x34c5   : > { %v11362_v19 = vpop.eup %11361 }
0x34c6   : > { %v6863_v58 = vadd.f32 1.0, %v11362_v19 }
0x34c8   : > { %11365 = vrcp.f32 %v6863_v58  ;;  %v6843_v63 = vpop.permute.xlu1 %6842 }
0x34c9   : > { %v11364_v33 = vpop.eup %11363  ;;  %v6846_v11 = vadd.f32 %v6843_v63, %v6830_v61 }
0x34ca   : > { %v6864_v17 = vadd.f32 1.0, %v11364_v33 }
0x34cc   : > { %11367 = vrcp.f32 %v6864_v17  ;;  %v6813_v44 = vpop.permute.xlu1 %6812 }
0x34cd   : > { %v6825_v41 = vsel %vm6824_vm14, 0.0, %v6813_v44  ;;  %vm14831_vm14 = vcmask 392192  }
0x34ce   : > { %v6829_v9 = vadd.f32 %v6825_v41, %v6793_v49 }
0x34d0   : > { %v6845_v60 = vadd.f32 %v6838_v37, %v6829_v9 }
0x34d2   : > { %v11366_v6 = vpop.eup %11365 }
0x34d3   : > { %v6869_v5 = vmul.f32 %v11366_v6, %v6845_v60 }
0x34d5   : > { %v6871_v31 = vsel %vm14822_vm2, %v6869_v5, 0.0  ;;  %v6879_v30 = vmul.f32 %v6869_v5, %v6869_v5  ;;  %vm14832_vm2 = vcmask 261120  }
0x34d6   : > { %v11368_v32 = vpop.eup %11367  ;;  %6872 = vadd.xlane.f32.xlu1 %v6871_v31 }
0x34d7   : > { %v6870_v1 = vmul.f32 %v11368_v32, %v6846_v11  ;;  %v6881_v34 = vsel %vm14824_vm6, %v6879_v30, 0.0  ;;  %v7016_v30 = vld [vmem:[%s14749_s11 + $0x110] sm:$0xff]  ;;  %vm14834_vm6 = vmmov %vm14832_vm2 }
0x34d9   : > { %v6874_v29 = vsel %vm14823_vm4, %v6870_v1, 0.0  ;;  %v6880_v56 = vmul.f32 %v6870_v1, %v6870_v1  ;;  %vm14833_vm4 = vmmov %vm14832_vm2 }
0x34da   : > { %6875 = vadd.xlane.f32.xlu0 %v6874_v29 }
0x34db   : > { %v6884_v62 = vsel %vm14825_vm12, %v6880_v56, 0.0  ;;  %vm14835_vm12 = vmmov %vm14832_vm2 }
0x34de   : > { %6882 = vadd.xlane.f32.xlu0 %v6881_v34  ;;  %v7017_v34 = vld [vmem:[%s14749_s11 + $0x118] sm:$0xff] }
0x34e7   : > { %6908 = vperm.xlu1 %10855, %v13871_v36  }
0x34eb   : > { %10856 = vset.pattern.permute.xlu1 %v11555_v14 }
0x34ec   : > { %6914 = vperm.xlu1 %10856, %v13876_v20  }
0x34f0   : > { %6918 = vperm.xlu1 %10856, %v13871_v36  }
0x34f4   : > { %10857 = vset.pattern.permute.xlu1 %v11556_v25  ;;  %6904 = vperm.xlu0 %10854, %v13876_v20  }
0x34f5   : > { %6926 = vperm.xlu1 %10857, %v13876_v20  }
0x34f8   : > { %10858 = vset.pattern.permute.xlu0 %v11553_v47 }
0x34f9   : > { %7020 = vperm.xlu0 %10858, %v7016_v30  }
0x34fd   : > { %10860 = vset.pattern.permute.xlu0 %v11551_v18 }
0x3519   : > { %6885 = vadd.xlane.f32.xlu1 %v6884_v62 }
0x352a   : > { %6930 = vperm.xlu1 %10857, %v13871_v36  }
0x352e   : > { %10859 = vset.pattern.permute.xlu1 %v11553_v47 }
0x3563   : > { %v6873_v8 = vpop.xlane.xlu1 %6872 }
0x3564   : > { %v6877_v54 = vmul.f32 0.013888889, %v6873_v8 }
0x3566   : > { %v6889_v42 = vmul.f32 %v6877_v54, %v6877_v54  ;;  %v6895_v53 = vsub.f32 %v6869_v5, %v6877_v54 }
0x3567   : > { %v6876_v13 = vpop.xlane.xlu0 %6875  ;;  %v6909_v50 = vpop.permute.xlu1 %6908 }
0x3568   : > { %v6878_v0 = vmul.f32 0.013888889, %v6876_v13 }
0x356a   : > { %v6890_v23 = vmul.f32 %v6878_v0, %v6878_v0  ;;  %v6896_v24 = vsub.f32 %v6870_v1, %v6878_v0 }
0x356b   : > { %v6883_v22 = vpop.xlane.xlu0 %6882  ;;  %v6915_v16 = vpop.permute.xlu1 %6914 }
0x356c   : > { %v6887_v28 = vmul.f32 0.013888889, %v6883_v22 }
0x356e   : > { %v6891_v55 = vsub.f32 %v6887_v28, %v6889_v42 }
0x356f   : > { %v6919_v20 = vpop.permute.xlu1 %6918 }
0x3570   : > { %v6893_v49 = vmax.f32 %v6891_v55, 0.0  ;;  %v11231_v55 = vld [vmem:[%s14748_s10 + $0xd0] sm:$0xff]  }
0x3572   : > { %v6897_v57 = vadd.f32 1e-05, %v6893_v49  ;;  %v13995_v49 = vld [vmem:[%s14743_s5 + $0x8] sm:$0xff]  }
0x3573   : > { %v6905_v43 = vpop.permute.xlu0 %6904 }
0x3574   : > { %v6927_v46 = vpop.permute.xlu1 %6926  ;;  %11369 = vrsqrt.f32 %v6897_v57 }
0x3578   : > { %v7021_v57 = vpop.permute.xlu0 %7020 }
0x357e   : > { %v11370_v27 = vpop.eup %11369 }
0x357f   : > { %v6901_v4 = vmul.f32 %v11370_v27, %v6895_v53 }
0x3581   : > { %v6911_v2 = vmul.f32 %v6905_v43, %v6901_v4 }
0x3583   : > { %v6921_v58 = vadd.f32 %v6915_v16, %v6911_v2 }
0x3585   : > { %v6933_v33 = vmul.f32 %v6927_v46, %v6921_v58  ;;  %vm6923_vm7 = vcmp.ge.f32.partialorder %v6921_v58, 0.0 }
0x3587   : > { %v13949_v41 = vsel %vm6923_vm7, %v6921_v58, %v6933_v33 }
0x35a6   : > { %v6886_v35 = vpop.xlane.xlu1 %6885 }
0x35a7   : > { %v6888_v36 = vmul.f32 0.013888889, %v6886_v35 }
0x35a9   : > { %v6892_v38 = vsub.f32 %v6888_v36, %v6890_v23 }
0x35aa   : > { %v6931_v44 = vpop.permute.xlu1 %6930 }
0x35ab   : > { %v6894_v48 = vmax.f32 %v6892_v38, 0.0 }
0x35ad   : > { %v6898_v39 = vadd.f32 1e-05, %v6894_v48 }
0x35af   : > { %11371 = vrsqrt.f32 %v6898_v39 }
0x35b9   : > { %v11372_v19 = vpop.eup %11371 }
0x35ba   : > { %v6902_v37 = vmul.f32 %v11372_v19, %v6896_v24 }
0x35bc   : > { %v6912_v63 = vmul.f32 %v6909_v50, %v6902_v37 }
0x35be   : > { %v6922_v17 = vadd.f32 %v6919_v20, %v6912_v63  ;;  %v13986_v20 = vld [vmem:[%s14743_s5] sm:$0xff]  }
0x35c0   : > { %vm6924_vm9 = vcmp.ge.f32.partialorder %v6922_v17, 0.0  ;;  %v6934_v59 = vmul.f32 %v6931_v44, %v6922_v17 }
0x35c2   : > { %v13951_v9 = vsel %vm6924_vm9, %v6922_v17, %v6934_v59 }
0x35c3   : > { %v6937_v45 = vpack.c.bf16 %v13951_v9, %v13949_v41 }
0x35c5   : > { %6939 = vrot.lane.b32.xlu1 %v6937_v45, %s11547_s25  ;;  %10457 = vmatmul.mubr.msk.bf16.vlgmr.msra.gmra.mrb[200].mxu1 %vm14826_vm8, %v6937_v45  ;;  %vm14836_vm8 = vmmov %vm14832_vm2 }
0x35c6   : > { %10460 = vmatprep.mubr.msk.bf16.mxu1 %vm11558_vm13, %v11557_v15 }
0x35c9   : > { %6943 = vrot.lane.b32.xlu1 %v6937_v45, %s11549_s16 }
0x35cd   : > { %7025 = vperm.xlu1 %10859, %v7017_v34  }
0x35d1   : > { %10861 = vset.pattern.permute.xlu1 %v11551_v18 }
0x3637   : > { %v6940_v60 = vpop.permute.xlu1 %6939 }
0x3638   : > { %v6942_v6 = vsel %vm14827_vm0, %v6940_v60, 0  ;;  %vm14837_vm0 = vcmask 252928  }
0x3639   : > { %10461 = vmatmul.mubr.msk.bf16.gmra.mrb[204].mxu1 %vm14828_vm3, %v6942_v6  ;;  %vm14838_vm3 = vmmov %vm14832_vm2 }
0x363a   : > { %10464 = vmatprep.mubr.msk.bf16.mxu1 %vm11558_vm13, %v11557_v15 }
0x363b   : > { %v6944_v61 = vpop.permute.xlu1 %6943 }
0x363c   : > { %v6946_v5 = vsel %vm14829_vm11, %v6944_v61, 0  ;;  %vm14839_vm11 = vcmask 244736  }
0x3641   : > { %10465 = vmatmul.mubr.msk.bf16.gmra.mrb[208].mxu1 %vm14830_vm1, %v6946_v5  ;;  %vm14840_vm1 = vmmov %vm14832_vm2 }
0x3642   : > { %10500 = vmatprep.mubr.msk.bf16.mxu1 %vm11558_vm13, %v11557_v15 }
0x364c   : > { %v7026_v0 = vpop.permute.xlu1 %7025 }
0x3698   : > { %v6988_v11 = vpop.f32.mrb[200].mxu1 }
0x3699   : > { %v10458_v31 = vpop.f32.mrb[201].mxu1 }
0x369a   : > { %v6991_v32 = vpop.f32.mrb[202].mxu1 }
0x369b   : > { %v7013_v1 = vpack.c.bf16 %v6991_v32, %v6988_v11  ;;  %v10459_v29 = vpop.f32.mrb[203].mxu1 }
0x369d   : > { %10469 = vmatpush3.bf16.msra.mxu0 %v7013_v1 }
0x369e   : > { %10470 = vmatprep.subr.bf16.mxu0 %v11557_v15 }
0x370c   : > { %v6996_v56 = vpop.f32.mrb[204].mxu1 }
0x370d   : > { %v10462_v62 = vpop.f32.mrb[205].mxu1 }
0x370e   : > { %v6999_v8 = vpop.f32.mrb[206].mxu1 }
0x370f   : > { %v7014_v13 = vpack.c.bf16 %v6999_v8, %v6996_v56  ;;  %v10463_v50 = vpop.f32.mrb[207].mxu1 }
0x3711   : > { %10471 = vmatpush3.bf16.msra.mxu0 %v7014_v13 }
0x3712   : > { %10472 = vmatprep.subr.bf16.mxu0 %v11557_v15 }
0x3714   : > { %v7004_v22 = vpop.f32.mrb[208].mxu1 }
0x3715   : > { %v10466_v54 = vpop.f32.mrb[209].mxu1 }
0x3716   : > { %v7007_v28 = vpop.f32.mrb[210].mxu1 }
0x3717   : > { %v7015_v16 = vpack.c.bf16 %v7007_v28, %v7004_v22  ;;  %v10467_v42 = vpop.f32.mrb[211].mxu1 }
0x3719   : > { %10473 = vmatpush3.bf16.msra.mxu0 %v7015_v16 }
0x371a   : > { %10478 = vmatprep.subr.bf16.mxu0 %v11557_v15 }
0x371c   : > { %10475 = vmatmul.mubr.msk.bf16.vlgmr.msra.gmra.mrb[112].mxu0 %vm14831_vm14, %v11231_v55 }
0x371d   : > { %10479 = vmatpush3.bf16.msra.mxu0 %v13986_v20  ;;  %10482 = vmatprep.mubr.msk.bf16.mxu0 %vm11558_vm13, %v11557_v15 }
0x371e   : > { %10480 = vmatprep.subr.bf16.mxu0 %v11557_v15 }
0x3721   : > { %10481 = vmatpush3.bf16.msra.mxu0 %v13995_v49 }
0x3722   : > { %10510 = vmatprep.subr.bf16.mxu0 %v11557_v15 }
0x37ef   : > { %v7070_v46 = vpop.f32.mrb[112].mxu0 }
0x37f0   : > { %v7071_v35 = vadd.f32 %v7070_v46, %v7021_v57  ;;  %v10476_v23 = vpop.f32.mrb[113].mxu0 }
0x37f1   : > { %v7073_v36 = vpop.f32.mrb[114].mxu0 }
0x37f2   : > { %v7074_v38 = vadd.f32 %v7073_v36, %v7026_v0  ;;  %v10477_v48 = vpop.f32.mrb[115].mxu0  ;;  %v7077_v39 = vsel %vm14832_vm2, %v7071_v35, 0.0  ;;  %v7085_v53 = vmul.f32 %v7071_v35, %v7071_v35  ;;  %vm14841_vm2 = vcmask 64512  }
0x37f3   : > { %7078 = vadd.xlane.f32.xlu1 %v7077_v39 }
0x37f4   : > { %v7080_v27 = vsel %vm14833_vm4, %v7074_v38, 0.0  ;;  %v7087_v4 = vsel %vm14834_vm6, %v7085_v53, 0.0  ;;  %v7086_v43 = vmul.f32 %v7074_v38, %v7074_v38  ;;  %vm14842_vm4 = vmmov %vm14841_vm2 }
0x37f5   : > { %7081 = vadd.xlane.f32.xlu0 %v7080_v27  ;;  %vm14843_vm6 = vmmov %vm14841_vm2 }
0x37f6   : > { %v7090_v2 = vsel %vm14835_vm12, %v7086_v43, 0.0  ;;  %vm14844_vm12 = vmmov %vm14841_vm2 }
0x37f9   : > { %7088 = vadd.xlane.f32.xlu0 %v7087_v4 }
0x3804   : > { %7114 = vperm.xlu1 %10861, %v7017_v34  }
0x3808   : > { %10862 = vset.pattern.permute.xlu1 %v11555_v14 }
0x3809   : > { %7120 = vperm.xlu1 %10862, %v7016_v30  }
0x380d   : > { %7124 = vperm.xlu1 %10862, %v7017_v34  }
0x380f   : > { %7110 = vperm.xlu0 %10860, %v7016_v30  }
0x3811   : > { %10863 = vset.pattern.permute.xlu1 %v11556_v25 }
0x3812   : > { %7132 = vperm.xlu1 %10863, %v7016_v30  }
0x3813   : > { %10865 = vset.pattern.permute.xlu0 %v11553_v47 }
0x3836   : > { %7091 = vadd.xlane.f32.xlu1 %v7090_v2 }
0x3847   : > { %7136 = vperm.xlu1 %10863, %v7017_v34  }
0x384b   : > { %10864 = vset.pattern.permute.xlu1 %v11553_v47 }
0x3880   : > { %v7079_v24 = vpop.xlane.xlu1 %7078 }
0x3881   : > { %v7083_v63 = vmul.f32 0.03125, %v7079_v24  ;;  %v7222_v24 = vld [vmem:[%s14749_s11 + $0x120] sm:$0xff] }
0x3882   : > { %v7082_v19 = vpop.xlane.xlu0 %7081 }
0x3883   : > { %v7095_v44 = vmul.f32 %v7083_v63, %v7083_v63  ;;  %v7084_v5 = vmul.f32 0.03125, %v7082_v19  ;;  %v7101_v56 = vsub.f32 %v7071_v35, %v7083_v63  ;;  %v7223_v19 = vld [vmem:[%s14749_s11 + $0x128] sm:$0xff] }
0x3884   : > { %v7115_v58 = vpop.permute.xlu1 %7114  ;;  %7231 = vperm.xlu0 %10865, %v7223_v19  }
0x3885   : > { %v7096_v31 = vmul.f32 %v7084_v5, %v7084_v5  ;;  %v7102_v50 = vsub.f32 %v7074_v38, %v7084_v5  ;;  %v14047_v5 = vld [vmem:[%s14745_s7] sm:$0xff]  }
0x3886   : > { %v7089_v37 = vpop.xlane.xlu0 %7088 }
0x3887   : > { %v7093_v33 = vmul.f32 0.03125, %v7089_v37 }
0x3888   : > { %v7121_v17 = vpop.permute.xlu1 %7120  ;;  %10867 = vset.pattern.permute.xlu0 %v11551_v18 }
0x3889   : > { %v7097_v59 = vsub.f32 %v7093_v33, %v7095_v44 }
0x388b   : > { %v7099_v60 = vmax.f32 %v7097_v59, 0.0 }
0x388c   : > { %v7125_v45 = vpop.permute.xlu1 %7124 }
0x388d   : > { %v7103_v6 = vadd.f32 1e-05, %v7099_v60 }
0x388e   : > { %v7111_v8 = vpop.permute.xlu0 %7110 }
0x388f   : > { %11373 = vrsqrt.f32 %v7103_v6 }
0x3891   : > { %v7133_v61 = vpop.permute.xlu1 %7132 }
0x3899   : > { %v11374_v34 = vpop.eup %11373 }
0x389a   : > { %v7107_v62 = vmul.f32 %v11374_v34, %v7101_v56 }
0x389c   : > { %v7117_v13 = vmul.f32 %v7111_v8, %v7107_v62 }
0x389e   : > { %v7127_v54 = vadd.f32 %v7121_v17, %v7117_v13 }
0x38a0   : > { %v7139_v42 = vmul.f32 %v7133_v61, %v7127_v54  ;;  %vm7129_vm7 = vcmp.ge.f32.partialorder %v7127_v54, 0.0  ;;  %v11232_v61 = vld [vmem:[%s14748_s10 + $0xd8] sm:$0xff]  }
0x38a2   : > { %v7141_v0 = vsel %vm7129_vm7, %v7127_v54, %v7139_v42 }
0x38c3   : > { %v7092_v11 = vpop.xlane.xlu1 %7091 }
0x38c4   : > { %v7094_v32 = vmul.f32 0.03125, %v7092_v11 }
0x38c6   : > { %v7098_v1 = vsub.f32 %v7094_v32, %v7096_v31 }
0x38c7   : > { %v7137_v57 = vpop.permute.xlu1 %7136 }
0x38c8   : > { %v7100_v29 = vmax.f32 %v7098_v1, 0.0 }
0x38ca   : > { %v7104_v30 = vadd.f32 1e-05, %v7100_v29 }
0x38cc   : > { %11375 = vrsqrt.f32 %v7104_v30 }
0x38d6   : > { %v11376_v22 = vpop.eup %11375 }
0x38d7   : > { %v7108_v28 = vmul.f32 %v11376_v22, %v7102_v50 }
0x38d9   : > { %v7118_v16 = vmul.f32 %v7115_v58, %v7108_v28 }
0x38db   : > { %v7128_v55 = vadd.f32 %v7125_v45, %v7118_v16 }
0x38dd   : > { %vm7130_vm9 = vcmp.ge.f32.partialorder %v7128_v55, 0.0  ;;  %v7140_v46 = vmul.f32 %v7137_v57, %v7128_v55 }
0x38df   : > { %v7142_v23 = vsel %vm7130_vm9, %v7128_v55, %v7140_v46 }
0x38e0   : > { %v14007_v36 = vpack.c.bf16 %v7142_v23, %v7141_v0 }
0x38e2   : > { %7145 = vrot.lane.b32.xlu1 %v14007_v36, %s11547_s25  ;;  %10483 = vmatmul.mubr.msk.bf16.vlgmr.msra.gmra.mrb[116].mxu0 %vm14836_vm8, %v14007_v36  ;;  %vm14845_vm8 = vmmov %vm14841_vm2 }
0x38e3   : > { %10486 = vmatprep.mubr.msk.bf16.mxu0 %vm11558_vm13, %v11557_v15 }
0x38e6   : > { %7149 = vrot.lane.b32.xlu1 %v14007_v36, %s11549_s16 }
0x38ea   : > { %7226 = vperm.xlu1 %10864, %v7222_v24  }
0x38ee   : > { %10866 = vset.pattern.permute.xlu1 %v11551_v18 }
0x38ef   : > { %7316 = vperm.xlu1 %10866, %v7222_v24  }
0x38f3   : > { %10868 = vset.pattern.permute.xlu1 %v11555_v14 }
0x3903   : > { %v7232_v32 = vpop.permute.xlu0 %7231 }
0x3954   : > { %v7146_v35 = vpop.permute.xlu1 %7145 }
0x3955   : > { %v7148_v38 = vsel %vm14837_vm0, %v7146_v35, 0  ;;  %vm14846_vm0 = vmmov %vm14831_vm14 }
0x3956   : > { %10487 = vmatmul.mubr.msk.bf16.gmra.mrb[120].mxu0 %vm14838_vm3, %v7148_v38  ;;  %vm14847_vm3 = vmmov %vm14840_vm1 }
0x3957   : > { %10490 = vmatprep.mubr.msk.bf16.mxu0 %vm11558_vm13, %v11557_v15 }
0x3958   : > { %v7150_v48 = vpop.permute.xlu1 %7149 }
0x3959   : > { %v7152_v39 = vsel %vm14839_vm11, %v7150_v48, 0  ;;  %vm14848_vm11 = vmmov %vm14840_vm1 }
0x395e   : > { %10491 = vmatmul.mubr.msk.bf16.gmra.mrb[124].mxu0 %vm14840_vm1, %v7152_v39 }
0x395f   : > { %10516 = vmatprep.mubr.msk.bf16.mxu0 %vm11558_vm13, %v11557_v15 }
0x3969   : > { %v7227_v11 = vpop.permute.xlu1 %7226 }
0x396e   : > { %v7317_v28 = vpop.permute.xlu1 %7316 }
0x39b5   : > { %v7194_v27 = vpop.f32.mrb[116].mxu0 }
0x39b6   : > { %v10484_v53 = vpop.f32.mrb[117].mxu0 }
0x39b7   : > { %v7197_v4 = vpop.f32.mrb[118].mxu0 }
0x39b8   : > { %v7219_v43 = vpack.c.bf16 %v7197_v4, %v7194_v27  ;;  %v10485_v2 = vpop.f32.mrb[119].mxu0 }
0x39ba   : > { %10495 = vmatpush3.bf16.msra.mxu1 %v7219_v43 }
0x39bb   : > { %10496 = vmatprep.subr.bf16.mxu1 %v11557_v15 }
0x3a29   : > { %v7202_v58 = vpop.f32.mrb[120].mxu0 }
0x3a2a   : > { %v10488_v37 = vpop.f32.mrb[121].mxu0 }
0x3a2b   : > { %v7205_v63 = vpop.f32.mrb[122].mxu0 }
0x3a2c   : > { %v7220_v33 = vpack.c.bf16 %v7205_v63, %v7202_v58  ;;  %v10489_v17 = vpop.f32.mrb[123].mxu0 }
0x3a2e   : > { %10497 = vmatpush3.bf16.msra.mxu1 %v7220_v33 }
0x3a2f   : > { %10498 = vmatprep.subr.bf16.mxu1 %v11557_v15 }
0x3a31   : > { %v7210_v44 = vpop.f32.mrb[124].mxu0 }
0x3a32   : > { %v10492_v59 = vpop.f32.mrb[125].mxu0 }
0x3a33   : > { %v7213_v45 = vpop.f32.mrb[126].mxu0 }
0x3a34   : > { %v7221_v60 = vpack.c.bf16 %v7213_v45, %v7210_v44  ;;  %v10493_v6 = vpop.f32.mrb[127].mxu0 }
0x3a36   : > { %10499 = vmatpush3.bf16.msra.mxu1 %v7221_v60 }
0x3a37   : > { %10504 = vmatprep.subr.bf16.mxu1 %v11557_v15 }
0x3a39   : > { %10501 = vmatmul.mubr.msk.bf16.vlgmr.msra.gmra.mrb[212].mxu1 %vm14831_vm14, %v11232_v61  ;;  %vm14849_vm14 = vmmov %vm14840_vm1 }
0x3a3a   : > { %10505 = vmatpush3.bf16.msra.mxu1 %v12786_v21  ;;  %10506 = vmatprep.mubr.msk.bf16.mxu1 %vm11558_vm13, %v11557_v15 }
0x3a3b   : > { %10520 = vmatprep.subr.bf16.mxu1 %v14047_v5 }
0x3b0c   : > { %v7276_v31 = vpop.f32.mrb[212].mxu1 }
0x3b0d   : > { %v7277_v1 = vadd.f32 %v7276_v31, %v7227_v11  ;;  %v10502_v29 = vpop.f32.mrb[213].mxu1 }
0x3b0e   : > { %v7279_v30 = vpop.f32.mrb[214].mxu1 }
0x3b0f   : > { %v7280_v34 = vadd.f32 %v7279_v30, %v7232_v32  ;;  %v10503_v56 = vpop.f32.mrb[215].mxu1  ;;  %v7283_v62 = vsel %vm14841_vm2, %v7277_v1, 0.0  ;;  %v7291_v8 = vmul.f32 %v7277_v1, %v7277_v1 }
0x3b10   : > { %7284 = vadd.xlane.f32.xlu1 %v7283_v62 }
0x3b11   : > { %v7286_v13 = vsel %vm14842_vm4, %v7280_v34, 0.0  ;;  %v7292_v50 = vmul.f32 %v7280_v34, %v7280_v34  ;;  %v7293_v22 = vsel %vm14843_vm6, %v7291_v8, 0.0  ;;  %vm14850_vm6 = vmmov %vm14840_vm1 }
0x3b12   : > { %7287 = vadd.xlane.f32.xlu0 %v7286_v13 }
0x3b13   : > { %v7296_v54 = vsel %vm14844_vm12, %v7292_v50, 0.0  ;;  %vm14851_vm12 = vmmov %vm14840_vm1 }
0x3b14   : > { %7294 = vadd.xlane.f32.xlu1 %v7293_v22 }
0x3b16   : > { %7297 = vadd.xlane.f32.xlu0 %v7296_v54 }
0x3b25   : > { %7326 = vperm.xlu1 %10868, %v7222_v24  }
0x3b29   : > { %7330 = vperm.xlu1 %10868, %v7223_v19  }
0x3b2c   : > { %7320 = vperm.xlu0 %10867, %v7223_v19  }
0x3b2d   : > { %10869 = vset.pattern.permute.xlu1 %v11556_v25 }
0x3b2e   : > { %7338 = vperm.xlu1 %10869, %v7222_v24  }
0x3b30   : > { %10871 = vset.pattern.permute.xlu0 %v11553_v47 }
0x3b32   : > { %7342 = vperm.xlu1 %10869, %v7223_v19  }
0x3b36   : > { %10870 = vset.pattern.permute.xlu1 %v11553_v47 }
0x3b9d   : > { %v7285_v16 = vpop.xlane.xlu1 %7284 }
0x3b9e   : > { %v7289_v42 = vmul.f32 0.125, %v7285_v16 }
0x3b9f   : > { %v7288_v55 = vpop.xlane.xlu0 %7287 }
0x3ba0   : > { %v7290_v57 = vmul.f32 0.125, %v7288_v55  ;;  %v7301_v0 = vmul.f32 %v7289_v42, %v7289_v42  ;;  %v7307_v58 = vsub.f32 %v7277_v1, %v7289_v42  ;;  %v11536_v1 = vld [vmem:[%s14745_s7 + $0x8] sm:$0xff]   ;;  %v11233_v42 = vld [vmem:[%s14748_s10 + $0xe0] sm:$0xff]  }
0x3ba1   : > { %v7295_v46 = vpop.xlane.xlu1 %7294 }
0x3ba2   : > { %v7299_v23 = vmul.f32 0.125, %v7295_v46  ;;  %v7302_v38 = vmul.f32 %v7290_v57, %v7290_v57  ;;  %v7308_v63 = vsub.f32 %v7280_v34, %v7290_v57  ;;  %v7409_v34 = vld [vmem:[%s14749_s11 + $0x138] sm:$0xff] }
0x3ba3   : > { %v7298_v35 = vpop.xlane.xlu0 %7297  ;;  %7417 = vperm.xlu0 %10871, %v7409_v34  }
0x3ba4   : > { %v7303_v48 = vsub.f32 %v7299_v23, %v7301_v0  ;;  %v7300_v39 = vmul.f32 0.125, %v7298_v35 }
0x3ba5   : > { %v7327_v24 = vpop.permute.xlu1 %7326 }
0x3ba6   : > { %v7305_v27 = vmax.f32 %v7303_v48, 0.0  ;;  %v7304_v53 = vsub.f32 %v7300_v39, %v7302_v38 }
0x3ba7   : > { %10873 = vset.pattern.permute.xlu0 %v11551_v18 }
0x3ba8   : > { %v7309_v4 = vadd.f32 1e-05, %v7305_v27  ;;  %v7306_v43 = vmax.f32 %v7304_v53, 0.0 }
0x3ba9   : > { %v7331_v19 = vpop.permute.xlu1 %7330 }
0x3baa   : > { %11377 = vrsqrt.f32 %v7309_v4  ;;  %v7310_v2 = vadd.f32 1e-05, %v7306_v43 }
0x3bab   : > { %v7321_v59 = vpop.permute.xlu0 %7320 }
0x3bac   : > { %11379 = vrsqrt.f32 %v7310_v2 }
0x3bad   : > { %v7339_v44 = vpop.permute.xlu1 %7338 }
0x3bb1   : > { %v7343_v32 = vpop.permute.xlu1 %7342 }
0x3bb4   : > { %v11378_v37 = vpop.eup %11377 }
0x3bb5   : > { %v7313_v33 = vmul.f32 %v11378_v37, %v7307_v58 }
0x3bb6   : > { %v11380_v17 = vpop.eup %11379 }
0x3bb7   : > { %v7323_v45 = vmul.f32 %v7317_v28, %v7313_v33  ;;  %v7314_v60 = vmul.f32 %v11380_v17, %v7308_v63 }
0x3bb9   : > { %v7333_v6 = vadd.f32 %v7327_v24, %v7323_v45  ;;  %v7324_v61 = vmul.f32 %v7321_v59, %v7314_v60 }
0x3bbb   : > { %v7345_v11 = vmul.f32 %v7339_v44, %v7333_v6  ;;  %v7334_v31 = vadd.f32 %v7331_v19, %v7324_v61  ;;  %vm7335_vm7 = vcmp.ge.f32.partialorder %v7333_v6, 0.0 }
0x3bbd   : > { %vm7336_vm9 = vcmp.ge.f32.partialorder %v7334_v31, 0.0  ;;  %v7346_v29 = vmul.f32 %v7343_v32, %v7334_v31  ;;  %v7347_v30 = vsel %vm7335_vm7, %v7333_v6, %v7345_v11  ;;  %vm14852_vm7 = vcmask 588800  }
0x3bbf   : > { %v7348_v56 = vsel %vm7336_vm9, %v7334_v31, %v7346_v29  ;;  %vm14853_vm9 = vmmov %vm14852_vm7 }
0x3bc0   : > { %v7349_v62 = vpack.c.bf16 %v7348_v56, %v7347_v30 }
0x3bc2   : > { %10507 = vmatmul.mubr.msk.bf16.vlgmr.msra.gmra.mrb[216].mxu1 %vm14845_vm8, %v7349_v62  ;;  %vm14854_vm8 = vmmov %vm14852_vm7 }
0x3bc3   : > { %10521 = vmatpush3.bf16.msra.mxu1 %v14047_v5  ;;  %v7408_v5 = vld [vmem:[%s14749_s11 + $0x130] sm:$0xff] }
0x3bc4   : > { %10522 = vmatprep.subr.bf16.mxu1 %v11536_v1 }
0x3bc7   : > { %10523 = vmatpush3.bf16.msra.mxu1 %v11536_v1 }
0x3bc8   : > { %10528 = vmatprep.subr.bf16.mxu1 %v11557_v15 }
0x3c22   : > { %v7418_v57 = vpop.permute.xlu0 %7417 }
0x3c95   : > { %v7387_v8 = vpop.f32.mrb[216].mxu1 }
0x3c96   : > { %v10508_v13 = vpop.f32.mrb[217].mxu1 }
0x3c97   : > { %v7390_v50 = vpop.f32.mrb[218].mxu1 }
0x3c98   : > { %v7394_v22 = vpack.c.bf16 %v7390_v50, %v7387_v8  ;;  %v10509_v54 = vpop.f32.mrb[219].mxu1 }
0x3c9a   : > { %7396 = vrot.lane.b32.xlu1 %v7394_v22, %s11559_s29  ;;  %10511 = vmatpush3.bf16.msra.mxu0 %v7394_v22 }
0x3c9b   : > { %10512 = vmatprep.subr.bf16.mxu0 %v11557_v15 }
0x3c9e   : > { %7401 = vrot.lane.b32.xlu1 %v7394_v22, %s11560_s30 }
0x3ca2   : > { %7412 = vperm.xlu1 %10870, %v7408_v5  }
0x3ca6   : > { %10872 = vset.pattern.permute.xlu1 %v11551_v18 }
0x3ca7   : > { %7502 = vperm.xlu1 %10872, %v7408_v5  }
0x3cab   : > { %10874 = vset.pattern.permute.xlu1 %v11555_v14 }
0x3d0c   : > { %v7397_v28 = vpop.permute.xlu1 %7396 }
0x3d0d   : > { %10513 = vmatpush3.bf16.msk.msra.mxu0 %vm12805_vm15, %v7397_v28 }
0x3d0e   : > { %10514 = vmatprep.subr.bf16.mxu0 %v11557_v15 }
0x3d10   : > { %v7402_v16 = vpop.permute.xlu1 %7401 }
0x3d11   : > { %10515 = vmatpush3.bf16.msk.msra.mxu0 %vm12813_vm5, %v7402_v16 }
0x3d12   : > { %10544 = vmatprep.subr.bf16.mxu0 %v11557_v15 }
0x3d14   : > { %10517 = vmatmul.mubr.msk.bf16.vlgmr.msra.gmra.mrb[128].mxu0 %vm14846_vm0, %v11233_v42 }
0x3d15   : > { %10545 = vmatpush3.bf16.msra.mxu0 %v13896_v10  ;;  %10554 = vmatprep.mubr.msk.bf16.mxu0 %vm11558_vm13, %v11557_v15 }
0x3d16   : > { %10546 = vmatprep.subr.bf16.mxu0 %v11557_v15 }
0x3d19   : > { %10547 = vmatpush3.bf16.msra.mxu0 %v13906_v40 }
0x3d1a   : > { %10548 = vmatprep.subr.bf16.mxu0 %v11557_v15 }
0x3d1d   : > { %10549 = vmatpush3.bf16.msra.mxu0 %v13914_v52 }
0x3d1e   : > { %10550 = vmatprep.subr.bf16.mxu0 %v11557_v15 }
0x3d21   : > { %10551 = vmatpush3.bf16.msra.mxu0 %v13923_v7  ;;  %v7413_v10 = vpop.permute.xlu1 %7412 }
0x3d22   : > { %10552 = vmatprep.subr.bf16.mxu0 %v11557_v15 }
0x3d25   : > { %10553 = vmatpush3.bf16.msra.mxu0 %v12686_v3 }
0x3d26   : > { %10580 = vmatprep.subr.bf16.mxu0 %v11557_v15  ;;  %v7503_v27 = vpop.permute.xlu1 %7502 }
0x3de7   : > { %v7462_v55 = vpop.f32.mrb[128].mxu0 }
0x3de8   : > { %v7463_v46 = vadd.f32 %v7462_v55, %v7413_v10  ;;  %v10518_v0 = vpop.f32.mrb[129].mxu0 }
0x3de9   : > { %v7465_v40 = vpop.f32.mrb[130].mxu0 }
0x3dea   : > { %v7466_v23 = vadd.f32 %v7465_v40, %v7418_v57  ;;  %v10519_v35 = vpop.f32.mrb[131].mxu0  ;;  %v7469_v52 = vsel %vm14847_vm3, %v7463_v46, 0.0  ;;  %v7477_v38 = vmul.f32 %v7463_v46, %v7463_v46 }
0x3deb   : > { %7470 = vadd.xlane.f32.xlu1 %v7469_v52  ;;  %v7614_v35 = vld [vmem:[%s14749_s11 + $0x140] sm:$0xff] }
0x3dec   : > { %v7472_v7 = vsel %vm14848_vm11, %v7466_v23, 0.0  ;;  %v7478_v48 = vmul.f32 %v7466_v23, %v7466_v23  ;;  %v7479_v3 = vsel %vm14840_vm1, %v7477_v38, 0.0  ;;  %vm14856_vm11 = vmmov %vm14852_vm7  ;;  %vm14857_vm1 = vcmask 580608  }
0x3ded   : > { %7473 = vadd.xlane.f32.xlu0 %v7472_v7 }
0x3dee   : > { %v7482_v39 = vsel %vm14849_vm14, %v7478_v48, 0.0  ;;  %vm14858_vm14 = vmmov %vm14852_vm7 }
0x3def   : > { %7480 = vadd.xlane.f32.xlu1 %v7479_v3  ;;  %v11234_v3 = vld [vmem:[%s14748_s10 + $0xe8] sm:$0xff]  }
0x3df1   : > { %7483 = vadd.xlane.f32.xlu0 %v7482_v39 }
0x3e00   : > { %7512 = vperm.xlu1 %10874, %v7408_v5  }
0x3e04   : > { %7516 = vperm.xlu1 %10874, %v7409_v34  }
0x3e07   : > { %7506 = vperm.xlu0 %10873, %v7409_v34  }
0x3e08   : > { %10875 = vset.pattern.permute.xlu1 %v11556_v25 }
0x3e09   : > { %7524 = vperm.xlu1 %10875, %v7408_v5  }
0x3e0b   : > { %10876 = vset.pattern.permute.xlu0 %v11553_v47 }
0x3e0c   : > { %7618 = vperm.xlu0 %10876, %v7614_v35  }
0x3e0d   : > { %7528 = vperm.xlu1 %10875, %v7409_v34  }
0x3e10   : > { %10878 = vset.pattern.permute.xlu0 %v11551_v18 }
0x3e11   : > { %10877 = vset.pattern.permute.xlu1 %v11553_v47 }
0x3e78   : > { %v7471_v53 = vpop.xlane.xlu1 %7470 }
0x3e79   : > { %v7475_v4 = vmul.f32 0.03125, %v7471_v53 }
0x3e7a   : > { %v7474_v43 = vpop.xlane.xlu0 %7473 }
0x3e7b   : > { %v7476_v2 = vmul.f32 0.03125, %v7474_v43  ;;  %v7487_v19 = vmul.f32 %v7475_v4, %v7475_v4  ;;  %v7493_v31 = vsub.f32 %v7463_v46, %v7475_v4 }
0x3e7c   : > { %v7481_v24 = vpop.xlane.xlu1 %7480 }
0x3e7d   : > { %v7485_v58 = vmul.f32 0.03125, %v7481_v24  ;;  %v7488_v63 = vmul.f32 %v7476_v2, %v7476_v2  ;;  %v7494_v29 = vsub.f32 %v7466_v23, %v7476_v2 }
0x3e7e   : > { %v7484_v37 = vpop.xlane.xlu0 %7483 }
0x3e7f   : > { %v7489_v33 = vsub.f32 %v7485_v58, %v7487_v19  ;;  %v7486_v17 = vmul.f32 0.03125, %v7484_v37 }
0x3e80   : > { %v7513_v61 = vpop.permute.xlu1 %7512 }
0x3e81   : > { %v7491_v44 = vmax.f32 %v7489_v33, 0.0  ;;  %v7490_v59 = vsub.f32 %v7486_v17, %v7488_v63 }
0x3e83   : > { %v7495_v45 = vadd.f32 1e-05, %v7491_v44  ;;  %v7492_v60 = vmax.f32 %v7490_v59, 0.0 }
0x3e84   : > { %v7517_v11 = vpop.permute.xlu1 %7516 }
0x3e85   : > { %11381 = vrsqrt.f32 %v7495_v45  ;;  %v7496_v6 = vadd.f32 1e-05, %v7492_v60 }
0x3e86   : > { %v7507_v1 = vpop.permute.xlu0 %7506 }
0x3e87   : > { %11383 = vrsqrt.f32 %v7496_v6 }
0x3e88   : > { %v7525_v62 = vpop.permute.xlu1 %7524 }
0x3e8b   : > { %v7619_v39 = vpop.permute.xlu0 %7618 }
0x3e8c   : > { %v7529_v5 = vpop.permute.xlu1 %7528 }
0x3e8f   : > { %v11382_v32 = vpop.eup %11381 }
0x3e90   : > { %v7499_v30 = vmul.f32 %v11382_v32, %v7493_v31 }
0x3e91   : > { %v11384_v56 = vpop.eup %11383 }
0x3e92   : > { %v7509_v34 = vmul.f32 %v7503_v27, %v7499_v30  ;;  %v7500_v8 = vmul.f32 %v11384_v56, %v7494_v29 }
0x3e94   : > { %v7519_v13 = vadd.f32 %v7513_v61, %v7509_v34  ;;  %v7510_v50 = vmul.f32 %v7507_v1, %v7500_v8 }
0x3e96   : > { %v7531_v22 = vmul.f32 %v7525_v62, %v7519_v13  ;;  %v7520_v54 = vadd.f32 %v7517_v11, %v7510_v50  ;;  %vm7521_vm2 = vcmp.ge.f32.partialorder %v7519_v13, 0.0 }
0x3e98   : > { %vm7522_vm4 = vcmp.ge.f32.partialorder %v7520_v54, 0.0  ;;  %v7532_v28 = vmul.f32 %v7529_v5, %v7520_v54  ;;  %v7533_v16 = vsel %vm7521_vm2, %v7519_v13, %v7531_v22  ;;  %vm14859_vm2 = vcmask 572416  }
0x3e9a   : > { %v7534_v42 = vsel %vm7522_vm4, %v7520_v54, %v7532_v28  ;;  %vm14860_vm4 = vmmov %vm14852_vm7 }
0x3e9b   : > { %v7535_v10 = vpack.c.bf16 %v7534_v42, %v7533_v16 }
0x3e9d   : > { %10524 = vmatprep.mubr.msk.bf16.mxu1 %vm14850_vm6, %v7535_v10  ;;  %vm14861_vm6 = vcmask 392192  }
0x3e9e   : > { %10525 = vmatmul.mubr.msk.bf16.vlgmr.msra.gmra.mrb[220].mxu1 %vm14851_vm12, %v14007_v36  ;;  %v7615_v36 = vld [vmem:[%s14749_s11 + $0x148] sm:$0xff]  ;;  %vm14862_vm12 = vmmov %vm14861_vm6 }
0x3e9f   : > { %10540 = vmatprep.mubr.msk.bf16.mxu1 %vm11558_vm13, %v11557_v15 }
0x3f71   : > { %v10526_v55 = vpop.f32.mrb[220].mxu1 }
0x3f72   : > { %v7573_v57 = vpop.f32.mrb[221].mxu1 }
0x3f73   : > { %v10527_v46 = vpop.f32.mrb[222].mxu1 }
0x3f74   : > { %v7589_v0 = vpack.c.bf16 %v10527_v46, %v10526_v55  ;;  %v7576_v40 = vpop.f32.mrb[223].mxu1 }
0x3f75   : > { %v7588_v23 = vpack.c.bf16 %v7576_v40, %v7573_v57 }
0x3f77   : > { %7592 = vrot.lane.b32.xlu1 %v7588_v23, %s11559_s29  ;;  %10529 = vmatpush3.bf16.msra.mxu1 %v7588_v23 }
0x3f78   : > { %10530 = vmatprep.subr.bf16.mxu1 %v11557_v15 }
0x3f7b   : > { %7594 = vrot.lane.b32.xlu1 %v7589_v0, %s11559_s29  ;;  %10531 = vmatpush3.bf16.msra.mxu1 %v7589_v0 }
0x3f7c   : > { %10532 = vmatprep.subr.bf16.mxu1 %v11557_v15 }
0x3f7f   : > { %7602 = vrot.lane.b32.xlu1 %v7588_v23, %s11560_s30 }
0x3f83   : > { %7604 = vrot.lane.b32.xlu1 %v7589_v0, %s11560_s30 }
0x3f87   : > { %7623 = vperm.xlu1 %10877, %v7615_v36  }
0x3f8b   : > { %10879 = vset.pattern.permute.xlu1 %v11551_v18 }
0x3fe9   : > { %v7593_v52 = vpop.permute.xlu1 %7592 }
0x3fea   : > { %10533 = vmatpush3.bf16.msk.msra.mxu1 %vm12805_vm15, %v7593_v52 }
0x3feb   : > { %10534 = vmatprep.subr.bf16.mxu1 %v11557_v15 }
0x3fed   : > { %v7595_v38 = vpop.permute.xlu1 %7594 }
0x3fee   : > { %10535 = vmatpush3.bf16.msk.msra.mxu1 %vm12805_vm15, %v7595_v38 }
0x3fef   : > { %10536 = vmatprep.subr.bf16.mxu1 %v11557_v15 }
0x3ff1   : > { %v7603_v7 = vpop.permute.xlu1 %7602 }
0x3ff2   : > { %10537 = vmatpush3.bf16.msk.msra.mxu1 %vm12813_vm5, %v7603_v7 }
0x3ff3   : > { %10538 = vmatprep.subr.bf16.mxu1 %v11557_v15 }
0x3ff5   : > { %v7605_v48 = vpop.permute.xlu1 %7604 }
0x3ff6   : > { %10539 = vmatpush3.bf16.msk.msra.mxu1 %vm12813_vm5, %v7605_v48 }
0x3ff9   : > { %10541 = vmatmul.mubr.msk.bf16.vlgmr.msra.gmra.mrb[224].mxu1 %vm3854_vm10, %v11234_v3  ;;  %vm14855_vm10 = vmmov %vm14852_vm7 }
0x4006   : > { %v7624_v53 = vpop.permute.xlu1 %7623 }
0x40cc   : > { %v7668_v27 = vpop.f32.mrb[224].mxu1 }
0x40cd   : > { %v7669_v4 = vadd.f32 %v7668_v27, %v7619_v39  ;;  %v10542_v43 = vpop.f32.mrb[225].mxu1 }
0x40ce   : > { %v7671_v2 = vpop.f32.mrb[226].mxu1 }
0x40cf   : > { %v7672_v24 = vadd.f32 %v7671_v2, %v7624_v53  ;;  %v10543_v19 = vpop.f32.mrb[227].mxu1  ;;  %v7675_v58 = vsel %vm14852_vm7, %v7669_v4, 0.0  ;;  %v7683_v63 = vmul.f32 %v7669_v4, %v7669_v4  ;;  %v11235_v2 = vld [vmem:[%s14748_s10 + $0xf0] sm:$0xff]   ;;  %vm14863_vm7 = vmmov %vm14861_vm6 }
0x40d0   : > { %7676 = vadd.xlane.f32.xlu1 %v7675_v58  ;;  %10572 = vmatprep.mubr.msk.bf16.mxu1 %vm14861_vm6, %v11235_v2  ;;  %v14172_v58 = vld [vmem:[%s14749_s11 + $0x158] sm:$0xff] }
0x40d1   : > { %v7678_v37 = vsel %vm14853_vm9, %v7672_v24, 0.0  ;;  %v7685_v33 = vsel %vm14854_vm8, %v7683_v63, 0.0  ;;  %v7684_v17 = vmul.f32 %v7672_v24, %v7672_v24  ;;  %vm14864_vm9 = vmmov %vm14861_vm6  ;;  %vm14865_vm8 = vcmask 31744  }
0x40d2   : > { %7679 = vadd.xlane.f32.xlu0 %v7678_v37  ;;  %v14177_v37 = vld [vmem:[%s14749_s11 + $0x150] sm:$0xff] }
0x40d3   : > { %v7688_v44 = vsel %vm14855_vm10, %v7684_v17, 0.0  ;;  %vm14866_vm10 = vmmov %vm14865_vm8 }
0x40d6   : > { %7686 = vadd.xlane.f32.xlu0 %v7685_v33 }
0x40e1   : > { %7712 = vperm.xlu1 %10879, %v7615_v36  }
0x40e5   : > { %10880 = vset.pattern.permute.xlu1 %v11555_v14 }
0x40e6   : > { %7718 = vperm.xlu1 %10880, %v7614_v35  }
0x40ea   : > { %7722 = vperm.xlu1 %10880, %v7615_v36  }
0x40ec   : > { %7708 = vperm.xlu0 %10878, %v7614_v35  }
0x40ee   : > { %10881 = vset.pattern.permute.xlu1 %v11556_v25 }
0x40ef   : > { %7730 = vperm.xlu1 %10881, %v7614_v35  }
0x40f0   : > { %10882 = vset.pattern.permute.xlu0 %v11552_v51 }
0x40f1   : > { %7964 = vperm.xlu0 %10882, %v14177_v37  }
0x40f5   : > { %10885 = vset.pattern.permute.xlu0 %v11553_v47 }
0x4113   : > { %7689 = vadd.xlane.f32.xlu1 %v7688_v44 }
0x4124   : > { %7734 = vperm.xlu1 %10881, %v7615_v36  }
0x4128   : > { %10883 = vset.pattern.permute.xlu1 %v11552_v51 }
0x415d   : > { %v7677_v59 = vpop.xlane.xlu1 %7676 }
0x415e   : > { %v7681_v61 = vmul.f32 0.013888889, %v7677_v59 }
0x415f   : > { %v7680_v45 = vpop.xlane.xlu0 %7679 }
0x4160   : > { %v7693_v31 = vmul.f32 %v7681_v61, %v7681_v61  ;;  %v7682_v34 = vmul.f32 0.013888889, %v7680_v45  ;;  %v7699_v16 = vsub.f32 %v7669_v4, %v7681_v61 }
0x4161   : > { %v7713_v60 = vpop.permute.xlu1 %7712 }
0x4162   : > { %v7694_v13 = vmul.f32 %v7682_v34, %v7682_v34  ;;  %v7700_v57 = vsub.f32 %v7672_v24, %v7682_v34 }
0x4163   : > { %v7687_v6 = vpop.xlane.xlu0 %7686 }
0x4164   : > { %v7691_v11 = vmul.f32 0.013888889, %v7687_v6 }
0x4165   : > { %v7719_v32 = vpop.permute.xlu1 %7718 }
0x4166   : > { %v7695_v29 = vsub.f32 %v7691_v11, %v7693_v31  ;;  %v11236_v31 = vld [vmem:[%s14748_s10 + $0xf8] sm:$0xff]  }
0x4168   : > { %v7697_v30 = vmax.f32 %v7695_v29, 0.0  ;;  %v11238_v29 = vld [vmem:[%s14748_s10 + $0x108] sm:$0xff]  }
0x4169   : > { %v7723_v56 = vpop.permute.xlu1 %7722 }
0x416a   : > { %v7701_v62 = vadd.f32 1e-05, %v7697_v30 }
0x416b   : > { %v7709_v10 = vpop.permute.xlu0 %7708 }
0x416c   : > { %11385 = vrsqrt.f32 %v7701_v62 }
0x416e   : > { %v7731_v1 = vpop.permute.xlu1 %7730 }
0x4176   : > { %v11386_v5 = vpop.eup %11385 }
0x4177   : > { %v7705_v42 = vmul.f32 %v11386_v5, %v7699_v16 }
0x4179   : > { %v7715_v55 = vmul.f32 %v7709_v10, %v7705_v42 }
0x417b   : > { %v7725_v46 = vadd.f32 %v7719_v32, %v7715_v55  ;;  %v11237_v32 = vld [vmem:[%s14748_s10 + $0x100] sm:$0xff]  }
0x417d   : > { %v7737_v23 = vmul.f32 %v7731_v1, %v7725_v46  ;;  %vm7727_vm0 = vcmp.ge.f32.partialorder %v7725_v46, 0.0 }
0x417f   : > { %v7739_v38 = vsel %vm7727_vm0, %v7725_v46, %v7737_v23  ;;  %vm14867_vm0 = vmmov %vm14865_vm8 }
0x4180   : > { %v7741_v3 = vadd.f32 %v7739_v38, %v13949_v41 }
0x41a0   : > { %v7690_v8 = vpop.xlane.xlu1 %7689 }
0x41a1   : > { %v7692_v50 = vmul.f32 0.013888889, %v7690_v8 }
0x41a3   : > { %v7696_v22 = vsub.f32 %v7692_v50, %v7694_v13 }
0x41a4   : > { %v7735_v52 = vpop.permute.xlu1 %7734 }
0x41a5   : > { %v7698_v54 = vmax.f32 %v7696_v22, 0.0 }
0x41a7   : > { %v7702_v28 = vadd.f32 1e-05, %v7698_v54  ;;  %v7965_v54 = vpop.permute.xlu0 %7964 }
0x41a9   : > { %11387 = vrsqrt.f32 %v7702_v28 }
0x41b3   : > { %v11388_v0 = vpop.eup %11387 }
0x41b4   : > { %v7706_v40 = vmul.f32 %v11388_v0, %v7700_v57 }
0x41b6   : > { %v7716_v35 = vmul.f32 %v7713_v60, %v7706_v40 }
0x41b8   : > { %v7726_v36 = vadd.f32 %v7723_v56, %v7716_v35 }
0x41ba   : > { %vm7728_vm3 = vcmp.ge.f32.partialorder %v7726_v36, 0.0  ;;  %v7738_v7 = vmul.f32 %v7735_v52, %v7726_v36 }
0x41bc   : > { %v7740_v48 = vsel %vm7728_vm3, %v7726_v36, %v7738_v7  ;;  %vm14868_vm3 = vmmov %vm14867_vm0 }
0x41bd   : > { %v7742_v39 = vadd.f32 %v7740_v48, %v13951_v9 }
0x41bf   : > { %v7743_v27 = vpack.c.bf16 %v7742_v39, %v7741_v3 }
0x41c1   : > { %7745 = vrot.lane.b32.xlu1 %v7743_v27, %s11547_s25  ;;  %10555 = vmatmul.mubr.msk.bf16.vlgmr.msra.gmra.mrb[132].mxu0 %vm14856_vm11, %v7743_v27  ;;  %vm14869_vm11 = vcmask 261120  }
0x41c2   : > { %10558 = vmatprep.mubr.msk.bf16.mxu0 %vm11558_vm13, %v11557_v15  ;;  %10581 = vmatpush3.bf16.msra.mxu0 %v13986_v20 }
0x41c3   : > { %10582 = vmatprep.subr.bf16.mxu0 %v11557_v15 }
0x41c5   : > { %7749 = vrot.lane.b32.xlu1 %v7743_v27, %s11549_s16 }
0x41c6   : > { %10583 = vmatpush3.bf16.msra.mxu0 %v13995_v49 }
0x41c7   : > { %10612 = vmatprep.subr.bf16.mxu0 %v11557_v15 }
0x41c9   : > { %7968 = vperm.xlu1 %10883, %v14172_v58  }
0x41cd   : > { %10884 = vset.pattern.permute.xlu1 %v11553_v47 }
0x4233   : > { %v7746_v41 = vpop.permute.xlu1 %7745 }
0x4234   : > { %v7748_v9 = vsel %vm14857_vm1, %v7746_v41, 0  ;;  %vm14870_vm1 = vmmov %vm14869_vm11 }
0x4235   : > { %10559 = vmatmul.mubr.msk.bf16.gmra.mrb[136].mxu0 %vm14858_vm14, %v7748_v9  ;;  %vm14871_vm14 = vmmov %vm14870_vm1 }
0x4236   : > { %10562 = vmatprep.mubr.msk.bf16.mxu0 %vm11558_vm13, %v11557_v15 }
0x4237   : > { %v7750_v53 = vpop.permute.xlu1 %7749 }
0x4238   : > { %v7752_v4 = vsel %vm14859_vm2, %v7750_v53, 0  ;;  %vm14872_vm2 = vmmov %vm14870_vm1 }
0x423d   : > { %10563 = vmatmul.mubr.msk.bf16.gmra.mrb[140].mxu0 %vm14860_vm4, %v7752_v4 }
0x423e   : > { %10584 = vmatprep.mubr.msk.bf16.mxu0 %vm11558_vm13, %v11557_v15 }
0x4248   : > { %v7969_v22 = vpop.permute.xlu1 %7968 }
0x4294   : > { %v7794_v20 = vpop.f32.mrb[132].mxu0 }
0x4295   : > { %v10556_v49 = vpop.f32.mrb[133].mxu0 }
0x4296   : > { %v7797_v43 = vpop.f32.mrb[134].mxu0 }
0x4297   : > { %v7825_v24 = vpack.c.bf16 %v7797_v43, %v7794_v20  ;;  %v10557_v19 = vpop.f32.mrb[135].mxu0 }
0x4299   : > { %10566 = vmatprep.subr.bf16.mxu1 %v7825_v24 }
0x429a   : > { %10567 = vmatpush3.bf16.msra.mxu1 %v7825_v24 }
0x4308   : > { %v7802_v63 = vpop.f32.mrb[136].mxu0 }
0x4309   : > { %v10560_v33 = vpop.f32.mrb[137].mxu0 }
0x430a   : > { %v7805_v17 = vpop.f32.mrb[138].mxu0 }
0x430b   : > { %v7826_v44 = vpack.c.bf16 %v7805_v17, %v7802_v63  ;;  %v10561_v59 = vpop.f32.mrb[139].mxu0 }
0x430d   : > { %10568 = vmatprep.subr.bf16.mxu1 %v7826_v44 }
0x430e   : > { %10569 = vmatpush3.bf16.msra.mxu1 %v7826_v44 }
0x4310   : > { %v7810_v45 = vpop.f32.mrb[140].mxu0 }
0x4311   : > { %v10564_v60 = vpop.f32.mrb[141].mxu0 }
0x4312   : > { %v7813_v6 = vpop.f32.mrb[142].mxu0 }
0x4313   : > { %v7827_v61 = vpack.c.bf16 %v7813_v6, %v7810_v45  ;;  %v10565_v11 = vpop.f32.mrb[143].mxu0 }
0x4315   : > { %10570 = vmatprep.subr.bf16.mxu1 %v7827_v61 }
0x4316   : > { %10571 = vmatpush3.bf16.msra.mxu1 %v7827_v61 }
0x4317   : > { %10596 = vmatprep.subr.bf16.mxu1 %v11557_v15 }
0x4319   : > { %10573 = vmatmul.mubr.msk.bf16.vlgmr.msra.gmra.mrb[228].mxu1 %vm14862_vm12, %v11236_v31  ;;  %vm14873_vm12 = vmmov %vm14870_vm1 }
0x431a   : > { %10576 = vmatprep.mubr.msk.bf16.mxu1 %vm14863_vm7, %v11237_v32  ;;  %vm14874_vm7 = vcmask 252928  }
0x4321   : > { %10577 = vmatmul.mubr.msk.bf16.gmra.mrb[232].mxu1 %vm14864_vm9, %v11238_v29  ;;  %vm14875_vm9 = vmmov %vm14870_vm1 }
0x4322   : > { %10602 = vmatprep.mubr.msk.bf16.mxu1 %vm11558_vm13, %v11557_v15 }
0x43ec   : > { %v10574_v30 = vpop.f32.mrb[228].mxu1 }
0x43ed   : > { %7933 = vrot.lane.b32.xlu1 %v10574_v30, %s11563_s19  ;;  %v7894_v56 = vpop.f32.mrb[229].mxu1 }
0x43ee   : > { %v10575_v62 = vpop.f32.mrb[230].mxu1 }
0x43ef   : > { %7935 = vrot.lane.b32.xlu0 %v10575_v62, %s11563_s19  ;;  %v7897_v1 = vpop.f32.mrb[231].mxu1 }
0x43f1   : > { %7953 = vperm.xlu1 %10884, %v14177_v37  }
0x43f3   : > { %7958 = vperm.xlu0 %10885, %v14172_v58  }
0x43f4   : > { %v10578_v34 = vpop.f32.mrb[232].mxu1 }
0x43f5   : > { %7929 = vrot.lane.b32.xlu1 %v7894_v56, %s11563_s19  ;;  %v7910_v8 = vpop.f32.mrb[233].mxu1 }
0x43f6   : > { %10886 = vset.pattern.permute.xlu1 %v11551_v18  ;;  %v10579_v13 = vpop.f32.mrb[234].mxu1 }
0x43f7   : > { %v7913_v50 = vpop.f32.mrb[235].mxu1  ;;  %10887 = vset.pattern.permute.xlu0 %v11551_v18 }
0x43f9   : > { %7931 = vrot.lane.b32.xlu1 %v7897_v1, %s11563_s19 }
0x43fd   : > { %8020 = vperm.xlu1 %10886, %v14177_v37  }
0x4401   : > { %10888 = vset.pattern.permute.xlu1 %v11555_v14 }
0x445f   : > { %v7934_v5 = vpop.permute.xlu1 %7933 }
0x4460   : > { %v7943_v28 = vsel %vm14865_vm8, 0.0, %v7934_v5  ;;  %vm14876_vm8 = vcmask 244736  }
0x4461   : > { %v7947_v16 = vadd.f32 %v10578_v34, %v7943_v28  ;;  %v7936_v42 = vpop.permute.xlu0 %7935 }
0x4462   : > { %v7944_v10 = vsel %vm14866_vm10, 0.0, %v7936_v42  ;;  %vm14877_vm10 = vmmov %vm14870_vm1 }
0x4463   : > { %v7971_v55 = vadd.f32 %v7965_v54, %v7947_v16  ;;  %v7948_v57 = vadd.f32 %v10579_v13, %v7944_v10 }
0x4465   : > { %v9861_v46 = vmul.f32 -1.442695, %v7971_v55  ;;  %v7972_v0 = vadd.f32 %v7969_v22, %v7948_v57 }
0x4467   : > { %11389 = vpow2.f32 %v9861_v46  ;;  %v9862_v40 = vmul.f32 -1.442695, %v7972_v0 }
0x4469   : > { %11391 = vpow2.f32 %v9862_v40 }
0x4470   : > { %v7954_v23 = vpop.permute.xlu1 %7953 }
0x4471   : > { %v11390_v35 = vpop.eup %11389 }
0x4472   : > { %v7979_v36 = vadd.f32 1.0, %v11390_v35  ;;  %v7959_v9 = vpop.permute.xlu0 %7958 }
0x4473   : > { %v11392_v52 = vpop.eup %11391 }
0x4474   : > { %11393 = vrcp.f32 %v7979_v36  ;;  %v7980_v38 = vadd.f32 1.0, %v11392_v52  ;;  %v7930_v7 = vpop.permute.xlu1 %7929 }
0x4475   : > { %v7941_v48 = vsel %vm14867_vm0, 0.0, %v7930_v7  ;;  %vm14878_vm0 = vcmask 392192  }
0x4476   : > { %11395 = vrcp.f32 %v7980_v38  ;;  %v7945_v39 = vadd.f32 %v7941_v48, %v7910_v8 }
0x4478   : > { %v7932_v3 = vpop.permute.xlu1 %7931  ;;  %v7961_v53 = vadd.f32 %v7954_v23, %v7945_v39 }
0x4479   : > { %v7942_v27 = vsel %vm14868_vm3, 0.0, %v7932_v3  ;;  %vm14879_vm3 = vcmask 64512  }
0x447a   : > { %v7946_v41 = vadd.f32 %v7942_v27, %v7913_v50 }
0x447c   : > { %v7962_v20 = vadd.f32 %v7959_v9, %v7946_v41  ;;  %v8021_v59 = vpop.permute.xlu1 %8020 }
0x447e   : > { %v11394_v4 = vpop.eup %11393 }
0x447f   : > { %v7985_v49 = vmul.f32 %v11394_v4, %v7961_v53 }
0x4480   : > { %v11396_v43 = vpop.eup %11395 }
0x4481   : > { %v7986_v2 = vmul.f32 %v11396_v43, %v7962_v20  ;;  %v7987_v24 = vsel %vm14869_vm11, %v7985_v49, 0.0  ;;  %v7995_v19 = vmul.f32 %v7985_v49, %v7985_v49  ;;  %v8133_v43 = vld [vmem:[%s14749_s11 + $0x168] sm:$0xff]  ;;  %vm14880_vm11 = vmmov %vm14879_vm3 }
0x4482   : > { %7988 = vadd.xlane.f32.xlu0 %v7987_v24 }
0x4483   : > { %v7990_v63 = vsel %vm14870_vm1, %v7986_v2, 0.0  ;;  %v7997_v33 = vsel %vm14871_vm14, %v7995_v19, 0.0  ;;  %v7996_v17 = vmul.f32 %v7986_v2, %v7986_v2  ;;  %vm14881_vm1 = vmmov %vm14879_vm3 }
0x4484   : > { %7991 = vadd.xlane.f32.xlu1 %v7990_v63  ;;  %vm14882_vm14 = vmmov %vm14881_vm1 }
0x4485   : > { %v8000_v44 = vsel %vm14872_vm2, %v7996_v17, 0.0 }
0x4486   : > { %7998 = vadd.xlane.f32.xlu0 %v7997_v33 }
0x448a   : > { %8001 = vadd.xlane.f32.xlu0 %v8000_v44 }
0x4495   : > { %8030 = vperm.xlu1 %10888, %v14177_v37  }
0x4499   : > { %8034 = vperm.xlu1 %10888, %v14172_v58  }
0x449d   : > { %10889 = vset.pattern.permute.xlu1 %v11556_v25 }
0x449e   : > { %8042 = vperm.xlu1 %10889, %v14177_v37  }
0x44a0   : > { %8024 = vperm.xlu0 %10887, %v14172_v58  }
0x44a2   : > { %8046 = vperm.xlu1 %10889, %v14172_v58  }
0x44a6   : > { %10890 = vset.pattern.permute.xlu1 %v11553_v47 }
0x450f   : > { %v7989_v45 = vpop.xlane.xlu0 %7988 }
0x4510   : > { %v7993_v60 = vmul.f32 0.03125, %v7989_v45 }
0x4511   : > { %v7992_v6 = vpop.xlane.xlu1 %7991 }
0x4512   : > { %v8005_v11 = vmul.f32 %v7993_v60, %v7993_v60  ;;  %v7994_v31 = vmul.f32 0.03125, %v7992_v6  ;;  %v8011_v22 = vsub.f32 %v7985_v49, %v7993_v60  ;;  %v8132_v49 = vld [vmem:[%s14749_s11 + $0x160] sm:$0xff]  ;;  %v11239_v6 = vld [vmem:[%s14748_s10 + $0x110] sm:$0xff]  }
0x4513   : > { %v7999_v61 = vpop.xlane.xlu0 %7998 }
0x4514   : > { %v8003_v32 = vmul.f32 0.03125, %v7999_v61  ;;  %v8006_v56 = vmul.f32 %v7994_v31, %v7994_v31  ;;  %v8012_v28 = vsub.f32 %v7986_v2, %v7994_v31 }
0x4515   : > { %v8031_v13 = vpop.permute.xlu1 %8030 }
0x4516   : > { %v8007_v29 = vsub.f32 %v8003_v32, %v8005_v11 }
0x4517   : > { %v8002_v30 = vpop.xlane.xlu0 %8001 }
0x4518   : > { %v8009_v62 = vmax.f32 %v8007_v29, 0.0  ;;  %v8004_v1 = vmul.f32 0.03125, %v8002_v30 }
0x4519   : > { %v8035_v50 = vpop.permute.xlu1 %8034 }
0x451a   : > { %v8013_v37 = vadd.f32 1e-05, %v8009_v62  ;;  %v8008_v34 = vsub.f32 %v8004_v1, %v8006_v56 }
0x451c   : > { %11397 = vrsqrt.f32 %v8013_v37  ;;  %v8010_v8 = vmax.f32 %v8008_v34, 0.0 }
0x451d   : > { %v8043_v10 = vpop.permute.xlu1 %8042 }
0x451e   : > { %v8014_v58 = vadd.f32 1e-05, %v8010_v8 }
0x451f   : > { %v8025_v55 = vpop.permute.xlu0 %8024 }
0x4520   : > { %11399 = vrsqrt.f32 %v8014_v58 }
0x4521   : > { %v8047_v35 = vpop.permute.xlu1 %8046 }
0x4526   : > { %v11398_v54 = vpop.eup %11397 }
0x4527   : > { %v8017_v5 = vmul.f32 %v11398_v54, %v8011_v22 }
0x4529   : > { %v8027_v16 = vmul.f32 %v8021_v59, %v8017_v5 }
0x452a   : > { %v11400_v42 = vpop.eup %11399 }
0x452b   : > { %v8037_v57 = vadd.f32 %v8031_v13, %v8027_v16  ;;  %v8018_v46 = vmul.f32 %v11400_v42, %v8012_v28 }
0x452d   : > { %v8028_v0 = vmul.f32 %v8025_v55, %v8018_v46  ;;  %v8049_v40 = vmul.f32 %v8043_v10, %v8037_v57  ;;  %vm8039_vm4 = vcmp.ge.f32.partialorder %v8037_v57, 0.0 }
0x452f   : > { %v8038_v23 = vadd.f32 %v8035_v50, %v8028_v0  ;;  %v14219_v52 = vsel %vm8039_vm4, %v8037_v57, %v8049_v40 }
0x4531   : > { %vm8040_vm6 = vcmp.ge.f32.partialorder %v8038_v23, 0.0  ;;  %v8050_v36 = vmul.f32 %v8047_v35, %v8038_v23 }
0x4533   : > { %v14221_v38 = vsel %vm8040_vm6, %v8038_v23, %v8050_v36  ;;  %vm14883_vm6 = vmmov %vm14881_vm1 }
0x4534   : > { %v8053_v7 = vpack.c.bf16 %v14221_v38, %v14219_v52 }
0x4536   : > { %8055 = vrot.lane.b32.xlu1 %v8053_v7, %s11547_s25  ;;  %10585 = vmatmul.mubr.msk.bf16.vlgmr.msra.gmra.mrb[144].mxu0 %vm14873_vm12, %v8053_v7  ;;  %vm14884_vm12 = vmmov %vm14878_vm0 }
0x4537   : > { %10588 = vmatprep.mubr.msk.bf16.mxu0 %vm11558_vm13, %v11557_v15 }
0x453a   : > { %8059 = vrot.lane.b32.xlu1 %v8053_v7, %s11549_s16 }
0x453e   : > { %8136 = vperm.xlu1 %10890, %v8132_v49  }
0x4542   : > { %8141 = vperm.xlu1 %10890, %v8133_v43  }
0x4546   : > { %10891 = vset.pattern.permute.xlu1 %v11551_v18 }
0x4547   : > { %8226 = vperm.xlu1 %10891, %v8132_v49  }
0x454b   : > { %10892 = vset.pattern.permute.xlu1 %v11555_v14 }
0x45a8   : > { %v8056_v48 = vpop.permute.xlu1 %8055 }
0x45a9   : > { %v8058_v3 = vsel %vm14874_vm7, %v8056_v48, 0  ;;  %vm14886_vm7 = vmmov %vm14875_vm9 }
0x45aa   : > { %10589 = vmatmul.mubr.msk.bf16.gmra.mrb[148].mxu0 %vm14875_vm9, %v8058_v3 }
0x45ab   : > { %10592 = vmatprep.mubr.msk.bf16.mxu0 %vm11558_vm13, %v11557_v15 }
0x45ac   : > { %v8060_v39 = vpop.permute.xlu1 %8059 }
0x45ad   : > { %v8062_v27 = vsel %vm14876_vm8, %v8060_v39, 0 }
0x45b2   : > { %10593 = vmatmul.mubr.msk.bf16.gmra.mrb[152].mxu0 %vm14877_vm10, %v8062_v27 }
0x45b3   : > { %10618 = vmatprep.mubr.msk.bf16.mxu0 %vm11558_vm13, %v11557_v15 }
0x45bd   : > { %v8137_v61 = vpop.permute.xlu1 %8136 }
0x45c1   : > { %v8142_v29 = vpop.permute.xlu1 %8141 }
0x45c6   : > { %v8227_v13 = vpop.permute.xlu1 %8226 }
0x4609   : > { %v8104_v41 = vpop.f32.mrb[144].mxu0 }
0x460a   : > { %v10586_v9 = vpop.f32.mrb[145].mxu0 }
0x460b   : > { %v8107_v53 = vpop.f32.mrb[146].mxu0 }
0x460c   : > { %v8129_v4 = vpack.c.bf16 %v8107_v53, %v8104_v41  ;;  %v10587_v20 = vpop.f32.mrb[147].mxu0 }
0x460e   : > { %10597 = vmatpush3.bf16.msra.mxu1 %v8129_v4 }
0x460f   : > { %10598 = vmatprep.subr.bf16.mxu1 %v11557_v15 }
0x467d   : > { %v8112_v2 = vpop.f32.mrb[148].mxu0 }
0x467e   : > { %v10590_v24 = vpop.f32.mrb[149].mxu0 }
0x467f   : > { %v8115_v19 = vpop.f32.mrb[150].mxu0 }
0x4680   : > { %v8130_v63 = vpack.c.bf16 %v8115_v19, %v8112_v2  ;;  %v10591_v33 = vpop.f32.mrb[151].mxu0 }
0x4682   : > { %10599 = vmatpush3.bf16.msra.mxu1 %v8130_v63 }
0x4683   : > { %10600 = vmatprep.subr.bf16.mxu1 %v11557_v15 }
0x4685   : > { %v8120_v17 = vpop.f32.mrb[152].mxu0 }
0x4686   : > { %v10594_v44 = vpop.f32.mrb[153].mxu0 }
0x4687   : > { %v8123_v59 = vpop.f32.mrb[154].mxu0 }
0x4688   : > { %v8131_v45 = vpack.c.bf16 %v8123_v59, %v8120_v17  ;;  %v10595_v60 = vpop.f32.mrb[155].mxu0 }
0x4689   : > { %v11538_v60 = vld [vmem:[%s14743_s5 + $0x8] sm:$0xff]  }
0x468a   : > { %10601 = vmatpush3.bf16.msra.mxu1 %v8131_v45  ;;  %v11537_v45 = vld [vmem:[%s14743_s5] sm:$0xff]  }
0x468b   : > { %10606 = vmatprep.subr.bf16.mxu1 %v11557_v15 }
0x468d   : > { %10603 = vmatmul.mubr.msk.bf16.vlgmr.msra.gmra.mrb[236].mxu1 %vm14878_vm0, %v11239_v6 }
0x468e   : > { %10607 = vmatpush3.bf16.msra.mxu1 %v12786_v21  ;;  %10608 = vmatprep.mubr.msk.bf16.mxu1 %vm11558_vm13, %v11557_v15 }
0x468f   : > { %10622 = vmatprep.subr.bf16.mxu1 %v11557_v15 }
0x4760   : > { %v8186_v11 = vpop.f32.mrb[236].mxu1 }
0x4761   : > { %v8187_v31 = vadd.f32 %v8186_v11, %v8137_v61  ;;  %v10604_v32 = vpop.f32.mrb[237].mxu1 }
0x4762   : > { %v8189_v30 = vpop.f32.mrb[238].mxu1 }
0x4763   : > { %v8190_v56 = vadd.f32 %v8189_v30, %v8142_v29  ;;  %v10605_v62 = vpop.f32.mrb[239].mxu1  ;;  %v8193_v1 = vsel %vm14879_vm3, %v8187_v31, 0.0  ;;  %v8201_v37 = vmul.f32 %v8187_v31, %v8187_v31  ;;  %v8318_v29 = vld [vmem:[%s14749_s11 + $0x170] sm:$0xff]  ;;  %v8319_v30 = vld [vmem:[%s14749_s11 + $0x178] sm:$0xff]  ;;  %vm14890_vm3 = vcmask 252928  }
0x4764   : > { %8194 = vadd.xlane.f32.xlu0 %v8193_v1  ;;  %v11240_v1 = vld [vmem:[%s14748_s10 + $0x118] sm:$0xff]  }
0x4765   : > { %v8196_v34 = vsel %vm14880_vm11, %v8190_v56, 0.0  ;;  %v8203_v21 = vsel %vm14881_vm1, %v8201_v37, 0.0  ;;  %v8202_v8 = vmul.f32 %v8190_v56, %v8190_v56  ;;  %vm14892_vm1 = vcmask 244736  }
0x4766   : > { %8197 = vadd.xlane.f32.xlu1 %v8196_v34 }
0x4767   : > { %v8206_v58 = vsel %vm14882_vm14, %v8202_v8, 0.0 }
0x4768   : > { %8204 = vadd.xlane.f32.xlu0 %v8203_v21 }
0x476c   : > { %8207 = vadd.xlane.f32.xlu0 %v8206_v58 }
0x4777   : > { %8236 = vperm.xlu1 %10892, %v8132_v49  }
0x477b   : > { %8240 = vperm.xlu1 %10892, %v8133_v43  }
0x477f   : > { %10894 = vset.pattern.permute.xlu1 %v11556_v25 }
0x4780   : > { %8252 = vperm.xlu1 %10894, %v8133_v43  }
0x4782   : > { %8230 = vperm.xlu0 %10887, %v8133_v43  }
0x4784   : > { %10895 = vset.pattern.permute.xlu1 %v11553_v47 }
0x4786   : > { %10893 = vset.pattern.permute.xlu0 %v11556_v25 }
0x4787   : > { %8248 = vperm.xlu0 %10893, %v8132_v49  }
0x478b   : > { %10896 = vset.pattern.permute.xlu0 %v11553_v47 }
0x47f1   : > { %v8195_v50 = vpop.xlane.xlu0 %8194 }
0x47f2   : > { %v8199_v22 = vmul.f32 0.125, %v8195_v50 }
0x47f3   : > { %v8198_v54 = vpop.xlane.xlu1 %8197 }
0x47f4   : > { %v8211_v28 = vmul.f32 %v8199_v22, %v8199_v22  ;;  %v8200_v16 = vmul.f32 0.125, %v8198_v54  ;;  %v8217_v48 = vsub.f32 %v8187_v31, %v8199_v22 }
0x47f5   : > { %v8205_v5 = vpop.xlane.xlu0 %8204 }
0x47f6   : > { %v8209_v42 = vmul.f32 0.125, %v8205_v5  ;;  %v8212_v57 = vmul.f32 %v8200_v16, %v8200_v16  ;;  %v8218_v41 = vsub.f32 %v8190_v56, %v8200_v16 }
0x47f7   : > { %v8237_v7 = vpop.permute.xlu1 %8236 }
0x47f8   : > { %v8213_v10 = vsub.f32 %v8209_v42, %v8211_v28 }
0x47f9   : > { %v8208_v55 = vpop.xlane.xlu0 %8207 }
0x47fa   : > { %v8215_v46 = vmax.f32 %v8213_v10, 0.0  ;;  %v8210_v0 = vmul.f32 0.125, %v8208_v55 }
0x47fb   : > { %v8241_v4 = vpop.permute.xlu1 %8240 }
0x47fc   : > { %v8219_v40 = vadd.f32 1e-05, %v8215_v46  ;;  %v8214_v23 = vsub.f32 %v8210_v0, %v8212_v57 }
0x47fe   : > { %11401 = vrsqrt.f32 %v8219_v40  ;;  %v8216_v35 = vmax.f32 %v8214_v23, 0.0 }
0x47ff   : > { %v8253_v24 = vpop.permute.xlu1 %8252 }
0x4800   : > { %v8220_v36 = vadd.f32 1e-05, %v8216_v35 }
0x4801   : > { %v8231_v27 = vpop.permute.xlu0 %8230 }
0x4802   : > { %11403 = vrsqrt.f32 %v8220_v36 }
0x4806   : > { %v8249_v43 = vpop.permute.xlu0 %8248 }
0x4808   : > { %v11402_v3 = vpop.eup %11401 }
0x4809   : > { %v8223_v39 = vmul.f32 %v11402_v3, %v8217_v48 }
0x480b   : > { %v8233_v9 = vmul.f32 %v8227_v13, %v8223_v39 }
0x480c   : > { %v11404_v53 = vpop.eup %11403 }
0x480d   : > { %v8224_v20 = vmul.f32 %v11404_v53, %v8218_v41  ;;  %v8243_v49 = vadd.f32 %v8237_v7, %v8233_v9 }
0x480f   : > { %v8234_v2 = vmul.f32 %v8231_v27, %v8224_v20  ;;  %v8255_v63 = vmul.f32 %v8249_v43, %v8243_v49  ;;  %vm8245_vm2 = vcmp.ge.f32.partialorder %v8243_v49, 0.0 }
0x4811   : > { %v8244_v19 = vadd.f32 %v8241_v4, %v8234_v2  ;;  %v8257_v17 = vsel %vm8245_vm2, %v8243_v49, %v8255_v63  ;;  %vm14894_vm2 = vmmov %vm14884_vm12 }
0x4813   : > { %vm8246_vm4 = vcmp.ge.f32.partialorder %v8244_v19, 0.0  ;;  %v8256_v33 = vmul.f32 %v8253_v24, %v8244_v19 }
0x4815   : > { %v8258_v44 = vsel %vm8246_vm4, %v8244_v19, %v8256_v33  ;;  %vm14896_vm4 = vmmov %vm14894_vm2 }
0x4816   : > { %v8259_v59 = vpack.c.bf16 %v8258_v44, %v8257_v17 }
0x4818   : > { %10609 = vmatmul.mubr.msk.bf16.vlgmr.msra.gmra.mrb[240].mxu1 %vm14883_vm6, %v8259_v59  ;;  %vm14897_vm6 = vmmov %vm14894_vm2 }
0x4819   : > { %10623 = vmatpush3.bf16.msra.mxu1 %v11537_v45  ;;  %10626 = vmatprep.mubr.msk.bf16.mxu1 %vm11558_vm13, %v11557_v15 }
0x481a   : > { %10624 = vmatprep.subr.bf16.mxu1 %v11557_v15 }
0x481d   : > { %10625 = vmatpush3.bf16.msra.mxu1 %v11538_v60 }
0x48eb   : > { %v8297_v6 = vpop.f32.mrb[240].mxu1 }
0x48ec   : > { %v10610_v61 = vpop.f32.mrb[241].mxu1 }
0x48ed   : > { %v8300_v11 = vpop.f32.mrb[242].mxu1 }
0x48ee   : > { %v8304_v31 = vpack.c.bf16 %v8300_v11, %v8297_v6  ;;  %v10611_v32 = vpop.f32.mrb[243].mxu1 }
0x48f0   : > { %8311 = vrot.lane.b32.xlu0 %v8304_v31, %s11560_s30  ;;  %8306 = vrot.lane.b32.xlu1 %v8304_v31, %s11559_s29 }
0x48f1   : > { %10613 = vmatpush3.bf16.msra.mxu0 %v8304_v31 }
0x48f2   : > { %10614 = vmatprep.subr.bf16.mxu0 %v11557_v15 }
0x48f4   : > { %8322 = vperm.xlu1 %10895, %v8318_v29   ;;  %8327 = vperm.xlu0 %10896, %v8319_v30  }
0x48f8   : > { %10897 = vset.pattern.permute.xlu1 %v11551_v18  ;;  %10898 = vset.pattern.permute.xlu0 %v11551_v18 }
0x48f9   : > { %8412 = vperm.xlu1 %10897, %v8318_v29  }
0x48fd   : > { %10899 = vset.pattern.permute.xlu1 %v11555_v14 }
0x4962   : > { %v8307_v56 = vpop.permute.xlu1 %8306  ;;  %v8312_v62 = vpop.permute.xlu0 %8311 }
0x4963   : > { %10615 = vmatpush3.bf16.msk.msra.mxu0 %vm12805_vm15, %v8307_v56  ;;  %vm14885_vm15 = vmmov %vm14875_vm9 }
0x4964   : > { %10616 = vmatprep.subr.bf16.mxu0 %v11557_v15  ;;  %vm14887_vm9 = vmmov %vm14886_vm7 }
0x4967   : > { %10617 = vmatpush3.bf16.msk.msra.mxu0 %vm12813_vm5, %v8312_v62  ;;  %vm14888_vm5 = vmmov %vm14886_vm7 }
0x4968   : > { %vm14889_vm0 = vmmov %vm14888_vm5 }
0x4969   : > { %vm14891_vm11 = vmmov %vm14889_vm0 }
0x496a   : > { %10619 = vmatmul.mubr.msk.bf16.vlgmr.msra.gmra.mrb[156].mxu0 %vm14884_vm12, %v11240_v1  ;;  %vm14893_vm14 = vmmov %vm14889_vm0 }
0x496b   : > { %vm14898_vm12 = vmmov %vm14894_vm2 }
0x4973   : > { %v8323_v37 = vpop.permute.xlu1 %8322  ;;  %v8328_v21 = vpop.permute.xlu0 %8327 }
0x4978   : > { %v8413_v42 = vpop.permute.xlu1 %8412 }
0x4a3d   : > { %v8372_v34 = vpop.f32.mrb[156].mxu0 }
0x4a3e   : > { %v8373_v8 = vadd.f32 %v8372_v34, %v8323_v37  ;;  %v10620_v58 = vpop.f32.mrb[157].mxu0 }
0x4a3f   : > { %v8375_v13 = vpop.f32.mrb[158].mxu0 }
0x4a40   : > { %v8376_v12 = vadd.f32 %v8375_v13, %v8328_v21  ;;  %v8379_v50 = vsel %vm14885_vm15, %v8373_v8, 0.0  ;;  %v8387_v22 = vmul.f32 %v8373_v8, %v8373_v8  ;;  %v10621_v54 = vpop.f32.mrb[159].mxu0  ;;  %v11241_v21 = vld [vmem:[%s14748_s10 + $0x120] sm:$0xff]   ;;  %v14329_v13 = vld [vmem:[%s14749_s11 + $0x188] sm:$0xff]  ;;  %vm14899_vm15 = vmmov %vm14894_vm2 }
0x4a41   : > { %8380 = vadd.xlane.f32.xlu1 %v8379_v50  ;;  %10644 = vmatprep.mubr.msk.bf16.mxu0 %vm14894_vm2, %v11241_v21  ;;  %v14340_v50 = vld [vmem:[%s14749_s11 + $0x1a0] sm:$0xff]  ;;  %v14352_v54 = vld [vmem:[%s14749_s11 + $0x1b0] sm:$0xff] }
0x4a42   : > { %v8382_v5 = vsel %vm14886_vm7, %v8376_v12, 0.0  ;;  %v8388_v28 = vmul.f32 %v8376_v12, %v8376_v12  ;;  %v8389_v26 = vsel %vm14887_vm9, %v8387_v22, 0.0  ;;  %v14346_v22 = vld [vmem:[%s14749_s11 + $0x198] sm:$0xff]  ;;  %vm14900_vm7 = vmmov %vm14894_vm2 }
0x4a43   : > { %8383 = vadd.xlane.f32.xlu0 %v8382_v5  ;;  %v14358_v5 = vld [vmem:[%s14749_s11 + $0x1a8] sm:$0xff]  ;;  %vm14901_vm9 = vmmov %vm14894_vm2 }
0x4a44   : > { %v8392_v16 = vsel %vm14888_vm5, %v8388_v28, 0.0  ;;  %vm14902_vm5 = vmmov %vm14894_vm2 }
0x4a45   : > { %8390 = vadd.xlane.f32.xlu1 %v8389_v26 }
0x4a47   : > { %8393 = vadd.xlane.f32.xlu0 %v8392_v16 }
0x4a56   : > { %8422 = vperm.xlu1 %10899, %v8318_v29  }
0x4a5a   : > { %8426 = vperm.xlu1 %10899, %v8319_v30  }
0x4a5d   : > { %8416 = vperm.xlu0 %10898, %v8319_v30  }
0x4a5e   : > { %10900 = vset.pattern.permute.xlu1 %v11556_v25 }
0x4a5f   : > { %8434 = vperm.xlu1 %10900, %v8318_v29  }
0x4a61   : > { %10903 = vset.pattern.permute.xlu0 %v11552_v51 }
0x4a62   : > { %9002 = vperm.xlu0 %10903, %v14329_v13  }
0x4a63   : > { %8438 = vperm.xlu1 %10900, %v8319_v30  }
0x4a66   : > { %9014 = vperm.xlu0 %10903, %v14340_v50  }
0x4a67   : > { %10901 = vset.pattern.permute.xlu1 %v11553_v47 }
0x4a6a   : > { %9022 = vperm.xlu0 %10903, %v14352_v54  }
0x4a6e   : > { %10904 = vset.pattern.permute.xlu0 %v11553_v47 }
0x4a6f   : > { %8956 = vperm.xlu0 %10904, %v14329_v13  }
0x4ace   : > { %v8381_v10 = vpop.xlane.xlu1 %8380 }
0x4acf   : > { %v8385_v55 = vmul.f32 0.03125, %v8381_v10 }
0x4ad0   : > { %v8384_v57 = vpop.xlane.xlu0 %8383 }
0x4ad1   : > { %v8386_v46 = vmul.f32 0.03125, %v8384_v57  ;;  %v8397_v40 = vmul.f32 %v8385_v55, %v8385_v55  ;;  %v8403_v20 = vsub.f32 %v8373_v8, %v8385_v55 }
0x4ad2   : > { %v8391_v0 = vpop.xlane.xlu1 %8390 }
0x4ad3   : > { %v8395_v23 = vmul.f32 0.03125, %v8391_v0  ;;  %v8398_v36 = vmul.f32 %v8386_v46, %v8386_v46  ;;  %v8404_v43 = vsub.f32 %v8376_v12, %v8386_v46  ;;  %v14334_v12 = vld [vmem:[%s14749_s11 + $0x190] sm:$0xff]  ;;  %v11242_v0 = vld [vmem:[%s14748_s10 + $0x128] sm:$0xff]  }
0x4ad4   : > { %v8394_v35 = vpop.xlane.xlu0 %8393 }
0x4ad5   : > { %v8399_v7 = vsub.f32 %v8395_v23, %v8397_v40  ;;  %v8396_v48 = vmul.f32 0.03125, %v8394_v35  ;;  %v11243_v40 = vld [vmem:[%s14748_s10 + $0x130] sm:$0xff]   ;;  %v11244_v23 = vld [vmem:[%s14748_s10 + $0x138] sm:$0xff]   ;;  %v11245_v35 = vld [vmem:[%s14748_s10 + $0x140] sm:$0xff]  }
0x4ad6   : > { %v8423_v53 = vpop.permute.xlu1 %8422 }
0x4ad7   : > { %v8401_v3 = vmax.f32 %v8399_v7, 0.0  ;;  %v8400_v39 = vsub.f32 %v8396_v48, %v8398_v36  ;;  %v11246_v36 = vld [vmem:[%s14748_s10 + $0x148] sm:$0xff]   ;;  %v11247_v7 = vld [vmem:[%s14748_s10 + $0x150] sm:$0xff]   ;;  %v11248_v48 = vld [vmem:[%s14748_s10 + $0x158] sm:$0xff]  }
0x4ad9   : > { %v8405_v27 = vadd.f32 1e-05, %v8401_v3  ;;  %v8402_v41 = vmax.f32 %v8400_v39, 0.0  ;;  %v11249_v3 = vld [vmem:[%s14748_s10 + $0x160] sm:$0xff]   ;;  %v11250_v39 = vld [vmem:[%s14748_s10 + $0x168] sm:$0xff]  }
0x4ada   : > { %v8427_v4 = vpop.permute.xlu1 %8426 }
0x4adb   : > { %11405 = vrsqrt.f32 %v8405_v27  ;;  %v8406_v9 = vadd.f32 1e-05, %v8402_v41  ;;  %v11251_v27 = vld [vmem:[%s14748_s10 + $0x170] sm:$0xff]   ;;  %v11252_v41 = vld [vmem:[%s14748_s10 + $0x178] sm:$0xff]  }
0x4adc   : > { %v8417_v63 = vpop.permute.xlu0 %8416 }
0x4add   : > { %11407 = vrsqrt.f32 %v8406_v9  ;;  %v11253_v9 = vld [vmem:[%s14748_s10 + $0x180] sm:$0xff]  }
0x4ade   : > { %v8435_v19 = vpop.permute.xlu1 %8434 }
0x4ae2   : > { %v8439_v6 = vpop.permute.xlu1 %8438 }
0x4ae5   : > { %v11406_v49 = vpop.eup %11405 }
0x4ae6   : > { %v8409_v2 = vmul.f32 %v11406_v49, %v8403_v20  ;;  %v11256_v20 = vld [vmem:[%s14748_s10 + $0x198] sm:$0xff]  }
0x4ae7   : > { %v11408_v24 = vpop.eup %11407 }
0x4ae8   : > { %v8419_v33 = vmul.f32 %v8413_v42, %v8409_v2  ;;  %v8410_v17 = vmul.f32 %v11408_v24, %v8404_v43 }
0x4aea   : > { %v8429_v44 = vadd.f32 %v8423_v53, %v8419_v33  ;;  %v8420_v59 = vmul.f32 %v8417_v63, %v8410_v17  ;;  %v11254_v53 = vld [vmem:[%s14748_s10 + $0x188] sm:$0xff]  }
0x4aec   : > { %vm8431_vm8 = vcmp.ge.f32.partialorder %v8429_v44, 0.0  ;;  %v8441_v45 = vmul.f32 %v8435_v19, %v8429_v44  ;;  %v8430_v60 = vadd.f32 %v8427_v4, %v8420_v59  ;;  %v11255_v4 = vld [vmem:[%s14748_s10 + $0x190] sm:$0xff]  }
0x4aee   : > { %v8443_v61 = vsel %vm8431_vm8, %v8429_v44, %v8441_v45  ;;  %vm8432_vm10 = vcmp.ge.f32.partialorder %v8430_v60, 0.0  ;;  %v8442_v11 = vmul.f32 %v8439_v6, %v8430_v60  ;;  %vm14903_vm8 = vmmov %vm14894_vm2 }
0x4aef   : > { %v8445_v32 = vadd.f32 %v8443_v61, %v14219_v52 }
0x4af0   : > { %v8444_v31 = vsel %vm8432_vm10, %v8430_v60, %v8442_v11  ;;  %vm14904_vm10 = vmmov %vm14894_vm2 }
0x4af1   : > { %v8446_v29 = vadd.f32 %v8444_v31, %v14221_v38 }
0x4af3   : > { %v8447_v30 = vpack.c.bf16 %v8446_v29, %v8445_v32  ;;  %v14447_v32 = vld [vmem:[%s14749_s11 + $0x1b8] sm:$0xff] }
0x4af5   : > { %8449 = vrot.lane.b32.xlu1 %v8447_v30, %s11547_s25  ;;  %10627 = vmatmul.mubr.msk.bf16.vlgmr.msra.gmra.mrb[244].mxu1 %vm14889_vm0, %v8447_v30  ;;  %vm14905_vm0 = vmmov %vm14894_vm2 }
0x4af6   : > { %10630 = vmatprep.mubr.msk.bf16.mxu1 %vm11558_vm13, %v11557_v15 }
0x4af9   : > { %8453 = vrot.lane.b32.xlu1 %v8447_v30, %s11549_s16 }
0x4b67   : > { %v8450_v56 = vpop.permute.xlu1 %8449 }
0x4b68   : > { %v8452_v62 = vsel %vm14890_vm3, %v8450_v56, 0  ;;  %vm14906_vm3 = vmmov %vm14905_vm0 }
0x4b69   : > { %10631 = vmatmul.mubr.msk.bf16.gmra.mrb[248].mxu1 %vm14891_vm11, %v8452_v62  ;;  %vm14907_vm11 = vmmov %vm14905_vm0 }
0x4b6a   : > { %10634 = vmatprep.mubr.msk.bf16.mxu1 %vm11558_vm13, %v11557_v15  ;;  %v14323_v15 = vld [vmem:[%s14749_s11 + $0x180] sm:$0xff]  ;;  %vm14895_vm13 = vmmov %vm14894_vm2  ;;  %vm14910_vm2 = vcmask 7168  }
0x4b6b   : > { %v8454_v52 = vpop.permute.xlu1 %8453  ;;  %8951 = vperm.xlu1 %10901, %v14323_v15  }
0x4b6c   : > { %v8456_v38 = vsel %vm14892_vm1, %v8454_v52, 0  ;;  %vm14908_vm1 = vmmov %vm14905_vm0 }
0x4b6f   : > { %8961 = vperm.xlu1 %10901, %v14334_v12  }
0x4b71   : > { %10635 = vmatmul.mubr.msk.bf16.gmra.mrb[252].mxu1 %vm14893_vm14, %v8456_v38  ;;  %vm14909_vm14 = vmmov %vm14905_vm0 }
0x4b73   : > { %8966 = vperm.xlu1 %10901, %v14346_v22  }
0x4b77   : > { %8976 = vperm.xlu1 %10901, %v14358_v5  }
0x4b7b   : > { %10902 = vset.pattern.permute.xlu1 %v11552_v51 }
0x4b7c   : > { %8998 = vperm.xlu1 %10902, %v14323_v15  }
0x4b80   : > { %9006 = vperm.xlu1 %10902, %v14334_v12  }
0x4b84   : > { %9010 = vperm.xlu1 %10902, %v14346_v22  }
0x4b88   : > { %9018 = vperm.xlu1 %10902, %v14358_v5  }
0x4bc8   : > { %v8498_v1 = vpop.f32.mrb[244].mxu1 }
0x4bc9   : > { %v10628_v37 = vpop.f32.mrb[245].mxu1 }
0x4bca   : > { %v8501_v34 = vpop.f32.mrb[246].mxu1 }
0x4bcb   : > { %v8553_v8 = vpack.c.bf16 %v8501_v34, %v8498_v1  ;;  %v10629_v58 = vpop.f32.mrb[247].mxu1 }
0x4bcd   : > { %10638 = vmatprep.subr.bf16.mxu0 %v8553_v8 }
0x4bce   : > { %10639 = vmatpush3.bf16.msra.mxu0 %v8553_v8 }
0x4c3c   : > { %v8506_v28 = vpop.f32.mrb[248].mxu1 }
0x4c3d   : > { %v10632_v26 = vpop.f32.mrb[249].mxu1 }
0x4c3e   : > { %v8509_v16 = vpop.f32.mrb[250].mxu1 }
0x4c3f   : > { %v8554_v42 = vpack.c.bf16 %v8509_v16, %v8506_v28  ;;  %v10633_v10 = vpop.f32.mrb[251].mxu1 }
0x4c41   : > { %10640 = vmatprep.subr.bf16.mxu0 %v8554_v42 }
0x4c42   : > { %10641 = vmatpush3.bf16.msra.mxu0 %v8554_v42  ;;  %v14496_v42 = vpop.permute.xlu1 %8951 }
0x4c44   : > { %v8514_v47 = vpop.f32.mrb[252].mxu1 }
0x4c45   : > { %v10636_v55 = vpop.f32.mrb[253].mxu1 }
0x4c46   : > { %v8517_v57 = vpop.f32.mrb[254].mxu1  ;;  %v14499_v10 = vpop.permute.xlu1 %8961 }
0x4c47   : > { %v8555_v46 = vpack.c.bf16 %v8517_v57, %v8514_v47  ;;  %v10637_v51 = vpop.f32.mrb[255].mxu1 }
0x4c49   : > { %10642 = vmatprep.subr.bf16.mxu0 %v8555_v46 }
0x4c4a   : > { %10643 = vmatpush3.bf16.msra.mxu0 %v8555_v46  ;;  %v14503_v47 = vpop.permute.xlu1 %8966 }
0x4c4d   : > { %10645 = vmatmul.mubr.msk.bf16.vlgmr.msra.gmra.mrb[160].mxu0 %vm14895_vm13, %v11242_v0  ;;  %vm14911_vm13 = vmmov %vm14910_vm2 }
0x4c4e   : > { %10648 = vmatprep.mubr.msk.bf16.mxu0 %vm14896_vm4, %v11243_v40  ;;  %v14506_v55 = vpop.permute.xlu1 %8976  ;;  %vm14912_vm4 = vmmov %vm14910_vm2 }
0x4c55   : > { %10649 = vmatmul.mubr.msk.bf16.gmra.mrb[164].mxu0 %vm14897_vm6, %v11244_v23  ;;  %vm14913_vm6 = vmmov %vm14910_vm2 }
0x4c56   : > { %10652 = vmatprep.mubr.msk.bf16.mxu0 %vm14898_vm12, %v11245_v35  ;;  %vm14914_vm12 = vmmov %vm14910_vm2 }
0x4c5d   : > { %10653 = vmatmul.mubr.msk.bf16.gmra.mrb[168].mxu0 %vm14899_vm15, %v11246_v36  ;;  %vm14915_vm15 = vmmov %vm14910_vm2 }
0x4c5e   : > { %10656 = vmatprep.mubr.msk.bf16.mxu0 %vm14900_vm7, %v11247_v7  ;;  %vm14916_vm7 = vmmov %vm14910_vm2 }
0x4c65   : > { %10657 = vmatmul.mubr.msk.bf16.gmra.mrb[172].mxu0 %vm14901_vm9, %v11248_v48  ;;  %vm14917_vm9 = vmmov %vm14910_vm2 }
0x4c66   : > { %10660 = vmatprep.mubr.msk.bf16.mxu0 %vm14902_vm5, %v11249_v3  ;;  %vm14918_vm5 = vmmov %vm14910_vm2 }
0x4c6d   : > { %10661 = vmatmul.mubr.msk.bf16.gmra.mrb[176].mxu0 %vm14903_vm8, %v11250_v39  ;;  %vm14919_vm8 = vmmov %vm14910_vm2 }
0x4c6e   : > { %10664 = vmatprep.mubr.msk.bf16.mxu0 %vm14904_vm10, %v11251_v27  ;;  %vm14920_vm10 = vmmov %vm14910_vm2 }
0x4c75   : > { %10665 = vmatmul.mubr.msk.bf16.gmra.mrb[180].mxu0 %vm14905_vm0, %v11252_v41  ;;  %vm14921_vm0 = vmmov %vm14910_vm2 }
0x4c76   : > { %10668 = vmatprep.mubr.msk.bf16.mxu0 %vm14906_vm3, %v11253_v9  ;;  %vm14922_vm3 = vmmov %vm14921_vm0 }
0x4c7d   : > { %10669 = vmatmul.mubr.msk.bf16.gmra.mrb[184].mxu0 %vm14907_vm11, %v11254_v53  ;;  %vm14923_vm11 = vcmask 64512  }
0x4c7e   : > { %10672 = vmatprep.mubr.msk.bf16.mxu0 %vm14908_vm1, %v11255_v4  ;;  %vm14924_vm1 = vmmov %vm14921_vm0 }
0x4c85   : > { %10673 = vmatmul.mubr.msk.bf16.gmra.mrb[188].mxu0 %vm14909_vm14, %v11256_v20  ;;  %vm14925_vm14 = vmmov %vm14923_vm11 }
0x4d20   : > { %v10646_v49 = vpop.f32.mrb[160].mxu0 }
0x4d21   : > { %8865 = vrot.lane.b32.xlu1 %v10646_v49, %s11559_s29  ;;  %v8718_v43 = vpop.f32.mrb[161].mxu0 }
0x4d22   : > { %v10647_v2 = vpop.f32.mrb[162].mxu0 }
0x4d23   : > { %8867 = vrot.lane.b32.xlu0 %v10647_v2, %s11559_s29  ;;  %v8721_v24 = vpop.f32.mrb[163].mxu0 }
0x4d25   : > { %8861 = vrot.lane.b32.xlu1 %v8718_v43, %s11559_s29 }
0x4d27   : > { %8863 = vrot.lane.b32.xlu0 %v8721_v24, %s11559_s29 }
0x4d28   : > { %v10650_v19 = vpop.f32.mrb[164].mxu0 }
0x4d29   : > { %8873 = vrot.lane.b32.xlu1 %v10650_v19, %s11559_s29  ;;  %v8734_v63 = vpop.f32.mrb[165].mxu0 }
0x4d2a   : > { %v10651_v33 = vpop.f32.mrb[166].mxu0 }
0x4d2b   : > { %8875 = vrot.lane.b32.xlu0 %v10651_v33, %s11559_s29  ;;  %v8737_v17 = vpop.f32.mrb[167].mxu0 }
0x4d2d   : > { %8869 = vrot.lane.b32.xlu1 %v8734_v63, %s11559_s29 }
0x4d2f   : > { %8871 = vrot.lane.b32.xlu0 %v8737_v17, %s11559_s29 }
0x4d30   : > { %v10654_v44 = vpop.f32.mrb[168].mxu0 }
0x4d31   : > { %8881 = vrot.lane.b32.xlu1 %v10654_v44, %s11559_s29  ;;  %v8750_v59 = vpop.f32.mrb[169].mxu0 }
0x4d32   : > { %v10655_v45 = vpop.f32.mrb[170].mxu0 }
0x4d33   : > { %8883 = vrot.lane.b32.xlu0 %v10655_v45, %s11559_s29  ;;  %v8753_v60 = vpop.f32.mrb[171].mxu0 }
0x4d35   : > { %8877 = vrot.lane.b32.xlu1 %v8750_v59, %s11559_s29 }
0x4d37   : > { %8879 = vrot.lane.b32.xlu0 %v8753_v60, %s11559_s29 }
0x4d38   : > { %v10658_v6 = vpop.f32.mrb[172].mxu0 }
0x4d39   : > { %8889 = vrot.lane.b32.xlu1 %v10658_v6, %s11559_s29  ;;  %v8766_v61 = vpop.f32.mrb[173].mxu0 }
0x4d3a   : > { %v10659_v11 = vpop.f32.mrb[174].mxu0 }
0x4d3b   : > { %8891 = vrot.lane.b32.xlu0 %v10659_v11, %s11559_s29  ;;  %v8769_v31 = vpop.f32.mrb[175].mxu0 }
0x4d3d   : > { %8885 = vrot.lane.b32.xlu1 %v8766_v61, %s11559_s29 }
0x4d3f   : > { %8887 = vrot.lane.b32.xlu0 %v8769_v31, %s11559_s29  ;;  %s9920_s29 = sshll.u32 %s14950_s22, 6 }
0x4d40   : > { %v14450_v29 = vpop.f32.mrb[176].mxu0  ;;  %s14696_s26 = scalar_lea.vmem %s14750_s12, %s9920_s29 }
0x4d41   : > { %9026 = vperm.xlu1 %10902, %v14447_v32   ;;  %v14453_v30 = vpop.f32.mrb[177].mxu0 }
0x4d42   : > { %v14455_v56 = vpop.f32.mrb[178].mxu0 }
0x4d43   : > { %8971 = vperm.xlu0 %10904, %v14340_v50   ;;  %v14458_v62 = vpop.f32.mrb[179].mxu0 }
0x4d45   : > { %10905 = vset.pattern.permute.xlu1 %v11551_v18 }
0x4d46   : > { %9222 = vperm.xlu1 %10905, %v14323_v15  }
0x4d47   : > { %8981 = vperm.xlu0 %10904, %v14352_v54  }
0x4d48   : > { %v14463_v52 = vpop.f32.mrb[180].mxu0 }
0x4d49   : > { %v14465_v38 = vpop.f32.mrb[181].mxu0 }
0x4d4a   : > { %9230 = vperm.xlu1 %10905, %v14334_v12   ;;  %v14468_v1 = vpop.f32.mrb[182].mxu0 }
0x4d4b   : > { %8986 = vperm.xlu0 %10904, %v14447_v32   ;;  %v14471_v37 = vpop.f32.mrb[183].mxu0 }
0x4d4e   : > { %9234 = vperm.xlu1 %10905, %v14346_v22  }
0x4d4f   : > { %10906 = vset.pattern.permute.xlu0 %v11551_v18 }
0x4d50   : > { %9226 = vperm.xlu0 %10906, %v14329_v13   ;;  %v10670_v34 = vpop.f32.mrb[184].mxu0 }
0x4d51   : > { %v8814_v21 = vpop.f32.mrb[185].mxu0 }
0x4d52   : > { %9238 = vperm.xlu1 %10905, %v14340_v50   ;;  %v10671_v8 = vpop.f32.mrb[186].mxu0 }
0x4d53   : > { %v8817_v58 = vpop.f32.mrb[187].mxu0 }
0x4d54   : > { %10908 = vset.pattern.permute.xlu0 %v11555_v14 }
0x4d55   : > { %9270 = vperm.xlu0 %10908, %v14334_v12  }
0x4d56   : > { %9242 = vperm.xlu1 %10905, %v14358_v5  }
0x4d58   : > { %v14480_v28 = vpop.f32.mrb[188].mxu0 }
0x4d59   : > { %9282 = vperm.xlu0 %10908, %v14358_v5   ;;  %v14483_v26 = vpop.f32.mrb[189].mxu0 }
0x4d5a   : > { %9246 = vperm.xlu1 %10905, %v14352_v54   ;;  %v14486_v18 = vpop.f32.mrb[190].mxu0 }
0x4d5b   : > { %v14488_v16 = vpop.f32.mrb[191].mxu0 }
0x4d5d   : > { %9290 = vperm.xlu0 %10908, %v14447_v32  }
0x4d5e   : > { %9250 = vperm.xlu1 %10905, %v14447_v32  }
0x4d61   : > { %10910 = vset.pattern.permute.xlu0 %v11556_v25 }
0x4d62   : > { %10907 = vset.pattern.permute.xlu1 %v11555_v14  ;;  %9314 = vperm.xlu0 %10910, %v14329_v13   ;;  %v8999_v14 = vpop.permute.xlu1 %8998 }
0x4d63   : > { %9262 = vperm.xlu1 %10907, %v14323_v15  }
0x4d66   : > { %v9007_v57 = vpop.permute.xlu1 %9006 }
0x4d67   : > { %9266 = vperm.xlu1 %10907, %v14329_v13   ;;  %v9003_v13 = vpop.permute.xlu0 %9002 }
0x4d6a   : > { %v9011_v51 = vpop.permute.xlu1 %9010 }
0x4d6b   : > { %9274 = vperm.xlu1 %10907, %v14346_v22   ;;  %v9015_v46 = vpop.permute.xlu0 %9014 }
0x4d6e   : > { %v9019_v40 = vpop.permute.xlu1 %9018 }
0x4d6f   : > { %9278 = vperm.xlu1 %10907, %v14340_v50   ;;  %v9023_v0 = vpop.permute.xlu0 %9022 }
0x4d73   : > { %9286 = vperm.xlu1 %10907, %v14352_v54   ;;  %v14512_v23 = vpop.permute.xlu0 %8956 }
0x4d77   : > { %10909 = vset.pattern.permute.xlu1 %v11556_v25 }
0x4d78   : > { %9310 = vperm.xlu1 %10909, %v14323_v15  }
0x4d7c   : > { %9318 = vperm.xlu1 %10909, %v14334_v12  }
0x4d80   : > { %9322 = vperm.xlu1 %10909, %v14346_v22  }
0x4d93   : > { %v8866_v35 = vpop.permute.xlu1 %8865 }
0x4d95   : > { %v8868_v36 = vpop.permute.xlu0 %8867 }
0x4d97   : > { %v14514_v7 = vpop.permute.xlu1 %8861 }
0x4d99   : > { %v14516_v25 = vpop.permute.xlu0 %8863 }
0x4d9b   : > { %v14518_v15 = vpop.permute.xlu1 %8873 }
0x4d9d   : > { %v14520_v12 = vpop.permute.xlu0 %8875 }
0x4d9f   : > { %v14522_v48 = vpop.permute.xlu1 %8869 }
0x4da1   : > { %v14524_v22 = vpop.permute.xlu0 %8871 }
0x4da3   : > { %v8882_v3 = vpop.permute.xlu1 %8881 }
0x4da4   : > { %v8919_v39 = vsel %vm14910_vm2, 0.0, %v8882_v3  ;;  %vm14926_vm2 = vmmov %vm14921_vm0 }
0x4da5   : > { %v8935_v27 = vadd.f32 %v10670_v34, %v8919_v39  ;;  %v8884_v41 = vpop.permute.xlu0 %8883 }
0x4da6   : > { %v8920_v9 = vsel %vm14911_vm13, 0.0, %v8884_v41  ;;  %vm14927_vm13 = vmmov %vm14923_vm11 }
0x4da7   : > { %v9031_v53 = vadd.f32 %v9007_v57, %v8935_v27  ;;  %v8936_v4 = vadd.f32 %v10671_v8, %v8920_v9  ;;  %v8878_v20 = vpop.permute.xlu1 %8877 }
0x4da8   : > { %v8917_v49 = vsel %vm14912_vm4, 0.0, %v8878_v20  ;;  %vm14928_vm4 = vmmov %vm14923_vm11 }
0x4da9   : > { %v9912_v43 = vmul.f32 -1.442695, %v9031_v53  ;;  %v9032_v2 = vadd.f32 %v9011_v51, %v8936_v4  ;;  %v8933_v24 = vadd.f32 %v8917_v49, %v8814_v21  ;;  %v8880_v19 = vpop.permute.xlu0 %8879 }
0x4daa   : > { %v8918_v63 = vsel %vm14913_vm6, 0.0, %v8880_v19  ;;  %vm14929_vm6 = vmmov %vm14928_vm4 }
0x4dab   : > { %11409 = vpow2.f32 %v9912_v43  ;;  %v9913_v33 = vmul.f32 -1.442695, %v9032_v2  ;;  %v9029_v17 = vadd.f32 %v8999_v14, %v8933_v24  ;;  %v8934_v44 = vadd.f32 %v8918_v63, %v8817_v58  ;;  %v8890_v59 = vpop.permute.xlu1 %8889 }
0x4dac   : > { %v8923_v45 = vsel %vm14914_vm12, 0.0, %v8890_v59  ;;  %v8909_v24 = vsel %vm14920_vm10, 0.0, %v14514_v7  ;;  %vm14930_vm12 = vmmov %vm14928_vm4 }
0x4dad   : > { %11411 = vpow2.f32 %v9913_v33  ;;  %v9910_v60 = vmul.f32 -1.442695, %v9029_v17  ;;  %v9030_v6 = vadd.f32 %v9003_v13, %v8934_v44  ;;  %v8939_v61 = vadd.f32 %v14480_v28, %v8923_v45  ;;  %v8892_v11 = vpop.permute.xlu0 %8891  ;;  %vm14936_vm10 = vmmov %vm14928_vm4 }
0x4dae   : > { %v8924_v43 = vsel %vm14919_vm8, 0.0, %v8892_v11  ;;  %v8925_v59 = vadd.f32 %v8909_v24, %v14453_v30  ;;  %vm14935_vm8 = vmmov %vm14928_vm4 }
0x4daf   : > { %11413 = vpow2.f32 %v9910_v60  ;;  %v9911_v31 = vmul.f32 -1.442695, %v9030_v6  ;;  %v9035_v34 = vadd.f32 %v9023_v0, %v8939_v61  ;;  %v8886_v21 = vpop.permute.xlu1 %8885  ;;  %v8940_v33 = vadd.f32 %v14486_v18, %v8924_v43 }
0x4db0   : > { %v8921_v8 = vsel %vm14915_vm15, 0.0, %v8886_v21  ;;  %v8989_v30 = vadd.f32 %v14496_v42, %v8925_v59  ;;  %vm14931_vm15 = vmmov %vm14928_vm4 }
0x4db1   : > { %11415 = vpow2.f32 %v9911_v31  ;;  %v9916_v57 = vmul.f32 -1.442695, %v9035_v34  ;;  %v8937_v14 = vadd.f32 %v8921_v8, %v14483_v26  ;;  %v8888_v58 = vpop.permute.xlu0 %8887  ;;  %v8911_v26 = vsel %vm14917_vm9, 0.0, %v8866_v35  ;;  %vm14933_vm9 = vmmov %vm14928_vm4 }
0x4db2   : > { %v8922_v51 = vsel %vm14916_vm7, 0.0, %v8888_v58  ;;  %v8927_v2 = vadd.f32 %v14450_v29, %v8911_v26  ;;  %v8910_v35 = vsel %vm14921_vm0, 0.0, %v14516_v25  ;;  %v8915_v31 = vsel %vm14922_vm3, 0.0, %v14518_v15  ;;  %vm14932_vm7 = vmmov %vm14928_vm4 }
0x4db3   : > { %11417 = vpow2.f32 %v9916_v57  ;;  %v9033_v3 = vadd.f32 %v9015_v46, %v8937_v14  ;;  %v8938_v13 = vadd.f32 %v8922_v51, %v14488_v16  ;;  %v8912_v46 = vsel %vm14918_vm5, 0.0, %v8868_v36  ;;  %vm14934_vm5 = vmmov %vm14921_vm0 }
0x4db4   : > { %v8928_v63 = vadd.f32 %v14455_v56, %v8912_v46  ;;  %v8991_v44 = vadd.f32 %v14499_v10, %v8927_v2  ;;  %v8926_v7 = vadd.f32 %v8910_v35, %v14458_v62  ;;  %v8913_v57 = vsel %vm14924_vm1, 0.0, %v14522_v48  ;;  %vm14937_vm0 = vmmov %vm14928_vm4 }
0x4db5   : > { %v11410_v39 = vpop.eup %11409  ;;  %v9914_v28 = vmul.f32 -1.442695, %v9033_v3  ;;  %v9034_v27 = vadd.f32 %v9019_v40, %v8938_v13  ;;  %v8931_v15 = vadd.f32 %v14463_v52, %v8915_v31  ;;  %v8914_v51 = vsel %vm14926_vm2, 0.0, %v14524_v22  ;;  %vm14938_vm3 = vmmov %vm14937_vm0 }
0x4db6   : > { %v9063_v41 = vadd.f32 1.0, %v11410_v39  ;;  %v8992_v56 = vadd.f32 %v14503_v47, %v8928_v63  ;;  %v8990_v47 = vadd.f32 %v14512_v23, %v8926_v7  ;;  %v8929_v39 = vadd.f32 %v8913_v57, %v14465_v38  ;;  %vm14940_vm1 = vmmov %vm14937_vm0 }
0x4db7   : > { %v11412_v9 = vpop.eup %11411  ;;  %11419 = vpow2.f32 %v9914_v28  ;;  %v9915_v0 = vmul.f32 -1.442695, %v9034_v27  ;;  %v8930_v28 = vadd.f32 %v8914_v51, %v14471_v37  ;;  %v8916_v24 = vsel %vm14934_vm5, 0.0, %v14520_v12 }
0x4db8   : > { %11421 = vrcp.f32 %v9063_v41  ;;  %v9064_v53 = vadd.f32 1.0, %v11412_v9  ;;  %v8932_v63 = vadd.f32 %v14468_v1, %v8916_v24 }
0x4db9   : > { %v11414_v4 = vpop.eup %11413  ;;  %11423 = vpow2.f32 %v9915_v0  ;;  %v8994_v37 = vadd.f32 %v14506_v55, %v8930_v28 }
0x4dba   : > { %11425 = vrcp.f32 %v9064_v53  ;;  %v9061_v20 = vadd.f32 1.0, %v11414_v4 }
0x4dbb   : > { %v11416_v49 = vpop.eup %11415 }
0x4dbc   : > { %11427 = vrcp.f32 %v9061_v20  ;;  %v9062_v16 = vadd.f32 1.0, %v11416_v49 }
0x4dbd   : > { %v11418_v40 = vpop.eup %11417 }
0x4dbe   : > { %11429 = vrcp.f32 %v9062_v16  ;;  %v9067_v19 = vadd.f32 1.0, %v11418_v40 }
0x4dc0   : > { %11431 = vrcp.f32 %v9067_v19  ;;  %v9027_v36 = vpop.permute.xlu1 %9026 }
0x4dc1   : > { %v11420_v17 = vpop.eup %11419  ;;  %v9036_v29 = vadd.f32 %v9027_v36, %v8940_v33 }
0x4dc2   : > { %v11422_v45 = vpop.eup %11421  ;;  %v9065_v60 = vadd.f32 1.0, %v11420_v17  ;;  %v8972_v6 = vpop.permute.xlu0 %8971 }
0x4dc3   : > { %v11424_v61 = vpop.eup %11423  ;;  %v9917_v11 = vmul.f32 -1.442695, %v9036_v29  ;;  %v14550_v25 = vmul.f32 %v11422_v45, %v8991_v44  ;;  %v8993_v9 = vadd.f32 %v8972_v6, %v8929_v39 }
0x4dc4   : > { %v11426_v18 = vpop.eup %11425  ;;  %11433 = vrcp.f32 %v9065_v60  ;;  %v9066_v10 = vadd.f32 1.0, %v11424_v61 }
0x4dc5   : > { %11435 = vpow2.f32 %v9917_v11  ;;  %v9099_v62 = vsel %vm14923_vm11, %v14550_v25, 0.0  ;;  %v14557_v34 = vmul.f32 %v11426_v18, %v8992_v56  ;;  %v9127_v48 = vmul.f32 %v14550_v25, %v14550_v25  ;;  %vm14939_vm11 = vmmov %vm14937_vm0  ;;  %v14623_v56 = vpop.permute.xlu1 %9222 }
0x4dc6   : > { %v11428_v21 = vpop.eup %11427  ;;  %11437 = vrcp.f32 %v9066_v10  ;;  %v8982_v8 = vpop.permute.xlu0 %8981  ;;  %9100 = vadd.xlane.f32.xlu1 %v9099_v62 }
0x4dc7   : > { %v9102_v42 = vsel %vm14925_vm14, %v14557_v34, 0.0  ;;  %v14565_v14 = vmul.f32 %v11428_v21, %v8989_v30  ;;  %v8995_v3 = vadd.f32 %v8982_v8, %v8931_v15  ;;  %v9128_v41 = vmul.f32 %v14557_v34, %v14557_v34  ;;  %vm14941_vm14 = vmmov %vm14937_vm0 }
0x4dc8   : > { %v11430_v58 = vpop.eup %11429  ;;  %9103 = vadd.xlane.f32.xlu0 %v9102_v42  ;;  %v9139_v0 = vsel %vm14929_vm6, %v9127_v48, 0.0 }
0x4dc9   : > { %v9093_v23 = vsel %vm14927_vm13, %v14565_v14, 0.0  ;;  %v14571_v13 = vmul.f32 %v11430_v58, %v8990_v47  ;;  %v9125_v53 = vmul.f32 %v14565_v14, %v14565_v14  ;;  %v9142_v20 = vsel %vm14930_vm12, %v9128_v41, 0.0  ;;  %v14626_v11 = vpop.permute.xlu1 %9230  ;;  %vm14943_vm12 = vmmov %vm14937_vm0 }
0x4dca   : > { %v11432_v52 = vpop.eup %11431  ;;  %9094 = vadd.xlane.f32.xlu1 %v9093_v23  ;;  %v8987_v19 = vpop.permute.xlu0 %8986 }
0x4dcb   : > { %v14577_v27 = vmul.f32 %v11432_v52, %v8995_v3  ;;  %v9096_v22 = vsel %vm14928_vm4, %v14571_v13, 0.0  ;;  %v9126_v49 = vmul.f32 %v14571_v13, %v14571_v13  ;;  %v9133_v43 = vsel %vm14931_vm15, %v9125_v53, 0.0  ;;  %vm14942_vm4 = vmmov %vm14937_vm0 }
0x4dcc   : > { %9097 = vadd.xlane.f32.xlu0 %v9096_v22  ;;  %v8996_v36 = vadd.f32 %v8987_v19, %v8932_v63 }
0x4dcd   : > { %v9136_v2 = vsel %vm14932_vm7, %v9126_v49, 0.0  ;;  %v9111_v55 = vsel %vm14933_vm9, %v14577_v27, 0.0  ;;  %v9131_v33 = vmul.f32 %v14577_v27, %v14577_v27  ;;  %v14629_v18 = vpop.permute.xlu1 %9234  ;;  %vm14944_vm7 = vmmov %vm14937_vm0 }
0x4dce   : > { %v11434_v4 = vpop.eup %11433  ;;  %9140 = vadd.xlane.f32.xlu1 %v9139_v0  ;;  %vm14945_vm9 = vmmov %vm14937_vm0 }
0x4dcf   : > { %v11436_v38 = vpop.eup %11435  ;;  %v14587_v26 = vmul.f32 %v11434_v4, %v8993_v9  ;;  %v9151_v59 = vsel %vm14936_vm10, %v9131_v33, 0.0  ;;  %v14647_v47 = vpop.permute.xlu0 %9226  ;;  %vm14946_vm10 = vmmov %vm14937_vm0 }
0x4dd0   : > { %v11438_v46 = vpop.eup %11437  ;;  %v9068_v16 = vadd.f32 1.0, %v11436_v38  ;;  %9143 = vadd.xlane.f32.xlu0 %v9142_v20 }
0x4dd1   : > { %v14593_v40 = vmul.f32 %v11438_v46, %v8994_v37  ;;  %v9105_v35 = vsel %vm14935_vm8, %v14587_v26, 0.0  ;;  %v9129_v12 = vmul.f32 %v14587_v26, %v14587_v26  ;;  %v14631_v31 = vpop.permute.xlu1 %9238 }
0x4dd2   : > { %11439 = vrcp.f32 %v9068_v16  ;;  %9134 = vadd.xlane.f32.xlu1 %v9133_v43 }
0x4dd3   : > { %v9145_v29 = vsel %vm14938_vm3, %v9129_v12, 0.0  ;;  %v9108_v45 = vsel %vm14939_vm11, %v14593_v40, 0.0  ;;  %v9130_v6 = vmul.f32 %v14593_v40, %v14593_v40  ;;  %vm14947_vm11 = vmmov %vm14937_vm0 }
0x4dd4   : > { %9137 = vadd.xlane.f32.xlu0 %v9136_v2  ;;  %v14651_v8 = vpop.permute.xlu0 %9270 }
0x4dd5   : > { %v9148_v61 = vsel %vm14941_vm14, %v9130_v6, 0.0  ;;  %v14633_v10 = vpop.permute.xlu1 %9242  ;;  %vm14948_vm14 = vmmov %vm14937_vm0 }
0x4dd6   : > { %9112 = vadd.xlane.f32.xlu1 %v9111_v55 }
0x4dd8   : > { %v14655_v15 = vpop.permute.xlu0 %9282 }
0x4dd9   : > { %v14635_v30 = vpop.permute.xlu1 %9246 }
0x4dda   : > { %9106 = vadd.xlane.f32.xlu1 %v9105_v35 }
0x4ddc   : > { %v11440_v17 = vpop.eup %11439  ;;  %v14659_v58 = vpop.permute.xlu0 %9290 }
0x4ddd   : > { %v14605_v44 = vmul.f32 %v11440_v17, %v8996_v36  ;;  %v14637_v62 = vpop.permute.xlu1 %9250 }
0x4dde   : > { %9152 = vadd.xlane.f32.xlu1 %v9151_v59 }
0x4ddf   : > { %v9114_v1 = vsel %vm14937_vm0, %v14605_v44, 0.0  ;;  %v9132_v7 = vmul.f32 %v14605_v44, %v14605_v44 }
0x4de0   : > { %9115 = vadd.xlane.f32.xlu0 %v9114_v1 }
0x4de1   : > { %v9154_v60 = vsel %vm14940_vm1, %v9132_v7, 0.0  ;;  %v14663_v3 = vpop.permute.xlu0 %9314 }
0x4de2   : > { %9146 = vadd.xlane.f32.xlu1 %v9145_v29 }
0x4de4   : > { %9109 = vadd.xlane.f32.xlu0 %v9108_v45 }
0x4de8   : > { %9155 = vadd.xlane.f32.xlu0 %v9154_v60 }
0x4dec   : > { %9149 = vadd.xlane.f32.xlu0 %v9148_v61 }
0x4df3   : > { %9330 = vperm.xlu1 %10909, %v14358_v5   ;;  %v14639_v5 = vpop.permute.xlu1 %9262 }
0x4df7   : > { %9338 = vperm.xlu1 %10909, %v14447_v32   ;;  %v14641_v32 = vpop.permute.xlu1 %9266 }
0x4dfb   : > { %v14643_v21 = vpop.permute.xlu1 %9274 }
0x4e02   : > { %9326 = vperm.xlu0 %10910, %v14340_v50   ;;  %v14645_v50 = vpop.permute.xlu1 %9278 }
0x4e06   : > { %9334 = vperm.xlu0 %10910, %v14352_v54   ;;  %v14649_v54 = vpop.permute.xlu1 %9286 }
0x4e0a   : > { %v14653_v57 = vpop.permute.xlu1 %9310 }
0x4e0e   : > { %v14657_v42 = vpop.permute.xlu1 %9318 }
0x4e12   : > { %v14661_v51 = vpop.permute.xlu1 %9322 }
0x4e53   : > { %v9101_v23 = vpop.xlane.xlu1 %9100 }
0x4e54   : > { %v9119_v39 = vmul.f32 0.125, %v9101_v23 }
0x4e55   : > { %v9104_v48 = vpop.xlane.xlu0 %9103 }
0x4e56   : > { %v9120_v22 = vmul.f32 0.125, %v9104_v48  ;;  %v9167_v9 = vmul.f32 %v9119_v39, %v9119_v39 }
0x4e57   : > { %v9095_v52 = vpop.xlane.xlu1 %9094 }
0x4e58   : > { %v9117_v0 = vmul.f32 0.125, %v9095_v52  ;;  %v9168_v37 = vmul.f32 %v9120_v22, %v9120_v22 }
0x4e59   : > { %v9098_v28 = vpop.xlane.xlu0 %9097 }
0x4e5a   : > { %v14665_v4 = vmul.f32 0.125, %v9098_v28  ;;  %v9165_v16 = vmul.f32 %v9117_v0, %v9117_v0  ;;  %v9191_v28 = vsub.f32 %v14550_v25, %v9119_v39 }
0x4e5b   : > { %v9141_v41 = vpop.xlane.xlu1 %9140 }
0x4e5c   : > { %v9159_v53 = vmul.f32 0.125, %v9141_v41  ;;  %v9166_v24 = vmul.f32 %v14665_v4, %v14665_v4 }
0x4e5d   : > { %v9144_v38 = vpop.xlane.xlu0 %9143 }
0x4e5e   : > { %v9175_v20 = vsub.f32 %v9159_v53, %v9167_v9  ;;  %v9160_v49 = vmul.f32 0.125, %v9144_v38  ;;  %v9192_v38 = vsub.f32 %v14557_v34, %v9120_v22 }
0x4e5f   : > { %v9135_v46 = vpop.xlane.xlu1 %9134 }
0x4e60   : > { %v9183_v43 = vmax.f32 %v9175_v20, 0.0  ;;  %v9176_v2 = vsub.f32 %v9160_v49, %v9168_v37  ;;  %v9157_v55 = vmul.f32 0.125, %v9135_v46 }
0x4e61   : > { %v9138_v19 = vpop.xlane.xlu0 %9137 }
0x4e62   : > { %v9199_v63 = vadd.f32 1e-05, %v9183_v43  ;;  %v9184_v35 = vmax.f32 %v9176_v2, 0.0  ;;  %v9173_v33 = vsub.f32 %v9157_v55, %v9165_v16  ;;  %v9158_v36 = vmul.f32 0.125, %v9138_v19 }
0x4e63   : > { %v9113_v17 = vpop.xlane.xlu1 %9112  ;;  %v9189_v55 = vsub.f32 %v14565_v14, %v9117_v0 }
0x4e64   : > { %11441 = vrsqrt.f32 %v9199_v63  ;;  %v9200_v59 = vadd.f32 1e-05, %v9184_v35  ;;  %v9181_v12 = vmax.f32 %v9173_v33, 0.0  ;;  %v9174_v1 = vsub.f32 %v9158_v36, %v9166_v24 }
0x4e65   : > { %v14669_v6 = vmul.f32 0.125, %v9113_v17  ;;  %v9190_v17 = vsub.f32 %v14571_v13, %v14665_v4 }
0x4e66   : > { %11443 = vrsqrt.f32 %v9200_v59  ;;  %v9197_v29 = vadd.f32 1e-05, %v9181_v12  ;;  %v9182_v45 = vmax.f32 %v9174_v1, 0.0 }
0x4e67   : > { %v9107_v7 = vpop.xlane.xlu1 %9106  ;;  %v9171_v23 = vmul.f32 %v14669_v6, %v14669_v6 }
0x4e68   : > { %11445 = vrsqrt.f32 %v9197_v29  ;;  %v9198_v60 = vadd.f32 1e-05, %v9182_v45  ;;  %v14673_v48 = vmul.f32 0.125, %v9107_v7 }
0x4e6a   : > { %11447 = vrsqrt.f32 %v9198_v60  ;;  %v9169_v46 = vmul.f32 %v14673_v48, %v14673_v48 }
0x4e6b   : > { %v9153_v61 = vpop.xlane.xlu1 %9152 }
0x4e6c   : > { %v9163_v52 = vmul.f32 0.125, %v9153_v61 }
0x4e6d   : > { %v9116_v41 = vpop.xlane.xlu0 %9115 }
0x4e6e   : > { %v11442_v9 = vpop.eup %11441  ;;  %v9179_v53 = vsub.f32 %v9163_v52, %v9171_v23  ;;  %v14679_v43 = vmul.f32 0.125, %v9116_v41 }
0x4e6f   : > { %v9215_v37 = vmul.f32 %v11442_v9, %v9191_v28  ;;  %v9147_v20 = vpop.xlane.xlu1 %9146 }
0x4e70   : > { %v11444_v49 = vpop.eup %11443  ;;  %v9187_v16 = vmax.f32 %v9179_v53, 0.0  ;;  %v9161_v2 = vmul.f32 0.125, %v9147_v20  ;;  %v9172_v14 = vmul.f32 %v14679_v43, %v14679_v43 }
0x4e71   : > { %v9255_v25 = vmul.f32 %v14626_v11, %v9215_v37  ;;  %v9216_v39 = vmul.f32 %v11444_v49, %v9192_v38  ;;  %v9110_v24 = vpop.xlane.xlu0 %9109  ;;  %v9193_v49 = vsub.f32 %v14587_v26, %v14673_v48 }
0x4e72   : > { %v11446_v19 = vpop.eup %11445  ;;  %v9203_v63 = vadd.f32 1e-05, %v9187_v16  ;;  %v9177_v35 = vsub.f32 %v9161_v2, %v9169_v46  ;;  %v9122_v4 = vmul.f32 0.125, %v9110_v24 }
0x4e73   : > { %v9295_v34 = vadd.f32 %v14651_v8, %v9255_v25  ;;  %v9256_v22 = vmul.f32 %v14629_v18, %v9216_v39  ;;  %v9213_v33 = vmul.f32 %v11446_v19, %v9189_v55  ;;  %v9196_v39 = vsub.f32 %v14605_v44, %v14679_v43  ;;  %v9331_v48 = vpop.permute.xlu1 %9330 }
0x4e74   : > { %v11448_v36 = vpop.eup %11447  ;;  %11449 = vrsqrt.f32 %v9203_v63  ;;  %v9185_v11 = vmax.f32 %v9177_v35, 0.0  ;;  %v9170_v52 = vmul.f32 %v9122_v4, %v9122_v4 }
0x4e75   : > { %vm9303_vm2 = vcmp.ge.f32.partialorder %v9295_v34, 0.0  ;;  %v9343_v0 = vmul.f32 %v14657_v42, %v9295_v34  ;;  %v9296_v59 = vadd.f32 %v14643_v21, %v9256_v22  ;;  %v9253_v12 = vmul.f32 %v14623_v56, %v9213_v33  ;;  %v9156_v8 = vpop.xlane.xlu0 %9155 }
0x4e76   : > { %v9214_v13 = vmul.f32 %v11448_v36, %v9190_v17  ;;  %v9201_v18 = vadd.f32 1e-05, %v9185_v11  ;;  %v9164_v1 = vmul.f32 0.125, %v9156_v8 }
0x4e77   : > { %v9351_v29 = vsel %vm9303_vm2, %v9295_v34, %v9343_v0  ;;  %vm9304_vm13 = vcmp.ge.f32.partialorder %v9296_v59, 0.0  ;;  %v9344_v42 = vmul.f32 %v14661_v51, %v9296_v59  ;;  %v9293_v21 = vadd.f32 %v14639_v5, %v9253_v12  ;;  %v9339_v43 = vpop.permute.xlu1 %9338 }
0x4e78   : > { %v9254_v56 = vmul.f32 %v14647_v47, %v9214_v13  ;;  %11451 = vrsqrt.f32 %v9201_v18  ;;  %v9180_v45 = vsub.f32 %v9164_v1, %v9172_v14  ;;  %9359 = vst.msk [vmem:[%s14696_s26 + $0x10] sm:$0xff] %vm14942_vm4, %v9351_v29 }
0x4e79   : > { %v9352_v7 = vsel %vm9304_vm13, %v9296_v59, %v9344_v42  ;;  %vm9301_vm6 = vcmp.ge.f32.partialorder %v9293_v21, 0.0  ;;  %v9341_v60 = vmul.f32 %v14653_v57, %v9293_v21  ;;  %v9150_v61 = vpop.xlane.xlu0 %9149  ;;  %v9195_v57 = vsub.f32 %v14577_v27, %v14669_v6 }
0x4e7a   : > { %v9294_v23 = vadd.f32 %v14641_v32, %v9254_v56  ;;  %v9188_v28 = vmax.f32 %v9180_v45, 0.0  ;;  %9360 = vst.msk [vmem:[%s14696_s26 + $0x18] sm:$0xff] %vm14943_vm12, %v9352_v7  ;;  %v9162_v5 = vmul.f32 0.125, %v9150_v61 }
0x4e7b   : > { %v9349_v51 = vsel %vm9301_vm6, %v9293_v21, %v9341_v60 }
0x4e7c   : > { %vm9302_vm15 = vcmp.ge.f32.partialorder %v9294_v23, 0.0  ;;  %v9342_v47 = vmul.f32 %v14663_v3, %v9294_v23  ;;  %v9204_v41 = vadd.f32 1e-05, %v9188_v28  ;;  %9357 = vst.msk [vmem:[%s14696_s26] sm:$0xff] %vm14944_vm7, %v9349_v51  ;;  %v9178_v9 = vsub.f32 %v9162_v5, %v9170_v52 }
0x4e7e   : > { %v11450_v53 = vpop.eup %11449  ;;  %v9350_v38 = vsel %vm9302_vm15, %v9294_v23, %v9342_v47  ;;  %11453 = vrsqrt.f32 %v9204_v41  ;;  %v9186_v32 = vmax.f32 %v9178_v9, 0.0 }
0x4e7f   : > { %9358 = vst.msk [vmem:[%s14696_s26 + $0x8] sm:$0xff] %vm14945_vm9, %v9350_v38  ;;  %v9219_v37 = vmul.f32 %v11450_v53, %v9195_v57 }
0x4e80   : > { %v9202_v20 = vadd.f32 1e-05, %v9186_v32 }
0x4e81   : > { %v9327_v46 = vpop.permute.xlu0 %9326  ;;  %v9259_v3 = vmul.f32 %v14635_v30, %v9219_v37 }
0x4e82   : > { %v11452_v16 = vpop.eup %11451  ;;  %11455 = vrsqrt.f32 %v9202_v20 }
0x4e83   : > { %v9217_v2 = vmul.f32 %v11452_v16, %v9193_v49  ;;  %v9299_v27 = vadd.f32 %v14649_v54, %v9259_v3 }
0x4e85   : > { %v9257_v6 = vmul.f32 %v14631_v31, %v9217_v2  ;;  %v9335_v55 = vpop.permute.xlu0 %9334  ;;  %vm9307_vm5 = vcmp.ge.f32.partialorder %v9299_v27, 0.0  ;;  %v9194_v31 = vsub.f32 %v14593_v40, %v9122_v4 }
0x4e86   : > { %v9347_v25 = vmul.f32 %v9335_v55, %v9299_v27 }
0x4e87   : > { %v9297_v24 = vadd.f32 %v14645_v50, %v9257_v6 }
0x4e88   : > { %v11454_v26 = vpop.eup %11453  ;;  %v9355_v30 = vsel %vm9307_vm5, %v9299_v27, %v9347_v25 }
0x4e89   : > { %v9220_v19 = vmul.f32 %v11454_v26, %v9196_v39  ;;  %vm9305_vm8 = vcmp.ge.f32.partialorder %v9297_v24, 0.0  ;;  %v9345_v63 = vmul.f32 %v9327_v46, %v9297_v24  ;;  %9363 = vst.msk [vmem:[%s14696_s26 + $0x30] sm:$0xff] %vm14946_vm10, %v9355_v30 }
0x4e8b   : > { %v9260_v54 = vmul.f32 %v14637_v62, %v9220_v19  ;;  %v9353_v35 = vsel %vm9305_vm8, %v9297_v24, %v9345_v63 }
0x4e8c   : > { %v11456_v34 = vpop.eup %11455  ;;  %9361 = vst.msk [vmem:[%s14696_s26 + $0x20] sm:$0xff] %vm14937_vm0, %v9353_v35 }
0x4e8d   : > { %v9300_v44 = vadd.f32 %v14659_v58, %v9260_v54  ;;  %v9218_v50 = vmul.f32 %v11456_v34, %v9194_v31 }
0x4e8f   : > { %vm9308_vm3 = vcmp.ge.f32.partialorder %v9300_v44, 0.0  ;;  %v9348_v22 = vmul.f32 %v9339_v43, %v9300_v44  ;;  %v9258_v33 = vmul.f32 %v14633_v10, %v9218_v50 }
0x4e91   : > { %v9356_v36 = vsel %vm9308_vm3, %v9300_v44, %v9348_v22  ;;  %v9298_v17 = vadd.f32 %v14655_v15, %v9258_v33 }
0x4e92   : > { %9364 = vst.msk [vmem:[%s14696_s26 + $0x38] sm:$0xff] %vm14947_vm11, %v9356_v36 }
0x4e93   : > { %vm9306_vm1 = vcmp.ge.f32.partialorder %v9298_v17, 0.0  ;;  %v9346_v40 = vmul.f32 %v9331_v48, %v9298_v17 }
0x4e95   : > { %v9354_v62 = vsel %vm9306_vm1, %v9298_v17, %v9346_v40 }
0x4e96   : > { %9362 = vst.msk [vmem:[%s14696_s26 + $0x28] sm:$0xff] %vm14948_vm14, %v9354_v62 }
0x4e97 PF: > { %s22_s21 = sadd.s32 1, %s11545_s21  }
0x4e98   : > { %p19_p4 = scmp.ge.s32.totalorder %s22_s21, 4  }
0x4e9a   :  { %21 = sbr.rel (!%p19_p4) target bundleno = 1 (0x1), region = 98 }

</bundles_post_ra>
